<compile_context>
chip_gen: v7x
topology: tpu7x:2x2x1
jax: 0.10.0
libtpu: 0.0.40
codegen_flags: <defaults>
</compile_context>

<pallas_src>
import math

import jax
import jax.numpy as jnp
from jax.experimental import pallas as pl
from jax.experimental.pallas import tpu as pltpu


INV_LN10 = float(1.0 / math.log(10.0))

# ----------------------------------------------------------------------------
# Model-size constants (scaled-down CRNN)
# ----------------------------------------------------------------------------
PLANES = 16          # "planes" (scaled down from 64)
HALF = PLANES // 2
HID = 32             # rnn hidden (scaled down from 256)
RTF_DIM = 8          # rtf_dim (scaled down)
NDOA = 6
NMIC = 4
FREQ = 64            # F : 5 MaxPool(2,1) -> final freq bins = 2
TIME = 8
RNN_IN = PLANES * (FREQ // 32)   # = C * Hf = 32
OUT_W = 16           # packed output lanes: [RTF_DIM | NDOA | zero pad]


# ----------------------------------------------------------------------------
# Fused Pallas kernel
# ----------------------------------------------------------------------------

def _crnn_fused_kernel(
    mag_ref, ph_ref,
    g1w_ref, g1b_ref, g2w_ref, g2b_ref,
    dmdpw_ref, dmdpb_ref, dm2w_ref, dm2b_ref, dp2w_ref, dp2b_ref,
    blkw_ref, blkb_ref,
    wih0_ref, wih1_ref, bih_ref, whh_ref, bhh_ref,
    fcw_ref, fcb_ref, rtfdp_ref,
    out_ref,
    pad_ref):
  """Entire CRNN forward for one small batch, fully VMEM-resident.

  Lane-packed layout: activation lane index = t*C + c  (t = time, c = channel).

  mag_ref/ph_ref : (N, F, T*2) f32   lane-packed raw mag / phase
  g1w/g2w        : (3, T*Cin, T*Cout) bf16  block-tridiagonal (time taps folded)
  dmdpw          : (T*4, T*16) bf16  fused layer_dm + layer_dp 1x1 convs
  dm2w/dp2w      : block-diagonal 1x1 convs (BN + conv bias folded into *b)
  blkw/blkb      : (10, 3, 128, 128) bf16 / (10, 1, 128) f32 BasicBlock convs
  wih0/wih1      : (128, T*3H) bf16  kron-expanded GRU input projection per hf
  whh/bhh        : (H, 3H) bf16 / (1, 3H) f32  GRU recurrent weights [r|z|n]
  fcw/fcb        : final Linear (+ tanh)
  rtfdp_ref      : (N, D, K) candidate RTFs, transposed for the L2 match
  out_ref        : (N, 16)  packed [tanh(fc(h_T)) | -sum(diff^2) | 0 pad]
  pad_ref        : (N, F+2, 128) f32 freq-halo conv staging scratch (reused)
  """
  n, f0, _ = mag_ref.shape
  bf16 = jnp.bfloat16
  half_l = HALF * TIME           # 64 lanes for the 8-channel front-end stages
  full_l = PLANES * TIME         # 128 lanes for the BasicBlock stages
  hid = whh_ref.shape[0]

  def conv3x3_lp(x, w3, b, act):
    """Lane-packed 3x3 conv: x (n, f, Lin) f32, w3 (3, Lin, Lout) bf16
    block-tridiagonal over time, b (1, Lout) f32 (BN folded).
    Three freq-tap matmuls accumulated in f32; freq zero-pad via halo rows."""
    nb, f, lin = x.shape
    lout = w3.shape[-1]
    # Stage inside the zero freq halo.  Both halo rows are re-zeroed every
    # call and only rows [dh, dh+f) / lanes [:lin] are ever read below, so no
    # stale-VMEM path exists regardless of how F / lane-width shrink later.
    pad_ref[:, 0:1, :lin] = jnp.zeros((nb, 1, lin), jnp.float32)
    pad_ref[:, f + 1:f + 2, :lin] = jnp.zeros((nb, 1, lin), jnp.float32)
    pad_ref[:, 1:f + 1, :lin] = x
    acc = b
    for dh in range(3):
      op = pad_ref[:, dh:dh + f, :lin].astype(bf16).reshape(nb * f, lin)
      acc = acc + jnp.dot(op, w3[dh], preferred_element_type=jnp.float32)
    y = jnp.maximum(acc, 0.0) if act == 'relu' else jax.nn.sigmoid(acc)
    return y.reshape(nb, f, lout)

  rows = n * f0
  mag_log = jnp.log(mag_ref[...] + 1e-5) * INV_LN10       # log10, (n, f, 16)
  phase = ph_ref[...]

  # --- layer_gate: conv3x3+BN+ReLU, conv3x3+BN+Sigmoid (BN folded) ---------
  g = conv3x3_lp(mag_log, g1w_ref[...], g1b_ref[...], 'relu')
  g = conv3x3_lp(g, g2w_ref[...], g2b_ref[...], 'sigmoid')
  gate = g.reshape(rows, half_l)                           # (rows, 64)

  # --- layer_dm + layer_dp first 1x1 convs fused into ONE matmul -----------
  mp = jnp.concatenate([mag_log, phase], axis=-1).reshape(rows, 4 * TIME)
  fmfp = (jnp.dot(mp.astype(bf16), dmdpw_ref[...],
                  preferred_element_type=jnp.float32) + dmdpb_ref[...])
  fm = jnp.tanh(fmfp[:, :half_l])                          # layer_dm -> tanh
  fp = fmfp[:, half_l:]                                    # layer_dp

  # layer_dm_2: 1x1 conv + BN + relu (block-diagonal matmul)
  fm2 = jnp.maximum(
      jnp.dot(fm.astype(bf16), dm2w_ref[...],
              preferred_element_type=jnp.float32) + dm2b_ref[...], 0.0)
  # layer_dp_2 on [sin|cos]: the channel concat lives in the weight layout
  fp_sc = jnp.concatenate([jnp.sin(fp), jnp.cos(fp)], axis=-1)   # (rows, 128)
  fp2 = jnp.maximum(
      jnp.dot(fp_sc.astype(bf16), dp2w_ref[...],
              preferred_element_type=jnp.float32) + dp2b_ref[...], 0.0)

  # fea halves concatenated along lanes; block-0 conv1 weight rows were
  # pre-permuted on the host so no in-kernel channel interleave is needed.
  fea = jnp.concatenate([fm2 * gate, fp2 * gate],
                        axis=-1).reshape(n, f0, full_l)

  # --- layer1..layer5: BasicBlock(use_res=False) + MaxPool((2,1)) ---------
  f = f0
  for bi in range(5):
    h1 = conv3x3_lp(fea, blkw_ref[2 * bi], blkb_ref[2 * bi], 'relu')
    h2 = conv3x3_lp(h1, blkw_ref[2 * bi + 1], blkb_ref[2 * bi + 1], 'relu')
    f = f // 2
    h2 = h2.reshape(n, f, 2, full_l)
    fea = jnp.maximum(h2[:, :, 0, :], h2[:, :, 1, :])      # freq maxpool

  # --- GRU (batch_first, last step) + Linear + tanh ------------------------
  # Input projection for ALL timesteps in two lane-packed matmuls; the
  # c*Hf + hf feature ordering of PyTorch's view/permute is baked into the
  # host-built kron weights, so no in-kernel transpose is needed.
  gi_all = (jnp.dot(fea[:, 0, :].astype(bf16), wih0_ref[...],
                    preferred_element_type=jnp.float32)
            + jnp.dot(fea[:, 1, :].astype(bf16), wih1_ref[...],
                      preferred_element_type=jnp.float32)
            + bih_ref[...])                                # (n, T*3H)
  whh = whh_ref[...]
  bhh = bhh_ref[...]
  h = jnp.zeros((n, hid), jnp.float32)
  for t in range(TIME):                                    # unrolled T=8
    gi = gi_all[:, t * 3 * hid:(t + 1) * 3 * hid]
    gh = jnp.dot(h.astype(bf16), whh, preferred_element_type=jnp.float32) + bhh
    r = jax.nn.sigmoid(gi[:, :hid] + gh[:, :hid])
    z = jax.nn.sigmoid(gi[:, hid:2 * hid] + gh[:, hid:2 * hid])
    nn_ = jnp.tanh(gi[:, 2 * hid:] + r * gh[:, 2 * hid:])
    h = (1.0 - z) * nn_ + z * h

  out_rtf = jnp.tanh(
      jnp.dot(h.astype(bf16), fcw_ref[...],
              preferred_element_type=jnp.float32) + fcb_ref[...])   # (n, K)

  # --- CIPIC 'rtf' head, match_flag='l2', fused epilogue -------------------
  diff = rtfdp_ref[...] - out_rtf[:, None, :]              # (n, D, K)
  hot = -jnp.sum(diff * diff, axis=-1)                     # (n, D)

  k = out_rtf.shape[-1]
  d = hot.shape[-1]
  out_ref[...] = jnp.concatenate(
      [out_rtf, hot,
       jnp.zeros((n, out_ref.shape[-1] - k - d), jnp.float32)], axis=-1)


# ----------------------------------------------------------------------------
# JAX glue
# ----------------------------------------------------------------------------

def crnn_forward(data, q):
  """data: (N, 5, F, T) NCHW [mag0, mag1, phase0, phase1, mic_label]."""
  n, _, f0, t = data.shape
  # lane-packed inputs: lane = t*2 + c
  mag_lp = jnp.transpose(data[:, 0:2], (0, 2, 3, 1)).reshape(n, f0, 2 * t)
  ph_lp = jnp.transpose(data[:, 2:4], (0, 2, 3, 1)).reshape(n, f0, 2 * t)
  mic_label = data[:, -1, 0, 0]                            # (N,)
  rtf_dim = q['fc_w'].shape[-1]

  # CIPIC mic one-hot selection (mic_idx_est=None) -> per-sample rtf_dp table
  eq = (mic_label[:, None] == q['mic_idx_set'][0][None, :]).astype(jnp.float32)
  rtf_dp = jnp.einsum('kdm,bm->bkd', q['rtf_dp_set'], eq)  # (N, K, D)
  rtf_dp_t = jnp.transpose(rtf_dp, (0, 2, 1))              # (N, D, K)
  ndoa = rtf_dp.shape[2]

  packed = pl.pallas_call(
      _crnn_fused_kernel,
      out_shape=jax.ShapeDtypeStruct((n, OUT_W), jnp.float32),
      scratch_shapes=[pltpu.VMEM((n, f0 + 2, PLANES * TIME), jnp.float32)],
      compiler_params=pltpu.CompilerParams(
          vmem_limit_bytes=8 * 1024 * 1024),
  )(mag_lp, ph_lp,
    q['gate_w1'], q['gate_b1'], q['gate_w2'], q['gate_b2'],
    q['dmdp_w'], q['dmdp_b'], q['dm2_w'], q['dm2_b'], q['dp2_w'], q['dp2_b'],
    q['blk_w'], q['blk_b'],
    q['gru_wih0'], q['gru_wih1'], q['gru_bih'], q['gru_whh'], q['gru_bhh'],
    q['fc_w'], q['fc_b'], rtf_dp_t)

  out_rtf = packed[:, :rtf_dim]
  out_onehot = packed[:, rtf_dim:rtf_dim + ndoa]
  return out_onehot, out_rtf[:, :, None], rtf_dp


# ----------------------------------------------------------------------------
# Parameter preparation: fold BN (+ conv1x1 biases), expand conv weights to
# lane-packed block-(tri)diagonal matrices, cast matmul weights to bf16,
# concatenate GRU gates and kron-expand the GRU input projection.
# ----------------------------------------------------------------------------

def prepare_params(p):
  bf16 = jnp.bfloat16
  T = TIME
  eye = jnp.eye(T, dtype=jnp.float32)
  s_up = jnp.eye(T, k=1, dtype=jnp.float32)    # time tap dw=0 (t_in = t_out-1)
  s_dn = jnp.eye(T, k=-1, dtype=jnp.float32)   # time tap dw=2 (t_in = t_out+1)
  taps = (s_up, eye, s_dn)

  def tridiag(w9, scale=None):                 # w9: (9, cin, cout)
    if scale is not None:
      w9 = w9 * scale[None, None, :]
    mats = []
    for dh in range(3):
      m = sum(jnp.kron(taps[dw], w9[3 * dh + dw]) for dw in range(3))
      mats.append(m)
    return jnp.stack(mats).astype(bf16)        # (3, T*cin, T*cout)

  def blockdiag(w, scale=None):                # w: (cin, cout)
    if scale is not None:
      w = w * scale[None, :]
    return jnp.kron(eye, w)

  def lane_bias(b):                            # per-channel -> per (t, c) lane
    return jnp.tile(b, T)[None, :]

  q = {}

  # layer_gate (conv3x3 bias-free, BN folded)
  q['gate_w1'] = tridiag(p['gate_w1'], p['gate_s1'])       # (3, 16, 64)
  q['gate_b1'] = lane_bias(p['gate_b1'])
  q['gate_w2'] = tridiag(p['gate_w2'], p['gate_s2'])       # (3, 64, 64)
  q['gate_b2'] = lane_bias(p['gate_b2'])

  # layer_dm + layer_dp first 1x1 convs fused: (32, 128) block weight
  k_dm = blockdiag(p['dm_w'][0])                           # (16, 64)
  k_dp = blockdiag(p['dp_w'][0])                           # (16, 64)
  z16 = jnp.zeros((2 * T, HALF * T), jnp.float32)
  q['dmdp_w'] = jnp.concatenate(
      [jnp.concatenate([k_dm, z16], axis=1),
       jnp.concatenate([z16, k_dp], axis=1)], axis=0).astype(bf16)   # (32, 128)
  q['dmdp_b'] = jnp.concatenate(
      [jnp.tile(p['dm_cb'], T), jnp.tile(p['dp_cb'], T)])[None, :]   # (1, 128)

  # layer_dm_2 (conv1x1 bias + BN folded)
  q['dm2_w'] = blockdiag(p['dm2_w'][0], p['dm2_s']).astype(bf16)     # (64, 64)
  q['dm2_b'] = lane_bias(p['dm2_s'] * p['dm2_cb'] + p['dm2_b'])
  # layer_dp_2: input channels 0..7 = sin, 8..15 = cos; the lane concat of
  # [sin | cos] halves is handled by stacking the two block-diagonal halves.
  wdp2 = p['dp2_w'][0] * p['dp2_s'][None, :]                         # (16, 8)
  q['dp2_w'] = jnp.concatenate(
      [jnp.kron(eye, wdp2[:HALF]), jnp.kron(eye, wdp2[HALF:])],
      axis=0).astype(bf16)                                           # (128, 64)
  q['dp2_b'] = lane_bias(p['dp2_s'] * p['dp2_cb'] + p['dp2_b'])

  # BasicBlocks: block-tridiagonal (3, 128, 128) weights, BN folded.
  # Block-0 conv1 input lanes are [fm2*gate | fp2*gate] halves (lane =
  # half*64 + t*8 + c, channel = half*8 + c): permute its weight rows so the
  # kernel needs no channel interleave.
  half_i = jnp.arange(2)[:, None, None]
  t_i = jnp.arange(T)[None, :, None]
  c_i = jnp.arange(HALF)[None, None, :]
  perm0 = (t_i * PLANES + half_i * HALF + c_i).reshape(-1)           # (128,)
  blk_w, blk_b = [], []
  for bi, blk in enumerate(p['blocks']):
    w1 = tridiag(blk['w1'], blk['s1'])
    if bi == 0:
      w1 = w1[:, perm0, :]
    blk_w.append(w1)
    blk_b.append(lane_bias(blk['b1']))
    blk_w.append(tridiag(blk['w2'], blk['s2']))
    blk_b.append(lane_bias(blk['b2']))
  q['blk_w'] = jnp.stack(blk_w)                # (10, 3, 128, 128) bf16
  q['blk_b'] = jnp.stack(blk_b)                # (10, 1, 128) f32

  # GRU: concat gates [r|z|n] along outputs.  PyTorch feeds the GRU features
  # in c*Hf + hf order (view(N, C*Hf, T).permute(0,2,1)); kron-expand the
  # input weights per hf so gi for all timesteps is two lane-packed matmuls.
  wih = jnp.concatenate([p['gru_wih'][g] for g in range(3)], axis=-1)  # (32, 3H)
  q['gru_wih0'] = jnp.kron(eye, wih[0::2, :]).astype(bf16)   # (128, T*3H)
  q['gru_wih1'] = jnp.kron(eye, wih[1::2, :]).astype(bf16)
  bih = jnp.concatenate([p['gru_bih'][g] for g in range(3)], axis=-1)  # (1, 3H)
  q['gru_bih'] = jnp.tile(bih, (1, T))                       # (1, T*3H)
  q['gru_whh'] = jnp.concatenate(
      [p['gru_whh'][g] for g in range(3)], axis=-1).astype(bf16)       # (H, 3H)
  q['gru_bhh'] = jnp.concatenate([p['gru_bhh'][g] for g in range(3)], axis=-1)

  q['fc_w'] = p['fc_w'].astype(bf16)
  q['fc_b'] = p['fc_b']
  q['rtf_dp_set'] = p['rtf_dp_set']
  q['mic_idx_set'] = p['mic_idx_set']
  return q


# ----------------------------------------------------------------------------
# Deterministic synthetic parameters
# ----------------------------------------------------------------------------

def _bn_fold(key, c):
  k1, k2, k3, k4 = jax.random.split(key, 4)
  gamma = 1.0 + 0.1 * jax.random.normal(k1, (c,), jnp.float32)
  beta = 0.1 * jax.random.normal(k2, (c,), jnp.float32)
  mean = 0.1 * jax.random.normal(k3, (c,), jnp.float32)
  var = jax.random.uniform(k4, (c,), jnp.float32, minval=0.5, maxval=1.5)
  scale = gamma / jnp.sqrt(var + 1e-5)   # eval-mode BatchNorm folded
  bias = beta - mean * scale
  return scale, bias


def init_params(key):
  keys = iter(jax.random.split(key, 64))
  nk = lambda: next(keys)
  w = lambda shape, s=0.1: (s * jax.random.normal(nk(), shape, jnp.float32))

  params = {
      # layer_gate: conv3x3(2->8)+BN+ReLU, conv3x3(8->8)+BN+Sigmoid (bias=False)
      'gate_w1': w((9, 2, HALF)), 'gate_w2': w((9, HALF, HALF)),
      # layer_dm / layer_dm_2 (conv1x1, bias=True)
      'dm_w': w((1, 2, HALF)), 'dm_cb': w((HALF,)),
      'dm2_w': w((1, HALF, HALF)), 'dm2_cb': w((HALF,)),
      # layer_dp / layer_dp_2 (conv1x1, bias=True)
      'dp_w': w((1, 2, HALF)), 'dp_cb': w((HALF,)),
      'dp2_w': w((1, PLANES, HALF)), 'dp2_cb': w((HALF,)),
      # GRU (gate order r, z, n) + fc
      'gru_wih': w((3, RNN_IN, HID)), 'gru_whh': w((3, HID, HID)),
      'gru_bih': w((3, 1, HID)), 'gru_bhh': w((3, 1, HID)),
      'fc_w': w((HID, RTF_DIM)), 'fc_b': w((1, RTF_DIM)),
      # synthesized stand-ins for the .mat-loaded tables
      'rtf_dp_set': w((RTF_DIM, NDOA, NMIC), 1.0),
      'mic_idx_set': jnp.arange(NMIC, dtype=jnp.float32)[None, :],
  }
  params['gate_s1'], params['gate_b1'] = _bn_fold(nk(), HALF)
  params['gate_s2'], params['gate_b2'] = _bn_fold(nk(), HALF)
  params['dm2_s'], params['dm2_b'] = _bn_fold(nk(), HALF)
  params['dp2_s'], params['dp2_b'] = _bn_fold(nk(), HALF)

  blocks = []
  for _ in range(5):   # layer1..layer5 BasicBlocks (use_res=False)
    blk = {'w1': w((9, PLANES, PLANES)), 'w2': w((9, PLANES, PLANES))}
    blk['s1'], blk['b1'] = _bn_fold(nk(), PLANES)
    blk['s2'], blk['b2'] = _bn_fold(nk(), PLANES)
    blocks.append(blk)
  params['blocks'] = blocks
  return params


# ----------------------------------------------------------------------------
# Main
# ----------------------------------------------------------------------------

if __name__ == "__main__":
  key = jax.random.PRNGKey(0)
  kp, kd1, kd2 = jax.random.split(key, 3)
  params = init_params(kp)
  q = prepare_params(params)

  N = 2
  mag = jnp.abs(jax.random.normal(kd1, (N, 2, FREQ, TIME), jnp.float32)) + 1e-3
  phase = jax.random.uniform(kd2, (N, 2, FREQ, TIME), jnp.float32,
                             minval=-3.14159, maxval=3.14159)
  mic = jnp.broadcast_to(
      jnp.array([1.0, 3.0], jnp.float32)[:, None, None, None],
      (N, 1, FREQ, TIME))
  data = jnp.concatenate([mag, phase, mic], axis=1)   # (N, 5, F, T) NCHW

  fwd = jax.jit(crnn_forward)
  out_onehot, out_rtf, rtf_dp = fwd(data, q)
  jax.block_until_ready((out_onehot, out_rtf, rtf_dp))

  assert out_onehot.shape == (N, NDOA)
  assert out_rtf.shape == (N, RTF_DIM, 1)
  assert rtf_dp.shape == (N, RTF_DIM, NDOA)
  assert bool(jnp.all(jnp.isfinite(out_onehot)))
  assert bool(jnp.all(jnp.isfinite(out_rtf)))
  # TODO(synk): GRU dropout=0.4 is a no-op for num_layers=1 / inference; omitted.
  print("KERNEL_OK")
</pallas_src>

<mosaic_0001>
module attributes {stable_mosaic.version = 11 : i64} {
  func.func @_crnn_fused_kernel(%arg0: memref<2x64x16xf32, #tpu.memory_space<vmem>>, %arg1: memref<2x64x16xf32, #tpu.memory_space<vmem>>, %arg2: memref<3x16x64xbf16, #tpu.memory_space<vmem>>, %arg3: memref<1x64xf32, #tpu.memory_space<vmem>>, %arg4: memref<3x64x64xbf16, #tpu.memory_space<vmem>>, %arg5: memref<1x64xf32, #tpu.memory_space<vmem>>, %arg6: memref<32x128xbf16, #tpu.memory_space<vmem>>, %arg7: memref<1x128xf32, #tpu.memory_space<vmem>>, %arg8: memref<64x64xbf16, #tpu.memory_space<vmem>>, %arg9: memref<1x64xf32, #tpu.memory_space<vmem>>, %arg10: memref<128x64xbf16, #tpu.memory_space<vmem>>, %arg11: memref<1x64xf32, #tpu.memory_space<vmem>>, %arg12: memref<10x3x128x128xbf16, #tpu.memory_space<vmem>>, %arg13: memref<10x1x128xf32, #tpu.memory_space<vmem>>, %arg14: memref<128x768xbf16, #tpu.memory_space<vmem>>, %arg15: memref<128x768xbf16, #tpu.memory_space<vmem>>, %arg16: memref<1x768xf32, #tpu.memory_space<vmem>>, %arg17: memref<32x96xbf16, #tpu.memory_space<vmem>>, %arg18: memref<1x96xf32, #tpu.memory_space<vmem>>, %arg19: memref<32x8xbf16, #tpu.memory_space<vmem>>, %arg20: memref<1x8xf32, #tpu.memory_space<vmem>>, %arg21: memref<2x6x8xf32, #tpu.memory_space<vmem>>, %arg22: memref<2x16xf32, #tpu.memory_space<vmem>>, %arg23: memref<2x66x128xf32, #tpu.memory_space<vmem>>) attributes {dimension_semantics = [], scalar_prefetch = 0 : i64, scratch_operands = 1 : i64, tpu.core_type = #tpu.core_type<tc>} {
    %c0 = arith.constant 0 : index
    %c0_0 = arith.constant 0 : index
    %c0_1 = arith.constant 0 : index
    %0 = vector.load %arg0[%c0, %c0_0, %c0_1] : memref<2x64x16xf32, #tpu.memory_space<vmem>>, vector<2x64x16xf32>
    %cst = arith.constant 9.99999974E-6 : f32
    %1 = vector.broadcast %cst : f32 to vector<2x64x16xf32>
    %2 = arith.addf %0, %1 : vector<2x64x16xf32>
    %3 = math.log %2 : vector<2x64x16xf32>
    %cst_2 = arith.constant 0.434294492 : f32
    %4 = vector.broadcast %cst_2 : f32 to vector<2x64x16xf32>
    %5 = arith.mulf %3, %4 : vector<2x64x16xf32>
    %c0_3 = arith.constant 0 : index
    %c0_4 = arith.constant 0 : index
    %c0_5 = arith.constant 0 : index
    %6 = vector.load %arg1[%c0_3, %c0_4, %c0_5] : memref<2x64x16xf32, #tpu.memory_space<vmem>>, vector<2x64x16xf32>
    %c0_6 = arith.constant 0 : index
    %c0_7 = arith.constant 0 : index
    %c0_8 = arith.constant 0 : index
    %7 = vector.load %arg2[%c0_6, %c0_7, %c0_8] : memref<3x16x64xbf16, #tpu.memory_space<vmem>>, vector<3x16x64xbf16>
    %c0_9 = arith.constant 0 : index
    %c0_10 = arith.constant 0 : index
    %8 = vector.load %arg3[%c0_9, %c0_10] : memref<1x64xf32, #tpu.memory_space<vmem>>, vector<1x64xf32>
    %cst_11 = arith.constant 0.000000e+00 : f32
    %9 = vector.broadcast %cst_11 : f32 to vector<2x1x16xf32>
    %c0_12 = arith.constant 0 : index
    %c0_13 = arith.constant 0 : index
    %c0_14 = arith.constant 0 : index
    %10 = vector.load %arg23[%c0_12, %c0_13, %c0_14] : memref<2x66x128xf32, #tpu.memory_space<vmem>>, vector<2x1x16xf32>
    tpu.vector_store %arg23[%c0_12, %c0_13, %c0_14], %9 {strides = array<i32>} : memref<2x66x128xf32, #tpu.memory_space<vmem>>, vector<2x1x16xf32>,
    %cst_15 = arith.constant 0.000000e+00 : f32
    %11 = vector.broadcast %cst_15 : f32 to vector<2x1x16xf32>
    %c0_16 = arith.constant 0 : index
    %c65 = arith.constant 65 : index
    %c0_17 = arith.constant 0 : index
    %12 = vector.load %arg23[%c0_16, %c65, %c0_17] : memref<2x66x128xf32, #tpu.memory_space<vmem>>, vector<2x1x16xf32>
    tpu.vector_store %arg23[%c0_16, %c65, %c0_17], %11 {strides = array<i32>} : memref<2x66x128xf32, #tpu.memory_space<vmem>>, vector<2x1x16xf32>,
    %c0_18 = arith.constant 0 : index
    %c1 = arith.constant 1 : index
    %c0_19 = arith.constant 0 : index
    %13 = vector.load %arg23[%c0_18, %c1, %c0_19] : memref<2x66x128xf32, #tpu.memory_space<vmem>>, vector<2x64x16xf32>
    tpu.vector_store %arg23[%c0_18, %c1, %c0_19], %5 {strides = array<i32>} : memref<2x66x128xf32, #tpu.memory_space<vmem>>, vector<2x64x16xf32>,
    %c0_20 = arith.constant 0 : index
    %c0_21 = arith.constant 0 : index
    %c0_22 = arith.constant 0 : index
    %14 = vector.load %arg23[%c0_20, %c0_21, %c0_22] : memref<2x66x128xf32, #tpu.memory_space<vmem>>, vector<2x64x16xf32>
    %15 = arith.truncf %14 : vector<2x64x16xf32> to vector<2x64x16xbf16>
    %16 = vector.shape_cast %15 : vector<2x64x16xbf16> to vector<128x16xbf16>
    %17 = vector.extract_strided_slice %7 {offsets = [0, 0, 0], sizes = [1, 16, 64], strides = [1, 1, 1]} : vector<3x16x64xbf16> to vector<1x16x64xbf16>
    %18 = vector.shape_cast %17 : vector<1x16x64xbf16> to vector<16x64xbf16>
    %cst_23 = arith.constant dense<0.000000e+00> : vector<128x64xf32>
    %19 = tpu.matmul %16, %18, %cst_23 {dimension_numbers = #tpu.dot_dimension_numbers<[1], [0], [0], [1], [0, 0, 1, 1], [], []>} : vector<128x16xbf16>, vector<16x64xbf16>, vector<128x64xf32> -> vector<128x64xf32>
    %20 = vector.broadcast %8 : vector<1x64xf32> to vector<128x64xf32>
    %21 = arith.addf %20, %19 : vector<128x64xf32>
    %c0_24 = arith.constant 0 : index
    %c1_25 = arith.constant 1 : index
    %c0_26 = arith.constant 0 : index
    %22 = vector.load %arg23[%c0_24, %c1_25, %c0_26] : memref<2x66x128xf32, #tpu.memory_space<vmem>>, vector<2x64x16xf32>
    %23 = arith.truncf %22 : vector<2x64x16xf32> to vector<2x64x16xbf16>
    %24 = vector.shape_cast %23 : vector<2x64x16xbf16> to vector<128x16xbf16>
    %25 = vector.extract_strided_slice %7 {offsets = [1, 0, 0], sizes = [1, 16, 64], strides = [1, 1, 1]} : vector<3x16x64xbf16> to vector<1x16x64xbf16>
    %26 = vector.shape_cast %25 : vector<1x16x64xbf16> to vector<16x64xbf16>
    %cst_27 = arith.constant dense<0.000000e+00> : vector<128x64xf32>
    %27 = tpu.matmul %24, %26, %cst_27 {dimension_numbers = #tpu.dot_dimension_numbers<[1], [0], [0], [1], [0, 0, 1, 1], [], []>} : vector<128x16xbf16>, vector<16x64xbf16>, vector<128x64xf32> -> vector<128x64xf32>
    %28 = arith.addf %21, %27 : vector<128x64xf32>
    %c0_28 = arith.constant 0 : index
    %c2 = arith.constant 2 : index
    %c0_29 = arith.constant 0 : index
    %29 = vector.load %arg23[%c0_28, %c2, %c0_29] : memref<2x66x128xf32, #tpu.memory_space<vmem>>, vector<2x64x16xf32>
    %30 = arith.truncf %29 : vector<2x64x16xf32> to vector<2x64x16xbf16>
    %31 = vector.shape_cast %30 : vector<2x64x16xbf16> to vector<128x16xbf16>
    %32 = vector.extract_strided_slice %7 {offsets = [2, 0, 0], sizes = [1, 16, 64], strides = [1, 1, 1]} : vector<3x16x64xbf16> to vector<1x16x64xbf16>
    %33 = vector.shape_cast %32 : vector<1x16x64xbf16> to vector<16x64xbf16>
    %cst_30 = arith.constant dense<0.000000e+00> : vector<128x64xf32>
    %34 = tpu.matmul %31, %33, %cst_30 {dimension_numbers = #tpu.dot_dimension_numbers<[1], [0], [0], [1], [0, 0, 1, 1], [], []>} : vector<128x16xbf16>, vector<16x64xbf16>, vector<128x64xf32> -> vector<128x64xf32>
    %35 = arith.addf %28, %34 : vector<128x64xf32>
    %cst_31 = arith.constant 0.000000e+00 : f32
    %36 = vector.broadcast %cst_31 : f32 to vector<128x64xf32>
    %37 = arith.maximumf %35, %36 : vector<128x64xf32>
    %38 = vector.shape_cast %37 : vector<128x64xf32> to vector<2x64x64xf32>
    %c0_32 = arith.constant 0 : index
    %c0_33 = arith.constant 0 : index
    %c0_34 = arith.constant 0 : index
    %39 = vector.load %arg4[%c0_32, %c0_33, %c0_34] : memref<3x64x64xbf16, #tpu.memory_space<vmem>>, vector<3x64x64xbf16>
    %c0_35 = arith.constant 0 : index
    %c0_36 = arith.constant 0 : index
    %40 = vector.load %arg5[%c0_35, %c0_36] : memref<1x64xf32, #tpu.memory_space<vmem>>, vector<1x64xf32>
    %cst_37 = arith.constant 0.000000e+00 : f32
    %41 = vector.broadcast %cst_37 : f32 to vector<2x1x64xf32>
    %c0_38 = arith.constant 0 : index
    %c0_39 = arith.constant 0 : index
    %c0_40 = arith.constant 0 : index
    %42 = vector.load %arg23[%c0_38, %c0_39, %c0_40] : memref<2x66x128xf32, #tpu.memory_space<vmem>>, vector<2x1x64xf32>
    tpu.vector_store %arg23[%c0_38, %c0_39, %c0_40], %41 {strides = array<i32>} : memref<2x66x128xf32, #tpu.memory_space<vmem>>, vector<2x1x64xf32>,
    %cst_41 = arith.constant 0.000000e+00 : f32
    %43 = vector.broadcast %cst_41 : f32 to vector<2x1x64xf32>
    %c0_42 = arith.constant 0 : index
    %c65_43 = arith.constant 65 : index
    %c0_44 = arith.constant 0 : index
    %44 = vector.load %arg23[%c0_42, %c65_43, %c0_44] : memref<2x66x128xf32, #tpu.memory_space<vmem>>, vector<2x1x64xf32>
    tpu.vector_store %arg23[%c0_42, %c65_43, %c0_44], %43 {strides = array<i32>} : memref<2x66x128xf32, #tpu.memory_space<vmem>>, vector<2x1x64xf32>,
    %c0_45 = arith.constant 0 : index
    %c1_46 = arith.constant 1 : index
    %c0_47 = arith.constant 0 : index
    %45 = vector.load %arg23[%c0_45, %c1_46, %c0_47] : memref<2x66x128xf32, #tpu.memory_space<vmem>>, vector<2x64x64xf32>
    tpu.vector_store %arg23[%c0_45, %c1_46, %c0_47], %38 {strides = array<i32>} : memref<2x66x128xf32, #tpu.memory_space<vmem>>, vector<2x64x64xf32>,
    %c0_48 = arith.constant 0 : index
    %c0_49 = arith.constant 0 : index
    %c0_50 = arith.constant 0 : index
    %46 = vector.load %arg23[%c0_48, %c0_49, %c0_50] : memref<2x66x128xf32, #tpu.memory_space<vmem>>, vector<2x64x64xf32>
    %47 = arith.truncf %46 : vector<2x64x64xf32> to vector<2x64x64xbf16>
    %48 = vector.shape_cast %47 : vector<2x64x64xbf16> to vector<128x64xbf16>
    %49 = vector.extract_strided_slice %39 {offsets = [0, 0, 0], sizes = [1, 64, 64], strides = [1, 1, 1]} : vector<3x64x64xbf16> to vector<1x64x64xbf16>
    %50 = vector.shape_cast %49 : vector<1x64x64xbf16> to vector<64x64xbf16>
    %cst_51 = arith.constant dense<0.000000e+00> : vector<128x64xf32>
    %51 = tpu.matmul %48, %50, %cst_51 {dimension_numbers = #tpu.dot_dimension_numbers<[1], [0], [0], [1], [0, 0, 1, 1], [], []>} : vector<128x64xbf16>, vector<64x64xbf16>, vector<128x64xf32> -> vector<128x64xf32>
    %52 = vector.broadcast %40 : vector<1x64xf32> to vector<128x64xf32>
    %53 = arith.addf %52, %51 : vector<128x64xf32>
    %c0_52 = arith.constant 0 : index
    %c1_53 = arith.constant 1 : index
    %c0_54 = arith.constant 0 : index
    %54 = vector.load %arg23[%c0_52, %c1_53, %c0_54] : memref<2x66x128xf32, #tpu.memory_space<vmem>>, vector<2x64x64xf32>
    %55 = arith.truncf %54 : vector<2x64x64xf32> to vector<2x64x64xbf16>
    %56 = vector.shape_cast %55 : vector<2x64x64xbf16> to vector<128x64xbf16>
    %57 = vector.extract_strided_slice %39 {offsets = [1, 0, 0], sizes = [1, 64, 64], strides = [1, 1, 1]} : vector<3x64x64xbf16> to vector<1x64x64xbf16>
    %58 = vector.shape_cast %57 : vector<1x64x64xbf16> to vector<64x64xbf16>
    %cst_55 = arith.constant dense<0.000000e+00> : vector<128x64xf32>
    %59 = tpu.matmul %56, %58, %cst_55 {dimension_numbers = #tpu.dot_dimension_numbers<[1], [0], [0], [1], [0, 0, 1, 1], [], []>} : vector<128x64xbf16>, vector<64x64xbf16>, vector<128x64xf32> -> vector<128x64xf32>
    %60 = arith.addf %53, %59 : vector<128x64xf32>
    %c0_56 = arith.constant 0 : index
    %c2_57 = arith.constant 2 : index
    %c0_58 = arith.constant 0 : index
    %61 = vector.load %arg23[%c0_56, %c2_57, %c0_58] : memref<2x66x128xf32, #tpu.memory_space<vmem>>, vector<2x64x64xf32>
    %62 = arith.truncf %61 : vector<2x64x64xf32> to vector<2x64x64xbf16>
    %63 = vector.shape_cast %62 : vector<2x64x64xbf16> to vector<128x64xbf16>
    %64 = vector.extract_strided_slice %39 {offsets = [2, 0, 0], sizes = [1, 64, 64], strides = [1, 1, 1]} : vector<3x64x64xbf16> to vector<1x64x64xbf16>
    %65 = vector.shape_cast %64 : vector<1x64x64xbf16> to vector<64x64xbf16>
    %cst_59 = arith.constant dense<0.000000e+00> : vector<128x64xf32>
    %66 = tpu.matmul %63, %65, %cst_59 {dimension_numbers = #tpu.dot_dimension_numbers<[1], [0], [0], [1], [0, 0, 1, 1], [], []>} : vector<128x64xbf16>, vector<64x64xbf16>, vector<128x64xf32> -> vector<128x64xf32>
    %67 = arith.addf %60, %66 : vector<128x64xf32>
    %68 = arith.negf %67 : vector<128x64xf32>
    %69 = math.exp %68 : vector<128x64xf32>
    %cst_60 = arith.constant 1.000000e+00 : f32
    %70 = vector.broadcast %cst_60 : f32 to vector<128x64xf32>
    %71 = arith.addf %70, %69 : vector<128x64xf32>
    %72 = arith.divf %70, %71 : vector<128x64xf32>
    %73 = vector.shape_cast %72 : vector<128x64xf32> to vector<2x64x64xf32>
    %74 = vector.shape_cast %73 : vector<2x64x64xf32> to vector<128x64xf32>
    %75 = tpu.concatenate %5, %6 in 2 : vector<2x64x16xf32>, vector<2x64x16xf32> -> vector<2x64x32xf32>
    %76 = vector.shape_cast %75 : vector<2x64x32xf32> to vector<128x32xf32>
    %77 = arith.truncf %76 : vector<128x32xf32> to vector<128x32xbf16>
    %c0_61 = arith.constant 0 : index
    %c0_62 = arith.constant 0 : index
    %78 = vector.load %arg6[%c0_61, %c0_62] : memref<32x128xbf16, #tpu.memory_space<vmem>>, vector<32x128xbf16>
    %cst_63 = arith.constant dense<0.000000e+00> : vector<128x128xf32>
    %79 = tpu.matmul %77, %78, %cst_63 {dimension_numbers = #tpu.dot_dimension_numbers<[1], [0], [0], [1], [0, 0, 1, 1], [], []>} : vector<128x32xbf16>, vector<32x128xbf16>, vector<128x128xf32> -> vector<128x128xf32>
    %c0_64 = arith.constant 0 : index
    %c0_65 = arith.constant 0 : index
    %80 = vector.load %arg7[%c0_64, %c0_65] : memref<1x128xf32, #tpu.memory_space<vmem>>, vector<1x128xf32>
    %81 = vector.broadcast %80 : vector<1x128xf32> to vector<128x128xf32>
    %82 = arith.addf %79, %81 : vector<128x128xf32>
    %83 = vector.extract_strided_slice %82 {offsets = [0, 0], sizes = [128, 64], strides = [1, 1]} : vector<128x128xf32> to vector<128x64xf32>
    %84 = math.tanh %83 : vector<128x64xf32>
    %85 = vector.extract_strided_slice %82 {offsets = [0, 64], sizes = [128, 64], strides = [1, 1]} : vector<128x128xf32> to vector<128x64xf32>
    %86 = arith.truncf %84 : vector<128x64xf32> to vector<128x64xbf16>
    %c0_66 = arith.constant 0 : index
    %c0_67 = arith.constant 0 : index
    %87 = vector.load %arg8[%c0_66, %c0_67] : memref<64x64xbf16, #tpu.memory_space<vmem>>, vector<64x64xbf16>
    %cst_68 = arith.constant dense<0.000000e+00> : vector<128x64xf32>
    %88 = tpu.matmul %86, %87, %cst_68 {dimension_numbers = #tpu.dot_dimension_numbers<[1], [0], [0], [1], [0, 0, 1, 1], [], []>} : vector<128x64xbf16>, vector<64x64xbf16>, vector<128x64xf32> -> vector<128x64xf32>
    %c0_69 = arith.constant 0 : index
    %c0_70 = arith.constant 0 : index
    %89 = vector.load %arg9[%c0_69, %c0_70] : memref<1x64xf32, #tpu.memory_space<vmem>>, vector<1x64xf32>
    %90 = vector.broadcast %89 : vector<1x64xf32> to vector<128x64xf32>
    %91 = arith.addf %88, %90 : vector<128x64xf32>
    %cst_71 = arith.constant 0.000000e+00 : f32
    %92 = vector.broadcast %cst_71 : f32 to vector<128x64xf32>
    %93 = arith.maximumf %91, %92 : vector<128x64xf32>
    %94 = math.sin %85 : vector<128x64xf32>
    %95 = math.cos %85 : vector<128x64xf32>
    %96 = tpu.concatenate %94, %95 in 1 : vector<128x64xf32>, vector<128x64xf32> -> vector<128x128xf32>
    %97 = arith.truncf %96 : vector<128x128xf32> to vector<128x128xbf16>
    %c0_72 = arith.constant 0 : index
    %c0_73 = arith.constant 0 : index
    %98 = vector.load %arg10[%c0_72, %c0_73] : memref<128x64xbf16, #tpu.memory_space<vmem>>, vector<128x64xbf16>
    %cst_74 = arith.constant dense<0.000000e+00> : vector<128x64xf32>
    %99 = tpu.matmul %97, %98, %cst_74 {dimension_numbers = #tpu.dot_dimension_numbers<[1], [0], [0], [1], [0, 0, 1, 1], [], []>} : vector<128x128xbf16>, vector<128x64xbf16>, vector<128x64xf32> -> vector<128x64xf32>
    %c0_75 = arith.constant 0 : index
    %c0_76 = arith.constant 0 : index
    %100 = vector.load %arg11[%c0_75, %c0_76] : memref<1x64xf32, #tpu.memory_space<vmem>>, vector<1x64xf32>
    %101 = vector.broadcast %100 : vector<1x64xf32> to vector<128x64xf32>
    %102 = arith.addf %99, %101 : vector<128x64xf32>
    %cst_77 = arith.constant 0.000000e+00 : f32
    %103 = vector.broadcast %cst_77 : f32 to vector<128x64xf32>
    %104 = arith.maximumf %102, %103 : vector<128x64xf32>
    %105 = arith.mulf %93, %74 : vector<128x64xf32>
    %106 = arith.mulf %104, %74 : vector<128x64xf32>
    %107 = tpu.concatenate %105, %106 in 1 : vector<128x64xf32>, vector<128x64xf32> -> vector<128x128xf32>
    %108 = vector.shape_cast %107 : vector<128x128xf32> to vector<2x64x128xf32>
    %c0_78 = arith.constant 0 : index
    %c0_79 = arith.constant 0 : index
    %c0_80 = arith.constant 0 : index
    %c0_81 = arith.constant 0 : index
    %109 = vector.load %arg12[%c0_78, %c0_79, %c0_80, %c0_81] : memref<10x3x128x128xbf16, #tpu.memory_space<vmem>>, vector<1x3x128x128xbf16>
    %110 = vector.shape_cast %109 : vector<1x3x128x128xbf16> to vector<3x128x128xbf16>
    %c0_82 = arith.constant 0 : index
    %c0_83 = arith.constant 0 : index
    %c0_84 = arith.constant 0 : index
    %111 = vector.load %arg13[%c0_82, %c0_83, %c0_84] : memref<10x1x128xf32, #tpu.memory_space<vmem>>, vector<1x1x128xf32>
    %112 = vector.shape_cast %111 : vector<1x1x128xf32> to vector<1x128xf32>
    %cst_85 = arith.constant 0.000000e+00 : f32
    %113 = vector.broadcast %cst_85 : f32 to vector<2x1x128xf32>
    %c0_86 = arith.constant 0 : index
    %c0_87 = arith.constant 0 : index
    %c0_88 = arith.constant 0 : index
    %114 = vector.load %arg23[%c0_86, %c0_87, %c0_88] : memref<2x66x128xf32, #tpu.memory_space<vmem>>, vector<2x1x128xf32>
    tpu.vector_store %arg23[%c0_86, %c0_87, %c0_88], %113 {strides = array<i32>} : memref<2x66x128xf32, #tpu.memory_space<vmem>>, vector<2x1x128xf32>,
    %cst_89 = arith.constant 0.000000e+00 : f32
    %115 = vector.broadcast %cst_89 : f32 to vector<2x1x128xf32>
    %c0_90 = arith.constant 0 : index
    %c65_91 = arith.constant 65 : index
    %c0_92 = arith.constant 0 : index
    %116 = vector.load %arg23[%c0_90, %c65_91, %c0_92] : memref<2x66x128xf32, #tpu.memory_space<vmem>>, vector<2x1x128xf32>
    tpu.vector_store %arg23[%c0_90, %c65_91, %c0_92], %115 {strides = array<i32>} : memref<2x66x128xf32, #tpu.memory_space<vmem>>, vector<2x1x128xf32>,
    %c0_93 = arith.constant 0 : index
    %c1_94 = arith.constant 1 : index
    %c0_95 = arith.constant 0 : index
    %117 = vector.load %arg23[%c0_93, %c1_94, %c0_95] : memref<2x66x128xf32, #tpu.memory_space<vmem>>, vector<2x64x128xf32>
    tpu.vector_store %arg23[%c0_93, %c1_94, %c0_95], %108 {strides = array<i32>} : memref<2x66x128xf32, #tpu.memory_space<vmem>>, vector<2x64x128xf32>,
    %c0_96 = arith.constant 0 : index
    %c0_97 = arith.constant 0 : index
    %c0_98 = arith.constant 0 : index
    %118 = vector.load %arg23[%c0_96, %c0_97, %c0_98] : memref<2x66x128xf32, #tpu.memory_space<vmem>>, vector<2x64x128xf32>
    %119 = arith.truncf %118 : vector<2x64x128xf32> to vector<2x64x128xbf16>
    %120 = vector.shape_cast %119 : vector<2x64x128xbf16> to vector<128x128xbf16>
    %121 = vector.extract_strided_slice %110 {offsets = [0, 0, 0], sizes = [1, 128, 128], strides = [1, 1, 1]} : vector<3x128x128xbf16> to vector<1x128x128xbf16>
    %122 = vector.shape_cast %121 : vector<1x128x128xbf16> to vector<128x128xbf16>
    %cst_99 = arith.constant dense<0.000000e+00> : vector<128x128xf32>
    %123 = tpu.matmul %120, %122, %cst_99 {dimension_numbers = #tpu.dot_dimension_numbers<[1], [0], [0], [1], [0, 0, 1, 1], [], []>} : vector<128x128xbf16>, vector<128x128xbf16>, vector<128x128xf32> -> vector<128x128xf32>
    %124 = vector.broadcast %112 : vector<1x128xf32> to vector<128x128xf32>
    %125 = arith.addf %124, %123 : vector<128x128xf32>
    %c0_100 = arith.constant 0 : index
    %c1_101 = arith.constant 1 : index
    %c0_102 = arith.constant 0 : index
    %126 = vector.load %arg23[%c0_100, %c1_101, %c0_102] : memref<2x66x128xf32, #tpu.memory_space<vmem>>, vector<2x64x128xf32>
    %127 = arith.truncf %126 : vector<2x64x128xf32> to vector<2x64x128xbf16>
    %128 = vector.shape_cast %127 : vector<2x64x128xbf16> to vector<128x128xbf16>
    %129 = vector.extract_strided_slice %110 {offsets = [1, 0, 0], sizes = [1, 128, 128], strides = [1, 1, 1]} : vector<3x128x128xbf16> to vector<1x128x128xbf16>
    %130 = vector.shape_cast %129 : vector<1x128x128xbf16> to vector<128x128xbf16>
    %cst_103 = arith.constant dense<0.000000e+00> : vector<128x128xf32>
    %131 = tpu.matmul %128, %130, %cst_103 {dimension_numbers = #tpu.dot_dimension_numbers<[1], [0], [0], [1], [0, 0, 1, 1], [], []>} : vector<128x128xbf16>, vector<128x128xbf16>, vector<128x128xf32> -> vector<128x128xf32>
    %132 = arith.addf %125, %131 : vector<128x128xf32>
    %c0_104 = arith.constant 0 : index
    %c2_105 = arith.constant 2 : index
    %c0_106 = arith.constant 0 : index
    %133 = vector.load %arg23[%c0_104, %c2_105, %c0_106] : memref<2x66x128xf32, #tpu.memory_space<vmem>>, vector<2x64x128xf32>
    %134 = arith.truncf %133 : vector<2x64x128xf32> to vector<2x64x128xbf16>
    %135 = vector.shape_cast %134 : vector<2x64x128xbf16> to vector<128x128xbf16>
    %136 = vector.extract_strided_slice %110 {offsets = [2, 0, 0], sizes = [1, 128, 128], strides = [1, 1, 1]} : vector<3x128x128xbf16> to vector<1x128x128xbf16>
    %137 = vector.shape_cast %136 : vector<1x128x128xbf16> to vector<128x128xbf16>
    %cst_107 = arith.constant dense<0.000000e+00> : vector<128x128xf32>
    %138 = tpu.matmul %135, %137, %cst_107 {dimension_numbers = #tpu.dot_dimension_numbers<[1], [0], [0], [1], [0, 0, 1, 1], [], []>} : vector<128x128xbf16>, vector<128x128xbf16>, vector<128x128xf32> -> vector<128x128xf32>
    %139 = arith.addf %132, %138 : vector<128x128xf32>
    %cst_108 = arith.constant 0.000000e+00 : f32
    %140 = vector.broadcast %cst_108 : f32 to vector<128x128xf32>
    %141 = arith.maximumf %139, %140 : vector<128x128xf32>
    %142 = vector.shape_cast %141 : vector<128x128xf32> to vector<2x64x128xf32>
    %c1_109 = arith.constant 1 : index
    %c0_110 = arith.constant 0 : index
    %c0_111 = arith.constant 0 : index
    %c0_112 = arith.constant 0 : index
    %143 = vector.load %arg12[%c1_109, %c0_110, %c0_111, %c0_112] : memref<10x3x128x128xbf16, #tpu.memory_space<vmem>>, vector<1x3x128x128xbf16>
    %144 = vector.shape_cast %143 : vector<1x3x128x128xbf16> to vector<3x128x128xbf16>
    %c1_113 = arith.constant 1 : index
    %c0_114 = arith.constant 0 : index
    %c0_115 = arith.constant 0 : index
    %145 = vector.load %arg13[%c1_113, %c0_114, %c0_115] : memref<10x1x128xf32, #tpu.memory_space<vmem>>, vector<1x1x128xf32>
    %146 = vector.shape_cast %145 : vector<1x1x128xf32> to vector<1x128xf32>
    %cst_116 = arith.constant 0.000000e+00 : f32
    %147 = vector.broadcast %cst_116 : f32 to vector<2x1x128xf32>
    %c0_117 = arith.constant 0 : index
    %c0_118 = arith.constant 0 : index
    %c0_119 = arith.constant 0 : index
    %148 = vector.load %arg23[%c0_117, %c0_118, %c0_119] : memref<2x66x128xf32, #tpu.memory_space<vmem>>, vector<2x1x128xf32>
    tpu.vector_store %arg23[%c0_117, %c0_118, %c0_119], %147 {strides = array<i32>} : memref<2x66x128xf32, #tpu.memory_space<vmem>>, vector<2x1x128xf32>,
    %cst_120 = arith.constant 0.000000e+00 : f32
    %149 = vector.broadcast %cst_120 : f32 to vector<2x1x128xf32>
    %c0_121 = arith.constant 0 : index
    %c65_122 = arith.constant 65 : index
    %c0_123 = arith.constant 0 : index
    %150 = vector.load %arg23[%c0_121, %c65_122, %c0_123] : memref<2x66x128xf32, #tpu.memory_space<vmem>>, vector<2x1x128xf32>
    tpu.vector_store %arg23[%c0_121, %c65_122, %c0_123], %149 {strides = array<i32>} : memref<2x66x128xf32, #tpu.memory_space<vmem>>, vector<2x1x128xf32>,
    %c0_124 = arith.constant 0 : index
    %c1_125 = arith.constant 1 : index
    %c0_126 = arith.constant 0 : index
    %151 = vector.load %arg23[%c0_124, %c1_125, %c0_126] : memref<2x66x128xf32, #tpu.memory_space<vmem>>, vector<2x64x128xf32>
    tpu.vector_store %arg23[%c0_124, %c1_125, %c0_126], %142 {strides = array<i32>} : memref<2x66x128xf32, #tpu.memory_space<vmem>>, vector<2x64x128xf32>,
    %c0_127 = arith.constant 0 : index
    %c0_128 = arith.constant 0 : index
    %c0_129 = arith.constant 0 : index
    %152 = vector.load %arg23[%c0_127, %c0_128, %c0_129] : memref<2x66x128xf32, #tpu.memory_space<vmem>>, vector<2x64x128xf32>
    %153 = arith.truncf %152 : vector<2x64x128xf32> to vector<2x64x128xbf16>
    %154 = vector.shape_cast %153 : vector<2x64x128xbf16> to vector<128x128xbf16>
    %155 = vector.extract_strided_slice %144 {offsets = [0, 0, 0], sizes = [1, 128, 128], strides = [1, 1, 1]} : vector<3x128x128xbf16> to vector<1x128x128xbf16>
    %156 = vector.shape_cast %155 : vector<1x128x128xbf16> to vector<128x128xbf16>
    %cst_130 = arith.constant dense<0.000000e+00> : vector<128x128xf32>
    %157 = tpu.matmul %154, %156, %cst_130 {dimension_numbers = #tpu.dot_dimension_numbers<[1], [0], [0], [1], [0, 0, 1, 1], [], []>} : vector<128x128xbf16>, vector<128x128xbf16>, vector<128x128xf32> -> vector<128x128xf32>
    %158 = vector.broadcast %146 : vector<1x128xf32> to vector<128x128xf32>
    %159 = arith.addf %158, %157 : vector<128x128xf32>
    %c0_131 = arith.constant 0 : index
    %c1_132 = arith.constant 1 : index
    %c0_133 = arith.constant 0 : index
    %160 = vector.load %arg23[%c0_131, %c1_132, %c0_133] : memref<2x66x128xf32, #tpu.memory_space<vmem>>, vector<2x64x128xf32>
    %161 = arith.truncf %160 : vector<2x64x128xf32> to vector<2x64x128xbf16>
    %162 = vector.shape_cast %161 : vector<2x64x128xbf16> to vector<128x128xbf16>
    %163 = vector.extract_strided_slice %144 {offsets = [1, 0, 0], sizes = [1, 128, 128], strides = [1, 1, 1]} : vector<3x128x128xbf16> to vector<1x128x128xbf16>
    %164 = vector.shape_cast %163 : vector<1x128x128xbf16> to vector<128x128xbf16>
    %cst_134 = arith.constant dense<0.000000e+00> : vector<128x128xf32>
    %165 = tpu.matmul %162, %164, %cst_134 {dimension_numbers = #tpu.dot_dimension_numbers<[1], [0], [0], [1], [0, 0, 1, 1], [], []>} : vector<128x128xbf16>, vector<128x128xbf16>, vector<128x128xf32> -> vector<128x128xf32>
    %166 = arith.addf %159, %165 : vector<128x128xf32>
    %c0_135 = arith.constant 0 : index
    %c2_136 = arith.constant 2 : index
    %c0_137 = arith.constant 0 : index
    %167 = vector.load %arg23[%c0_135, %c2_136, %c0_137] : memref<2x66x128xf32, #tpu.memory_space<vmem>>, vector<2x64x128xf32>
    %168 = arith.truncf %167 : vector<2x64x128xf32> to vector<2x64x128xbf16>
    %169 = vector.shape_cast %168 : vector<2x64x128xbf16> to vector<128x128xbf16>
    %170 = vector.extract_strided_slice %144 {offsets = [2, 0, 0], sizes = [1, 128, 128], strides = [1, 1, 1]} : vector<3x128x128xbf16> to vector<1x128x128xbf16>
    %171 = vector.shape_cast %170 : vector<1x128x128xbf16> to vector<128x128xbf16>
    %cst_138 = arith.constant dense<0.000000e+00> : vector<128x128xf32>
    %172 = tpu.matmul %169, %171, %cst_138 {dimension_numbers = #tpu.dot_dimension_numbers<[1], [0], [0], [1], [0, 0, 1, 1], [], []>} : vector<128x128xbf16>, vector<128x128xbf16>, vector<128x128xf32> -> vector<128x128xf32>
    %173 = arith.addf %166, %172 : vector<128x128xf32>
    %cst_139 = arith.constant 0.000000e+00 : f32
    %174 = vector.broadcast %cst_139 : f32 to vector<128x128xf32>
    %175 = arith.maximumf %173, %174 : vector<128x128xf32>
    %176 = vector.shape_cast %175 : vector<128x128xf32> to vector<2x64x128xf32>
    %177 = vector.shape_cast %176 : vector<2x64x128xf32> to vector<2x32x2x128xf32>
    %178 = vector.extract_strided_slice %177 {offsets = [0, 0, 0, 0], sizes = [2, 32, 1, 128], strides = [1, 1, 1, 1]} : vector<2x32x2x128xf32> to vector<2x32x1x128xf32>
    %179 = vector.shape_cast %178 : vector<2x32x1x128xf32> to vector<2x32x128xf32>
    %180 = vector.extract_strided_slice %177 {offsets = [0, 0, 1, 0], sizes = [2, 32, 1, 128], strides = [1, 1, 1, 1]} : vector<2x32x2x128xf32> to vector<2x32x1x128xf32>
    %181 = vector.shape_cast %180 : vector<2x32x1x128xf32> to vector<2x32x128xf32>
    %182 = arith.maximumf %179, %181 : vector<2x32x128xf32>
    %c2_140 = arith.constant 2 : index
    %c0_141 = arith.constant 0 : index
    %c0_142 = arith.constant 0 : index
    %c0_143 = arith.constant 0 : index
    %183 = vector.load %arg12[%c2_140, %c0_141, %c0_142, %c0_143] : memref<10x3x128x128xbf16, #tpu.memory_space<vmem>>, vector<1x3x128x128xbf16>
    %184 = vector.shape_cast %183 : vector<1x3x128x128xbf16> to vector<3x128x128xbf16>
    %c2_144 = arith.constant 2 : index
    %c0_145 = arith.constant 0 : index
    %c0_146 = arith.constant 0 : index
    %185 = vector.load %arg13[%c2_144, %c0_145, %c0_146] : memref<10x1x128xf32, #tpu.memory_space<vmem>>, vector<1x1x128xf32>
    %186 = vector.shape_cast %185 : vector<1x1x128xf32> to vector<1x128xf32>
    %cst_147 = arith.constant 0.000000e+00 : f32
    %187 = vector.broadcast %cst_147 : f32 to vector<2x1x128xf32>
    %c0_148 = arith.constant 0 : index
    %c0_149 = arith.constant 0 : index
    %c0_150 = arith.constant 0 : index
    %188 = vector.load %arg23[%c0_148, %c0_149, %c0_150] : memref<2x66x128xf32, #tpu.memory_space<vmem>>, vector<2x1x128xf32>
    tpu.vector_store %arg23[%c0_148, %c0_149, %c0_150], %187 {strides = array<i32>} : memref<2x66x128xf32, #tpu.memory_space<vmem>>, vector<2x1x128xf32>,
    %cst_151 = arith.constant 0.000000e+00 : f32
    %189 = vector.broadcast %cst_151 : f32 to vector<2x1x128xf32>
    %c0_152 = arith.constant 0 : index
    %c33 = arith.constant 33 : index
    %c0_153 = arith.constant 0 : index
    %190 = vector.load %arg23[%c0_152, %c33, %c0_153] : memref<2x66x128xf32, #tpu.memory_space<vmem>>, vector<2x1x128xf32>
    tpu.vector_store %arg23[%c0_152, %c33, %c0_153], %189 {strides = array<i32>} : memref<2x66x128xf32, #tpu.memory_space<vmem>>, vector<2x1x128xf32>,
    %c0_154 = arith.constant 0 : index
    %c1_155 = arith.constant 1 : index
    %c0_156 = arith.constant 0 : index
    %191 = vector.load %arg23[%c0_154, %c1_155, %c0_156] : memref<2x66x128xf32, #tpu.memory_space<vmem>>, vector<2x32x128xf32>
    tpu.vector_store %arg23[%c0_154, %c1_155, %c0_156], %182 {strides = array<i32>} : memref<2x66x128xf32, #tpu.memory_space<vmem>>, vector<2x32x128xf32>,
    %c0_157 = arith.constant 0 : index
    %c0_158 = arith.constant 0 : index
    %c0_159 = arith.constant 0 : index
    %192 = vector.load %arg23[%c0_157, %c0_158, %c0_159] : memref<2x66x128xf32, #tpu.memory_space<vmem>>, vector<2x32x128xf32>
    %193 = arith.truncf %192 : vector<2x32x128xf32> to vector<2x32x128xbf16>
    %194 = vector.shape_cast %193 : vector<2x32x128xbf16> to vector<64x128xbf16>
    %195 = vector.extract_strided_slice %184 {offsets = [0, 0, 0], sizes = [1, 128, 128], strides = [1, 1, 1]} : vector<3x128x128xbf16> to vector<1x128x128xbf16>
    %196 = vector.shape_cast %195 : vector<1x128x128xbf16> to vector<128x128xbf16>
    %cst_160 = arith.constant dense<0.000000e+00> : vector<64x128xf32>
    %197 = tpu.matmul %194, %196, %cst_160 {dimension_numbers = #tpu.dot_dimension_numbers<[1], [0], [0], [1], [0, 0, 1, 1], [], []>} : vector<64x128xbf16>, vector<128x128xbf16>, vector<64x128xf32> -> vector<64x128xf32>
    %198 = vector.broadcast %186 : vector<1x128xf32> to vector<64x128xf32>
    %199 = arith.addf %198, %197 : vector<64x128xf32>
    %c0_161 = arith.constant 0 : index
    %c1_162 = arith.constant 1 : index
    %c0_163 = arith.constant 0 : index
    %200 = vector.load %arg23[%c0_161, %c1_162, %c0_163] : memref<2x66x128xf32, #tpu.memory_space<vmem>>, vector<2x32x128xf32>
    %201 = arith.truncf %200 : vector<2x32x128xf32> to vector<2x32x128xbf16>
    %202 = vector.shape_cast %201 : vector<2x32x128xbf16> to vector<64x128xbf16>
    %203 = vector.extract_strided_slice %184 {offsets = [1, 0, 0], sizes = [1, 128, 128], strides = [1, 1, 1]} : vector<3x128x128xbf16> to vector<1x128x128xbf16>
    %204 = vector.shape_cast %203 : vector<1x128x128xbf16> to vector<128x128xbf16>
    %cst_164 = arith.constant dense<0.000000e+00> : vector<64x128xf32>
    %205 = tpu.matmul %202, %204, %cst_164 {dimension_numbers = #tpu.dot_dimension_numbers<[1], [0], [0], [1], [0, 0, 1, 1], [], []>} : vector<64x128xbf16>, vector<128x128xbf16>, vector<64x128xf32> -> vector<64x128xf32>
    %206 = arith.addf %199, %205 : vector<64x128xf32>
    %c0_165 = arith.constant 0 : index
    %c2_166 = arith.constant 2 : index
    %c0_167 = arith.constant 0 : index
    %207 = vector.load %arg23[%c0_165, %c2_166, %c0_167] : memref<2x66x128xf32, #tpu.memory_space<vmem>>, vector<2x32x128xf32>
    %208 = arith.truncf %207 : vector<2x32x128xf32> to vector<2x32x128xbf16>
    %209 = vector.shape_cast %208 : vector<2x32x128xbf16> to vector<64x128xbf16>
    %210 = vector.extract_strided_slice %184 {offsets = [2, 0, 0], sizes = [1, 128, 128], strides = [1, 1, 1]} : vector<3x128x128xbf16> to vector<1x128x128xbf16>
    %211 = vector.shape_cast %210 : vector<1x128x128xbf16> to vector<128x128xbf16>
    %cst_168 = arith.constant dense<0.000000e+00> : vector<64x128xf32>
    %212 = tpu.matmul %209, %211, %cst_168 {dimension_numbers = #tpu.dot_dimension_numbers<[1], [0], [0], [1], [0, 0, 1, 1], [], []>} : vector<64x128xbf16>, vector<128x128xbf16>, vector<64x128xf32> -> vector<64x128xf32>
    %213 = arith.addf %206, %212 : vector<64x128xf32>
    %cst_169 = arith.constant 0.000000e+00 : f32
    %214 = vector.broadcast %cst_169 : f32 to vector<64x128xf32>
    %215 = arith.maximumf %213, %214 : vector<64x128xf32>
    %216 = vector.shape_cast %215 : vector<64x128xf32> to vector<2x32x128xf32>
    %c3 = arith.constant 3 : index
    %c0_170 = arith.constant 0 : index
    %c0_171 = arith.constant 0 : index
    %c0_172 = arith.constant 0 : index
    %217 = vector.load %arg12[%c3, %c0_170, %c0_171, %c0_172] : memref<10x3x128x128xbf16, #tpu.memory_space<vmem>>, vector<1x3x128x128xbf16>
    %218 = vector.shape_cast %217 : vector<1x3x128x128xbf16> to vector<3x128x128xbf16>
    %c3_173 = arith.constant 3 : index
    %c0_174 = arith.constant 0 : index
    %c0_175 = arith.constant 0 : index
    %219 = vector.load %arg13[%c3_173, %c0_174, %c0_175] : memref<10x1x128xf32, #tpu.memory_space<vmem>>, vector<1x1x128xf32>
    %220 = vector.shape_cast %219 : vector<1x1x128xf32> to vector<1x128xf32>
    %cst_176 = arith.constant 0.000000e+00 : f32
    %221 = vector.broadcast %cst_176 : f32 to vector<2x1x128xf32>
    %c0_177 = arith.constant 0 : index
    %c0_178 = arith.constant 0 : index
    %c0_179 = arith.constant 0 : index
    %222 = vector.load %arg23[%c0_177, %c0_178, %c0_179] : memref<2x66x128xf32, #tpu.memory_space<vmem>>, vector<2x1x128xf32>
    tpu.vector_store %arg23[%c0_177, %c0_178, %c0_179], %221 {strides = array<i32>} : memref<2x66x128xf32, #tpu.memory_space<vmem>>, vector<2x1x128xf32>,
    %cst_180 = arith.constant 0.000000e+00 : f32
    %223 = vector.broadcast %cst_180 : f32 to vector<2x1x128xf32>
    %c0_181 = arith.constant 0 : index
    %c33_182 = arith.constant 33 : index
    %c0_183 = arith.constant 0 : index
    %224 = vector.load %arg23[%c0_181, %c33_182, %c0_183] : memref<2x66x128xf32, #tpu.memory_space<vmem>>, vector<2x1x128xf32>
    tpu.vector_store %arg23[%c0_181, %c33_182, %c0_183], %223 {strides = array<i32>} : memref<2x66x128xf32, #tpu.memory_space<vmem>>, vector<2x1x128xf32>,
    %c0_184 = arith.constant 0 : index
    %c1_185 = arith.constant 1 : index
    %c0_186 = arith.constant 0 : index
    %225 = vector.load %arg23[%c0_184, %c1_185, %c0_186] : memref<2x66x128xf32, #tpu.memory_space<vmem>>, vector<2x32x128xf32>
    tpu.vector_store %arg23[%c0_184, %c1_185, %c0_186], %216 {strides = array<i32>} : memref<2x66x128xf32, #tpu.memory_space<vmem>>, vector<2x32x128xf32>,
    %c0_187 = arith.constant 0 : index
    %c0_188 = arith.constant 0 : index
    %c0_189 = arith.constant 0 : index
    %226 = vector.load %arg23[%c0_187, %c0_188, %c0_189] : memref<2x66x128xf32, #tpu.memory_space<vmem>>, vector<2x32x128xf32>
    %227 = arith.truncf %226 : vector<2x32x128xf32> to vector<2x32x128xbf16>
    %228 = vector.shape_cast %227 : vector<2x32x128xbf16> to vector<64x128xbf16>
    %229 = vector.extract_strided_slice %218 {offsets = [0, 0, 0], sizes = [1, 128, 128], strides = [1, 1, 1]} : vector<3x128x128xbf16> to vector<1x128x128xbf16>
    %230 = vector.shape_cast %229 : vector<1x128x128xbf16> to vector<128x128xbf16>
    %cst_190 = arith.constant dense<0.000000e+00> : vector<64x128xf32>
    %231 = tpu.matmul %228, %230, %cst_190 {dimension_numbers = #tpu.dot_dimension_numbers<[1], [0], [0], [1], [0, 0, 1, 1], [], []>} : vector<64x128xbf16>, vector<128x128xbf16>, vector<64x128xf32> -> vector<64x128xf32>
    %232 = vector.broadcast %220 : vector<1x128xf32> to vector<64x128xf32>
    %233 = arith.addf %232, %231 : vector<64x128xf32>
    %c0_191 = arith.constant 0 : index
    %c1_192 = arith.constant 1 : index
    %c0_193 = arith.constant 0 : index
    %234 = vector.load %arg23[%c0_191, %c1_192, %c0_193] : memref<2x66x128xf32, #tpu.memory_space<vmem>>, vector<2x32x128xf32>
    %235 = arith.truncf %234 : vector<2x32x128xf32> to vector<2x32x128xbf16>
    %236 = vector.shape_cast %235 : vector<2x32x128xbf16> to vector<64x128xbf16>
    %237 = vector.extract_strided_slice %218 {offsets = [1, 0, 0], sizes = [1, 128, 128], strides = [1, 1, 1]} : vector<3x128x128xbf16> to vector<1x128x128xbf16>
    %238 = vector.shape_cast %237 : vector<1x128x128xbf16> to vector<128x128xbf16>
    %cst_194 = arith.constant dense<0.000000e+00> : vector<64x128xf32>
    %239 = tpu.matmul %236, %238, %cst_194 {dimension_numbers = #tpu.dot_dimension_numbers<[1], [0], [0], [1], [0, 0, 1, 1], [], []>} : vector<64x128xbf16>, vector<128x128xbf16>, vector<64x128xf32> -> vector<64x128xf32>
    %240 = arith.addf %233, %239 : vector<64x128xf32>
    %c0_195 = arith.constant 0 : index
    %c2_196 = arith.constant 2 : index
    %c0_197 = arith.constant 0 : index
    %241 = vector.load %arg23[%c0_195, %c2_196, %c0_197] : memref<2x66x128xf32, #tpu.memory_space<vmem>>, vector<2x32x128xf32>
    %242 = arith.truncf %241 : vector<2x32x128xf32> to vector<2x32x128xbf16>
    %243 = vector.shape_cast %242 : vector<2x32x128xbf16> to vector<64x128xbf16>
    %244 = vector.extract_strided_slice %218 {offsets = [2, 0, 0], sizes = [1, 128, 128], strides = [1, 1, 1]} : vector<3x128x128xbf16> to vector<1x128x128xbf16>
    %245 = vector.shape_cast %244 : vector<1x128x128xbf16> to vector<128x128xbf16>
    %cst_198 = arith.constant dense<0.000000e+00> : vector<64x128xf32>
    %246 = tpu.matmul %243, %245, %cst_198 {dimension_numbers = #tpu.dot_dimension_numbers<[1], [0], [0], [1], [0, 0, 1, 1], [], []>} : vector<64x128xbf16>, vector<128x128xbf16>, vector<64x128xf32> -> vector<64x128xf32>
    %247 = arith.addf %240, %246 : vector<64x128xf32>
    %cst_199 = arith.constant 0.000000e+00 : f32
    %248 = vector.broadcast %cst_199 : f32 to vector<64x128xf32>
    %249 = arith.maximumf %247, %248 : vector<64x128xf32>
    %250 = vector.shape_cast %249 : vector<64x128xf32> to vector<2x32x128xf32>
    %251 = vector.shape_cast %250 : vector<2x32x128xf32> to vector<2x16x2x128xf32>
    %252 = vector.extract_strided_slice %251 {offsets = [0, 0, 0, 0], sizes = [2, 16, 1, 128], strides = [1, 1, 1, 1]} : vector<2x16x2x128xf32> to vector<2x16x1x128xf32>
    %253 = vector.shape_cast %252 : vector<2x16x1x128xf32> to vector<2x16x128xf32>
    %254 = vector.extract_strided_slice %251 {offsets = [0, 0, 1, 0], sizes = [2, 16, 1, 128], strides = [1, 1, 1, 1]} : vector<2x16x2x128xf32> to vector<2x16x1x128xf32>
    %255 = vector.shape_cast %254 : vector<2x16x1x128xf32> to vector<2x16x128xf32>
    %256 = arith.maximumf %253, %255 : vector<2x16x128xf32>
    %c4 = arith.constant 4 : index
    %c0_200 = arith.constant 0 : index
    %c0_201 = arith.constant 0 : index
    %c0_202 = arith.constant 0 : index
    %257 = vector.load %arg12[%c4, %c0_200, %c0_201, %c0_202] : memref<10x3x128x128xbf16, #tpu.memory_space<vmem>>, vector<1x3x128x128xbf16>
    %258 = vector.shape_cast %257 : vector<1x3x128x128xbf16> to vector<3x128x128xbf16>
    %c4_203 = arith.constant 4 : index
    %c0_204 = arith.constant 0 : index
    %c0_205 = arith.constant 0 : index
    %259 = vector.load %arg13[%c4_203, %c0_204, %c0_205] : memref<10x1x128xf32, #tpu.memory_space<vmem>>, vector<1x1x128xf32>
    %260 = vector.shape_cast %259 : vector<1x1x128xf32> to vector<1x128xf32>
    %cst_206 = arith.constant 0.000000e+00 : f32
    %261 = vector.broadcast %cst_206 : f32 to vector<2x1x128xf32>
    %c0_207 = arith.constant 0 : index
    %c0_208 = arith.constant 0 : index
    %c0_209 = arith.constant 0 : index
    %262 = vector.load %arg23[%c0_207, %c0_208, %c0_209] : memref<2x66x128xf32, #tpu.memory_space<vmem>>, vector<2x1x128xf32>
    tpu.vector_store %arg23[%c0_207, %c0_208, %c0_209], %261 {strides = array<i32>} : memref<2x66x128xf32, #tpu.memory_space<vmem>>, vector<2x1x128xf32>,
    %cst_210 = arith.constant 0.000000e+00 : f32
    %263 = vector.broadcast %cst_210 : f32 to vector<2x1x128xf32>
    %c0_211 = arith.constant 0 : index
    %c17 = arith.constant 17 : index
    %c0_212 = arith.constant 0 : index
    %264 = vector.load %arg23[%c0_211, %c17, %c0_212] : memref<2x66x128xf32, #tpu.memory_space<vmem>>, vector<2x1x128xf32>
    tpu.vector_store %arg23[%c0_211, %c17, %c0_212], %263 {strides = array<i32>} : memref<2x66x128xf32, #tpu.memory_space<vmem>>, vector<2x1x128xf32>,
    %c0_213 = arith.constant 0 : index
    %c1_214 = arith.constant 1 : index
    %c0_215 = arith.constant 0 : index
    %265 = vector.load %arg23[%c0_213, %c1_214, %c0_215] : memref<2x66x128xf32, #tpu.memory_space<vmem>>, vector<2x16x128xf32>
    tpu.vector_store %arg23[%c0_213, %c1_214, %c0_215], %256 {strides = array<i32>} : memref<2x66x128xf32, #tpu.memory_space<vmem>>, vector<2x16x128xf32>,
    %c0_216 = arith.constant 0 : index
    %c0_217 = arith.constant 0 : index
    %c0_218 = arith.constant 0 : index
    %266 = vector.load %arg23[%c0_216, %c0_217, %c0_218] : memref<2x66x128xf32, #tpu.memory_space<vmem>>, vector<2x16x128xf32>
    %267 = arith.truncf %266 : vector<2x16x128xf32> to vector<2x16x128xbf16>
    %268 = vector.shape_cast %267 : vector<2x16x128xbf16> to vector<32x128xbf16>
    %269 = vector.extract_strided_slice %258 {offsets = [0, 0, 0], sizes = [1, 128, 128], strides = [1, 1, 1]} : vector<3x128x128xbf16> to vector<1x128x128xbf16>
    %270 = vector.shape_cast %269 : vector<1x128x128xbf16> to vector<128x128xbf16>
    %cst_219 = arith.constant dense<0.000000e+00> : vector<32x128xf32>
    %271 = tpu.matmul %268, %270, %cst_219 {dimension_numbers = #tpu.dot_dimension_numbers<[1], [0], [0], [1], [0, 0, 1, 1], [], []>} : vector<32x128xbf16>, vector<128x128xbf16>, vector<32x128xf32> -> vector<32x128xf32>
    %272 = vector.broadcast %260 : vector<1x128xf32> to vector<32x128xf32>
    %273 = arith.addf %272, %271 : vector<32x128xf32>
    %c0_220 = arith.constant 0 : index
    %c1_221 = arith.constant 1 : index
    %c0_222 = arith.constant 0 : index
    %274 = vector.load %arg23[%c0_220, %c1_221, %c0_222] : memref<2x66x128xf32, #tpu.memory_space<vmem>>, vector<2x16x128xf32>
    %275 = arith.truncf %274 : vector<2x16x128xf32> to vector<2x16x128xbf16>
    %276 = vector.shape_cast %275 : vector<2x16x128xbf16> to vector<32x128xbf16>
    %277 = vector.extract_strided_slice %258 {offsets = [1, 0, 0], sizes = [1, 128, 128], strides = [1, 1, 1]} : vector<3x128x128xbf16> to vector<1x128x128xbf16>
    %278 = vector.shape_cast %277 : vector<1x128x128xbf16> to vector<128x128xbf16>
    %cst_223 = arith.constant dense<0.000000e+00> : vector<32x128xf32>
    %279 = tpu.matmul %276, %278, %cst_223 {dimension_numbers = #tpu.dot_dimension_numbers<[1], [0], [0], [1], [0, 0, 1, 1], [], []>} : vector<32x128xbf16>, vector<128x128xbf16>, vector<32x128xf32> -> vector<32x128xf32>
    %280 = arith.addf %273, %279 : vector<32x128xf32>
    %c0_224 = arith.constant 0 : index
    %c2_225 = arith.constant 2 : index
    %c0_226 = arith.constant 0 : index
    %281 = vector.load %arg23[%c0_224, %c2_225, %c0_226] : memref<2x66x128xf32, #tpu.memory_space<vmem>>, vector<2x16x128xf32>
    %282 = arith.truncf %281 : vector<2x16x128xf32> to vector<2x16x128xbf16>
    %283 = vector.shape_cast %282 : vector<2x16x128xbf16> to vector<32x128xbf16>
    %284 = vector.extract_strided_slice %258 {offsets = [2, 0, 0], sizes = [1, 128, 128], strides = [1, 1, 1]} : vector<3x128x128xbf16> to vector<1x128x128xbf16>
    %285 = vector.shape_cast %284 : vector<1x128x128xbf16> to vector<128x128xbf16>
    %cst_227 = arith.constant dense<0.000000e+00> : vector<32x128xf32>
    %286 = tpu.matmul %283, %285, %cst_227 {dimension_numbers = #tpu.dot_dimension_numbers<[1], [0], [0], [1], [0, 0, 1, 1], [], []>} : vector<32x128xbf16>, vector<128x128xbf16>, vector<32x128xf32> -> vector<32x128xf32>
    %287 = arith.addf %280, %286 : vector<32x128xf32>
    %cst_228 = arith.constant 0.000000e+00 : f32
    %288 = vector.broadcast %cst_228 : f32 to vector<32x128xf32>
    %289 = arith.maximumf %287, %288 : vector<32x128xf32>
    %290 = vector.shape_cast %289 : vector<32x128xf32> to vector<2x16x128xf32>
    %c5 = arith.constant 5 : index
    %c0_229 = arith.constant 0 : index
    %c0_230 = arith.constant 0 : index
    %c0_231 = arith.constant 0 : index
    %291 = vector.load %arg12[%c5, %c0_229, %c0_230, %c0_231] : memref<10x3x128x128xbf16, #tpu.memory_space<vmem>>, vector<1x3x128x128xbf16>
    %292 = vector.shape_cast %291 : vector<1x3x128x128xbf16> to vector<3x128x128xbf16>
    %c5_232 = arith.constant 5 : index
    %c0_233 = arith.constant 0 : index
    %c0_234 = arith.constant 0 : index
    %293 = vector.load %arg13[%c5_232, %c0_233, %c0_234] : memref<10x1x128xf32, #tpu.memory_space<vmem>>, vector<1x1x128xf32>
    %294 = vector.shape_cast %293 : vector<1x1x128xf32> to vector<1x128xf32>
    %cst_235 = arith.constant 0.000000e+00 : f32
    %295 = vector.broadcast %cst_235 : f32 to vector<2x1x128xf32>
    %c0_236 = arith.constant 0 : index
    %c0_237 = arith.constant 0 : index
    %c0_238 = arith.constant 0 : index
    %296 = vector.load %arg23[%c0_236, %c0_237, %c0_238] : memref<2x66x128xf32, #tpu.memory_space<vmem>>, vector<2x1x128xf32>
    tpu.vector_store %arg23[%c0_236, %c0_237, %c0_238], %295 {strides = array<i32>} : memref<2x66x128xf32, #tpu.memory_space<vmem>>, vector<2x1x128xf32>,
    %cst_239 = arith.constant 0.000000e+00 : f32
    %297 = vector.broadcast %cst_239 : f32 to vector<2x1x128xf32>
    %c0_240 = arith.constant 0 : index
    %c17_241 = arith.constant 17 : index
    %c0_242 = arith.constant 0 : index
    %298 = vector.load %arg23[%c0_240, %c17_241, %c0_242] : memref<2x66x128xf32, #tpu.memory_space<vmem>>, vector<2x1x128xf32>
    tpu.vector_store %arg23[%c0_240, %c17_241, %c0_242], %297 {strides = array<i32>} : memref<2x66x128xf32, #tpu.memory_space<vmem>>, vector<2x1x128xf32>,
    %c0_243 = arith.constant 0 : index
    %c1_244 = arith.constant 1 : index
    %c0_245 = arith.constant 0 : index
    %299 = vector.load %arg23[%c0_243, %c1_244, %c0_245] : memref<2x66x128xf32, #tpu.memory_space<vmem>>, vector<2x16x128xf32>
    tpu.vector_store %arg23[%c0_243, %c1_244, %c0_245], %290 {strides = array<i32>} : memref<2x66x128xf32, #tpu.memory_space<vmem>>, vector<2x16x128xf32>,
    %c0_246 = arith.constant 0 : index
    %c0_247 = arith.constant 0 : index
    %c0_248 = arith.constant 0 : index
    %300 = vector.load %arg23[%c0_246, %c0_247, %c0_248] : memref<2x66x128xf32, #tpu.memory_space<vmem>>, vector<2x16x128xf32>
    %301 = arith.truncf %300 : vector<2x16x128xf32> to vector<2x16x128xbf16>
    %302 = vector.shape_cast %301 : vector<2x16x128xbf16> to vector<32x128xbf16>
    %303 = vector.extract_strided_slice %292 {offsets = [0, 0, 0], sizes = [1, 128, 128], strides = [1, 1, 1]} : vector<3x128x128xbf16> to vector<1x128x128xbf16>
    %304 = vector.shape_cast %303 : vector<1x128x128xbf16> to vector<128x128xbf16>
    %cst_249 = arith.constant dense<0.000000e+00> : vector<32x128xf32>
    %305 = tpu.matmul %302, %304, %cst_249 {dimension_numbers = #tpu.dot_dimension_numbers<[1], [0], [0], [1], [0, 0, 1, 1], [], []>} : vector<32x128xbf16>, vector<128x128xbf16>, vector<32x128xf32> -> vector<32x128xf32>
    %306 = vector.broadcast %294 : vector<1x128xf32> to vector<32x128xf32>
    %307 = arith.addf %306, %305 : vector<32x128xf32>
    %c0_250 = arith.constant 0 : index
    %c1_251 = arith.constant 1 : index
    %c0_252 = arith.constant 0 : index
    %308 = vector.load %arg23[%c0_250, %c1_251, %c0_252] : memref<2x66x128xf32, #tpu.memory_space<vmem>>, vector<2x16x128xf32>
    %309 = arith.truncf %308 : vector<2x16x128xf32> to vector<2x16x128xbf16>
    %310 = vector.shape_cast %309 : vector<2x16x128xbf16> to vector<32x128xbf16>
    %311 = vector.extract_strided_slice %292 {offsets = [1, 0, 0], sizes = [1, 128, 128], strides = [1, 1, 1]} : vector<3x128x128xbf16> to vector<1x128x128xbf16>
    %312 = vector.shape_cast %311 : vector<1x128x128xbf16> to vector<128x128xbf16>
    %cst_253 = arith.constant dense<0.000000e+00> : vector<32x128xf32>
    %313 = tpu.matmul %310, %312, %cst_253 {dimension_numbers = #tpu.dot_dimension_numbers<[1], [0], [0], [1], [0, 0, 1, 1], [], []>} : vector<32x128xbf16>, vector<128x128xbf16>, vector<32x128xf32> -> vector<32x128xf32>
    %314 = arith.addf %307, %313 : vector<32x128xf32>
    %c0_254 = arith.constant 0 : index
    %c2_255 = arith.constant 2 : index
    %c0_256 = arith.constant 0 : index
    %315 = vector.load %arg23[%c0_254, %c2_255, %c0_256] : memref<2x66x128xf32, #tpu.memory_space<vmem>>, vector<2x16x128xf32>
    %316 = arith.truncf %315 : vector<2x16x128xf32> to vector<2x16x128xbf16>
    %317 = vector.shape_cast %316 : vector<2x16x128xbf16> to vector<32x128xbf16>
    %318 = vector.extract_strided_slice %292 {offsets = [2, 0, 0], sizes = [1, 128, 128], strides = [1, 1, 1]} : vector<3x128x128xbf16> to vector<1x128x128xbf16>
    %319 = vector.shape_cast %318 : vector<1x128x128xbf16> to vector<128x128xbf16>
    %cst_257 = arith.constant dense<0.000000e+00> : vector<32x128xf32>
    %320 = tpu.matmul %317, %319, %cst_257 {dimension_numbers = #tpu.dot_dimension_numbers<[1], [0], [0], [1], [0, 0, 1, 1], [], []>} : vector<32x128xbf16>, vector<128x128xbf16>, vector<32x128xf32> -> vector<32x128xf32>
    %321 = arith.addf %314, %320 : vector<32x128xf32>
    %cst_258 = arith.constant 0.000000e+00 : f32
    %322 = vector.broadcast %cst_258 : f32 to vector<32x128xf32>
    %323 = arith.maximumf %321, %322 : vector<32x128xf32>
    %324 = vector.shape_cast %323 : vector<32x128xf32> to vector<2x16x128xf32>
    %325 = vector.shape_cast %324 : vector<2x16x128xf32> to vector<2x8x2x128xf32>
    %326 = vector.extract_strided_slice %325 {offsets = [0, 0, 0, 0], sizes = [2, 8, 1, 128], strides = [1, 1, 1, 1]} : vector<2x8x2x128xf32> to vector<2x8x1x128xf32>
    %327 = vector.shape_cast %326 : vector<2x8x1x128xf32> to vector<2x8x128xf32>
    %328 = vector.extract_strided_slice %325 {offsets = [0, 0, 1, 0], sizes = [2, 8, 1, 128], strides = [1, 1, 1, 1]} : vector<2x8x2x128xf32> to vector<2x8x1x128xf32>
    %329 = vector.shape_cast %328 : vector<2x8x1x128xf32> to vector<2x8x128xf32>
    %330 = arith.maximumf %327, %329 : vector<2x8x128xf32>
    %c6 = arith.constant 6 : index
    %c0_259 = arith.constant 0 : index
    %c0_260 = arith.constant 0 : index
    %c0_261 = arith.constant 0 : index
    %331 = vector.load %arg12[%c6, %c0_259, %c0_260, %c0_261] : memref<10x3x128x128xbf16, #tpu.memory_space<vmem>>, vector<1x3x128x128xbf16>
    %332 = vector.shape_cast %331 : vector<1x3x128x128xbf16> to vector<3x128x128xbf16>
    %c6_262 = arith.constant 6 : index
    %c0_263 = arith.constant 0 : index
    %c0_264 = arith.constant 0 : index
    %333 = vector.load %arg13[%c6_262, %c0_263, %c0_264] : memref<10x1x128xf32, #tpu.memory_space<vmem>>, vector<1x1x128xf32>
    %334 = vector.shape_cast %333 : vector<1x1x128xf32> to vector<1x128xf32>
    %cst_265 = arith.constant 0.000000e+00 : f32
    %335 = vector.broadcast %cst_265 : f32 to vector<2x1x128xf32>
    %c0_266 = arith.constant 0 : index
    %c0_267 = arith.constant 0 : index
    %c0_268 = arith.constant 0 : index
    %336 = vector.load %arg23[%c0_266, %c0_267, %c0_268] : memref<2x66x128xf32, #tpu.memory_space<vmem>>, vector<2x1x128xf32>
    tpu.vector_store %arg23[%c0_266, %c0_267, %c0_268], %335 {strides = array<i32>} : memref<2x66x128xf32, #tpu.memory_space<vmem>>, vector<2x1x128xf32>,
    %cst_269 = arith.constant 0.000000e+00 : f32
    %337 = vector.broadcast %cst_269 : f32 to vector<2x1x128xf32>
    %c0_270 = arith.constant 0 : index
    %c9 = arith.constant 9 : index
    %c0_271 = arith.constant 0 : index
    %338 = vector.load %arg23[%c0_270, %c9, %c0_271] : memref<2x66x128xf32, #tpu.memory_space<vmem>>, vector<2x1x128xf32>
    tpu.vector_store %arg23[%c0_270, %c9, %c0_271], %337 {strides = array<i32>} : memref<2x66x128xf32, #tpu.memory_space<vmem>>, vector<2x1x128xf32>,
    %c0_272 = arith.constant 0 : index
    %c1_273 = arith.constant 1 : index
    %c0_274 = arith.constant 0 : index
    %339 = vector.load %arg23[%c0_272, %c1_273, %c0_274] : memref<2x66x128xf32, #tpu.memory_space<vmem>>, vector<2x8x128xf32>
    tpu.vector_store %arg23[%c0_272, %c1_273, %c0_274], %330 {strides = array<i32>} : memref<2x66x128xf32, #tpu.memory_space<vmem>>, vector<2x8x128xf32>,
    %c0_275 = arith.constant 0 : index
    %c0_276 = arith.constant 0 : index
    %c0_277 = arith.constant 0 : index
    %340 = vector.load %arg23[%c0_275, %c0_276, %c0_277] : memref<2x66x128xf32, #tpu.memory_space<vmem>>, vector<2x8x128xf32>
    %341 = arith.truncf %340 : vector<2x8x128xf32> to vector<2x8x128xbf16>
    %342 = vector.shape_cast %341 : vector<2x8x128xbf16> to vector<16x128xbf16>
    %343 = vector.extract_strided_slice %332 {offsets = [0, 0, 0], sizes = [1, 128, 128], strides = [1, 1, 1]} : vector<3x128x128xbf16> to vector<1x128x128xbf16>
    %344 = vector.shape_cast %343 : vector<1x128x128xbf16> to vector<128x128xbf16>
    %cst_278 = arith.constant dense<0.000000e+00> : vector<16x128xf32>
    %345 = tpu.matmul %342, %344, %cst_278 {dimension_numbers = #tpu.dot_dimension_numbers<[1], [0], [0], [1], [0, 0, 1, 1], [], []>} : vector<16x128xbf16>, vector<128x128xbf16>, vector<16x128xf32> -> vector<16x128xf32>
    %346 = vector.broadcast %334 : vector<1x128xf32> to vector<16x128xf32>
    %347 = arith.addf %346, %345 : vector<16x128xf32>
    %c0_279 = arith.constant 0 : index
    %c1_280 = arith.constant 1 : index
    %c0_281 = arith.constant 0 : index
    %348 = vector.load %arg23[%c0_279, %c1_280, %c0_281] : memref<2x66x128xf32, #tpu.memory_space<vmem>>, vector<2x8x128xf32>
    %349 = arith.truncf %348 : vector<2x8x128xf32> to vector<2x8x128xbf16>
    %350 = vector.shape_cast %349 : vector<2x8x128xbf16> to vector<16x128xbf16>
    %351 = vector.extract_strided_slice %332 {offsets = [1, 0, 0], sizes = [1, 128, 128], strides = [1, 1, 1]} : vector<3x128x128xbf16> to vector<1x128x128xbf16>
    %352 = vector.shape_cast %351 : vector<1x128x128xbf16> to vector<128x128xbf16>
    %cst_282 = arith.constant dense<0.000000e+00> : vector<16x128xf32>
    %353 = tpu.matmul %350, %352, %cst_282 {dimension_numbers = #tpu.dot_dimension_numbers<[1], [0], [0], [1], [0, 0, 1, 1], [], []>} : vector<16x128xbf16>, vector<128x128xbf16>, vector<16x128xf32> -> vector<16x128xf32>
    %354 = arith.addf %347, %353 : vector<16x128xf32>
    %c0_283 = arith.constant 0 : index
    %c2_284 = arith.constant 2 : index
    %c0_285 = arith.constant 0 : index
    %355 = vector.load %arg23[%c0_283, %c2_284, %c0_285] : memref<2x66x128xf32, #tpu.memory_space<vmem>>, vector<2x8x128xf32>
    %356 = arith.truncf %355 : vector<2x8x128xf32> to vector<2x8x128xbf16>
    %357 = vector.shape_cast %356 : vector<2x8x128xbf16> to vector<16x128xbf16>
    %358 = vector.extract_strided_slice %332 {offsets = [2, 0, 0], sizes = [1, 128, 128], strides = [1, 1, 1]} : vector<3x128x128xbf16> to vector<1x128x128xbf16>
    %359 = vector.shape_cast %358 : vector<1x128x128xbf16> to vector<128x128xbf16>
    %cst_286 = arith.constant dense<0.000000e+00> : vector<16x128xf32>
    %360 = tpu.matmul %357, %359, %cst_286 {dimension_numbers = #tpu.dot_dimension_numbers<[1], [0], [0], [1], [0, 0, 1, 1], [], []>} : vector<16x128xbf16>, vector<128x128xbf16>, vector<16x128xf32> -> vector<16x128xf32>
    %361 = arith.addf %354, %360 : vector<16x128xf32>
    %cst_287 = arith.constant 0.000000e+00 : f32
    %362 = vector.broadcast %cst_287 : f32 to vector<16x128xf32>
    %363 = arith.maximumf %361, %362 : vector<16x128xf32>
    %364 = vector.shape_cast %363 : vector<16x128xf32> to vector<2x8x128xf32>
    %c7 = arith.constant 7 : index
    %c0_288 = arith.constant 0 : index
    %c0_289 = arith.constant 0 : index
    %c0_290 = arith.constant 0 : index
    %365 = vector.load %arg12[%c7, %c0_288, %c0_289, %c0_290] : memref<10x3x128x128xbf16, #tpu.memory_space<vmem>>, vector<1x3x128x128xbf16>
    %366 = vector.shape_cast %365 : vector<1x3x128x128xbf16> to vector<3x128x128xbf16>
    %c7_291 = arith.constant 7 : index
    %c0_292 = arith.constant 0 : index
    %c0_293 = arith.constant 0 : index
    %367 = vector.load %arg13[%c7_291, %c0_292, %c0_293] : memref<10x1x128xf32, #tpu.memory_space<vmem>>, vector<1x1x128xf32>
    %368 = vector.shape_cast %367 : vector<1x1x128xf32> to vector<1x128xf32>
    %cst_294 = arith.constant 0.000000e+00 : f32
    %369 = vector.broadcast %cst_294 : f32 to vector<2x1x128xf32>
    %c0_295 = arith.constant 0 : index
    %c0_296 = arith.constant 0 : index
    %c0_297 = arith.constant 0 : index
    %370 = vector.load %arg23[%c0_295, %c0_296, %c0_297] : memref<2x66x128xf32, #tpu.memory_space<vmem>>, vector<2x1x128xf32>
    tpu.vector_store %arg23[%c0_295, %c0_296, %c0_297], %369 {strides = array<i32>} : memref<2x66x128xf32, #tpu.memory_space<vmem>>, vector<2x1x128xf32>,
    %cst_298 = arith.constant 0.000000e+00 : f32
    %371 = vector.broadcast %cst_298 : f32 to vector<2x1x128xf32>
    %c0_299 = arith.constant 0 : index
    %c9_300 = arith.constant 9 : index
    %c0_301 = arith.constant 0 : index
    %372 = vector.load %arg23[%c0_299, %c9_300, %c0_301] : memref<2x66x128xf32, #tpu.memory_space<vmem>>, vector<2x1x128xf32>
    tpu.vector_store %arg23[%c0_299, %c9_300, %c0_301], %371 {strides = array<i32>} : memref<2x66x128xf32, #tpu.memory_space<vmem>>, vector<2x1x128xf32>,
    %c0_302 = arith.constant 0 : index
    %c1_303 = arith.constant 1 : index
    %c0_304 = arith.constant 0 : index
    %373 = vector.load %arg23[%c0_302, %c1_303, %c0_304] : memref<2x66x128xf32, #tpu.memory_space<vmem>>, vector<2x8x128xf32>
    tpu.vector_store %arg23[%c0_302, %c1_303, %c0_304], %364 {strides = array<i32>} : memref<2x66x128xf32, #tpu.memory_space<vmem>>, vector<2x8x128xf32>,
    %c0_305 = arith.constant 0 : index
    %c0_306 = arith.constant 0 : index
    %c0_307 = arith.constant 0 : index
    %374 = vector.load %arg23[%c0_305, %c0_306, %c0_307] : memref<2x66x128xf32, #tpu.memory_space<vmem>>, vector<2x8x128xf32>
    %375 = arith.truncf %374 : vector<2x8x128xf32> to vector<2x8x128xbf16>
    %376 = vector.shape_cast %375 : vector<2x8x128xbf16> to vector<16x128xbf16>
    %377 = vector.extract_strided_slice %366 {offsets = [0, 0, 0], sizes = [1, 128, 128], strides = [1, 1, 1]} : vector<3x128x128xbf16> to vector<1x128x128xbf16>
    %378 = vector.shape_cast %377 : vector<1x128x128xbf16> to vector<128x128xbf16>
    %cst_308 = arith.constant dense<0.000000e+00> : vector<16x128xf32>
    %379 = tpu.matmul %376, %378, %cst_308 {dimension_numbers = #tpu.dot_dimension_numbers<[1], [0], [0], [1], [0, 0, 1, 1], [], []>} : vector<16x128xbf16>, vector<128x128xbf16>, vector<16x128xf32> -> vector<16x128xf32>
    %380 = vector.broadcast %368 : vector<1x128xf32> to vector<16x128xf32>
    %381 = arith.addf %380, %379 : vector<16x128xf32>
    %c0_309 = arith.constant 0 : index
    %c1_310 = arith.constant 1 : index
    %c0_311 = arith.constant 0 : index
    %382 = vector.load %arg23[%c0_309, %c1_310, %c0_311] : memref<2x66x128xf32, #tpu.memory_space<vmem>>, vector<2x8x128xf32>
    %383 = arith.truncf %382 : vector<2x8x128xf32> to vector<2x8x128xbf16>
    %384 = vector.shape_cast %383 : vector<2x8x128xbf16> to vector<16x128xbf16>
    %385 = vector.extract_strided_slice %366 {offsets = [1, 0, 0], sizes = [1, 128, 128], strides = [1, 1, 1]} : vector<3x128x128xbf16> to vector<1x128x128xbf16>
    %386 = vector.shape_cast %385 : vector<1x128x128xbf16> to vector<128x128xbf16>
    %cst_312 = arith.constant dense<0.000000e+00> : vector<16x128xf32>
    %387 = tpu.matmul %384, %386, %cst_312 {dimension_numbers = #tpu.dot_dimension_numbers<[1], [0], [0], [1], [0, 0, 1, 1], [], []>} : vector<16x128xbf16>, vector<128x128xbf16>, vector<16x128xf32> -> vector<16x128xf32>
    %388 = arith.addf %381, %387 : vector<16x128xf32>
    %c0_313 = arith.constant 0 : index
    %c2_314 = arith.constant 2 : index
    %c0_315 = arith.constant 0 : index
    %389 = vector.load %arg23[%c0_313, %c2_314, %c0_315] : memref<2x66x128xf32, #tpu.memory_space<vmem>>, vector<2x8x128xf32>
    %390 = arith.truncf %389 : vector<2x8x128xf32> to vector<2x8x128xbf16>
    %391 = vector.shape_cast %390 : vector<2x8x128xbf16> to vector<16x128xbf16>
    %392 = vector.extract_strided_slice %366 {offsets = [2, 0, 0], sizes = [1, 128, 128], strides = [1, 1, 1]} : vector<3x128x128xbf16> to vector<1x128x128xbf16>
    %393 = vector.shape_cast %392 : vector<1x128x128xbf16> to vector<128x128xbf16>
    %cst_316 = arith.constant dense<0.000000e+00> : vector<16x128xf32>
    %394 = tpu.matmul %391, %393, %cst_316 {dimension_numbers = #tpu.dot_dimension_numbers<[1], [0], [0], [1], [0, 0, 1, 1], [], []>} : vector<16x128xbf16>, vector<128x128xbf16>, vector<16x128xf32> -> vector<16x128xf32>
    %395 = arith.addf %388, %394 : vector<16x128xf32>
    %cst_317 = arith.constant 0.000000e+00 : f32
    %396 = vector.broadcast %cst_317 : f32 to vector<16x128xf32>
    %397 = arith.maximumf %395, %396 : vector<16x128xf32>
    %398 = vector.shape_cast %397 : vector<16x128xf32> to vector<2x8x128xf32>
    %399 = vector.shape_cast %398 : vector<2x8x128xf32> to vector<2x4x2x128xf32>
    %400 = vector.extract_strided_slice %399 {offsets = [0, 0, 0, 0], sizes = [2, 4, 1, 128], strides = [1, 1, 1, 1]} : vector<2x4x2x128xf32> to vector<2x4x1x128xf32>
    %401 = vector.shape_cast %400 : vector<2x4x1x128xf32> to vector<2x4x128xf32>
    %402 = vector.extract_strided_slice %399 {offsets = [0, 0, 1, 0], sizes = [2, 4, 1, 128], strides = [1, 1, 1, 1]} : vector<2x4x2x128xf32> to vector<2x4x1x128xf32>
    %403 = vector.shape_cast %402 : vector<2x4x1x128xf32> to vector<2x4x128xf32>
    %404 = arith.maximumf %401, %403 : vector<2x4x128xf32>
    %c8 = arith.constant 8 : index
    %c0_318 = arith.constant 0 : index
    %c0_319 = arith.constant 0 : index
    %c0_320 = arith.constant 0 : index
    %405 = vector.load %arg12[%c8, %c0_318, %c0_319, %c0_320] : memref<10x3x128x128xbf16, #tpu.memory_space<vmem>>, vector<1x3x128x128xbf16>
    %406 = vector.shape_cast %405 : vector<1x3x128x128xbf16> to vector<3x128x128xbf16>
    %c8_321 = arith.constant 8 : index
    %c0_322 = arith.constant 0 : index
    %c0_323 = arith.constant 0 : index
    %407 = vector.load %arg13[%c8_321, %c0_322, %c0_323] : memref<10x1x128xf32, #tpu.memory_space<vmem>>, vector<1x1x128xf32>
    %408 = vector.shape_cast %407 : vector<1x1x128xf32> to vector<1x128xf32>
    %cst_324 = arith.constant 0.000000e+00 : f32
    %409 = vector.broadcast %cst_324 : f32 to vector<2x1x128xf32>
    %c0_325 = arith.constant 0 : index
    %c0_326 = arith.constant 0 : index
    %c0_327 = arith.constant 0 : index
    %410 = vector.load %arg23[%c0_325, %c0_326, %c0_327] : memref<2x66x128xf32, #tpu.memory_space<vmem>>, vector<2x1x128xf32>
    tpu.vector_store %arg23[%c0_325, %c0_326, %c0_327], %409 {strides = array<i32>} : memref<2x66x128xf32, #tpu.memory_space<vmem>>, vector<2x1x128xf32>,
    %cst_328 = arith.constant 0.000000e+00 : f32
    %411 = vector.broadcast %cst_328 : f32 to vector<2x1x128xf32>
    %c0_329 = arith.constant 0 : index
    %c5_330 = arith.constant 5 : index
    %c0_331 = arith.constant 0 : index
    %412 = vector.load %arg23[%c0_329, %c5_330, %c0_331] : memref<2x66x128xf32, #tpu.memory_space<vmem>>, vector<2x1x128xf32>
    tpu.vector_store %arg23[%c0_329, %c5_330, %c0_331], %411 {strides = array<i32>} : memref<2x66x128xf32, #tpu.memory_space<vmem>>, vector<2x1x128xf32>,
    %c0_332 = arith.constant 0 : index
    %c1_333 = arith.constant 1 : index
    %c0_334 = arith.constant 0 : index
    %413 = vector.load %arg23[%c0_332, %c1_333, %c0_334] : memref<2x66x128xf32, #tpu.memory_space<vmem>>, vector<2x4x128xf32>
    tpu.vector_store %arg23[%c0_332, %c1_333, %c0_334], %404 {strides = array<i32>} : memref<2x66x128xf32, #tpu.memory_space<vmem>>, vector<2x4x128xf32>,
    %c0_335 = arith.constant 0 : index
    %c0_336 = arith.constant 0 : index
    %c0_337 = arith.constant 0 : index
    %414 = vector.load %arg23[%c0_335, %c0_336, %c0_337] : memref<2x66x128xf32, #tpu.memory_space<vmem>>, vector<2x4x128xf32>
    %415 = arith.truncf %414 : vector<2x4x128xf32> to vector<2x4x128xbf16>
    %416 = vector.shape_cast %415 : vector<2x4x128xbf16> to vector<8x128xbf16>
    %417 = vector.extract_strided_slice %406 {offsets = [0, 0, 0], sizes = [1, 128, 128], strides = [1, 1, 1]} : vector<3x128x128xbf16> to vector<1x128x128xbf16>
    %418 = vector.shape_cast %417 : vector<1x128x128xbf16> to vector<128x128xbf16>
    %cst_338 = arith.constant dense<0.000000e+00> : vector<8x128xf32>
    %419 = tpu.matmul %416, %418, %cst_338 {dimension_numbers = #tpu.dot_dimension_numbers<[1], [0], [0], [1], [0, 0, 1, 1], [], []>} : vector<8x128xbf16>, vector<128x128xbf16>, vector<8x128xf32> -> vector<8x128xf32>
    %420 = vector.broadcast %408 : vector<1x128xf32> to vector<8x128xf32>
    %421 = arith.addf %420, %419 : vector<8x128xf32>
    %c0_339 = arith.constant 0 : index
    %c1_340 = arith.constant 1 : index
    %c0_341 = arith.constant 0 : index
    %422 = vector.load %arg23[%c0_339, %c1_340, %c0_341] : memref<2x66x128xf32, #tpu.memory_space<vmem>>, vector<2x4x128xf32>
    %423 = arith.truncf %422 : vector<2x4x128xf32> to vector<2x4x128xbf16>
    %424 = vector.shape_cast %423 : vector<2x4x128xbf16> to vector<8x128xbf16>
    %425 = vector.extract_strided_slice %406 {offsets = [1, 0, 0], sizes = [1, 128, 128], strides = [1, 1, 1]} : vector<3x128x128xbf16> to vector<1x128x128xbf16>
    %426 = vector.shape_cast %425 : vector<1x128x128xbf16> to vector<128x128xbf16>
    %cst_342 = arith.constant dense<0.000000e+00> : vector<8x128xf32>
    %427 = tpu.matmul %424, %426, %cst_342 {dimension_numbers = #tpu.dot_dimension_numbers<[1], [0], [0], [1], [0, 0, 1, 1], [], []>} : vector<8x128xbf16>, vector<128x128xbf16>, vector<8x128xf32> -> vector<8x128xf32>
    %428 = arith.addf %421, %427 : vector<8x128xf32>
    %c0_343 = arith.constant 0 : index
    %c2_344 = arith.constant 2 : index
    %c0_345 = arith.constant 0 : index
    %429 = vector.load %arg23[%c0_343, %c2_344, %c0_345] : memref<2x66x128xf32, #tpu.memory_space<vmem>>, vector<2x4x128xf32>
    %430 = arith.truncf %429 : vector<2x4x128xf32> to vector<2x4x128xbf16>
    %431 = vector.shape_cast %430 : vector<2x4x128xbf16> to vector<8x128xbf16>
    %432 = vector.extract_strided_slice %406 {offsets = [2, 0, 0], sizes = [1, 128, 128], strides = [1, 1, 1]} : vector<3x128x128xbf16> to vector<1x128x128xbf16>
    %433 = vector.shape_cast %432 : vector<1x128x128xbf16> to vector<128x128xbf16>
    %cst_346 = arith.constant dense<0.000000e+00> : vector<8x128xf32>
    %434 = tpu.matmul %431, %433, %cst_346 {dimension_numbers = #tpu.dot_dimension_numbers<[1], [0], [0], [1], [0, 0, 1, 1], [], []>} : vector<8x128xbf16>, vector<128x128xbf16>, vector<8x128xf32> -> vector<8x128xf32>
    %435 = arith.addf %428, %434 : vector<8x128xf32>
    %cst_347 = arith.constant 0.000000e+00 : f32
    %436 = vector.broadcast %cst_347 : f32 to vector<8x128xf32>
    %437 = arith.maximumf %435, %436 : vector<8x128xf32>
    %438 = vector.shape_cast %437 : vector<8x128xf32> to vector<2x4x128xf32>
    %c9_348 = arith.constant 9 : index
    %c0_349 = arith.constant 0 : index
    %c0_350 = arith.constant 0 : index
    %c0_351 = arith.constant 0 : index
    %439 = vector.load %arg12[%c9_348, %c0_349, %c0_350, %c0_351] : memref<10x3x128x128xbf16, #tpu.memory_space<vmem>>, vector<1x3x128x128xbf16>
    %440 = vector.shape_cast %439 : vector<1x3x128x128xbf16> to vector<3x128x128xbf16>
    %c9_352 = arith.constant 9 : index
    %c0_353 = arith.constant 0 : index
    %c0_354 = arith.constant 0 : index
    %441 = vector.load %arg13[%c9_352, %c0_353, %c0_354] : memref<10x1x128xf32, #tpu.memory_space<vmem>>, vector<1x1x128xf32>
    %442 = vector.shape_cast %441 : vector<1x1x128xf32> to vector<1x128xf32>
    %cst_355 = arith.constant 0.000000e+00 : f32
    %443 = vector.broadcast %cst_355 : f32 to vector<2x1x128xf32>
    %c0_356 = arith.constant 0 : index
    %c0_357 = arith.constant 0 : index
    %c0_358 = arith.constant 0 : index
    %444 = vector.load %arg23[%c0_356, %c0_357, %c0_358] : memref<2x66x128xf32, #tpu.memory_space<vmem>>, vector<2x1x128xf32>
    tpu.vector_store %arg23[%c0_356, %c0_357, %c0_358], %443 {strides = array<i32>} : memref<2x66x128xf32, #tpu.memory_space<vmem>>, vector<2x1x128xf32>,
    %cst_359 = arith.constant 0.000000e+00 : f32
    %445 = vector.broadcast %cst_359 : f32 to vector<2x1x128xf32>
    %c0_360 = arith.constant 0 : index
    %c5_361 = arith.constant 5 : index
    %c0_362 = arith.constant 0 : index
    %446 = vector.load %arg23[%c0_360, %c5_361, %c0_362] : memref<2x66x128xf32, #tpu.memory_space<vmem>>, vector<2x1x128xf32>
    tpu.vector_store %arg23[%c0_360, %c5_361, %c0_362], %445 {strides = array<i32>} : memref<2x66x128xf32, #tpu.memory_space<vmem>>, vector<2x1x128xf32>,
    %c0_363 = arith.constant 0 : index
    %c1_364 = arith.constant 1 : index
    %c0_365 = arith.constant 0 : index
    %447 = vector.load %arg23[%c0_363, %c1_364, %c0_365] : memref<2x66x128xf32, #tpu.memory_space<vmem>>, vector<2x4x128xf32>
    tpu.vector_store %arg23[%c0_363, %c1_364, %c0_365], %438 {strides = array<i32>} : memref<2x66x128xf32, #tpu.memory_space<vmem>>, vector<2x4x128xf32>,
    %c0_366 = arith.constant 0 : index
    %c0_367 = arith.constant 0 : index
    %c0_368 = arith.constant 0 : index
    %448 = vector.load %arg23[%c0_366, %c0_367, %c0_368] : memref<2x66x128xf32, #tpu.memory_space<vmem>>, vector<2x4x128xf32>
    %449 = arith.truncf %448 : vector<2x4x128xf32> to vector<2x4x128xbf16>
    %450 = vector.shape_cast %449 : vector<2x4x128xbf16> to vector<8x128xbf16>
    %451 = vector.extract_strided_slice %440 {offsets = [0, 0, 0], sizes = [1, 128, 128], strides = [1, 1, 1]} : vector<3x128x128xbf16> to vector<1x128x128xbf16>
    %452 = vector.shape_cast %451 : vector<1x128x128xbf16> to vector<128x128xbf16>
    %cst_369 = arith.constant dense<0.000000e+00> : vector<8x128xf32>
    %453 = tpu.matmul %450, %452, %cst_369 {dimension_numbers = #tpu.dot_dimension_numbers<[1], [0], [0], [1], [0, 0, 1, 1], [], []>} : vector<8x128xbf16>, vector<128x128xbf16>, vector<8x128xf32> -> vector<8x128xf32>
    %454 = vector.broadcast %442 : vector<1x128xf32> to vector<8x128xf32>
    %455 = arith.addf %454, %453 : vector<8x128xf32>
    %c0_370 = arith.constant 0 : index
    %c1_371 = arith.constant 1 : index
    %c0_372 = arith.constant 0 : index
    %456 = vector.load %arg23[%c0_370, %c1_371, %c0_372] : memref<2x66x128xf32, #tpu.memory_space<vmem>>, vector<2x4x128xf32>
    %457 = arith.truncf %456 : vector<2x4x128xf32> to vector<2x4x128xbf16>
    %458 = vector.shape_cast %457 : vector<2x4x128xbf16> to vector<8x128xbf16>
    %459 = vector.extract_strided_slice %440 {offsets = [1, 0, 0], sizes = [1, 128, 128], strides = [1, 1, 1]} : vector<3x128x128xbf16> to vector<1x128x128xbf16>
    %460 = vector.shape_cast %459 : vector<1x128x128xbf16> to vector<128x128xbf16>
    %cst_373 = arith.constant dense<0.000000e+00> : vector<8x128xf32>
    %461 = tpu.matmul %458, %460, %cst_373 {dimension_numbers = #tpu.dot_dimension_numbers<[1], [0], [0], [1], [0, 0, 1, 1], [], []>} : vector<8x128xbf16>, vector<128x128xbf16>, vector<8x128xf32> -> vector<8x128xf32>
    %462 = arith.addf %455, %461 : vector<8x128xf32>
    %c0_374 = arith.constant 0 : index
    %c2_375 = arith.constant 2 : index
    %c0_376 = arith.constant 0 : index
    %463 = vector.load %arg23[%c0_374, %c2_375, %c0_376] : memref<2x66x128xf32, #tpu.memory_space<vmem>>, vector<2x4x128xf32>
    %464 = arith.truncf %463 : vector<2x4x128xf32> to vector<2x4x128xbf16>
    %465 = vector.shape_cast %464 : vector<2x4x128xbf16> to vector<8x128xbf16>
    %466 = vector.extract_strided_slice %440 {offsets = [2, 0, 0], sizes = [1, 128, 128], strides = [1, 1, 1]} : vector<3x128x128xbf16> to vector<1x128x128xbf16>
    %467 = vector.shape_cast %466 : vector<1x128x128xbf16> to vector<128x128xbf16>
    %cst_377 = arith.constant dense<0.000000e+00> : vector<8x128xf32>
    %468 = tpu.matmul %465, %467, %cst_377 {dimension_numbers = #tpu.dot_dimension_numbers<[1], [0], [0], [1], [0, 0, 1, 1], [], []>} : vector<8x128xbf16>, vector<128x128xbf16>, vector<8x128xf32> -> vector<8x128xf32>
    %469 = arith.addf %462, %468 : vector<8x128xf32>
    %cst_378 = arith.constant 0.000000e+00 : f32
    %470 = vector.broadcast %cst_378 : f32 to vector<8x128xf32>
    %471 = arith.maximumf %469, %470 : vector<8x128xf32>
    %472 = vector.shape_cast %471 : vector<8x128xf32> to vector<2x4x128xf32>
    %473 = vector.shape_cast %472 : vector<2x4x128xf32> to vector<2x2x2x128xf32>
    %474 = vector.extract_strided_slice %473 {offsets = [0, 0, 0, 0], sizes = [2, 2, 1, 128], strides = [1, 1, 1, 1]} : vector<2x2x2x128xf32> to vector<2x2x1x128xf32>
    %475 = vector.shape_cast %474 : vector<2x2x1x128xf32> to vector<2x2x128xf32>
    %476 = vector.extract_strided_slice %473 {offsets = [0, 0, 1, 0], sizes = [2, 2, 1, 128], strides = [1, 1, 1, 1]} : vector<2x2x2x128xf32> to vector<2x2x1x128xf32>
    %477 = vector.shape_cast %476 : vector<2x2x1x128xf32> to vector<2x2x128xf32>
    %478 = arith.maximumf %475, %477 : vector<2x2x128xf32>
    %479 = vector.extract_strided_slice %478 {offsets = [0, 0, 0], sizes = [2, 1, 128], strides = [1, 1, 1]} : vector<2x2x128xf32> to vector<2x1x128xf32>
    %480 = vector.shape_cast %479 : vector<2x1x128xf32> to vector<2x128xf32>
    %481 = arith.truncf %480 : vector<2x128xf32> to vector<2x128xbf16>
    %c0_379 = arith.constant 0 : index
    %c0_380 = arith.constant 0 : index
    %482 = vector.load %arg14[%c0_379, %c0_380] : memref<128x768xbf16, #tpu.memory_space<vmem>>, vector<128x768xbf16>
    %cst_381 = arith.constant dense<0.000000e+00> : vector<2x768xf32>
    %483 = tpu.matmul %481, %482, %cst_381 {dimension_numbers = #tpu.dot_dimension_numbers<[1], [0], [0], [1], [0, 0, 1, 1], [], []>} : vector<2x128xbf16>, vector<128x768xbf16>, vector<2x768xf32> -> vector<2x768xf32>
    %484 = vector.extract_strided_slice %478 {offsets = [0, 1, 0], sizes = [2, 1, 128], strides = [1, 1, 1]} : vector<2x2x128xf32> to vector<2x1x128xf32>
    %485 = vector.shape_cast %484 : vector<2x1x128xf32> to vector<2x128xf32>
    %486 = arith.truncf %485 : vector<2x128xf32> to vector<2x128xbf16>
    %c0_382 = arith.constant 0 : index
    %c0_383 = arith.constant 0 : index
    %487 = vector.load %arg15[%c0_382, %c0_383] : memref<128x768xbf16, #tpu.memory_space<vmem>>, vector<128x768xbf16>
    %cst_384 = arith.constant dense<0.000000e+00> : vector<2x768xf32>
    %488 = tpu.matmul %486, %487, %cst_384 {dimension_numbers = #tpu.dot_dimension_numbers<[1], [0], [0], [1], [0, 0, 1, 1], [], []>} : vector<2x128xbf16>, vector<128x768xbf16>, vector<2x768xf32> -> vector<2x768xf32>
    %489 = arith.addf %483, %488 : vector<2x768xf32>
    %c0_385 = arith.constant 0 : index
    %c0_386 = arith.constant 0 : index
    %490 = vector.load %arg16[%c0_385, %c0_386] : memref<1x768xf32, #tpu.memory_space<vmem>>, vector<1x768xf32>
    %491 = vector.broadcast %490 : vector<1x768xf32> to vector<2x768xf32>
    %492 = arith.addf %489, %491 : vector<2x768xf32>
    %c0_387 = arith.constant 0 : index
    %c0_388 = arith.constant 0 : index
    %493 = vector.load %arg17[%c0_387, %c0_388] : memref<32x96xbf16, #tpu.memory_space<vmem>>, vector<32x96xbf16>
    %c0_389 = arith.constant 0 : index
    %c0_390 = arith.constant 0 : index
    %494 = vector.load %arg18[%c0_389, %c0_390] : memref<1x96xf32, #tpu.memory_space<vmem>>, vector<1x96xf32>
    %cst_391 = arith.constant 0.000000e+00 : f32
    %495 = vector.broadcast %cst_391 : f32 to vector<2x32xf32>
    %496 = vector.extract_strided_slice %492 {offsets = [0, 0], sizes = [2, 96], strides = [1, 1]} : vector<2x768xf32> to vector<2x96xf32>
    %497 = arith.truncf %495 : vector<2x32xf32> to vector<2x32xbf16>
    %cst_392 = arith.constant dense<0.000000e+00> : vector<2x96xf32>
    %498 = tpu.matmul %497, %493, %cst_392 {dimension_numbers = #tpu.dot_dimension_numbers<[1], [0], [0], [1], [0, 0, 1, 1], [], []>} : vector<2x32xbf16>, vector<32x96xbf16>, vector<2x96xf32> -> vector<2x96xf32>
    %499 = vector.broadcast %494 : vector<1x96xf32> to vector<2x96xf32>
    %500 = arith.addf %498, %499 : vector<2x96xf32>
    %501 = vector.extract_strided_slice %496 {offsets = [0, 0], sizes = [2, 32], strides = [1, 1]} : vector<2x96xf32> to vector<2x32xf32>
    %502 = vector.extract_strided_slice %500 {offsets = [0, 0], sizes = [2, 32], strides = [1, 1]} : vector<2x96xf32> to vector<2x32xf32>
    %503 = arith.addf %501, %502 : vector<2x32xf32>
    %504 = arith.negf %503 : vector<2x32xf32>
    %505 = math.exp %504 : vector<2x32xf32>
    %cst_393 = arith.constant 1.000000e+00 : f32
    %506 = vector.broadcast %cst_393 : f32 to vector<2x32xf32>
    %507 = arith.addf %506, %505 : vector<2x32xf32>
    %508 = arith.divf %506, %507 : vector<2x32xf32>
    %509 = vector.extract_strided_slice %496 {offsets = [0, 32], sizes = [2, 32], strides = [1, 1]} : vector<2x96xf32> to vector<2x32xf32>
    %510 = vector.extract_strided_slice %500 {offsets = [0, 32], sizes = [2, 32], strides = [1, 1]} : vector<2x96xf32> to vector<2x32xf32>
    %511 = arith.addf %509, %510 : vector<2x32xf32>
    %512 = arith.negf %511 : vector<2x32xf32>
    %513 = math.exp %512 : vector<2x32xf32>
    %cst_394 = arith.constant 1.000000e+00 : f32
    %514 = vector.broadcast %cst_394 : f32 to vector<2x32xf32>
    %515 = arith.addf %514, %513 : vector<2x32xf32>
    %516 = arith.divf %514, %515 : vector<2x32xf32>
    %517 = vector.extract_strided_slice %496 {offsets = [0, 64], sizes = [2, 32], strides = [1, 1]} : vector<2x96xf32> to vector<2x32xf32>
    %518 = vector.extract_strided_slice %500 {offsets = [0, 64], sizes = [2, 32], strides = [1, 1]} : vector<2x96xf32> to vector<2x32xf32>
    %519 = arith.mulf %508, %518 : vector<2x32xf32>
    %520 = arith.addf %517, %519 : vector<2x32xf32>
    %521 = math.tanh %520 : vector<2x32xf32>
    %cst_395 = arith.constant 1.000000e+00 : f32
    %522 = vector.broadcast %cst_395 : f32 to vector<2x32xf32>
    %523 = arith.subf %522, %516 : vector<2x32xf32>
    %524 = arith.mulf %523, %521 : vector<2x32xf32>
    %525 = arith.mulf %516, %495 : vector<2x32xf32>
    %526 = arith.addf %524, %525 : vector<2x32xf32>
    %527 = vector.extract_strided_slice %492 {offsets = [0, 96], sizes = [2, 96], strides = [1, 1]} : vector<2x768xf32> to vector<2x96xf32>
    %528 = arith.truncf %526 : vector<2x32xf32> to vector<2x32xbf16>
    %cst_396 = arith.constant dense<0.000000e+00> : vector<2x96xf32>
    %529 = tpu.matmul %528, %493, %cst_396 {dimension_numbers = #tpu.dot_dimension_numbers<[1], [0], [0], [1], [0, 0, 1, 1], [], []>} : vector<2x32xbf16>, vector<32x96xbf16>, vector<2x96xf32> -> vector<2x96xf32>
    %530 = vector.broadcast %494 : vector<1x96xf32> to vector<2x96xf32>
    %531 = arith.addf %529, %530 : vector<2x96xf32>
    %532 = vector.extract_strided_slice %527 {offsets = [0, 0], sizes = [2, 32], strides = [1, 1]} : vector<2x96xf32> to vector<2x32xf32>
    %533 = vector.extract_strided_slice %531 {offsets = [0, 0], sizes = [2, 32], strides = [1, 1]} : vector<2x96xf32> to vector<2x32xf32>
    %534 = arith.addf %532, %533 : vector<2x32xf32>
    %535 = arith.negf %534 : vector<2x32xf32>
    %536 = math.exp %535 : vector<2x32xf32>
    %cst_397 = arith.constant 1.000000e+00 : f32
    %537 = vector.broadcast %cst_397 : f32 to vector<2x32xf32>
    %538 = arith.addf %537, %536 : vector<2x32xf32>
    %539 = arith.divf %537, %538 : vector<2x32xf32>
    %540 = vector.extract_strided_slice %527 {offsets = [0, 32], sizes = [2, 32], strides = [1, 1]} : vector<2x96xf32> to vector<2x32xf32>
    %541 = vector.extract_strided_slice %531 {offsets = [0, 32], sizes = [2, 32], strides = [1, 1]} : vector<2x96xf32> to vector<2x32xf32>
    %542 = arith.addf %540, %541 : vector<2x32xf32>
    %543 = arith.negf %542 : vector<2x32xf32>
    %544 = math.exp %543 : vector<2x32xf32>
    %cst_398 = arith.constant 1.000000e+00 : f32
    %545 = vector.broadcast %cst_398 : f32 to vector<2x32xf32>
    %546 = arith.addf %545, %544 : vector<2x32xf32>
    %547 = arith.divf %545, %546 : vector<2x32xf32>
    %548 = vector.extract_strided_slice %527 {offsets = [0, 64], sizes = [2, 32], strides = [1, 1]} : vector<2x96xf32> to vector<2x32xf32>
    %549 = vector.extract_strided_slice %531 {offsets = [0, 64], sizes = [2, 32], strides = [1, 1]} : vector<2x96xf32> to vector<2x32xf32>
    %550 = arith.mulf %539, %549 : vector<2x32xf32>
    %551 = arith.addf %548, %550 : vector<2x32xf32>
    %552 = math.tanh %551 : vector<2x32xf32>
    %cst_399 = arith.constant 1.000000e+00 : f32
    %553 = vector.broadcast %cst_399 : f32 to vector<2x32xf32>
    %554 = arith.subf %553, %547 : vector<2x32xf32>
    %555 = arith.mulf %554, %552 : vector<2x32xf32>
    %556 = arith.mulf %547, %526 : vector<2x32xf32>
    %557 = arith.addf %555, %556 : vector<2x32xf32>
    %558 = vector.extract_strided_slice %492 {offsets = [0, 192], sizes = [2, 96], strides = [1, 1]} : vector<2x768xf32> to vector<2x96xf32>
    %559 = arith.truncf %557 : vector<2x32xf32> to vector<2x32xbf16>
    %cst_400 = arith.constant dense<0.000000e+00> : vector<2x96xf32>
    %560 = tpu.matmul %559, %493, %cst_400 {dimension_numbers = #tpu.dot_dimension_numbers<[1], [0], [0], [1], [0, 0, 1, 1], [], []>} : vector<2x32xbf16>, vector<32x96xbf16>, vector<2x96xf32> -> vector<2x96xf32>
    %561 = vector.broadcast %494 : vector<1x96xf32> to vector<2x96xf32>
    %562 = arith.addf %560, %561 : vector<2x96xf32>
    %563 = vector.extract_strided_slice %558 {offsets = [0, 0], sizes = [2, 32], strides = [1, 1]} : vector<2x96xf32> to vector<2x32xf32>
    %564 = vector.extract_strided_slice %562 {offsets = [0, 0], sizes = [2, 32], strides = [1, 1]} : vector<2x96xf32> to vector<2x32xf32>
    %565 = arith.addf %563, %564 : vector<2x32xf32>
    %566 = arith.negf %565 : vector<2x32xf32>
    %567 = math.exp %566 : vector<2x32xf32>
    %cst_401 = arith.constant 1.000000e+00 : f32
    %568 = vector.broadcast %cst_401 : f32 to vector<2x32xf32>
    %569 = arith.addf %568, %567 : vector<2x32xf32>
    %570 = arith.divf %568, %569 : vector<2x32xf32>
    %571 = vector.extract_strided_slice %558 {offsets = [0, 32], sizes = [2, 32], strides = [1, 1]} : vector<2x96xf32> to vector<2x32xf32>
    %572 = vector.extract_strided_slice %562 {offsets = [0, 32], sizes = [2, 32], strides = [1, 1]} : vector<2x96xf32> to vector<2x32xf32>
    %573 = arith.addf %571, %572 : vector<2x32xf32>
    %574 = arith.negf %573 : vector<2x32xf32>
    %575 = math.exp %574 : vector<2x32xf32>
    %cst_402 = arith.constant 1.000000e+00 : f32
    %576 = vector.broadcast %cst_402 : f32 to vector<2x32xf32>
    %577 = arith.addf %576, %575 : vector<2x32xf32>
    %578 = arith.divf %576, %577 : vector<2x32xf32>
    %579 = vector.extract_strided_slice %558 {offsets = [0, 64], sizes = [2, 32], strides = [1, 1]} : vector<2x96xf32> to vector<2x32xf32>
    %580 = vector.extract_strided_slice %562 {offsets = [0, 64], sizes = [2, 32], strides = [1, 1]} : vector<2x96xf32> to vector<2x32xf32>
    %581 = arith.mulf %570, %580 : vector<2x32xf32>
    %582 = arith.addf %579, %581 : vector<2x32xf32>
    %583 = math.tanh %582 : vector<2x32xf32>
    %cst_403 = arith.constant 1.000000e+00 : f32
    %584 = vector.broadcast %cst_403 : f32 to vector<2x32xf32>
    %585 = arith.subf %584, %578 : vector<2x32xf32>
    %586 = arith.mulf %585, %583 : vector<2x32xf32>
    %587 = arith.mulf %578, %557 : vector<2x32xf32>
    %588 = arith.addf %586, %587 : vector<2x32xf32>
    %589 = vector.extract_strided_slice %492 {offsets = [0, 288], sizes = [2, 96], strides = [1, 1]} : vector<2x768xf32> to vector<2x96xf32>
    %590 = arith.truncf %588 : vector<2x32xf32> to vector<2x32xbf16>
    %cst_404 = arith.constant dense<0.000000e+00> : vector<2x96xf32>
    %591 = tpu.matmul %590, %493, %cst_404 {dimension_numbers = #tpu.dot_dimension_numbers<[1], [0], [0], [1], [0, 0, 1, 1], [], []>} : vector<2x32xbf16>, vector<32x96xbf16>, vector<2x96xf32> -> vector<2x96xf32>
    %592 = vector.broadcast %494 : vector<1x96xf32> to vector<2x96xf32>
    %593 = arith.addf %591, %592 : vector<2x96xf32>
    %594 = vector.extract_strided_slice %589 {offsets = [0, 0], sizes = [2, 32], strides = [1, 1]} : vector<2x96xf32> to vector<2x32xf32>
    %595 = vector.extract_strided_slice %593 {offsets = [0, 0], sizes = [2, 32], strides = [1, 1]} : vector<2x96xf32> to vector<2x32xf32>
    %596 = arith.addf %594, %595 : vector<2x32xf32>
    %597 = arith.negf %596 : vector<2x32xf32>
    %598 = math.exp %597 : vector<2x32xf32>
    %cst_405 = arith.constant 1.000000e+00 : f32
    %599 = vector.broadcast %cst_405 : f32 to vector<2x32xf32>
    %600 = arith.addf %599, %598 : vector<2x32xf32>
    %601 = arith.divf %599, %600 : vector<2x32xf32>
    %602 = vector.extract_strided_slice %589 {offsets = [0, 32], sizes = [2, 32], strides = [1, 1]} : vector<2x96xf32> to vector<2x32xf32>
    %603 = vector.extract_strided_slice %593 {offsets = [0, 32], sizes = [2, 32], strides = [1, 1]} : vector<2x96xf32> to vector<2x32xf32>
    %604 = arith.addf %602, %603 : vector<2x32xf32>
    %605 = arith.negf %604 : vector<2x32xf32>
    %606 = math.exp %605 : vector<2x32xf32>
    %cst_406 = arith.constant 1.000000e+00 : f32
    %607 = vector.broadcast %cst_406 : f32 to vector<2x32xf32>
    %608 = arith.addf %607, %606 : vector<2x32xf32>
    %609 = arith.divf %607, %608 : vector<2x32xf32>
    %610 = vector.extract_strided_slice %589 {offsets = [0, 64], sizes = [2, 32], strides = [1, 1]} : vector<2x96xf32> to vector<2x32xf32>
    %611 = vector.extract_strided_slice %593 {offsets = [0, 64], sizes = [2, 32], strides = [1, 1]} : vector<2x96xf32> to vector<2x32xf32>
    %612 = arith.mulf %601, %611 : vector<2x32xf32>
    %613 = arith.addf %610, %612 : vector<2x32xf32>
    %614 = math.tanh %613 : vector<2x32xf32>
    %cst_407 = arith.constant 1.000000e+00 : f32
    %615 = vector.broadcast %cst_407 : f32 to vector<2x32xf32>
    %616 = arith.subf %615, %609 : vector<2x32xf32>
    %617 = arith.mulf %616, %614 : vector<2x32xf32>
    %618 = arith.mulf %609, %588 : vector<2x32xf32>
    %619 = arith.addf %617, %618 : vector<2x32xf32>
    %620 = vector.extract_strided_slice %492 {offsets = [0, 384], sizes = [2, 96], strides = [1, 1]} : vector<2x768xf32> to vector<2x96xf32>
    %621 = arith.truncf %619 : vector<2x32xf32> to vector<2x32xbf16>
    %cst_408 = arith.constant dense<0.000000e+00> : vector<2x96xf32>
    %622 = tpu.matmul %621, %493, %cst_408 {dimension_numbers = #tpu.dot_dimension_numbers<[1], [0], [0], [1], [0, 0, 1, 1], [], []>} : vector<2x32xbf16>, vector<32x96xbf16>, vector<2x96xf32> -> vector<2x96xf32>
    %623 = vector.broadcast %494 : vector<1x96xf32> to vector<2x96xf32>
    %624 = arith.addf %622, %623 : vector<2x96xf32>
    %625 = vector.extract_strided_slice %620 {offsets = [0, 0], sizes = [2, 32], strides = [1, 1]} : vector<2x96xf32> to vector<2x32xf32>
    %626 = vector.extract_strided_slice %624 {offsets = [0, 0], sizes = [2, 32], strides = [1, 1]} : vector<2x96xf32> to vector<2x32xf32>
    %627 = arith.addf %625, %626 : vector<2x32xf32>
    %628 = arith.negf %627 : vector<2x32xf32>
    %629 = math.exp %628 : vector<2x32xf32>
    %cst_409 = arith.constant 1.000000e+00 : f32
    %630 = vector.broadcast %cst_409 : f32 to vector<2x32xf32>
    %631 = arith.addf %630, %629 : vector<2x32xf32>
    %632 = arith.divf %630, %631 : vector<2x32xf32>
    %633 = vector.extract_strided_slice %620 {offsets = [0, 32], sizes = [2, 32], strides = [1, 1]} : vector<2x96xf32> to vector<2x32xf32>
    %634 = vector.extract_strided_slice %624 {offsets = [0, 32], sizes = [2, 32], strides = [1, 1]} : vector<2x96xf32> to vector<2x32xf32>
    %635 = arith.addf %633, %634 : vector<2x32xf32>
    %636 = arith.negf %635 : vector<2x32xf32>
    %637 = math.exp %636 : vector<2x32xf32>
    %cst_410 = arith.constant 1.000000e+00 : f32
    %638 = vector.broadcast %cst_410 : f32 to vector<2x32xf32>
    %639 = arith.addf %638, %637 : vector<2x32xf32>
    %640 = arith.divf %638, %639 : vector<2x32xf32>
    %641 = vector.extract_strided_slice %620 {offsets = [0, 64], sizes = [2, 32], strides = [1, 1]} : vector<2x96xf32> to vector<2x32xf32>
    %642 = vector.extract_strided_slice %624 {offsets = [0, 64], sizes = [2, 32], strides = [1, 1]} : vector<2x96xf32> to vector<2x32xf32>
    %643 = arith.mulf %632, %642 : vector<2x32xf32>
    %644 = arith.addf %641, %643 : vector<2x32xf32>
    %645 = math.tanh %644 : vector<2x32xf32>
    %cst_411 = arith.constant 1.000000e+00 : f32
    %646 = vector.broadcast %cst_411 : f32 to vector<2x32xf32>
    %647 = arith.subf %646, %640 : vector<2x32xf32>
    %648 = arith.mulf %647, %645 : vector<2x32xf32>
    %649 = arith.mulf %640, %619 : vector<2x32xf32>
    %650 = arith.addf %648, %649 : vector<2x32xf32>
    %651 = vector.extract_strided_slice %492 {offsets = [0, 480], sizes = [2, 96], strides = [1, 1]} : vector<2x768xf32> to vector<2x96xf32>
    %652 = arith.truncf %650 : vector<2x32xf32> to vector<2x32xbf16>
    %cst_412 = arith.constant dense<0.000000e+00> : vector<2x96xf32>
    %653 = tpu.matmul %652, %493, %cst_412 {dimension_numbers = #tpu.dot_dimension_numbers<[1], [0], [0], [1], [0, 0, 1, 1], [], []>} : vector<2x32xbf16>, vector<32x96xbf16>, vector<2x96xf32> -> vector<2x96xf32>
    %654 = vector.broadcast %494 : vector<1x96xf32> to vector<2x96xf32>
    %655 = arith.addf %653, %654 : vector<2x96xf32>
    %656 = vector.extract_strided_slice %651 {offsets = [0, 0], sizes = [2, 32], strides = [1, 1]} : vector<2x96xf32> to vector<2x32xf32>
    %657 = vector.extract_strided_slice %655 {offsets = [0, 0], sizes = [2, 32], strides = [1, 1]} : vector<2x96xf32> to vector<2x32xf32>
    %658 = arith.addf %656, %657 : vector<2x32xf32>
    %659 = arith.negf %658 : vector<2x32xf32>
    %660 = math.exp %659 : vector<2x32xf32>
    %cst_413 = arith.constant 1.000000e+00 : f32
    %661 = vector.broadcast %cst_413 : f32 to vector<2x32xf32>
    %662 = arith.addf %661, %660 : vector<2x32xf32>
    %663 = arith.divf %661, %662 : vector<2x32xf32>
    %664 = vector.extract_strided_slice %651 {offsets = [0, 32], sizes = [2, 32], strides = [1, 1]} : vector<2x96xf32> to vector<2x32xf32>
    %665 = vector.extract_strided_slice %655 {offsets = [0, 32], sizes = [2, 32], strides = [1, 1]} : vector<2x96xf32> to vector<2x32xf32>
    %666 = arith.addf %664, %665 : vector<2x32xf32>
    %667 = arith.negf %666 : vector<2x32xf32>
    %668 = math.exp %667 : vector<2x32xf32>
    %cst_414 = arith.constant 1.000000e+00 : f32
    %669 = vector.broadcast %cst_414 : f32 to vector<2x32xf32>
    %670 = arith.addf %669, %668 : vector<2x32xf32>
    %671 = arith.divf %669, %670 : vector<2x32xf32>
    %672 = vector.extract_strided_slice %651 {offsets = [0, 64], sizes = [2, 32], strides = [1, 1]} : vector<2x96xf32> to vector<2x32xf32>
    %673 = vector.extract_strided_slice %655 {offsets = [0, 64], sizes = [2, 32], strides = [1, 1]} : vector<2x96xf32> to vector<2x32xf32>
    %674 = arith.mulf %663, %673 : vector<2x32xf32>
    %675 = arith.addf %672, %674 : vector<2x32xf32>
    %676 = math.tanh %675 : vector<2x32xf32>
    %cst_415 = arith.constant 1.000000e+00 : f32
    %677 = vector.broadcast %cst_415 : f32 to vector<2x32xf32>
    %678 = arith.subf %677, %671 : vector<2x32xf32>
    %679 = arith.mulf %678, %676 : vector<2x32xf32>
    %680 = arith.mulf %671, %650 : vector<2x32xf32>
    %681 = arith.addf %679, %680 : vector<2x32xf32>
    %682 = vector.extract_strided_slice %492 {offsets = [0, 576], sizes = [2, 96], strides = [1, 1]} : vector<2x768xf32> to vector<2x96xf32>
    %683 = arith.truncf %681 : vector<2x32xf32> to vector<2x32xbf16>
    %cst_416 = arith.constant dense<0.000000e+00> : vector<2x96xf32>
    %684 = tpu.matmul %683, %493, %cst_416 {dimension_numbers = #tpu.dot_dimension_numbers<[1], [0], [0], [1], [0, 0, 1, 1], [], []>} : vector<2x32xbf16>, vector<32x96xbf16>, vector<2x96xf32> -> vector<2x96xf32>
    %685 = vector.broadcast %494 : vector<1x96xf32> to vector<2x96xf32>
    %686 = arith.addf %684, %685 : vector<2x96xf32>
    %687 = vector.extract_strided_slice %682 {offsets = [0, 0], sizes = [2, 32], strides = [1, 1]} : vector<2x96xf32> to vector<2x32xf32>
    %688 = vector.extract_strided_slice %686 {offsets = [0, 0], sizes = [2, 32], strides = [1, 1]} : vector<2x96xf32> to vector<2x32xf32>
    %689 = arith.addf %687, %688 : vector<2x32xf32>
    %690 = arith.negf %689 : vector<2x32xf32>
    %691 = math.exp %690 : vector<2x32xf32>
    %cst_417 = arith.constant 1.000000e+00 : f32
    %692 = vector.broadcast %cst_417 : f32 to vector<2x32xf32>
    %693 = arith.addf %692, %691 : vector<2x32xf32>
    %694 = arith.divf %692, %693 : vector<2x32xf32>
    %695 = vector.extract_strided_slice %682 {offsets = [0, 32], sizes = [2, 32], strides = [1, 1]} : vector<2x96xf32> to vector<2x32xf32>
    %696 = vector.extract_strided_slice %686 {offsets = [0, 32], sizes = [2, 32], strides = [1, 1]} : vector<2x96xf32> to vector<2x32xf32>
    %697 = arith.addf %695, %696 : vector<2x32xf32>
    %698 = arith.negf %697 : vector<2x32xf32>
    %699 = math.exp %698 : vector<2x32xf32>
    %cst_418 = arith.constant 1.000000e+00 : f32
    %700 = vector.broadcast %cst_418 : f32 to vector<2x32xf32>
    %701 = arith.addf %700, %699 : vector<2x32xf32>
    %702 = arith.divf %700, %701 : vector<2x32xf32>
    %703 = vector.extract_strided_slice %682 {offsets = [0, 64], sizes = [2, 32], strides = [1, 1]} : vector<2x96xf32> to vector<2x32xf32>
    %704 = vector.extract_strided_slice %686 {offsets = [0, 64], sizes = [2, 32], strides = [1, 1]} : vector<2x96xf32> to vector<2x32xf32>
    %705 = arith.mulf %694, %704 : vector<2x32xf32>
    %706 = arith.addf %703, %705 : vector<2x32xf32>
    %707 = math.tanh %706 : vector<2x32xf32>
    %cst_419 = arith.constant 1.000000e+00 : f32
    %708 = vector.broadcast %cst_419 : f32 to vector<2x32xf32>
    %709 = arith.subf %708, %702 : vector<2x32xf32>
    %710 = arith.mulf %709, %707 : vector<2x32xf32>
    %711 = arith.mulf %702, %681 : vector<2x32xf32>
    %712 = arith.addf %710, %711 : vector<2x32xf32>
    %713 = vector.extract_strided_slice %492 {offsets = [0, 672], sizes = [2, 96], strides = [1, 1]} : vector<2x768xf32> to vector<2x96xf32>
    %714 = arith.truncf %712 : vector<2x32xf32> to vector<2x32xbf16>
    %cst_420 = arith.constant dense<0.000000e+00> : vector<2x96xf32>
    %715 = tpu.matmul %714, %493, %cst_420 {dimension_numbers = #tpu.dot_dimension_numbers<[1], [0], [0], [1], [0, 0, 1, 1], [], []>} : vector<2x32xbf16>, vector<32x96xbf16>, vector<2x96xf32> -> vector<2x96xf32>
    %716 = vector.broadcast %494 : vector<1x96xf32> to vector<2x96xf32>
    %717 = arith.addf %715, %716 : vector<2x96xf32>
    %718 = vector.extract_strided_slice %713 {offsets = [0, 0], sizes = [2, 32], strides = [1, 1]} : vector<2x96xf32> to vector<2x32xf32>
    %719 = vector.extract_strided_slice %717 {offsets = [0, 0], sizes = [2, 32], strides = [1, 1]} : vector<2x96xf32> to vector<2x32xf32>
    %720 = arith.addf %718, %719 : vector<2x32xf32>
    %721 = arith.negf %720 : vector<2x32xf32>
    %722 = math.exp %721 : vector<2x32xf32>
    %cst_421 = arith.constant 1.000000e+00 : f32
    %723 = vector.broadcast %cst_421 : f32 to vector<2x32xf32>
    %724 = arith.addf %723, %722 : vector<2x32xf32>
    %725 = arith.divf %723, %724 : vector<2x32xf32>
    %726 = vector.extract_strided_slice %713 {offsets = [0, 32], sizes = [2, 32], strides = [1, 1]} : vector<2x96xf32> to vector<2x32xf32>
    %727 = vector.extract_strided_slice %717 {offsets = [0, 32], sizes = [2, 32], strides = [1, 1]} : vector<2x96xf32> to vector<2x32xf32>
    %728 = arith.addf %726, %727 : vector<2x32xf32>
    %729 = arith.negf %728 : vector<2x32xf32>
    %730 = math.exp %729 : vector<2x32xf32>
    %cst_422 = arith.constant 1.000000e+00 : f32
    %731 = vector.broadcast %cst_422 : f32 to vector<2x32xf32>
    %732 = arith.addf %731, %730 : vector<2x32xf32>
    %733 = arith.divf %731, %732 : vector<2x32xf32>
    %734 = vector.extract_strided_slice %713 {offsets = [0, 64], sizes = [2, 32], strides = [1, 1]} : vector<2x96xf32> to vector<2x32xf32>
    %735 = vector.extract_strided_slice %717 {offsets = [0, 64], sizes = [2, 32], strides = [1, 1]} : vector<2x96xf32> to vector<2x32xf32>
    %736 = arith.mulf %725, %735 : vector<2x32xf32>
    %737 = arith.addf %734, %736 : vector<2x32xf32>
    %738 = math.tanh %737 : vector<2x32xf32>
    %cst_423 = arith.constant 1.000000e+00 : f32
    %739 = vector.broadcast %cst_423 : f32 to vector<2x32xf32>
    %740 = arith.subf %739, %733 : vector<2x32xf32>
    %741 = arith.mulf %740, %738 : vector<2x32xf32>
    %742 = arith.mulf %733, %712 : vector<2x32xf32>
    %743 = arith.addf %741, %742 : vector<2x32xf32>
    %744 = arith.truncf %743 : vector<2x32xf32> to vector<2x32xbf16>
    %c0_424 = arith.constant 0 : index
    %c0_425 = arith.constant 0 : index
    %745 = vector.load %arg19[%c0_424, %c0_425] : memref<32x8xbf16, #tpu.memory_space<vmem>>, vector<32x8xbf16>
    %cst_426 = arith.constant dense<0.000000e+00> : vector<2x8xf32>
    %746 = tpu.matmul %744, %745, %cst_426 {dimension_numbers = #tpu.dot_dimension_numbers<[1], [0], [0], [1], [0, 0, 1, 1], [], []>} : vector<2x32xbf16>, vector<32x8xbf16>, vector<2x8xf32> -> vector<2x8xf32>
    %c0_427 = arith.constant 0 : index
    %c0_428 = arith.constant 0 : index
    %747 = vector.load %arg20[%c0_427, %c0_428] : memref<1x8xf32, #tpu.memory_space<vmem>>, vector<1x8xf32>
    %748 = vector.broadcast %747 : vector<1x8xf32> to vector<2x8xf32>
    %749 = arith.addf %746, %748 : vector<2x8xf32>
    %750 = math.tanh %749 : vector<2x8xf32>
    %c0_429 = arith.constant 0 : index
    %c0_430 = arith.constant 0 : index
    %c0_431 = arith.constant 0 : index
    %751 = vector.load %arg21[%c0_429, %c0_430, %c0_431] : memref<2x6x8xf32, #tpu.memory_space<vmem>>, vector<2x6x8xf32>
    %752 = vector.shape_cast %750 : vector<2x8xf32> to vector<2x1x8xf32>
    %753 = vector.broadcast %752 : vector<2x1x8xf32> to vector<2x6x8xf32>
    %754 = arith.subf %751, %753 : vector<2x6x8xf32>
    %755 = arith.mulf %754, %754 : vector<2x6x8xf32>
    %cst_432 = arith.constant dense<0.000000e+00> : vector<2x6xf32>
    %756 = vector.multi_reduction <add>, %755, %cst_432 [2] : vector<2x6x8xf32> to vector<2x6xf32>
    %cst_433 = arith.constant 0.000000e+00 : f32
    %757 = vector.broadcast %cst_433 : f32 to vector<2x6xf32>
    %758 = arith.subf %757, %756 : vector<2x6xf32>
    %cst_434 = arith.constant 0.000000e+00 : f32
    %759 = vector.broadcast %cst_434 : f32 to vector<2x2xf32>
    %760 = tpu.concatenate %750, %758, %759 in 1 : vector<2x8xf32>, vector<2x6xf32>, vector<2x2xf32> -> vector<2x16xf32>
    %c0_435 = arith.constant 0 : index
    %c0_436 = arith.constant 0 : index
    %761 = vector.load %arg22[%c0_435, %c0_436] : memref<2x16xf32, #tpu.memory_space<vmem>>, vector<2x16xf32>
    tpu.vector_store %arg22[%c0_435, %c0_436], %760 {strides = array<i32>} : memref<2x16xf32, #tpu.memory_space<vmem>>, vector<2x16xf32>,
    return
  }
}

</mosaic_0001>

<bundles_post_ra>
// kernel: crnn_forward.1
= control target key start
LH: loop header
LB: loop body
LE: loop exit
PB: predicated region body
PF: predicated region fallthrough
CT: control target
= control target key end

     0   :  { %s21746_s0 = inlined_call_operand.vmem [shape: f32[2,64,16], index: 0, kind: input, shape index: {}]   ;;  %s21747_s1 = inlined_call_operand.vmem [shape: f32[2,64,16], index: 1, kind: input, shape index: {}]   ;;  %s21748_s2 = inlined_call_operand.hbm [shape: bf16[3,16,64], index: 2, kind: input, shape index: {}]   ;;  %s21749_s3 = inlined_call_operand.hbm [shape: f32[1,64], index: 3, kind: input, shape index: {}]   ;;  %s21750_s4 = inlined_call_operand.vmem [shape: bf16[3,64,64], index: 4, kind: input, shape index: {}]   ;;  %s21751_s5 = inlined_call_operand.hbm [shape: f32[1,64], index: 5, kind: input, shape index: {}]   ;;  %s21752_s6 = inlined_call_operand.hbm [shape: bf16[32,128], index: 6, kind: input, shape index: {}]   ;;  %s21753_s7 = inlined_call_operand.hbm [shape: f32[1,128], index: 7, kind: input, shape index: {}]   ;;  %s21754_s8 = inlined_call_operand.vmem [shape: bf16[64,64], index: 8, kind: input, shape index: {}]   ;;  %s21755_s9 = inlined_call_operand.hbm [shape: f32[1,64], index: 9, kind: input, shape index: {}]   ;;  %s21756_s10 = inlined_call_operand.vmem [shape: bf16[128,64], index: 10, kind: input, shape index: {}]   ;;  %s21757_s11 = inlined_call_operand.hbm [shape: f32[1,64], index: 11, kind: input, shape index: {}]   ;;  %s21758_s12 = inlined_call_operand.hbm [shape: bf16[10,3,128,128], index: 12, kind: input, shape index: {}]   ;;  %s21759_s13 = inlined_call_operand.hbm [shape: f32[10,1,128], index: 13, kind: input, shape index: {}]   ;;  %s21760_s14 = inlined_call_operand.vmem [shape: bf16[128,768], index: 14, kind: input, shape index: {}]   ;;  %s21761_s15 = inlined_call_operand.vmem [shape: bf16[128,768], index: 15, kind: input, shape index: {}]   ;;  %s21762_s16 = inlined_call_operand.hbm [shape: f32[1,768], index: 16, kind: input, shape index: {}]   ;;  %s21763_s17 = inlined_call_operand.hbm [shape: bf16[32,96], index: 17, kind: input, shape index: {}]   ;;  %s21764_s18 = inlined_call_operand.hbm [shape: f32[1,96], index: 18, kind: input, shape index: {}]   ;;  %s21765_s19 = inlined_call_operand.vmem [shape: bf16[32,8], index: 19, kind: input, shape index: {}]   ;;  %s21766_s20 = inlined_call_operand.hbm [shape: f32[1,8], index: 20, kind: input, shape index: {}]   ;;  %s21767_s21 = inlined_call_operand.vmem [shape: f32[2,6,8], index: 21, kind: input, shape index: {}]   ;;  %s21768_s22 = inlined_call_operand.vmem [shape: f32[2,16], index: 22, kind: output, shape index: {}]  }
   0x1   :  { %21831 = sst [smem:[#allocation50_spill]] %s21746_s0 }
   0x2   :  { %21832 = sst [smem:[#allocation51_spill]] %s21747_s1 }
   0x3   :  { %21833 = sst [smem:[#allocation52_spill]] %s21748_s2 }
   0x4   :  { %21834 = sst [smem:[#allocation53_spill]] %s21749_s3 }
   0x5   :  { %21835 = sst [smem:[#allocation54_spill]] %s21750_s4 }
   0x6   :  { %21836 = sst [smem:[#allocation55_spill]] %s21751_s5 }
   0x7   :  { %21837 = sst [smem:[#allocation56_spill]] %s21752_s6 }
   0x8   :  { %21838 = sst [smem:[#allocation57_spill]] %s21768_s22 }
   0x9   :  { %27 = vsyncpa [#allocation4], 0 }
   0xa   :  { %28 = vsyncpa [#allocation6], 0 }
   0xb   :  { %29 = vsyncpa [#allocation9], 0 }
   0xc   :  { %30 = vsyncpa [#allocation12], 0 }
   0xd   :  { %31 = vsyncpa [#allocation15], 0 }
   0xe   :  { %32 = vsyncpa [#allocation18], 0 }
   0xf   :  { %33 = vsyncpa [#allocation21], 0  ;;  %s17448_s3 = smov [#allocation5]   ;;  %s21839_s4 = sld [smem:[#allocation53_spill]] }
  0x10   :  { %s56_s28 = sshll.u32 %s17448_s3, 4  ;;  %s57_s28 = int_to_ptr.vmem [resolvable:$true] %s56_s28 }
  0x15   :  { %s17148_s0 = scalar_lea.hbm %s21839_s4, 16 }
  0x16   :  { %p17149_p0 = scmp.ne.s32.totalorder %s21839_s4, %s17148_s0  ;;  %p17152_p1 = scmp.lt.u32.totalorder %s17148_s0, %s21839_s4 }
  0x18   :  { %p17154_p2 = pnand %p17152_p1, %p17149_p0 }
  0x1a   :  { %17157 = shalt.err (!%p17154_p2)
}
  0x1b   :  { %s17158_s6 = scalar_lea.vmem %s57_s28, 16  ;;  %s17162_s25 = scalar_lea.vmem %s57_s28, 32 }
  0x1c   :  { %p17159_p3 = scmp.ne.s32.totalorder %s57_s28, %s17158_s6  ;;  %p17163_p4 = scmp.lt.s32.totalorder %s57_s28, %s57_s28 }
  0x1d   :  { %p17164_p5 = scmp.lt.s32.totalorder %s17162_s25, %s17158_s6 }
  0x1f   :  { %p17165_p6 = por %p17164_p5, %p17163_p4 }
  0x21   :  { %p17166_p7 = pnand %p17165_p6, %p17159_p3 }
  0x23   :  { %17169 = shalt.err (!%p17166_p7)
}
  0x24   :  { %59 = dma.hbm_to_vmem [thread:$0]  %s21839_s4, 16, %s57_s28, [#allocation6]  }
  0x25   :  { %s17449_s27 = smov [#allocation8]   ;;  %s17450_s29 = smov [#allocation11]  }
  0x26   :  { %s77_s3 = sshll.u32 %s17449_s27, 4  ;;  %s102_s30 = sshll.u32 %s17450_s29, 4  ;;  %s78_s3 = int_to_ptr.vmem [resolvable:$true] %s77_s3  ;;  %s103_s30 = int_to_ptr.vmem [resolvable:$true] %s102_s30 }
  0x27   :  { %s21840_s1 = sld [smem:[#allocation56_spill]] }
  0x2d   :  { %s17170_s5 = scalar_lea.hbm %s21840_s1, 256 }
  0x2e   :  { %p17171_p8 = scmp.ne.s32.totalorder %s21840_s1, %s17170_s5  ;;  %p17174_p9 = scmp.lt.u32.totalorder %s17170_s5, %s21840_s1 }
  0x30   :  { %p17176_p10 = pnand %p17174_p9, %p17171_p8 }
  0x32   :  { %17179 = shalt.err (!%p17176_p10)
}
  0x33   :  { %s17180_s28 = scalar_lea.vmem %s78_s3, 256  ;;  %p17185_p12 = scmp.lt.s32.totalorder %s78_s3, %s78_s3 }
  0x34   :  { %p17181_p11 = scmp.ne.s32.totalorder %s78_s3, %s17180_s28  ;;  %p17186_p13 = scmp.lt.s32.totalorder %s17180_s28, %s17180_s28 }
  0x36   :  { %p17187_p0 = por %p17186_p13, %p17185_p12 }
  0x38   :  { %p17188_p1 = pnand %p17187_p0, %p17181_p11 }
  0x3a   :  { %17191 = shalt.err (!%p17188_p1)
}
  0x3b   :  { %s17451_s4 = smov 64   ;;  %s17452_s26 = smov 4  }
  0x3c   :  { %83 = dma.hbm_to_vmem [thread:$0]  %s21840_s1, 256, %s78_s3, [#allocation9], %s17451_s4, %s17451_s4, %s17452_s26  }
  0x3d   :  { %s17192_s0 = scalar_lea.hbm %s21755_s9, 16 }
  0x3e   :  { %p17193_p2 = scmp.ne.s32.totalorder %s21755_s9, %s17192_s0  ;;  %p17196_p3 = scmp.lt.u32.totalorder %s17192_s0, %s21755_s9 }
  0x40   :  { %p17198_p4 = pnand %p17196_p3, %p17193_p2 }
  0x42   :  { %17201 = shalt.err (!%p17198_p4)
}
  0x43   :  { %s17202_s25 = scalar_lea.vmem %s103_s30, 16  ;;  %s17206_s28 = scalar_lea.vmem %s103_s30, 32 }
  0x44   :  { %p17203_p5 = scmp.ne.s32.totalorder %s103_s30, %s17202_s25  ;;  %p17207_p6 = scmp.lt.s32.totalorder %s103_s30, %s103_s30 }
  0x45   :  { %p17208_p7 = scmp.lt.s32.totalorder %s17206_s28, %s17202_s25 }
  0x47   :  { %p17209_p8 = por %p17208_p7, %p17207_p6 }
  0x49   :  { %p17210_p9 = pnand %p17209_p8, %p17203_p5 }
  0x4b   :  { %17213 = shalt.err (!%p17210_p9)
}
  0x4c   :  { %105 = dma.hbm_to_vmem [thread:$0]  %s21755_s9, 16, %s103_s30, [#allocation12]  }
  0x4d   :  { %s17453_s22 = smov [#allocation14]   ;;  %s17454_s27 = smov [#allocation17]  }
  0x4e   :  { %s123_s2 = sshll.u32 %s17453_s22, 4  ;;  %s152_s29 = sshll.u32 %s17454_s27, 4  ;;  %s124_s2 = int_to_ptr.vmem [resolvable:$true] %s123_s2  ;;  %s153_s29 = int_to_ptr.vmem [resolvable:$true] %s152_s29 }
  0x4f   :  { %s17214_s5 = scalar_lea.hbm %s21758_s12, 30720 }
  0x50   :  { %p17215_p10 = scmp.ne.s32.totalorder %s21758_s12, %s17214_s5  ;;  %p17218_p11 = scmp.lt.u32.totalorder %s17214_s5, %s21758_s12 }
  0x52   :  { %p17220_p12 = pnand %p17218_p11, %p17215_p10 }
  0x54   :  { %17223 = shalt.err (!%p17220_p12)
}
  0x55   :  { %s17224_s9 = scalar_lea.vmem %s124_s2, 30720  ;;  %p17229_p0 = scmp.lt.s32.totalorder %s124_s2, %s124_s2 }
  0x56   :  { %p17225_p13 = scmp.ne.s32.totalorder %s124_s2, %s17224_s9  ;;  %p17230_p1 = scmp.lt.s32.totalorder %s17224_s9, %s17224_s9 }
  0x58   :  { %p17231_p2 = por %p17230_p1, %p17229_p0 }
  0x5a   :  { %p17232_p3 = pnand %p17231_p2, %p17225_p13 }
  0x5c   :  { %17235 = shalt.err (!%p17232_p3)
}
  0x5d   :  { %129 = dma.hbm_to_vmem [thread:$0]  %s21758_s12, 30720, %s124_s2, [#allocation15], %s17451_s4, %s17451_s4, %s17452_s26  }
  0x5e   :  { %s17236_s27 = scalar_lea.hbm %s21762_s16, 96 }
  0x5f   :  { %p17237_p4 = scmp.ne.s32.totalorder %s21762_s16, %s17236_s27  ;;  %p17240_p5 = scmp.lt.u32.totalorder %s17236_s27, %s21762_s16 }
  0x61   :  { %p17242_p6 = pnand %p17240_p5, %p17237_p4 }
  0x63   :  { %17245 = shalt.err (!%p17242_p6)
}
  0x64   :  { %s17246_s6 = scalar_lea.vmem %s153_s29, 96  ;;  %p17251_p8 = scmp.lt.s32.totalorder %s153_s29, %s153_s29 }
  0x65   :  { %p17247_p7 = scmp.ne.s32.totalorder %s153_s29, %s17246_s6  ;;  %p17252_p9 = scmp.lt.s32.totalorder %s17246_s6, %s17246_s6 }
  0x67   :  { %p17253_p10 = por %p17252_p9, %p17251_p8 }
  0x69   :  { %p17254_p11 = pnand %p17253_p10, %p17247_p7 }
  0x6b   :  { %17257 = shalt.err (!%p17254_p11)
}
  0x6c   :  { %155 = dma.hbm_to_vmem [thread:$0]  %s21762_s16, 96, %s153_s29, [#allocation18]  }
  0x6d   :  { %s17455_s25 = smov [#allocation20]   ;;  %s17456_s9 = smov [#allocation3]  }
  0x6e   :  { %s174_s28 = sshll.u32 %s17455_s25, 4  ;;  %s43_s30 = sshll.u32 %s17456_s9, 4  ;;  %s175_s28 = int_to_ptr.vmem [resolvable:$true] %s174_s28  ;;  %s44_s30 = int_to_ptr.vmem [resolvable:$true] %s43_s30 }
  0x6f   :  { %s17258_s22 = scalar_lea.hbm %s21764_s18, 16 }
  0x70   :  { %p17259_p12 = scmp.ne.s32.totalorder %s21764_s18, %s17258_s22  ;;  %p17262_p13 = scmp.lt.u32.totalorder %s17258_s22, %s21764_s18 }
  0x72   :  { %p17264_p0 = pnand %p17262_p13, %p17259_p12 }
  0x74   :  { %17267 = shalt.err (!%p17264_p0)
}
  0x75   :  { %s17268_s16 = scalar_lea.vmem %s175_s28, 16  ;;  %s17272_s29 = scalar_lea.vmem %s175_s28, 32 }
  0x76   :  { %p17269_p1 = scmp.ne.s32.totalorder %s175_s28, %s17268_s16  ;;  %p17273_p2 = scmp.lt.s32.totalorder %s175_s28, %s175_s28 }
  0x77   :  { %p17274_p3 = scmp.lt.s32.totalorder %s17272_s29, %s17268_s16 }
  0x79   :  { %p17275_p4 = por %p17274_p3, %p17273_p2 }
  0x7b   :  { %p17276_p5 = pnand %p17275_p4, %p17269_p1 }
  0x7d   :  { %17279 = shalt.err (!%p17276_p5)
}
  0x7e   :  { %177 = dma.hbm_to_vmem [thread:$0]  %s21764_s18, 16, %s175_s28, [#allocation21]  }
  0x7f   :  { %s21841_s25 = sld [smem:[#allocation52_spill]] }
  0x85   :  { %s17280_s9 = scalar_lea.hbm %s21841_s25, 384 }
  0x86   :  { %p17281_p6 = scmp.ne.s32.totalorder %s21841_s25, %s17280_s9  ;;  %p17284_p7 = scmp.lt.u32.totalorder %s17280_s9, %s21841_s25 }
  0x88   :  { %p17286_p8 = pnand %p17284_p7, %p17281_p6 }
  0x8a   :  { %17289 = shalt.err (!%p17286_p8)
}
  0x8b   :  { %s17290_s0 = scalar_lea.vmem %s44_s30, 384  ;;  %p17295_p10 = scmp.lt.s32.totalorder %s44_s30, %s44_s30 }
  0x8c   :  { %p17291_p9 = scmp.ne.s32.totalorder %s44_s30, %s17290_s0  ;;  %p17296_p11 = scmp.lt.s32.totalorder %s17290_s0, %s17290_s0 }
  0x8e   :  { %p17297_p12 = por %p17296_p11, %p17295_p10 }
  0x90   :  { %p17298_p13 = pnand %p17297_p12, %p17291_p9 }
  0x92   :  { %17301 = shalt.err (!%p17298_p13)
}
  0x93   :  { %49 = dma.hbm_to_vmem [thread:$0]  %s21841_s25, 384, %s44_s30, [#allocation4], %s17451_s4, %s17451_s4, %s17452_s26  }
  0x94   :  { %s17457_s23 = smov [#allocation7]   ;;  %s17458_s16 = smov [#allocation10]  }
  0x95   :  { %s68_s5 = sshll.u32 %s17457_s23, 4  ;;  %s90_s29 = sshll.u32 %s17458_s16, 4  ;;  %s69_s5 = int_to_ptr.vmem [resolvable:$true] %s68_s5  ;;  %s91_s29 = int_to_ptr.vmem [resolvable:$true] %s90_s29 }
  0x96   :  { %s21842_s12 = sld [smem:[#allocation55_spill]] }
  0x9c   :  { %s17302_s2 = scalar_lea.hbm %s21842_s12, 16 }
  0x9d   :  { %p17303_p0 = scmp.ne.s32.totalorder %s21842_s12, %s17302_s2  ;;  %p17306_p1 = scmp.lt.u32.totalorder %s17302_s2, %s21842_s12 }
  0x9f   :  { %p17308_p2 = pnand %p17306_p1, %p17303_p0 }
  0xa1   :  { %17311 = shalt.err (!%p17308_p2)
}
  0xa2   :  { %s17312_s30 = scalar_lea.vmem %s69_s5, 16  ;;  %s17316_s25 = scalar_lea.vmem %s69_s5, 32 }
  0xa3   :  { %p17313_p3 = scmp.ne.s32.totalorder %s69_s5, %s17312_s30  ;;  %p17317_p4 = scmp.lt.s32.totalorder %s69_s5, %s69_s5 }
  0xa4   :  { %p17318_p5 = scmp.lt.s32.totalorder %s17316_s25, %s17312_s30 }
  0xa6   :  { %p17319_p6 = por %p17318_p5, %p17317_p4 }
  0xa8   :  { %p17320_p7 = pnand %p17319_p6, %p17313_p3 }
  0xaa   :  { %17323 = shalt.err (!%p17320_p7)
}
  0xab   :  { %71 = dma.hbm_to_vmem [thread:$0]  %s21842_s12, 16, %s69_s5, [#allocation6]  }
  0xac   :  { %s17324_s23 = scalar_lea.hbm %s21753_s7, 16 }
  0xad   :  { %p17325_p8 = scmp.ne.s32.totalorder %s21753_s7, %s17324_s23  ;;  %p17328_p9 = scmp.lt.u32.totalorder %s17324_s23, %s21753_s7 }
  0xaf   :  { %p17330_p10 = pnand %p17328_p9, %p17325_p8 }
  0xb1   :  { %17333 = shalt.err (!%p17330_p10)
}
  0xb2   :  { %s17334_s9 = scalar_lea.vmem %s91_s29, 16  ;;  %s17338_s3 = scalar_lea.vmem %s91_s29, 32 }
  0xb3   :  { %p17335_p11 = scmp.ne.s32.totalorder %s91_s29, %s17334_s9  ;;  %p17339_p12 = scmp.lt.s32.totalorder %s91_s29, %s91_s29 }
  0xb4   :  { %p17340_p13 = scmp.lt.s32.totalorder %s17338_s3, %s17334_s9 }
  0xb6   :  { %p17341_p0 = por %p17340_p13, %p17339_p12 }
  0xb8   :  { %p17342_p1 = pnand %p17341_p0, %p17335_p11 }
  0xba   :  { %17345 = shalt.err (!%p17342_p1)
}
  0xbb   :  { %93 = dma.hbm_to_vmem [thread:$0]  %s21753_s7, 16, %s91_s29, [#allocation9]  }
  0xbc   :  { %s17459_s1 = smov [#allocation13]   ;;  %s17460_s30 = smov [#allocation16]  }
  0xbd   :  { %s114_s22 = sshll.u32 %s17459_s1, 4  ;;  %s135_s25 = sshll.u32 %s17460_s30, 4  ;;  %s115_s22 = int_to_ptr.vmem [resolvable:$true] %s114_s22  ;;  %s136_s25 = int_to_ptr.vmem [resolvable:$true] %s135_s25 }
  0xbe   :  { %s17346_s18 = scalar_lea.hbm %s21757_s11, 16 }
  0xbf   :  { %p17347_p2 = scmp.ne.s32.totalorder %s21757_s11, %s17346_s18  ;;  %p17350_p3 = scmp.lt.u32.totalorder %s17346_s18, %s21757_s11 }
  0xc1   :  { %p17352_p4 = pnand %p17350_p3, %p17347_p2 }
  0xc3   :  { %17355 = shalt.err (!%p17352_p4)
}
  0xc4   :  { %s17356_s7 = scalar_lea.vmem %s115_s22, 16  ;;  %s17360_s29 = scalar_lea.vmem %s115_s22, 32 }
  0xc5   :  { %p17357_p5 = scmp.ne.s32.totalorder %s115_s22, %s17356_s7  ;;  %p17361_p6 = scmp.lt.s32.totalorder %s115_s22, %s115_s22 }
  0xc6   :  { %p17362_p7 = scmp.lt.s32.totalorder %s17360_s29, %s17356_s7 }
  0xc8   :  { %p17363_p8 = por %p17362_p7, %p17361_p6 }
  0xca   :  { %p17364_p9 = pnand %p17363_p8, %p17357_p5 }
  0xcc   :  { %17367 = shalt.err (!%p17364_p9)
}
  0xcd   :  { %117 = dma.hbm_to_vmem [thread:$0]  %s21757_s11, 16, %s115_s22, [#allocation12]  }
  0xce   :  { %s17368_s5 = scalar_lea.hbm %s21759_s13, 160 }
  0xcf   :  { %p17369_p10 = scmp.ne.s32.totalorder %s21759_s13, %s17368_s5  ;;  %p17372_p11 = scmp.lt.u32.totalorder %s17368_s5, %s21759_s13 }
  0xd1   :  { %p17374_p12 = pnand %p17372_p11, %p17369_p10 }
  0xd3   :  { %17377 = shalt.err (!%p17374_p12)
}
  0xd4   :  { %s17378_s0 = scalar_lea.vmem %s136_s25, 160  ;;  %p17383_p0 = scmp.lt.s32.totalorder %s136_s25, %s136_s25 }
  0xd5   :  { %p17379_p13 = scmp.ne.s32.totalorder %s136_s25, %s17378_s0  ;;  %p17384_p1 = scmp.lt.s32.totalorder %s17378_s0, %s17378_s0 }
  0xd7   :  { %p17385_p2 = por %p17384_p1, %p17383_p0 }
  0xd9   :  { %p17386_p3 = pnand %p17385_p2, %p17379_p13 }
  0xdb   :  { %17389 = shalt.err (!%p17386_p3)
}
  0xdc   :  { %s17461_s11 = smov 16   ;;  %s17462_s22 = smov 1  }
  0xdd   :  { %141 = dma.hbm_to_vmem [thread:$0]  %s21759_s13, 160, %s136_s25, [#allocation15], %s17461_s11, %s17461_s11, %s17462_s22  }
  0xde   :  { %s17463_s23 = smov [#allocation19]   ;;  %s17464_s24 = smov [#allocation22]  }
  0xdf   :  { %s161_s16 = sshll.u32 %s17463_s23, 4  ;;  %s186_s7 = sshll.u32 %s17464_s24, 4  ;;  %s162_s16 = int_to_ptr.vmem [resolvable:$true] %s161_s16  ;;  %s187_s7 = int_to_ptr.vmem [resolvable:$true] %s186_s7 }
  0xe0   :  { %s17390_s2 = scalar_lea.hbm %s21763_s17, 256 }
  0xe1   :  { %p17391_p4 = scmp.ne.s32.totalorder %s21763_s17, %s17390_s2  ;;  %p17394_p5 = scmp.lt.u32.totalorder %s17390_s2, %s21763_s17 }
  0xe3   :  { %p17396_p6 = pnand %p17394_p5, %p17391_p4 }
  0xe5   :  { %17399 = shalt.err (!%p17396_p6)
}
  0xe6   :  { %s17400_s13 = scalar_lea.vmem %s162_s16, 256  ;;  %p17405_p8 = scmp.lt.s32.totalorder %s162_s16, %s162_s16 }
  0xe7   :  { %p17401_p7 = scmp.ne.s32.totalorder %s162_s16, %s17400_s13  ;;  %p17406_p9 = scmp.lt.s32.totalorder %s17400_s13, %s17400_s13 }
  0xe9   :  { %p17407_p10 = por %p17406_p9, %p17405_p8 }
  0xeb   :  { %p17408_p11 = pnand %p17407_p10, %p17401_p7 }
  0xed   :  { %17411 = shalt.err (!%p17408_p11)
}
  0xee   :  { %167 = dma.hbm_to_vmem [thread:$0]  %s21763_s17, 256, %s162_s16, [#allocation18], %s17451_s4, %s17451_s4, %s17452_s26  }
  0xef   :  { %s17412_s0 = scalar_lea.hbm %s21766_s20, 16 }
  0xf0   :  { %p17413_p12 = scmp.ne.s32.totalorder %s21766_s20, %s17412_s0  ;;  %p17416_p13 = scmp.lt.u32.totalorder %s17412_s0, %s21766_s20 }
  0xf2   :  { %p17418_p0 = pnand %p17416_p13, %p17413_p12 }
  0xf4   :  { %17421 = shalt.err (!%p17418_p0)
}
  0xf5   :  { %s17422_s24 = scalar_lea.vmem %s187_s7, 16  ;;  %s17426_s29 = scalar_lea.vmem %s187_s7, 32 }
  0xf6   :  { %p17423_p1 = scmp.ne.s32.totalorder %s187_s7, %s17422_s24  ;;  %p17427_p2 = scmp.lt.s32.totalorder %s187_s7, %s187_s7 }
  0xf7   :  { %p17428_p3 = scmp.lt.s32.totalorder %s17426_s29, %s17422_s24 }
  0xf9   :  { %p17429_p4 = por %p17428_p3, %p17427_p2 }
  0xfb   :  { %p17430_p5 = pnand %p17429_p4, %p17423_p1 }
  0xfd   :  { %17433 = shalt.err (!%p17430_p5)
}
  0xfe   :  { %189 = dma.hbm_to_vmem [thread:$0]  %s21766_s20, 16, %s187_s7, [#allocation21]  }
  0xff   :  { %17434 = dma.done.wait [#allocation4], 384  }
 0x100   :  { %17435 = vsyncadd [#allocation4], 4294966912 }
 0x101   :  { %17436 = dma.done.wait [#allocation6], 32  }
 0x102   :  { %17437 = vsyncadd [#allocation6], 4294967264 }
 0x103   :  { %17438 = dma.done.wait [#allocation9], 272  }
 0x104   :  { %17439 = vsyncadd [#allocation9], 4294967024 }
 0x105   :  { %17440 = dma.done.wait [#allocation12], 32  }
 0x106   :  { %17441 = vsyncadd [#allocation12], 4294967264 }
 0x107   :  { %17442 = dma.done.wait [#allocation15], 30880  }
 0x108   :  { %17443 = vsyncadd [#allocation15], 4294936416 }
 0x109   :  { %17444 = dma.done.wait [#allocation18], 352  }
 0x10a   :  { %17445 = vsyncadd [#allocation18], 4294966944 }
 0x10b   :  { %17446 = dma.done.wait [#allocation21], 32  }
 0x10c   :  { %17447 = vsyncadd [#allocation21], 4294967264  ;;  %vm335_vm0 = vcmask 122880   ;;  %v21776_v0 = vmov 0.0   ;;  %s21843_s7 = sld [smem:[#allocation51_spill]]  ;;  %v16481_v17 = vld [vmem:[#allocation3] sm:$0xff]  }
 0x10d   :  { %336 = vst.msk [vmem:[#allocation2] sm:$0x1] %vm335_vm0, %v21776_v0  ;;  %337 = vst.msk [vmem:[#allocation2 + $0x48] sm:$0x1] %vm335_vm0, %v21776_v0  ;;  %s21844_s9 = sld [smem:[#allocation50_spill]]  ;;  %15035 = vmatprep.subr.bf16.mxu0 %v16481_v17  ;;  %v17824_v29 = vld [vmem:[#allocation3 + $0x8] sm:$0xff]  }
 0x10e   :  { %338 = vst.msk [vmem:[#allocation2 + $0x41] sm:$0x1] %vm335_vm0, %v21776_v0  ;;  %339 = vst.msk [vmem:[#allocation2 + $0x89] sm:$0x1] %vm335_vm0, %v21776_v0  ;;  %15036 = vmatpush3.bf16.msra.mxu0 %v16481_v17  ;;  %vm340_vm1 = vcmask 130048   ;;  %vm1695_vm2 = vcmask 261120  }
 0x10f   :  { %15053 = vmatprep.subr.bf16.mxu0 %v17824_v29  ;;  %s21845_s26 = sld [smem:[#allocation54_spill]]  ;;  %vm905_vm3 = vcmask 516096   ;;  %vm910_vm4 = vcmask 523264   ;;  %s17476_s2 = smov 32  }
 0x110   :  { %s21947_s1 = sld [smem:[#allocation57_spill]] }
 0x112   :  { %v312_v1 = vld [vmem:[%s21843_s7] sm:$0xff]  ;;  %v313_v2 = vld [vmem:[%s21843_s7 + $0x8] sm:$0xff]  ;;  %v314_v3 = vld [vmem:[%s21843_s7 + $0x10] sm:$0xff] }
 0x113   :  { %v16401_v4 = vpack.i.bf16 %v313_v2, %v312_v1  ;;  %v315_v5 = vld [vmem:[%s21843_s7 + $0x18] sm:$0xff]  ;;  %v316_v6 = vld [vmem:[%s21843_s7 + $0x20] sm:$0xff]  ;;  %v317_v7 = vld [vmem:[%s21843_s7 + $0x28] sm:$0xff] }
 0x114   :  { %v16411_v8 = vpack.i.bf16 %v317_v7, %v316_v6  ;;  %v318_v9 = vld [vmem:[%s21843_s7 + $0x30] sm:$0xff]  ;;  %v319_v10 = vld [vmem:[%s21843_s7 + $0x38] sm:$0xff]  ;;  %v320_v11 = vld [vmem:[%s21843_s7 + $0x40] sm:$0xff]  ;;  %v16406_v12 = vpack.i.bf16 %v315_v5, %v314_v3 }
 0x115   :  { %16402 = vrot.lane.b32.xlu0 %v16401_v4, %s17461_s11  ;;  %v321_v13 = vld [vmem:[%s21843_s7 + $0x48] sm:$0xff]  ;;  %v322_v14 = vld [vmem:[%s21843_s7 + $0x50] sm:$0xff]  ;;  %v323_v15 = vld [vmem:[%s21843_s7 + $0x58] sm:$0xff]  ;;  %v16416_v16 = vpack.i.bf16 %v319_v10, %v318_v9 }
 0x116   :  { %16412 = vrot.lane.b32.xlu1 %v16411_v8, %s17461_s11  ;;  %v232_v18 = vld [vmem:[%s21844_s9] sm:$0xff]  ;;  %v233_v19 = vld [vmem:[%s21844_s9 + $0x8] sm:$0xff]  ;;  %v234_v20 = vld [vmem:[%s21844_s9 + $0x10] sm:$0xff]  ;;  %v16421_v25 = vpack.i.bf16 %v321_v13, %v320_v11  ;;  %v16426_v30 = vpack.i.bf16 %v323_v15, %v322_v14 }
 0x117   :  { %v248_v21 = vadd.f32 1e-05, %v232_v18  ;;  %v249_v22 = vadd.f32 1e-05, %v233_v19  ;;  %v235_v23 = vld [vmem:[%s21844_s9 + $0x18] sm:$0xff]  ;;  %v324_v24 = vld [vmem:[%s21843_s7 + $0x60] sm:$0xff] }
 0x118   :  { %v250_v26 = vadd.f32 1e-05, %v234_v20  ;;  %v251_v27 = vadd.f32 1e-05, %v235_v23  ;;  %v325_v28 = vld [vmem:[%s21843_s7 + $0x68] sm:$0xff]  ;;  %v326_v31 = vld [vmem:[%s21843_s7 + $0x70] sm:$0xff] }
 0x119   :  { %16407 = vrot.lane.b32.xlu0 %v16406_v12, %s17461_s11  ;;  %16898 = vlog2.f32 %v248_v21  ;;  %v327_v32 = vld [vmem:[%s21843_s7 + $0x78] sm:$0xff]  ;;  %v236_v33 = vld [vmem:[%s21844_s9 + $0x20] sm:$0xff]  ;;  %v237_v34 = vld [vmem:[%s21844_s9 + $0x28] sm:$0xff]  ;;  %v16431_v39 = vpack.i.bf16 %v325_v28, %v324_v24 }
 0x11a   :  { %16417 = vrot.lane.b32.xlu1 %v16416_v16, %s17461_s11  ;;  %16900 = vlog2.f32 %v249_v22  ;;  %v252_v35 = vadd.f32 1e-05, %v236_v33  ;;  %v253_v36 = vadd.f32 1e-05, %v237_v34  ;;  %v238_v37 = vld [vmem:[%s21844_s9 + $0x30] sm:$0xff]  ;;  %v239_v38 = vld [vmem:[%s21844_s9 + $0x38] sm:$0xff]  ;;  %v16436_v44 = vpack.i.bf16 %v327_v32, %v326_v31 }
 0x11b   :  { %16902 = vlog2.f32 %v250_v26  ;;  %v254_v40 = vadd.f32 1e-05, %v238_v37  ;;  %v255_v41 = vadd.f32 1e-05, %v239_v38  ;;  %v240_v42 = vld [vmem:[%s21844_s9 + $0x40] sm:$0xff]  ;;  %v241_v43 = vld [vmem:[%s21844_s9 + $0x48] sm:$0xff] }
 0x11c   :  { %16904 = vlog2.f32 %v251_v27  ;;  %v256_v45 = vadd.f32 1e-05, %v240_v42  ;;  %v242_v46 = vld [vmem:[%s21844_s9 + $0x50] sm:$0xff]  ;;  %v243_v47 = vld [vmem:[%s21844_s9 + $0x58] sm:$0xff]  ;;  %v257_v48 = vadd.f32 1e-05, %v241_v43 }
 0x11d   :  { %16422 = vrot.lane.b32.xlu0 %v16421_v25, %s17461_s11  ;;  %16906 = vlog2.f32 %v252_v35  ;;  %v244_v49 = vld [vmem:[%s21844_s9 + $0x60] sm:$0xff]  ;;  %v245_v50 = vld [vmem:[%s21844_s9 + $0x68] sm:$0xff]  ;;  %v258_v51 = vadd.f32 1e-05, %v242_v46  ;;  %v259_v52 = vadd.f32 1e-05, %v243_v47 }
 0x11e   :  { %16427 = vrot.lane.b32.xlu1 %v16426_v30, %s17461_s11  ;;  %16908 = vlog2.f32 %v253_v36  ;;  %v246_v53 = vld [vmem:[%s21844_s9 + $0x70] sm:$0xff]  ;;  %v260_v54 = vadd.f32 1e-05, %v244_v49  ;;  %v247_v55 = vld [vmem:[%s21844_s9 + $0x78] sm:$0xff]  ;;  %v261_v56 = vadd.f32 1e-05, %v245_v50 }
 0x11f   :  { %16910 = vlog2.f32 %v254_v40  ;;  %v262_v57 = vadd.f32 1e-05, %v246_v53  ;;  %v263_v59 = vadd.f32 1e-05, %v247_v55  ;;  %v16483_v50 = vld [vmem:[#allocation3 + $0x10] sm:$0xff]  }
 0x120   :  { %16912 = vlog2.f32 %v255_v41 }
 0x121   :  { %16432 = vrot.lane.b32.xlu0 %v16431_v39, %s17461_s11  ;;  %16914 = vlog2.f32 %v256_v45 }
 0x122   :  { %16437 = vrot.lane.b32.xlu1 %v16436_v44, %s17461_s11  ;;  %16916 = vlog2.f32 %v257_v48 }
 0x123   :  { %v16899_v58 = vpop.eup %16898  ;;  %16918 = vlog2.f32 %v258_v51 }
 0x124   :  { %v16901_v60 = vpop.eup %16900  ;;  %v265_v61 = vmul.f32 0.6931472, %v16899_v58  ;;  %16920 = vlog2.f32 %v259_v52 }
 0x125   :  { %v16903_v62 = vpop.eup %16902  ;;  %v267_v63 = vmul.f32 0.6931472, %v16901_v60  ;;  %16922 = vlog2.f32 %v260_v54 }
 0x126   :  { %v16905_v1 = vpop.eup %16904  ;;  %v17874_v2 = vmul.f32 0.4342945, %v265_v61  ;;  %v269_v3 = vmul.f32 0.6931472, %v16903_v62  ;;  %16924 = vlog2.f32 %v261_v56 }
 0x127   :  { %v16907_v4 = vpop.eup %16906  ;;  %v17876_v5 = vmul.f32 0.4342945, %v267_v63  ;;  %v271_v6 = vmul.f32 0.6931472, %v16905_v1  ;;  %16926 = vlog2.f32 %v262_v57 }
 0x128   :  { %v16909_v7 = vpop.eup %16908  ;;  %341 = vst.msk [vmem:[#allocation2 + $0x1] sm:$0xff] %vm340_vm1, %v17874_v2  ;;  %v17880_v8 = vmul.f32 0.4342945, %v269_v3  ;;  %v273_v9 = vmul.f32 0.6931472, %v16907_v4  ;;  %16928 = vlog2.f32 %v263_v59 }
 0x129   :  { %v16911_v10 = vpop.eup %16910  ;;  %342 = vst.msk [vmem:[#allocation2 + $0x9] sm:$0xff] %vm340_vm1, %v17876_v5  ;;  %v17884_v11 = vmul.f32 0.4342945, %v271_v6  ;;  %v275_v12 = vmul.f32 0.6931472, %v16909_v7 }
 0x12a   :  { %v16913_v13 = vpop.eup %16912  ;;  %343 = vst.msk [vmem:[#allocation2 + $0x11] sm:$0xff] %vm340_vm1, %v17880_v8  ;;  %v17888_v14 = vmul.f32 0.4342945, %v273_v9  ;;  %v277_v15 = vmul.f32 0.6931472, %v16911_v10 }
 0x12b   :  { %v16915_v16 = vpop.eup %16914  ;;  %344 = vst.msk [vmem:[#allocation2 + $0x19] sm:$0xff] %vm340_vm1, %v17884_v11  ;;  %v17892_v17 = vmul.f32 0.4342945, %v275_v12  ;;  %v279_v18 = vmul.f32 0.6931472, %v16913_v13 }
 0x12c   :  { %v16917_v19 = vpop.eup %16916  ;;  %345 = vst.msk [vmem:[#allocation2 + $0x21] sm:$0xff] %vm340_vm1, %v17888_v14  ;;  %v17896_v20 = vmul.f32 0.4342945, %v277_v15  ;;  %v281_v21 = vmul.f32 0.6931472, %v16915_v16 }
 0x12d   :  { %v16919_v22 = vpop.eup %16918  ;;  %346 = vst.msk [vmem:[#allocation2 + $0x29] sm:$0xff] %vm340_vm1, %v17892_v17  ;;  %v17900_v23 = vmul.f32 0.4342945, %v279_v18  ;;  %v283_v24 = vmul.f32 0.6931472, %v16917_v19 }
 0x12e   :  { %v16921_v25 = vpop.eup %16920  ;;  %347 = vst.msk [vmem:[#allocation2 + $0x31] sm:$0xff] %vm340_vm1, %v17896_v20  ;;  %v17904_v26 = vmul.f32 0.4342945, %v281_v21  ;;  %v285_v27 = vmul.f32 0.6931472, %v16919_v22  ;;  %v16484_v21 = vld [vmem:[#allocation8] sm:$0xff]  }
 0x12f   :  { %v16923_v28 = vpop.eup %16922  ;;  %v357_v30 = vld [vmem:[#allocation2] sm:$0xff]  ;;  %348 = vst.msk [vmem:[#allocation2 + $0x39] sm:$0xff] %vm340_vm1, %v17900_v23  ;;  %v17908_v31 = vmul.f32 0.4342945, %v283_v24  ;;  %v287_v32 = vmul.f32 0.6931472, %v16921_v25 }
 0x130   :  { %v16925_v33 = vpop.eup %16924  ;;  %v358_v34 = vld [vmem:[#allocation2 + $0x8] sm:$0xff]  ;;  %349 = vst.msk [vmem:[#allocation2 + $0x49] sm:$0xff] %vm340_vm1, %v17904_v26  ;;  %v17912_v35 = vmul.f32 0.4342945, %v285_v27  ;;  %v289_v36 = vmul.f32 0.6931472, %v16923_v28 }
 0x131   :  { %v16927_v37 = vpop.eup %16926  ;;  %v373_v38 = vpack.c.bf16 %v358_v34, %v357_v30  ;;  %v359_v39 = vld [vmem:[#allocation2 + $0x10] sm:$0xff]  ;;  %350 = vst.msk [vmem:[#allocation2 + $0x51] sm:$0xff] %vm340_vm1, %v17908_v31  ;;  %v17916_v40 = vmul.f32 0.4342945, %v287_v32  ;;  %v291_v41 = vmul.f32 0.6931472, %v16925_v33 }
 0x132   :  { %v16929_v42 = vpop.eup %16928  ;;  %v360_v43 = vld [vmem:[#allocation2 + $0x18] sm:$0xff]  ;;  %351 = vst.msk [vmem:[#allocation2 + $0x59] sm:$0xff] %vm340_vm1, %v17912_v35  ;;  %v17920_v44 = vmul.f32 0.4342945, %v289_v36  ;;  %v293_v45 = vmul.f32 0.6931472, %v16927_v37 }
 0x133   :  { %15037 = vmatprep.mubr.msk.bf16.mxu0 %vm340_vm1, %v373_v38  ;;  %v374_v46 = vpack.c.bf16 %v360_v43, %v359_v39  ;;  %v361_v47 = vld [vmem:[#allocation2 + $0x20] sm:$0xff]  ;;  %352 = vst.msk [vmem:[#allocation2 + $0x61] sm:$0xff] %vm340_vm1, %v17916_v40  ;;  %v17925_v48 = vmul.f32 0.4342945, %v291_v41  ;;  %v295_v49 = vmul.f32 0.6931472, %v16929_v42 }
 0x134   :  { %v362_v51 = vld [vmem:[#allocation2 + $0x28] sm:$0xff]  ;;  %353 = vst.msk [vmem:[#allocation2 + $0x69] sm:$0xff] %vm340_vm1, %v17920_v44  ;;  %v17929_v52 = vmul.f32 0.4342945, %v293_v45  ;;  %v532_v13 = vld [vmem:[#allocation2 + $0x11] sm:$0xff]  ;;  %v533_v15 = vld [vmem:[#allocation2 + $0x19] sm:$0xff] }
 0x135   :  { %15038 = vmatmul.mubr.msk.bf16.vlgmr.msra.gmra.mrb[0].mxu0 %vm340_vm1, %v374_v46  ;;  %v375_v53 = vpack.c.bf16 %v362_v51, %v361_v47  ;;  %354 = vst.msk [vmem:[#allocation2 + $0x71] sm:$0xff] %vm340_vm1, %v17925_v48  ;;  %v17934_v54 = vmul.f32 0.4342945, %v295_v49  ;;  %v363_v55 = vld [vmem:[#allocation2 + $0x30] sm:$0xff]  ;;  %v530_v7 = vld [vmem:[#allocation2 + $0x1] sm:$0xff]  ;;  %v547_v19 = vpack.c.bf16 %v533_v15, %v532_v13 }
 0x136   :  { %15054 = vmatpush3.bf16.msra.mxu0 %v17824_v29  ;;  %v364_v56 = vld [vmem:[#allocation2 + $0x38] sm:$0xff]  ;;  %355 = vst.msk [vmem:[#allocation2 + $0x79] sm:$0xff] %vm340_vm1, %v17929_v52  ;;  %v531_v9 = vld [vmem:[#allocation2 + $0x9] sm:$0xff]  ;;  %v534_v16 = vld [vmem:[#allocation2 + $0x21] sm:$0xff] }
 0x137   :  { %15041 = vmatprep.mubr.msk.bf16.mxu0 %vm340_vm1, %v375_v53  ;;  %v365_v57 = vld [vmem:[#allocation2 + $0x48] sm:$0xff]  ;;  %356 = vst.msk [vmem:[#allocation2 + $0x81] sm:$0xff] %vm340_vm1, %v17934_v54  ;;  %15071 = vmatprep.subr.bf16.mxu0 %v16483_v50  ;;  %v376_v59 = vpack.c.bf16 %v364_v56, %v363_v55  ;;  %v546_v12 = vpack.c.bf16 %v531_v9, %v530_v7  ;;  %v536_v24 = vld [vmem:[#allocation2 + $0x31] sm:$0xff]  ;;  %v537_v25 = vld [vmem:[#allocation2 + $0x39] sm:$0xff] }
 0x138   :  { %v366_v58 = vld [vmem:[#allocation2 + $0x50] sm:$0xff]  ;;  %v549_v30 = vpack.c.bf16 %v537_v25, %v536_v24  ;;  %v697_v43 = vld [vmem:[#allocation2 + $0x2] sm:$0xff]  ;;  %906 = vst.msk [vmem:[#allocation2] sm:$0x1] %vm905_vm3, %v21776_v0  ;;  %907 = vst.msk [vmem:[#allocation2 + $0x48] sm:$0x1] %vm905_vm3, %v21776_v0 }
 0x139   :  { %v377_v60 = vpack.c.bf16 %v366_v58, %v365_v57  ;;  %v367_v29 = vld [vmem:[#allocation2 + $0x58] sm:$0xff]  ;;  %v535_v18 = vld [vmem:[#allocation2 + $0x29] sm:$0xff] }
 0x13a   :  { %v368_v61 = vld [vmem:[#allocation2 + $0x60] sm:$0xff]  ;;  %v548_v22 = vpack.c.bf16 %v535_v18, %v534_v16  ;;  %v538_v27 = vld [vmem:[#allocation2 + $0x49] sm:$0xff]  ;;  %v539_v28 = vld [vmem:[#allocation2 + $0x51] sm:$0xff] }
 0x13b   :  { %v369_v62 = vld [vmem:[#allocation2 + $0x68] sm:$0xff]  ;;  %v378_v1 = vpack.c.bf16 %v368_v61, %v367_v29  ;;  %v550_v32 = vpack.c.bf16 %v539_v28, %v538_v27  ;;  %v540_v33 = vld [vmem:[#allocation2 + $0x59] sm:$0xff] }
 0x13c   :  { %v370_v63 = vld [vmem:[#allocation2 + $0x70] sm:$0xff]  ;;  %v541_v34 = vld [vmem:[#allocation2 + $0x61] sm:$0xff] }
 0x13d   :  { %15042 = vmatmul.mubr.msk.bf16.gmra.mrb[4].mxu0 %vm340_vm1, %v376_v59  ;;  %v379_v3 = vpack.c.bf16 %v370_v63, %v369_v62  ;;  %v371_v4 = vld [vmem:[#allocation2 + $0x78] sm:$0xff]  ;;  %v542_v36 = vld [vmem:[#allocation2 + $0x69] sm:$0xff]  ;;  %v551_v38 = vpack.c.bf16 %v541_v34, %v540_v33 }
 0x13e   :  { %15045 = vmatprep.mubr.msk.bf16.mxu0 %vm340_vm1, %v377_v60  ;;  %v372_v6 = vld [vmem:[#allocation2 + $0x80] sm:$0xff]  ;;  %v543_v37 = vld [vmem:[#allocation2 + $0x71] sm:$0xff] }
 0x13f   :  { %v380_v10 = vpack.c.bf16 %v372_v6, %v371_v4  ;;  %v552_v39 = vpack.c.bf16 %v543_v37, %v542_v36  ;;  %v544_v41 = vld [vmem:[#allocation2 + $0x79] sm:$0xff]  ;;  %v545_v42 = vld [vmem:[#allocation2 + $0x81] sm:$0xff]  ;;  %v698_v45 = vld [vmem:[#allocation2 + $0xa] sm:$0xff] }
 0x140   :  { %v553_v46 = vpack.c.bf16 %v545_v42, %v544_v41  ;;  %v713_v47 = vpack.c.bf16 %v698_v45, %v697_v43  ;;  %v699_v49 = vld [vmem:[#allocation2 + $0x12] sm:$0xff]  ;;  %v701_v51 = vld [vmem:[#allocation2 + $0x22] sm:$0xff]  ;;  %v702_v53 = vld [vmem:[#allocation2 + $0x2a] sm:$0xff] }
 0x141   :  { %v16485_v56 = vld [vmem:[#allocation8 + $0x8] sm:$0xff]   ;;  %v715_v57 = vpack.c.bf16 %v702_v53, %v701_v51  ;;  %v705_v60 = vld [vmem:[#allocation2 + $0x4a] sm:$0xff] }
 0x142   :  { %v703_v58 = vld [vmem:[#allocation2 + $0x32] sm:$0xff]  ;;  %v704_v59 = vld [vmem:[#allocation2 + $0x3a] sm:$0xff] }
 0x143   :  { %v706_v29 = vld [vmem:[#allocation2 + $0x52] sm:$0xff]  ;;  %v716_v61 = vpack.c.bf16 %v704_v59, %v703_v58  ;;  %v707_v63 = vld [vmem:[#allocation2 + $0x5a] sm:$0xff]  ;;  %908 = vst.msk [vmem:[#allocation2 + $0x41] sm:$0x1] %vm905_vm3, %v21776_v0 }
 0x144   :  { %v717_v62 = vpack.c.bf16 %v706_v29, %v705_v60  ;;  %v710_v4 = vld [vmem:[#allocation2 + $0x72] sm:$0xff]  ;;  %v711_v9 = vld [vmem:[#allocation2 + $0x7a] sm:$0xff] }
 0x145   :  { %15046 = vmatmul.mubr.msk.bf16.gmra.mrb[8].mxu0 %vm340_vm1, %v378_v1  ;;  %v708_v1 = vld [vmem:[#allocation2 + $0x62] sm:$0xff] }
 0x146   :  { %15049 = vmatprep.mubr.msk.bf16.mxu0 %vm340_vm1, %v379_v3  ;;  %v709_v3 = vld [vmem:[#allocation2 + $0x6a] sm:$0xff]  ;;  %v718_v6 = vpack.c.bf16 %v708_v1, %v707_v63 }
 0x147   :  { %v719_v7 = vpack.c.bf16 %v710_v4, %v709_v3 }
 0x14d   :  { %15050 = vmatmul.mubr.msk.bf16.gmra.mrb[12].mxu0 %vm340_vm1, %v380_v10  ;;  %v712_v10 = vld [vmem:[#allocation2 + $0x82] sm:$0xff] }
 0x14e   :  { %15055 = vmatprep.mubr.msk.bf16.mxu0 %vm340_vm1, %v546_v12  ;;  %909 = vst.msk [vmem:[#allocation2 + $0x89] sm:$0x1] %vm905_vm3, %v21776_v0 }
 0x155   :  { %15056 = vmatmul.mubr.msk.bf16.vlgmr.msra.gmra.mrb[0].mxu0 %vm340_vm1, %v547_v19 }
 0x156   :  { %15072 = vmatpush3.bf16.msra.mxu0 %v16483_v50  ;;  %15059 = vmatprep.mubr.msk.bf16.mxu0 %vm340_vm1, %v548_v22  ;;  %v700_v50 = vld [vmem:[#allocation2 + $0x1a] sm:$0xff] }
 0x157   :  { %15161 = vmatprep.subr.bf16.mxu0 %v16484_v21  ;;  %v714_v55 = vpack.c.bf16 %v700_v50, %v699_v49 }
 0x15d   :  { %15060 = vmatmul.mubr.msk.bf16.gmra.mrb[4].mxu0 %vm340_vm1, %v549_v30 }
 0x15e   :  { %15063 = vmatprep.mubr.msk.bf16.mxu0 %vm340_vm1, %v550_v32 }
 0x165   :  { %15064 = vmatmul.mubr.msk.bf16.gmra.mrb[8].mxu0 %vm340_vm1, %v551_v38 }
 0x166   :  { %15067 = vmatprep.mubr.msk.bf16.mxu0 %vm340_vm1, %v552_v39 }
 0x16d   :  { %15068 = vmatmul.mubr.msk.bf16.gmra.mrb[12].mxu0 %vm340_vm1, %v553_v46 }
 0x16e   :  { %15073 = vmatprep.mubr.msk.bf16.mxu0 %vm340_vm1, %v713_v47 }
 0x175   :  { %15074 = vmatmul.mubr.msk.bf16.vlgmr.msra.gmra.mrb[0].mxu0 %vm340_vm1, %v714_v55 }
 0x176   :  { %15162 = vmatpush3.bf16.msra.mxu0 %v16484_v21  ;;  %15077 = vmatprep.mubr.msk.bf16.mxu0 %vm340_vm1, %v715_v57  ;;  %v720_v21 = vpack.c.bf16 %v712_v10, %v711_v9 }
 0x177   :  { %15163 = vmatprep.subr.bf16.mxu0 %v16485_v56 }
 0x17a   :  { %15164 = vmatpush3.bf16.msra.mxu0 %v16485_v56 }
 0x17d   :  { %15078 = vmatmul.mubr.msk.bf16.gmra.mrb[4].mxu0 %vm340_vm1, %v716_v61  ;;  %v16490_v61 = vld [vmem:[%s21845_s26 + $0x20] sm:$0xff]  }
 0x17e   :  { %15081 = vmatprep.mubr.msk.bf16.mxu0 %vm340_vm1, %v717_v62  ;;  %v18022_v62 = vld [vmem:[#allocation5] ss:$0 sm:$0xff] }
 0x185   :  { %15082 = vmatmul.mubr.msk.bf16.gmra.mrb[8].mxu0 %vm340_vm1, %v718_v6 }
 0x186   :  { %15085 = vmatprep.mubr.msk.bf16.mxu0 %vm340_vm1, %v719_v7 }
 0x187   :  { %v16403_v12 = vpop.permute.xlu0 %16402 }
 0x188   :  { %v16405_v13 = vunpack.i.h.bf16 %v16403_v12  ;;  %v16404_v15 = vunpack.i.l.bf16 %v16403_v12  ;;  %v16413_v16 = vpop.permute.xlu1 %16412 }
 0x189   :  { %v16415_v28 = vunpack.i.h.bf16 %v16413_v16  ;;  %v16414_v30 = vunpack.i.l.bf16 %v16413_v16 }
 0x18a   :  { %v1648_v18 = vsel %vm340_vm1, %v17874_v2, %v16404_v15  ;;  %v1649_v19 = vsel %vm340_vm1, %v17876_v5, %v16405_v13 }
 0x18b   :  { %v1664_v22 = vpack.c.bf16 %v1649_v19, %v1648_v18  ;;  %v16408_v24 = vpop.permute.xlu0 %16407  ;;  %v1652_v2 = vsel %vm340_vm1, %v17888_v14, %v16414_v30  ;;  %v1653_v5 = vsel %vm340_vm1, %v17892_v17, %v16415_v28 }
 0x18c   :  { %v16410_v25 = vunpack.i.h.bf16 %v16408_v24  ;;  %v16409_v27 = vunpack.i.l.bf16 %v16408_v24  ;;  %v16418_v34 = vpop.permute.xlu1 %16417  ;;  %v1666_v38 = vpack.c.bf16 %v1653_v5, %v1652_v2 }
 0x18d   :  { %15086 = vmatmul.mubr.msk.bf16.gmra.mrb[12].mxu0 %vm340_vm1, %v720_v21  ;;  %v16420_v39 = vunpack.i.h.bf16 %v16418_v34  ;;  %v16419_v41 = vunpack.i.l.bf16 %v16418_v34 }
 0x18e   :  { %v1650_v32 = vsel %vm340_vm1, %v17880_v8, %v16409_v27  ;;  %v1651_v33 = vsel %vm340_vm1, %v17884_v11, %v16410_v25  ;;  %15165 = vmatprep.mubr.msk.bf16.mxu0 %vm1695_vm2, %v1664_v22 }
 0x18f   :  { %v16423_v36 = vpop.permute.xlu0 %16422  ;;  %v1665_v37 = vpack.c.bf16 %v1651_v33, %v1650_v32  ;;  %v1654_v8 = vsel %vm340_vm1, %v17896_v20, %v16419_v41  ;;  %v1655_v11 = vsel %vm340_vm1, %v17900_v23, %v16420_v39 }
 0x190   :  { %v16425_v42 = vunpack.i.h.bf16 %v16423_v36  ;;  %v16424_v43 = vunpack.i.l.bf16 %v16423_v36  ;;  %v16428_v45 = vpop.permute.xlu1 %16427  ;;  %v1667_v47 = vpack.c.bf16 %v1655_v11, %v1654_v8  ;;  %v16491_v8 = vld [vmem:[%s21845_s26 + $0x28] sm:$0xff]  }
 0x191   :  { %v16430_v50 = vunpack.i.h.bf16 %v16428_v45  ;;  %v16429_v51 = vunpack.i.l.bf16 %v16428_v45 }
 0x192   :  { %v1656_v14 = vsel %vm340_vm1, %v17904_v26, %v16424_v43  ;;  %v1657_v17 = vsel %vm340_vm1, %v17908_v31, %v16425_v42 }
 0x193   :  { %v16433_v46 = vpop.permute.xlu0 %16432  ;;  %v1668_v49 = vpack.c.bf16 %v1657_v17, %v1656_v14  ;;  %v1658_v20 = vsel %vm340_vm1, %v17912_v35, %v16429_v51  ;;  %v1659_v23 = vsel %vm340_vm1, %v17916_v40, %v16430_v50  ;;  %v16492_v51 = vld [vmem:[%s21845_s26 + $0x30] sm:$0xff]  }
 0x194   :  { %v16435_v53 = vunpack.i.h.bf16 %v16433_v46  ;;  %v16434_v55 = vunpack.i.l.bf16 %v16433_v46  ;;  %v16438_v56 = vpop.permute.xlu1 %16437  ;;  %v1669_v57 = vpack.c.bf16 %v1659_v23, %v1658_v20 }
 0x195   :  { %15166 = vmatmul.mubr.msk.bf16.vlgmr.msra.gmra.mrb[16].mxu0 %vm1695_vm2, %v1665_v37  ;;  %v16440_v59 = vunpack.i.h.bf16 %v16438_v56  ;;  %v16439_v60 = vunpack.i.l.bf16 %v16438_v56 }
 0x196   :  { %15169 = vmatprep.mubr.msk.bf16.mxu0 %vm1695_vm2, %v1666_v38  ;;  %v1660_v26 = vsel %vm340_vm1, %v17920_v44, %v16434_v55  ;;  %v1661_v31 = vsel %vm340_vm1, %v17925_v48, %v16435_v53  ;;  %v16486_v44 = vld [vmem:[%s21845_s26] sm:$0xff]   ;;  %v16487_v48 = vld [vmem:[%s21845_s26 + $0x8] sm:$0xff]  }
 0x197   :  { %v1670_v58 = vpack.c.bf16 %v1661_v31, %v1660_v26  ;;  %v1662_v35 = vsel %vm340_vm1, %v17929_v52, %v16439_v60  ;;  %v1663_v40 = vsel %vm340_vm1, %v17934_v54, %v16440_v59  ;;  %15089 = vmatprep.subr.bf16.mxu1 %v16486_v44  ;;  %v16488_v52 = vld [vmem:[%s21845_s26 + $0x10] sm:$0xff]   ;;  %v16489_v54 = vld [vmem:[%s21845_s26 + $0x18] sm:$0xff]  }
 0x198   :  { %v1671_v29 = vpack.c.bf16 %v1663_v40, %v1662_v35  ;;  %15090 = vmatpush3.bf16.msra.mxu1 %v16486_v44  ;;  %v16493_v35 = vld [vmem:[%s21845_s26 + $0x38] sm:$0xff]  }
 0x199   :  { %15091 = vmatprep.subr.bf16.mxu1 %v16487_v48 }
 0x19c   :  { %15092 = vmatpush3.bf16.msra.mxu1 %v16487_v48 }
 0x19d   :  { %15170 = vmatmul.mubr.msk.bf16.gmra.mrb[20].mxu0 %vm1695_vm2, %v1667_v47  ;;  %15093 = vmatprep.subr.bf16.mxu1 %v16488_v52 }
 0x19e   :  { %15173 = vmatprep.mubr.msk.bf16.mxu0 %vm1695_vm2, %v1668_v49 }
 0x1a0   :  { %15094 = vmatpush3.bf16.msra.mxu1 %v16488_v52 }
 0x1a1   :  { %15095 = vmatprep.subr.bf16.mxu1 %v16489_v54 }
 0x1a4   :  { %15096 = vmatpush3.bf16.msra.mxu1 %v16489_v54 }
 0x1a5   :  { %15174 = vmatmul.mubr.msk.bf16.gmra.mrb[24].mxu0 %vm1695_vm2, %v1669_v57  ;;  %15113 = vmatprep.subr.bf16.mxu1 %v16490_v61 }
 0x1a6   :  { %15177 = vmatprep.mubr.msk.bf16.mxu0 %vm1695_vm2, %v1670_v58 }
 0x1ad   :  { %15178 = vmatmul.mubr.msk.bf16.gmra.mrb[28].mxu0 %vm1695_vm2, %v1671_v29 }
 0x248   :  { %v15075_v63 = vpop.f32.mrb[0].mxu0 }
 0x249   :  { %v16005_v1 = vadd.f32 %v15075_v63, %v18022_v62  ;;  %v785_v3 = vpop.f32.mrb[1].mxu0 }
 0x24a   :  { %v16006_v4 = vadd.f32 %v18022_v62, %v785_v3  ;;  %v15076_v6 = vpop.f32.mrb[2].mxu0  ;;  %v18073_v3 = vld [vmem:[%s21845_s26 + $0x40] sm:$0xff]  }
 0x24b   :  { %v866_v7 = vmax.f32 %v16005_v1, 0.0  ;;  %v16007_v9 = vadd.f32 %v15076_v6, %v18022_v62  ;;  %v788_v10 = vpop.f32.mrb[3].mxu0 }
 0x24c   :  { %v864_v12 = vmax.f32 %v16006_v4, 0.0  ;;  %v16008_v13 = vadd.f32 %v18022_v62, %v788_v10 }
 0x24d   :  { %913 = vst.msk [vmem:[#allocation2 + $0x11] sm:$0xff] %vm910_vm4, %v866_v7  ;;  %v867_v15 = vmax.f32 %v16007_v9, 0.0 }
 0x24e   :  { %911 = vst.msk [vmem:[#allocation2 + $0x1] sm:$0xff] %vm910_vm4, %v864_v12  ;;  %v865_v16 = vmax.f32 %v16008_v13, 0.0 }
 0x24f   :  { %914 = vst.msk [vmem:[#allocation2 + $0x19] sm:$0xff] %vm910_vm4, %v867_v15 }
 0x250   :  { %912 = vst.msk [vmem:[#allocation2 + $0x9] sm:$0xff] %vm910_vm4, %v865_v16  ;;  %v15079_v18 = vpop.f32.mrb[4].mxu0 }
 0x251   :  { %v16009_v19 = vadd.f32 %v15079_v18, %v18022_v62  ;;  %v801_v21 = vpop.f32.mrb[5].mxu0 }
 0x252   :  { %v16010_v22 = vadd.f32 %v18022_v62, %v801_v21  ;;  %v15080_v24 = vpop.f32.mrb[6].mxu0 }
 0x253   :  { %v870_v25 = vmax.f32 %v16009_v19, 0.0  ;;  %v16011_v27 = vadd.f32 %v15080_v24, %v18022_v62  ;;  %v804_v28 = vpop.f32.mrb[7].mxu0 }
 0x254   :  { %v868_v30 = vmax.f32 %v16010_v22, 0.0  ;;  %v16012_v32 = vadd.f32 %v18022_v62, %v804_v28 }
 0x255   :  { %v927_v33 = vld [vmem:[#allocation2] sm:$0xff]  ;;  %917 = vst.msk [vmem:[#allocation2 + $0x31] sm:$0xff] %vm910_vm4, %v870_v25  ;;  %v871_v2 = vmax.f32 %v16011_v27, 0.0  ;;  %v18082_v25 = vld [vmem:[#allocation10] ss:$0 sm:$0xff] }
 0x256   :  { %5762 = vst [vmem:[#allocation2] sm:$0x1] %v21776_v0  ;;  %915 = vst.msk [vmem:[#allocation2 + $0x21] sm:$0xff] %vm910_vm4, %v868_v30  ;;  %v869_v5 = vmax.f32 %v16012_v32, 0.0  ;;  %v930_v34 = vld [vmem:[#allocation2 + $0x18] sm:$0xff] }
 0x257   :  { %v928_v36 = vld [vmem:[#allocation2 + $0x8] sm:$0xff]  ;;  %918 = vst.msk [vmem:[#allocation2 + $0x39] sm:$0xff] %vm910_vm4, %v871_v2  ;;  %v929_v37 = vld [vmem:[#allocation2 + $0x10] sm:$0xff] }
 0x258   :  { %916 = vst.msk [vmem:[#allocation2 + $0x29] sm:$0xff] %vm910_vm4, %v869_v5  ;;  %v15083_v38 = vpop.f32.mrb[8].mxu0  ;;  %v943_v39 = vpack.c.bf16 %v928_v36, %v927_v33  ;;  %v944_v41 = vpack.c.bf16 %v930_v34, %v929_v37  ;;  %v1119_v19 = vld [vmem:[#allocation2 + $0x9] sm:$0xff]  ;;  %v1118_v5 = vld [vmem:[#allocation2 + $0x1] sm:$0xff] }
 0x259   :  { %v16013_v42 = vadd.f32 %v15083_v38, %v18022_v62  ;;  %v817_v43 = vpop.f32.mrb[9].mxu0  ;;  %v1134_v34 = vpack.c.bf16 %v1119_v19, %v1118_v5 }
 0x25a   :  { %v16014_v11 = vadd.f32 %v18022_v62, %v817_v43  ;;  %v15084_v14 = vpop.f32.mrb[10].mxu0  ;;  %15097 = vmatprep.mubr.msk.bf16.mxu1 %vm910_vm4, %v943_v39 }
 0x25b   :  { %v874_v17 = vmax.f32 %v16013_v42, 0.0  ;;  %v16015_v45 = vadd.f32 %v15084_v14, %v18022_v62  ;;  %v820_v46 = vpop.f32.mrb[11].mxu0  ;;  %15098 = vmatmul.mubr.msk.bf16.vlgmr.msra.gmra.mrb[0].mxu1 %vm910_vm4, %v944_v41 }
 0x25c   :  { %v872_v47 = vmax.f32 %v16014_v11, 0.0  ;;  %v16016_v49 = vadd.f32 %v18022_v62, %v820_v46  ;;  %15114 = vmatpush3.bf16.msra.mxu1 %v16490_v61 }
 0x25d   :  { %921 = vst.msk [vmem:[#allocation2 + $0x59] sm:$0xff] %vm910_vm4, %v874_v17  ;;  %v875_v50 = vmax.f32 %v16015_v45, 0.0  ;;  %15115 = vmatprep.subr.bf16.mxu1 %v16491_v8  ;;  %v931_v20 = vld [vmem:[#allocation2 + $0x20] sm:$0xff] }
 0x25e   :  { %919 = vst.msk [vmem:[#allocation2 + $0x49] sm:$0xff] %vm910_vm4, %v872_v47  ;;  %v873_v53 = vmax.f32 %v16016_v49, 0.0  ;;  %v934_v55 = vld [vmem:[#allocation2 + $0x38] sm:$0xff] }
 0x25f   :  { %922 = vst.msk [vmem:[#allocation2 + $0x61] sm:$0xff] %vm910_vm4, %v875_v50  ;;  %v932_v23 = vld [vmem:[#allocation2 + $0x28] sm:$0xff]  ;;  %v933_v26 = vld [vmem:[#allocation2 + $0x30] sm:$0xff]  ;;  %v18057_v58 = vld [vmem:[#allocation2 + $0x3a] sm:$0xff] }
 0x260   :  { %920 = vst.msk [vmem:[#allocation2 + $0x51] sm:$0xff] %vm910_vm4, %v873_v53  ;;  %v15087_v31 = vpop.f32.mrb[12].mxu0  ;;  %v945_v56 = vpack.c.bf16 %v932_v23, %v931_v20  ;;  %v946_v57 = vpack.c.bf16 %v934_v55, %v933_v26  ;;  %15116 = vmatpush3.bf16.msra.mxu1 %v16491_v8  ;;  %5764 = vst [vmem:[#allocation2 + $0x41] sm:$0x1] %v21776_v0  ;;  %v1121_v8 = vld [vmem:[#allocation2 + $0x19] sm:$0xff]  ;;  %v1123_v17 = vld [vmem:[#allocation2 + $0x29] sm:$0xff] }
 0x261   :  { %v16017_v59 = vadd.f32 %v15087_v31, %v18022_v62  ;;  %v833_v60 = vpop.f32.mrb[13].mxu0  ;;  %15117 = vmatprep.subr.bf16.mxu1 %v16492_v51  ;;  %v1120_v47 = vld [vmem:[#allocation2 + $0x11] sm:$0xff]  ;;  %v1122_v53 = vld [vmem:[#allocation2 + $0x21] sm:$0xff] }
 0x262   :  { %v16018_v40 = vadd.f32 %v18022_v62, %v833_v60  ;;  %v15088_v29 = vpop.f32.mrb[14].mxu0  ;;  %15101 = vmatprep.mubr.msk.bf16.mxu1 %vm910_vm4, %v945_v56  ;;  %v1135_v50 = vpack.c.bf16 %v1121_v8, %v1120_v47  ;;  %v16495_v55 = vld [vmem:[%s21845_s26 + $0x48] sm:$0xff]   ;;  %v1136_v31 = vpack.c.bf16 %v1123_v17, %v1122_v53 }
 0x263   :  { %v878_v44 = vmax.f32 %v16017_v59, 0.0  ;;  %v16019_v48 = vadd.f32 %v15088_v29, %v18022_v62  ;;  %v836_v52 = vpop.f32.mrb[15].mxu0  ;;  %15102 = vmatmul.mubr.msk.bf16.gmra.mrb[4].mxu1 %vm910_vm4, %v946_v57 }
 0x264   :  { %v876_v54 = vmax.f32 %v16018_v40, 0.0  ;;  %v16020_v61 = vadd.f32 %v18022_v62, %v836_v52  ;;  %15118 = vmatpush3.bf16.msra.mxu1 %v16492_v51 }
 0x265   :  { %v935_v63 = vld [vmem:[#allocation2 + $0x48] sm:$0xff]  ;;  %925 = vst.msk [vmem:[#allocation2 + $0x79] sm:$0xff] %vm910_vm4, %v878_v44  ;;  %v879_v1 = vmax.f32 %v16019_v48, 0.0  ;;  %15119 = vmatprep.subr.bf16.mxu1 %v16493_v35 }
 0x266   :  { %5763 = vst [vmem:[#allocation2 + $0x48] sm:$0x1] %v21776_v0  ;;  %923 = vst.msk [vmem:[#allocation2 + $0x69] sm:$0xff] %vm910_vm4, %v876_v54  ;;  %v877_v4 = vmax.f32 %v16020_v61, 0.0  ;;  %v938_v6 = vld [vmem:[#allocation2 + $0x60] sm:$0xff] }
 0x267   :  { %v936_v7 = vld [vmem:[#allocation2 + $0x50] sm:$0xff]  ;;  %926 = vst.msk [vmem:[#allocation2 + $0x81] sm:$0xff] %vm910_vm4, %v879_v1  ;;  %v937_v62 = vld [vmem:[#allocation2 + $0x58] sm:$0xff]  ;;  %v18139_v54 = vld [vmem:[#allocation2 + $0x2] sm:$0xff] }
 0x268   :  { %924 = vst.msk [vmem:[#allocation2 + $0x71] sm:$0xff] %vm910_vm4, %v877_v4  ;;  %v947_v9 = vpack.c.bf16 %v936_v7, %v935_v63  ;;  %v15167_v10 = vpop.f32.mrb[16].mxu0  ;;  %v948_v12 = vpack.c.bf16 %v938_v6, %v937_v62  ;;  %15120 = vmatpush3.bf16.msra.mxu1 %v16493_v35  ;;  %v16496_v63 = vld [vmem:[%s21845_s26 + $0x50] sm:$0xff]   ;;  %v1125_v6 = vld [vmem:[#allocation2 + $0x39] sm:$0xff] }
 0x269   :  { %v1754_v13 = vpop.f32.mrb[17].mxu0  ;;  %15137 = vmatprep.subr.bf16.mxu1 %v18073_v3  ;;  %v18092_v37 = vadd.f32 %v15167_v10, %v18082_v25  ;;  %v18144_v1 = vld [vmem:[#allocation2 + $0xa] sm:$0xff]  ;;  %v18146_v7 = vld [vmem:[#allocation2 + $0x1a] sm:$0xff]  ;;  %v18148_v62 = vld [vmem:[#allocation2 + $0x32] sm:$0xff] }
 0x26a   :  { %15105 = vmatprep.mubr.msk.bf16.mxu1 %vm910_vm4, %v947_v9  ;;  %v15168_v15 = vpop.f32.mrb[18].mxu0  ;;  %v18099_v41 = vadd.f32 %v18082_v25, %v1754_v13  ;;  %v18150_v13 = vld [vmem:[#allocation2 + $0x22] sm:$0xff] }
 0x26b   :  { %15106 = vmatmul.mubr.msk.bf16.gmra.mrb[8].mxu1 %vm910_vm4, %v948_v12  ;;  %v1757_v16 = vpop.f32.mrb[19].mxu0  ;;  %v18103_v42 = vadd.f32 %v15168_v15, %v18082_v25  ;;  %v2228_v11 = vand.u32 2139095040, %v18092_v37  ;;  %v18152_v15 = vld [vmem:[#allocation2 + $0x2a] sm:$0xff]  ;;  %16930 = vtanh.f32 %v18092_v37 }
 0x26c   :  { %v18106_v43 = vadd.f32 %v18082_v25, %v1757_v16  ;;  %v2020_v45 = vand.u32 2139095040, %v18099_v41  ;;  %16932 = vtanh.f32 %v18099_v41 }
 0x26d   :  { %v939_v21 = vld [vmem:[#allocation2 + $0x68] sm:$0xff]  ;;  %v2332_v49 = vand.u32 2139095040, %v18103_v42  ;;  %v2229_v57 = vshrl.u32 %v2228_v11, 23  ;;  %16934 = vtanh.f32 %v18103_v42 }
 0x26e   :  { %v942_v18 = vld [vmem:[#allocation2 + $0x80] sm:$0xff]  ;;  %v2124_v20 = vand.u32 2139095040, %v18106_v43  ;;  %v2021_v29 = vshrl.u32 %v2020_v45, 23  ;;  %16936 = vtanh.f32 %v18106_v43 }
 0x26f   :  { %v940_v22 = vld [vmem:[#allocation2 + $0x70] sm:$0xff]  ;;  %v941_v24 = vld [vmem:[#allocation2 + $0x78] sm:$0xff]  ;;  %v18084_v32 = vld [vmem:[#allocation2 + $0x82] sm:$0xff]  ;;  %v2333_v61 = vshrl.u32 %v2332_v49, 23  ;;  %v13930_v9 = vadd.s32 4294967169, %v2229_v57 }
 0x270   :  { %v949_v27 = vpack.c.bf16 %v940_v22, %v939_v21  ;;  %v15171_v28 = vpop.f32.mrb[20].mxu0  ;;  %v950_v30 = vpack.c.bf16 %v942_v18, %v941_v24  ;;  %5765 = vst [vmem:[#allocation2 + $0x89] sm:$0x1] %v21776_v0  ;;  %v2125_v4 = vshrl.u32 %v2124_v20, 23  ;;  %v13922_v16 = vadd.s32 4294967169, %v2021_v29  ;;  %v1124_v22 = vld [vmem:[#allocation2 + $0x31] sm:$0xff] }
 0x271   :  { %v18087_v33 = vadd.f32 %v15171_v28, %v18082_v25  ;;  %v1770_v2 = vpop.f32.mrb[21].mxu0  ;;  %v1319_v24 = vpack.c.bf16 %v18144_v1, %v18139_v54  ;;  %v13934_v28 = vadd.s32 4294967169, %v2333_v61  ;;  %v1129_v45 = vld [vmem:[#allocation2 + $0x61] sm:$0xff]  ;;  %v18169_v49 = vld [vmem:[#allocation2 + $0x4a] sm:$0xff]  ;;  %v18173_v20 = vld [vmem:[#allocation2 + $0x52] sm:$0xff] }
 0x272   :  { %15109 = vmatprep.mubr.msk.bf16.mxu1 %vm910_vm4, %v949_v27  ;;  %v15172_v36 = vpop.f32.mrb[22].mxu0  ;;  %v18110_v14 = vadd.f32 %v18082_v25, %v1770_v2  ;;  %v18157_v27 = vld [vmem:[#allocation2 + $0x12] sm:$0xff]  ;;  %v1137_v2 = vpack.c.bf16 %v1125_v6, %v1124_v22  ;;  %v13926_v8 = vadd.s32 4294967169, %v2125_v4  ;;  %v18180_v61 = vld [vmem:[%s21754_s8] sm:$0xff]  }
 0x273   :  { %21846 = vst [vmem:[#allocation30_spill] sm:$0xff] %v18087_v33  ;;  %15110 = vmatmul.mubr.msk.bf16.gmra.mrb[12].mxu1 %vm910_vm4, %v950_v30  ;;  %v18096_v38 = vadd.f32 %v15172_v36, %v18082_v25  ;;  %v1773_v39 = vpop.f32.mrb[23].mxu0  ;;  %v2644_v59 = vand.u32 2139095040, %v18087_v33  ;;  %v16497_v36 = vld [vmem:[%s21845_s26 + $0x58] sm:$0xff]   ;;  %v21867_v33 = vpack.c.bf16 %v18146_v7, %v18157_v27 }
 0x274   :  { %15121 = vmatprep.mubr.msk.bf16.mxu1 %vm910_vm4, %v1134_v34  ;;  %v2436_v60 = vand.u32 2139095040, %v18110_v14  ;;  %v18132_v48 = vadd.f32 %v18082_v25, %v1773_v39  ;;  %v1126_v34 = vld [vmem:[#allocation2 + $0x49] sm:$0xff]  ;;  %v2131_v4 = vadd.s32 1, %v13926_v8  ;;  %v18198_v8 = vld [vmem:[#allocation2 + $0x5a] sm:$0xff] }
 0x275   :  { %21847 = vst [vmem:[#allocation31_spill] sm:$0xff] %v18096_v38  ;;  %v2748_v44 = vand.u32 2139095040, %v18096_v38  ;;  %v2645_v10 = vshrl.u32 %v2644_v59, 23  ;;  %v21818_v38 = vmov 920167782  }
 0x276   :  { %v2437_v12 = vshrl.u32 %v2436_v60, 23  ;;  %v2540_v19 = vand.u32 2139095040, %v18132_v48  ;;  %v1128_v60 = vld [vmem:[#allocation2 + $0x59] sm:$0xff]  ;;  %vm2132_vm8 = vcmp.gt.s32.totalorder %v2131_v4, 0  ;;  %16938 = vtanh.f32 %v18132_v48 }
 0x277   :  { %v2749_v18 = vshrl.u32 %v2748_v44, 23  ;;  %v1139_v44 = vpack.c.bf16 %v1129_v45, %v1128_v60  ;;  %v1133_v45 = vld [vmem:[#allocation2 + $0x81] sm:$0xff]  ;;  %16940 = vtanh.f32 %v18110_v14 }
 0x278   :  { %v15175_v46 = vpop.f32.mrb[24].mxu0  ;;  %v13938_v53 = vadd.s32 4294967169, %v2437_v12  ;;  %v2541_v57 = vshrl.u32 %v2540_v19, 23 }
 0x279   :  { %v1786_v51 = vpop.f32.mrb[25].mxu0  ;;  %v18119_v23 = vadd.f32 %v15175_v46, %v18082_v25 }
 0x27a   :  { %v18122_v26 = vadd.f32 %v18082_v25, %v1786_v51  ;;  %v15176_v56 = vpop.f32.mrb[26].mxu0  ;;  %v13946_v51 = vadd.s32 4294967169, %v2645_v10  ;;  %v2443_v10 = vadd.s32 1, %v13938_v53  ;;  %v13942_v19 = vadd.s32 4294967169, %v2541_v57  ;;  %v18213_v57 = vld [vmem:[#allocation2 + $0x72] sm:$0xff] }
 0x27b   :  { %21848 = vst [vmem:[#allocation32_spill] sm:$0xff] %v18119_v23  ;;  %15122 = vmatmul.mubr.msk.bf16.vlgmr.msra.gmra.mrb[0].mxu1 %vm910_vm4, %v1135_v50  ;;  %v18128_v35 = vadd.f32 %v15176_v56, %v18082_v25  ;;  %v1789_v40 = vpop.f32.mrb[27].mxu0  ;;  %v3060_v30 = vand.u32 2139095040, %v18119_v23  ;;  %v2235_v50 = vadd.s32 1, %v13930_v9  ;;  %v13950_v56 = vadd.s32 4294967169, %v2749_v18 }
 0x27c   :  { %21849 = vst [vmem:[#allocation33_spill] sm:$0xff] %v18122_v26  ;;  %15125 = vmatprep.mubr.msk.bf16.mxu1 %vm910_vm4, %v1136_v31  ;;  %v18136_v52 = vadd.f32 %v18082_v25, %v1789_v40  ;;  %15138 = vmatpush3.bf16.msra.mxu1 %v18073_v3  ;;  %v1127_v3 = vld [vmem:[#allocation2 + $0x51] sm:$0xff]  ;;  %v2027_v31 = vadd.s32 1, %v13922_v16  ;;  %v2852_v59 = vand.u32 2139095040, %v18122_v26  ;;  %v2339_v40 = vadd.s32 1, %v13934_v28  ;;  %v18190_v16 = vld [vmem:[#allocation2 + $0x62] sm:$0xff] }
 0x27d   :  { %21850 = vst [vmem:[#allocation34_spill] sm:$0xff] %v18128_v35  ;;  %15139 = vmatprep.subr.bf16.mxu1 %v16495_v55  ;;  %v1138_v11 = vpack.c.bf16 %v1127_v3, %v1126_v34  ;;  %v3061_v29 = vshrl.u32 %v3060_v30, 23  ;;  %vm2236_vm5 = vcmp.gt.s32.totalorder %v2235_v50, 0  ;;  %v1131_v3 = vld [vmem:[#allocation2 + $0x71] sm:$0xff]  ;;  %v2755_v18 = vadd.s32 1, %v13950_v56  ;;  %v1130_v34 = vld [vmem:[#allocation2 + $0x69] sm:$0xff] }
 0x27e   :  { %21851 = vst [vmem:[#allocation35_spill] sm:$0xff] %v18136_v52  ;;  %vm2028_vm6 = vcmp.gt.s32.totalorder %v2027_v31, 0  ;;  %v2853_v22 = vshrl.u32 %v2852_v59, 23  ;;  %vm2340_vm7 = vcmp.gt.s32.totalorder %v2339_v40, 0  ;;  %vm2444_vm10 = vcmp.gt.s32.totalorder %v2443_v10, 0  ;;  %v18215_v59 = vpop.eup %16930 }
 0x27f   :  { %v13962_v28 = vadd.s32 4294967169, %v3061_v29  ;;  %v2341_v53 = vsel %vm2340_vm7, %v2339_v40, 0  ;;  %vm2756_vm11 = vcmp.gt.s32.totalorder %v2755_v18, 0  ;;  %v2547_v56 = vadd.s32 1, %v13942_v19  ;;  %v18225_v19 = vpop.eup %16932 }
 0x280   :  { %v15179_v21 = vpop.f32.mrb[28].mxu0  ;;  %15140 = vmatpush3.bf16.msra.mxu1 %v16495_v55 }
 0x281   :  { %v1802_v5 = vpop.f32.mrb[29].mxu0  ;;  %15141 = vmatprep.subr.bf16.mxu1 %v16496_v63  ;;  %v18188_v12 = vadd.f32 %v15179_v21, %v18082_v25  ;;  %vm2548_vm12 = vcmp.gt.s32.totalorder %v2547_v56, 0 }
 0x282   :  { %v15180_v17 = vpop.f32.mrb[30].mxu0  ;;  %v18193_v30 = vadd.f32 %v18082_v25, %v1802_v5  ;;  %v2237_v5 = vsel %vm2236_vm5, %v2235_v50, 0  ;;  %v2133_v50 = vsel %vm2132_vm8, %v2131_v4, 0  ;;  %v3164_v4 = vand.u32 2139095040, %v18128_v35 }
 0x283   :  { %15126 = vmatmul.mubr.msk.bf16.gmra.mrb[4].mxu1 %vm910_vm4, %v1137_v2  ;;  %v1805_v55 = vpop.f32.mrb[31].mxu0  ;;  %21852 = vst [vmem:[#allocation36_spill] sm:$0xff] %v18188_v12  ;;  %v18196_v2 = vadd.f32 %v15180_v17, %v18082_v25  ;;  %v1132_v17 = vld [vmem:[#allocation2 + $0x79] sm:$0xff]  ;;  %v18219_v29 = vand.u32 31, %v2237_v5 }
 0x284   :  { %15129 = vmatprep.mubr.msk.bf16.mxu1 %vm910_vm4, %v1138_v11  ;;  %15142 = vmatpush3.bf16.msra.mxu1 %v16496_v63  ;;  %v2651_v63 = vadd.s32 1, %v13946_v51  ;;  %v18202_v21 = vadd.f32 %v18082_v25, %v1805_v55  ;;  %v1140_v11 = vpack.c.bf16 %v1131_v3, %v1130_v34  ;;  %v2029_v51 = vsel %vm2028_vm6, %v2027_v31, 0  ;;  %v18211_v55 = vld [vmem:[#allocation2 + $0x6a] sm:$0xff] }
 0x285   :  { %15143 = vmatprep.subr.bf16.mxu1 %v16497_v36  ;;  %21853 = vst [vmem:[#allocation37_spill] sm:$0xff] %v18196_v2  ;;  %v13954_v25 = vadd.s32 4294967169, %v2853_v22  ;;  %v3067_v31 = vadd.s32 1, %v13962_v28  ;;  %v1141_v60 = vpack.c.bf16 %v1133_v45, %v1132_v17  ;;  %v18221_v40 = vand.u32 31, %v2029_v51 }
 0x286   :  { %vm2652_vm9 = vcmp.gt.s32.totalorder %v2651_v63, 0  ;;  %v2445_v3 = vsel %vm2444_vm10, %v2443_v10, 0  ;;  %v18227_v22 = vand.u32 31, %v2341_v53  ;;  %v2757_v34 = vsel %vm2756_vm11, %v2755_v18, 0 }
 0x287   :  { %v18235_v45 = vshrl.u32 %v2237_v5, 5  ;;  %v18237_v17 = vand.u32 31, %v2133_v50  ;;  %v18239_v10 = vshrl.u32 %v2029_v51, 5  ;;  %vm3068_vm13 = vcmp.gt.s32.totalorder %v3067_v31, 0 }
 0x288   :  { %15144 = vmatpush3.bf16.msra.mxu1 %v16497_v36  ;;  %v18243_v36 = vand.u32 31, %v2445_v3  ;;  %v2240_v18 = vsub.s32 32, %v18219_v29  ;;  %v18247_v6 = vsub.s32 32, %v18221_v40  ;;  %v18249_v28 = vshrl.u32 %v2341_v53, 5 }
 0x289   :  { %15181 = vmatprep.subr.bf16.mxu1 %v18180_v61  ;;  %v18251_v5 = vand.u32 31, %v2757_v34  ;;  %v18254_v47 = vsub.s32 32, %v18227_v22  ;;  %v2549_v51 = vsel %vm2548_vm12, %v2547_v56, 0  ;;  %v3165_v46 = vshrl.u32 %v3164_v4, 23 }
 0x28a   :  { %21855 = vst [vmem:[#allocation39_spill] sm:$0xff] %v18243_v36  ;;  %v18260_v39 = vsub.s32 32, %v18237_v17  ;;  %v18262_v9 = vsel %vm3068_vm13, %v3067_v31, 0  ;;  %v2956_v53 = vand.u32 2139095040, %v18136_v52  ;;  %v18279_v31 = vshrl.u32 %v2757_v34, 5 }
 0x28b   :  { %15130 = vmatmul.mubr.msk.bf16.gmra.mrb[8].mxu1 %vm910_vm4, %v1139_v44  ;;  %v2653_v44 = vsel %vm2652_vm9, %v2651_v63, 0  ;;  %v2859_v63 = vadd.s32 1, %v13954_v25  ;;  %21856 = vst [vmem:[#allocation40_spill] sm:$0xff] %v18251_v5  ;;  %v18256_v25 = vshrl.u32 %v2133_v50, 5  ;;  %v18274_v50 = vshrl.u32 %v2445_v3, 5 }
 0x28c   :  { %15133 = vmatprep.mubr.msk.bf16.mxu1 %vm910_vm4, %v1140_v11  ;;  %v18233_v11 = vpop.eup %16934  ;;  %v18241_v0 = vand.u32 31, %v2653_v44  ;;  %21858 = vst [vmem:[#allocation42_spill] sm:$0xff] %v18260_v39  ;;  %v18269_v35 = vshrl.u32 %v2653_v44, 5  ;;  %21863 = vst [vmem:[#allocation47_spill] sm:$0xff] %v18279_v31  ;;  %v18282_v4 = vsub.s32 32, %v18251_v5  ;;  %v18284_v23 = vshrl.u32 %v2549_v51, 5 }
 0x28d   :  { %21857 = vst [vmem:[#allocation41_spill] sm:$0xff] %v18256_v25  ;;  %vm2860_vm14 = vcmp.gt.s32.totalorder %v2859_v63, 0  ;;  %21861 = vst [vmem:[#allocation45_spill] sm:$0xff] %v18274_v50  ;;  %v18286_v54 = vand.u32 31, %v2549_v51  ;;  %v18288_v1 = vpop.eup %16936  ;;  %v13966_v3 = vadd.s32 4294967169, %v3165_v46  ;;  %v16499_v46 = vld [vmem:[%s21754_s8 + $0x8] sm:$0xff]  }
 0x28e   :  { %21854 = vst [vmem:[#allocation38_spill] sm:$0xff] %v18241_v0  ;;  %21859 = vst [vmem:[#allocation43_spill] sm:$0xff] %v18269_v35  ;;  %v18272_v56 = vsub.s32 32, %v18241_v0  ;;  %v18293_v44 = vsel %vm2860_vm14, %v2859_v63, 0  ;;  %v21866_v50 = vand.u32 2147483647, %v18092_v37 }
 0x28f   :  { %21864 = vst [vmem:[#allocation48_spill] sm:$0xff] %v18282_v4  ;;  %21865 = vst [vmem:[#allocation49_spill] sm:$0xff] %v18284_v23  ;;  %v21805_v34 = vmov 683565275   ;;  %v21799_v31 = vmov 2475754826  }
 0x290   :  { %21860 = vst [vmem:[#allocation44_spill] sm:$0xff] %v18272_v56  ;;  %v2243_v23 = vshrl.u32 %v21799_v31, %v2240_v18  ;;  %v2245_v51 = vshll.u32 %v21799_v31, %v18219_v29  ;;  %v21808_v5 = vmov 2131351028   ;;  %v18303_v35 = vshrl.u32 %v2956_v53, 23 }
 0x291   :  { %v2246_v4 = vshrl.u32 %v21808_v5, %v2240_v18  ;;  %v2241_v63 = vshrl.u32 %v21805_v34, %v2240_v18  ;;  %v21816_v0 = vmov 2102212464   ;;  %v2252_v53 = vshrl.u32 %v21818_v38, %v2240_v18 }
 0x292   :  { %v2249_v56 = vshrl.u32 %v21816_v0, %v2240_v18  ;;  %v2251_v31 = vshll.u32 %v21816_v0, %v18219_v29  ;;  %v21814_v39 = vmov 1326507024   ;;  %vm2257_vm15 = vcmp.lt.s32.totalorder %v18235_v45, 1 }
 0x293   :  { %15134 = vmatmul.mubr.msk.bf16.gmra.mrb[12].mxu1 %vm910_vm4, %v1141_v60  ;;  %v18277_v60 = vsub.s32 32, %v18243_v36  ;;  %v2232_v36 = vand.u32 8388607, %v21866_v50  ;;  %v2248_v50 = vshll.u32 %v21808_v5, %v18219_v29  ;;  %v2247_v26 = vor.u32 %v2246_v4, %v2245_v51 }
 0x294   :  { %15145 = vmatprep.mubr.msk.bf16.mxu1 %vm910_vm4, %v1319_v24  ;;  %v18291_v24 = vand.u32 31, %v18262_v9  ;;  %v2254_v5 = vshll.u32 %v21818_v38, %v18219_v29  ;;  %v2253_v4 = vor.u32 %v2252_v53, %v2251_v31  ;;  %vm2258_vm0 = vcmp.lt.s32.totalorder %v18235_v45, 2 }
 0x295   :  { %21862 = vst [vmem:[#allocation46_spill] sm:$0xff] %v18277_v60  ;;  %v2242_v60 = vshll.u32 %v21805_v34, %v18219_v29  ;;  %v2233_v34 = vor.u32 8388608, %v2232_v36  ;;  %v2250_v25 = vor.u32 %v2249_v56, %v2248_v50  ;;  %vm2260_vm1 = vcmp.lt.s32.totalorder %v18235_v45, 4 }
 0x296   :  { %vm2259_vm3 = vcmp.lt.s32.totalorder %v18235_v45, 3  ;;  %v21811_v51 = vand.u32 2147483647, %v18103_v42  ;;  %v18335_v50 = vadd.s32 1, %v13966_v3  ;;  %v3476_v53 = vand.u32 2139095040, %v18188_v12 }
 0x297   :  { %v2244_v52 = vor.u32 %v2243_v23, %v2242_v60  ;;  %v2255_v23 = vshrl.u32 %v21814_v39, %v2240_v18  ;;  %v21868_v60 = vpack.c.bf16 %v18152_v15, %v18150_v13  ;;  %v2262_v13 = vsel %vm2260_vm1, %v2250_v25, 2102212464 }
 0x298   :  { %v2263_v36 = vsel %vm2259_vm3, %v2247_v26, %v2262_v13  ;;  %v2269_v29 = vsel %vm2257_vm15, %v2247_v26, %v2250_v25  ;;  %v2273_v31 = vshll.u32 %v2233_v34, 8  ;;  %v21870_v13 = vpack.c.bf16 %v18057_v58, %v18148_v62 }
 0x299   :  { %v2256_v7 = vor.u32 %v2255_v23, %v2254_v5  ;;  %v2265_v15 = vsel %vm2257_vm15, %v2244_v52, %v2247_v26  ;;  %v2261_v27 = vsel %vm2257_vm15, %v2241_v63, %v2244_v52  ;;  %v16501_v52 = vld [vmem:[%s21754_s8 + $0x18] sm:$0xff]   ;;  %v21871_v45 = vmov 2475754826  }
 0x29a   :  { %v2264_v26 = vsel %vm2258_vm0, %v2261_v27, %v2263_v36  ;;  %v2349_v27 = vshll.u32 %v21871_v45, %v18227_v22  ;;  %v21872_v36 = vmov 2131351028   ;;  %v2353_v58 = vshrl.u32 %v21816_v0, %v18254_v47 }
 0x29b   :  { %15146 = vmatmul.mubr.msk.bf16.vlgmr.msra.gmra.mrb[0].mxu1 %vm910_vm4, %v21867_v33  ;;  %v16500_v33 = vld [vmem:[%s21754_s8 + $0x10] sm:$0xff]   ;;  %v2270_v56 = vsel %vm2260_vm1, %v2256_v7, 1326507024  ;;  %v2355_v62 = vshll.u32 %v21816_v0, %v18227_v22  ;;  %vm2361_vm6 = vcmp.lt.s32.totalorder %v18249_v28, 1  ;;  %vm2363_vm7 = vcmp.lt.s32.totalorder %v18249_v28, 3 }
 0x29c   :  { %15149 = vmatprep.mubr.msk.bf16.mxu1 %vm910_vm4, %v21868_v60  ;;  %15182 = vmatpush3.bf16.msra.mxu1 %v18180_v61  ;;  %v2266_v61 = vsel %vm2260_vm1, %v2253_v4, 920167782  ;;  %v2271_v23 = vsel %vm2259_vm3, %v2253_v4, %v2270_v56  ;;  %v2336_v60 = vand.u32 8388607, %v21811_v51  ;;  %v21869_v4 = vmov 683565275  }
 0x29d   :  { %15183 = vmatprep.subr.bf16.mxu1 %v16499_v46  ;;  %v2267_v18 = vsel %vm2259_vm3, %v2250_v25, %v2266_v61  ;;  %v2272_v25 = vsel %vm2258_vm0, %v2269_v29, %v2271_v23  ;;  %v2346_v7 = vshll.u32 %v21869_v4, %v18227_v22  ;;  %v2350_v61 = vshrl.u32 %v21872_v36, %v18254_v47 }
 0x29e   :  { %v2268_v5 = vsel %vm2258_vm0, %v2265_v15, %v2267_v18  ;;  %v2347_v15 = vshrl.u32 %v21871_v45, %v18254_v47  ;;  %v2352_v29 = vshll.u32 %v21872_v36, %v18227_v22  ;;  %v21873_v18 = vpack.c.bf16 %v18173_v20, %v18169_v49 }
 0x29f   :  { %v18347_v3 = vmul.u32.u64.low %v2273_v31, %v2268_v5  ;;  %v18348_v34 = vmul.u32.u64.high %v2273_v31, %v2268_v5, %v18347_v3  ;;  %v2356_v56 = vshrl.u32 %v21818_v38, %v18254_v47  ;;  %v2280_v5 = vmul.u32 %v2273_v31, %v2264_v26 }
 0x2a0   :  { %15184 = vmatpush3.bf16.msra.mxu1 %v16499_v46  ;;  %v18351_v46 = vmul.u32.u64.low %v2273_v31, %v2272_v25  ;;  %v18352_v63 = vmul.u32.u64.high %v2273_v31, %v2272_v25, %v18351_v46  ;;  %v2348_v25 = vor.u32 %v2347_v15, %v2346_v7  ;;  %v2351_v49 = vor.u32 %v2350_v61, %v2349_v27 }
 0x2a1   :  { %15185 = vmatprep.subr.bf16.mxu1 %v16500_v33  ;;  %v2283_v23 = vadd.s32 1, %v18348_v34  ;;  %v2345_v20 = vshrl.u32 %v21869_v4, %v18254_v47  ;;  %v2357_v46 = vor.u32 %v2356_v56, %v2355_v62  ;;  %v2358_v51 = vshll.u32 %v21818_v38, %v18227_v22 }
 0x2a2   :  { %vm2282_vm5 = vc.u32 %v18352_v63, %v18347_v3  ;;  %v2359_v31 = vshrl.u32 %v21814_v39, %v18254_v47  ;;  %vm2364_vm8 = vcmp.lt.s32.totalorder %v18249_v28, 4  ;;  %vm2362_vm9 = vcmp.lt.s32.totalorder %v18249_v28, 2 }
 0x2a3   :  { %15150 = vmatmul.mubr.msk.bf16.gmra.mrb[4].mxu1 %vm910_vm4, %v21870_v13  ;;  %v2284_v13 = vsel %vm2282_vm5, %v2283_v23, %v18348_v34  ;;  %v2369_v34 = vsel %vm2361_vm6, %v2348_v25, %v2351_v49  ;;  %v2365_v56 = vsel %vm2361_vm6, %v2345_v20, %v2348_v25  ;;  %vm3172_vm10 = vcmp.gt.s32.totalorder %v18335_v50, 0  ;;  %v1317_v25 = vld [vmem:[#allocation2 + $0x7a] sm:$0xff] }
 0x2a4   :  { %15153 = vmatprep.mubr.msk.bf16.mxu1 %vm910_vm4, %v21873_v18  ;;  %15186 = vmatpush3.bf16.msra.mxu1 %v16500_v33  ;;  %v2354_v33 = vor.u32 %v2353_v58, %v2352_v29  ;;  %v2337_v18 = vor.u32 8388608, %v2336_v60  ;;  %v2285_v26 = vadd.s32 %v2284_v13, %v2280_v5  ;;  %v2360_v7 = vor.u32 %v2359_v31, %v2358_v51 }
 0x2a5   :  { %15187 = vmatprep.subr.bf16.mxu1 %v16501_v52  ;;  %v2370_v60 = vsel %vm2364_vm8, %v2357_v46, 920167782  ;;  %v21875_v58 = vpack.c.bf16 %v18213_v57, %v18211_v55  ;;  %v18425_v55 = vpop.eup %16938  ;;  %v18428_v57 = vshrl.u32 %v18262_v9, 5  ;;  %v13958_v31 = vadd.s32 4294967169, %v18303_v35 }
 0x2a6   :  { %v2366_v15 = vsel %vm2364_vm8, %v2354_v33, 2102212464  ;;  %v2286_v27 = vadd.s32 536870912, %v2285_v26  ;;  %v2371_v47 = vsel %vm2363_vm7, %v2354_v33, %v2370_v60  ;;  %v2373_v22 = vsel %vm2361_vm6, %v2351_v49, %v2354_v33 }
 0x2a7   :  { %v2372_v51 = vsel %vm2362_vm9, %v2369_v34, %v2371_v47  ;;  %v2374_v61 = vsel %vm2364_vm8, %v2360_v7, 1326507024  ;;  %v2377_v29 = vshll.u32 %v2337_v18, 8  ;;  %v18437_v18 = vand.u32 31, %v18293_v44 }
 0x2a8   :  { %15188 = vmatpush3.bf16.msra.mxu1 %v16501_v52  ;;  %v21874_v52 = vpack.c.bf16 %v18190_v16, %v18198_v8  ;;  %v2287_v62 = vshrl.u32 %v2286_v27, 30  ;;  %v2367_v16 = vsel %vm2363_vm7, %v2351_v49, %v2366_v15  ;;  %v2375_v8 = vsel %vm2363_vm7, %v2357_v46, %v2374_v61 }
 0x2a9   :  { %v2376_v5 = vsel %vm2362_vm9, %v2373_v22, %v2375_v8  ;;  %v18421_v23 = vmul.u32.u64.low %v2377_v29, %v2372_v51  ;;  %v18422_v33 = vmul.u32.u64.high %v2377_v29, %v2372_v51, %v18421_v23  ;;  %v18434_v46 = vsub.s32 32, %v18286_v54 }
 0x2aa   :  { %v2288_v20 = vshll.u32 %v2287_v62, 30  ;;  %v18430_v49 = vmul.u32.u64.low %v2377_v29, %v2376_v5  ;;  %v18431_v13 = vmul.u32.u64.high %v2377_v29, %v2376_v5, %v18430_v49  ;;  %v2368_v7 = vsel %vm2362_vm9, %v2365_v56, %v2367_v16 }
 0x2ab   :  { %15154 = vmatmul.mubr.msk.bf16.gmra.mrb[8].mxu1 %vm910_vm4, %v21874_v52  ;;  %v18443_v15 = vsub.s32 32, %v18291_v24  ;;  %v18446_v9 = vshrl.u32 %v18293_v44, 5  ;;  %v3173_v34 = vsel %vm3172_vm10, %v18335_v50, 0  ;;  %vm2227_vm11 = vcmp.lt.s32.totalorder %v18092_v37, 0 }
 0x2ac   :  { %15157 = vmatprep.mubr.msk.bf16.mxu1 %vm910_vm4, %v21875_v58  ;;  %v18450_v60 = vsub.s32 %v2285_v26, %v2288_v20  ;;  %v3477_v27 = vshrl.u32 %v3476_v53, 23  ;;  %v3268_v35 = vand.u32 2139095040, %v18193_v30  ;;  %v1326_v28 = vpack.c.bf16 %v18084_v32, %v1317_v25 }
 0x2ad   :  { %v2387_v47 = vadd.s32 1, %v18422_v33  ;;  %v1833_v22 = vpack.c.bf16 %v18288_v1, %v18225_v19  ;;  %v2384_v52 = vmul.u32 %v2377_v29, %v2368_v7  ;;  %vm2386_vm12 = vc.u32 %v18431_v13, %v18421_v23  ;;  %v16941_v29 = vpop.eup %16940 }
 0x2ae   :  { %v2291_v44 = vsub.s32 0, %v18450_v60  ;;  %v18463_v50 = vsub.s32 32, %v18437_v18  ;;  %v18465_v26 = vshrl.u32 %v3173_v34, 5  ;;  %v18467_v53 = vadd.s32 1, %v13958_v31 }
 0x2af   :  { %v2388_v32 = vsel %vm2386_vm12, %v2387_v47, %v18422_v33  ;;  %v18471_v51 = vand.u32 31, %v3173_v34  ;;  %v18476_v58 = vadd.s32 4294967169, %v3477_v27  ;;  %v2311_v16 = vsub.s32 4, %v2287_v62 }
 0x2b0   :  { %v13931_v1 = vmin.u32 %v2291_v44, %v18450_v60  ;;  %v2389_v61 = vadd.s32 %v2388_v32, %v2384_v52  ;;  %v21812_v8 = vand.u32 2147483647, %v18099_v41  ;;  %v18480_v5 = vshrl.u32 %v3268_v35, 23 }
 0x2b1   :  { %v1834_v33 = vpack.c.bf16 %v18233_v11, %v18215_v59  ;;  %v2035_v20 = vshrl.u32 %v21871_v45, %v18247_v6  ;;  %v1835_v49 = vpack.c.bf16 %v18425_v55, %v16941_v29  ;;  %v2281_v31 = vadd.s32 %v18347_v3, %v18352_v63 }
 0x2b2   :  { %v2293_v25 = vclz %v13931_v1  ;;  %v2390_v7 = vadd.s32 536870912, %v2389_v61  ;;  %v2044_v34 = vshrl.u32 %v21818_v38, %v18247_v6  ;;  %v2034_v35 = vshll.u32 %v21869_v4, %v18221_v40 }
 0x2b3   :  { %15158 = vmatmul.mubr.msk.bf16.gmra.mrb[12].mxu1 %vm910_vm4, %v1326_v28  ;;  %v2038_v59 = vshrl.u32 %v21872_v36, %v18247_v6  ;;  %v2041_v11 = vshrl.u32 %v21816_v0, %v18247_v6  ;;  %v2312_v55 = vsel %vm2227_vm11, %v2311_v16, %v2287_v62  ;;  %v2024_v3 = vand.u32 8388607, %v21812_v8 }
 0x2b4   :  { %15189 = vmatprep.mubr.msk.bf16.mxu1 %vm910_vm4, %v1833_v22  ;;  %v13932_v27 = vadd.s32 4294967294, %v2293_v25  ;;  %v2391_v28 = vshrl.u32 %v2390_v7, 30  ;;  %v2043_v63 = vshll.u32 %v21816_v0, %v18221_v40  ;;  %v2036_v47 = vor.u32 %v2035_v20, %v2034_v35 }
 0x2b5   :  { %v2037_v22 = vshll.u32 %v21871_v45, %v18221_v40  ;;  %v2040_v44 = vshll.u32 %v21872_v36, %v18221_v40  ;;  %v2047_v1 = vshrl.u32 %v21814_v39, %v18247_v6  ;;  %vm2964_vm14 = vcmp.gt.s32.totalorder %v18467_v53, 0 }
 0x2b6   :  { %vm13933_vm13 = vcmp.lt.s32.totalorder %v13932_v27, 0  ;;  %v2392_v32 = vshll.u32 %v2391_v28, 30  ;;  %v2045_v62 = vor.u32 %v2044_v34, %v2043_v63  ;;  %v2025_v35 = vor.u32 8388608, %v2024_v3 }
 0x2b7   :  { %v2296_v52 = vsel %vm13933_vm13, 0, %v13932_v27  ;;  %v2039_v25 = vor.u32 %v2038_v59, %v2037_v22  ;;  %v2042_v20 = vor.u32 %v2041_v11, %v2040_v44  ;;  %vm2049_vm15 = vcmp.lt.s32.totalorder %v18239_v10, 1 }
 0x2b8   :  { %v2297_v29 = vsub.s32 32, %v2296_v52  ;;  %v2301_v16 = vsub.s32 4294967266, %v2296_v52  ;;  %v18512_v7 = vsub.s32 %v2389_v61, %v2392_v32  ;;  %v2298_v34 = vshll.u32 %v18450_v60, %v2296_v52 }
 0x2b9   :  { %vm2331_vm0 = vcmp.lt.s32.totalorder %v18103_v42, 0  ;;  %vm2052_vm1 = vcmp.lt.s32.totalorder %v18239_v10, 4  ;;  %vm2051_vm3 = vcmp.lt.s32.totalorder %v18239_v10, 3  ;;  %v2057_v3 = vsel %vm2049_vm15, %v2036_v47, %v2039_v25 }
 0x2ba   :  { %v2299_v27 = vshrl.u32 %v2281_v31, %v2297_v29  ;;  %v2302_v63 = vadd.s32 127, %v2301_v16  ;;  %v2058_v61 = vsel %vm2052_vm1, %v2045_v62, 920167782  ;;  %v18529_v31 = vsub.s32 32, %v18471_v51 }
 0x2bb   :  { %15190 = vmatmul.mubr.msk.bf16.vlgmr.msra.gmra.mrb[16].mxu1 %vm910_vm4, %v1834_v33  ;;  %v2046_v33 = vshll.u32 %v21818_v38, %v18221_v40  ;;  %v2059_v60 = vsel %vm2051_vm3, %v2042_v20, %v2058_v61  ;;  %v21876_v22 = vand.u32 2147483647, %v18092_v37  ;;  %v2033_v32 = vshrl.u32 %v21869_v4, %v18247_v6 }
 0x2bc   :  { %15193 = vmatprep.mubr.msk.bf16.mxu1 %vm910_vm4, %v1835_v49  ;;  %v2395_v49 = vsub.s32 0, %v18512_v7  ;;  %v2300_v11 = vor.u32 %v2299_v27, %v2298_v34  ;;  %v2303_v40 = vshll.u32 %v2302_v63, 23  ;;  %vm2050_vm6 = vcmp.lt.s32.totalorder %v18239_v10, 2 }
 0x2bd   :  { %v2048_v59 = vor.u32 %v2047_v1, %v2046_v33  ;;  %vm18533_vm5 = vcmp.le.f32.partialorder %v21876_v22, 0.7853982  ;;  %v2054_v16 = vsel %vm2052_vm1, %v2042_v20, 2102212464  ;;  %v2415_v34 = vsub.s32 4, %v2391_v28 }
 0x2be   :  { %v13935_v52 = vmin.u32 %v2395_v49, %v18512_v7  ;;  %v2304_v1 = vor.u32 4788187, %v2303_v40  ;;  %v2314_v29 = vsel %vm18533_vm5, 0, %v2312_v55  ;;  %v2060_v27 = vsel %vm2050_vm6, %v2057_v3, %v2059_v60 }
 0x2bf   :  { %v2061_v63 = vsel %vm2049_vm15, %v2039_v25, %v2042_v20  ;;  %v2307_v61 = vcvt.s32.f32 %v2300_v11  ;;  %v2062_v6 = vsel %vm2052_vm1, %v2048_v59, 1326507024  ;;  %v2065_v40 = vshll.u32 %v2025_v35, 8 }
 0x2c0   :  { %v2397_v33 = vclz %v13935_v52  ;;  %v2305_v49 = vand.u32 2147483647, %v2304_v1  ;;  %v2053_v22 = vsel %vm2049_vm15, %v2033_v32, %v2036_v47  ;;  %v2055_v52 = vsel %vm2051_vm3, %v2039_v25, %v2054_v16 }
 0x2c1   :  { %v2063_v8 = vsel %vm2051_vm3, %v2045_v62, %v2062_v6  ;;  %v18559_v60 = vmul.u32.u64.low %v2065_v40, %v2060_v27  ;;  %v18560_v11 = vmul.u32.u64.high %v2065_v40, %v2060_v27, %v18559_v60  ;;  %v2416_v35 = vsel %vm2331_vm0, %v2415_v34, %v2391_v28 }
 0x2c2   :  { %v13936_v55 = vadd.s32 4294967294, %v2397_v33  ;;  %v2308_v3 = vmul.f32 %v2307_v61, %v2305_v49  ;;  %v2064_v20 = vsel %vm2050_vm6, %v2061_v63, %v2063_v8  ;;  %v18571_v25 = vsel %vm2964_vm14, %v18467_v53, 0 }
 0x2c3   :  { %v18565_v59 = vmul.u32.u64.low %v2065_v40, %v2064_v20  ;;  %v18566_v47 = vmul.u32.u64.high %v2065_v40, %v2064_v20, %v18565_v59  ;;  %v21879_v32 = vand.u32 2147483647, %v18103_v42  ;;  %v2385_v16 = vadd.s32 %v18421_v23, %v18431_v13 }
 0x2c4   :  { %vm13937_vm7 = vcmp.lt.s32.totalorder %v13936_v55, 0  ;;  %v2309_v62 = vxor.u32 2147483648, %v2308_v3  ;;  %v2056_v34 = vsel %vm2050_vm6, %v2053_v22, %v2055_v52  ;;  %v2318_v27 = vadd.s32 3, %v2314_v29 }
 0x2c5   :  { %vm18575_vm8 = vcmp.le.f32.partialorder %v21879_v32, 0.7853982  ;;  %v2400_v1 = vsel %vm13937_vm7, 0, %v13936_v55  ;;  %v2075_v49 = vadd.s32 1, %v18560_v11  ;;  %v18592_v10 = vand.u32 3, %v2314_v29 }
 0x2c6   :  { %v2401_v28 = vsub.s32 32, %v2400_v1  ;;  %v2405_v33 = vsub.s32 4294967266, %v2400_v1  ;;  %v2310_v53 = vsel %vm2227_vm11, %v2309_v62, %v2308_v3  ;;  %v2418_v63 = vsel %vm18575_vm8, 0, %v2416_v35  ;;  %v21882_v62 = vld [vmem:[#allocation42_spill] sm:$0xff] }
 0x2c7   :  { %v2313_v61 = vsel %vm18533_vm5, %v18092_v37, %v2310_v53  ;;  %v2402_v23 = vshll.u32 %v18512_v7, %v2400_v1  ;;  %v2072_v55 = vmul.u32 %v2065_v40, %v2056_v34  ;;  %vm2074_vm9 = vc.u32 %v18566_v47, %v18559_v60 }
 0x2c8   :  { %v2403_v13 = vshrl.u32 %v2385_v16, %v2401_v28  ;;  %v2406_v6 = vadd.s32 127, %v2405_v33  ;;  %16942 = vcosq.f32 %v2313_v61  ;;  %v2076_v3 = vsel %vm2074_vm9, %v2075_v49, %v18560_v11 }
 0x2c9   :  { %16944 = vsinq.f32 %v2313_v61  ;;  %v18597_v20 = vand.u32 3, %v2318_v27  ;;  %v2422_v44 = vadd.s32 3, %v2418_v63  ;;  %v2077_v35 = vadd.s32 %v2076_v3, %v2072_v55 }
 0x2ca   :  { %v2404_v22 = vor.u32 %v2403_v13, %v2402_v23  ;;  %v2407_v52 = vshll.u32 %v2406_v6, 23  ;;  %v21813_v7 = vand.u32 2147483647, %v18106_v43  ;;  %v2138_v29 = vshll.u32 %v21869_v4, %v18237_v17 }
 0x2cb   :  { %v2139_v40 = vshrl.u32 %v21871_v45, %v21882_v62  ;;  %v2142_v32 = vshrl.u32 %v21872_v36, %v21882_v62  ;;  %v2078_v1 = vadd.s32 536870912, %v2077_v35  ;;  %v2145_v11 = vshrl.u32 %v21816_v0, %v21882_v62 }
 0x2cc   :  { %v2408_v59 = vor.u32 4788187, %v2407_v52  ;;  %v2147_v16 = vshll.u32 %v21816_v0, %v18237_v17  ;;  %v2148_v28 = vshrl.u32 %v21818_v38, %v21882_v62  ;;  %v2411_v34 = vcvt.s32.f32 %v2404_v22 }
 0x2cd   :  { %vm3982_vm10 = vcmp.eq.s32.totalorder %v18592_v10, 0  ;;  %v2141_v53 = vshll.u32 %v21871_v45, %v18237_v17  ;;  %v2151_v27 = vshrl.u32 %v21814_v39, %v21882_v62  ;;  %vm3981_vm11 = vcmp.lt.s32.totalorder %v18592_v10, 2 }
 0x2ce   :  { %v2409_v33 = vand.u32 2147483647, %v2408_v59  ;;  %v18618_v49 = vshrl.u32 %v2078_v1, 30  ;;  %v2128_v61 = vand.u32 8388607, %v21813_v7  ;;  %v2144_v23 = vshll.u32 %v21872_v36, %v18237_v17 }
 0x2cf   :  { %v2149_v13 = vor.u32 %v2148_v28, %v2147_v16  ;;  %vm2317_vm12 = vweird.f32 %v18092_v37  ;;  %v2140_v55 = vor.u32 %v2139_v40, %v2138_v29  ;;  %v2143_v22 = vor.u32 %v2142_v32, %v2141_v53  ;;  %v21883_v16 = vld [vmem:[#allocation41_spill] sm:$0xff] }
 0x2d0   :  { %v2412_v6 = vmul.f32 %v2411_v34, %v2409_v33  ;;  %v2150_v52 = vshll.u32 %v21818_v38, %v18237_v17  ;;  %vm3985_vm13 = vcmp.eq.s32.totalorder %v18592_v10, 2  ;;  %v18628_v3 = vand.u32 3, %v2418_v63 }
 0x2d1   :  { %v2080_v59 = vshll.u32 %v18618_v49, 30  ;;  %v2146_v1 = vor.u32 %v2145_v11, %v2144_v23  ;;  %v18631_v39 = vand.u32 3, %v2422_v44  ;;  %vm2156_vm14 = vcmp.lt.s32.totalorder %v21883_v16, 4 }
 0x2d2   :  { %v2413_v7 = vxor.u32 2147483648, %v2412_v6  ;;  %v2152_v0 = vor.u32 %v2151_v27, %v2150_v52  ;;  %v16943_v28 = vpop.eup %16942  ;;  %v2129_v29 = vor.u32 8388608, %v2128_v61  ;;  %vm2153_vm15 = vcmp.lt.s32.totalorder %v21883_v16, 1 }
 0x2d3   :  { %v18634_v33 = vsub.s32 %v2077_v35, %v2080_v59  ;;  %v2162_v17 = vsel %vm2156_vm14, %v2149_v13, 920167782  ;;  %v16945_v63 = vpop.eup %16944  ;;  %v2325_v40 = vxor.u32 2147483648, %v16943_v28  ;;  %vm2155_vm1 = vcmp.lt.s32.totalorder %v21883_v16, 3 }
 0x2d4   :  { %v2414_v32 = vsel %vm2331_vm0, %v2413_v7, %v2412_v6  ;;  %v2161_v44 = vsel %vm2153_vm15, %v2140_v55, %v2143_v22  ;;  %v2322_v11 = vxor.u32 2147483648, %v16945_v63  ;;  %v2165_v53 = vsel %vm2153_vm15, %v2143_v22, %v2146_v1 }
 0x2d5   :  { %v2417_v35 = vsel %vm18575_vm8, %v18103_v42, %v2414_v32  ;;  %v2083_v34 = vsub.s32 0, %v18634_v33  ;;  %v3987_v27 = vsel %vm3985_vm13, %v2325_v40, %v16945_v63  ;;  %v2163_v7 = vsel %vm2155_vm1, %v2146_v1, %v2162_v17 }
 0x2d6   :  { %16946 = vcosq.f32 %v2417_v35  ;;  %v2166_v61 = vsel %vm2156_vm14, %v2152_v0, 1326507024  ;;  %v3984_v8 = vsel %vm3982_vm10, %v16943_v28, %v2322_v11  ;;  %v2137_v6 = vshrl.u32 %v21869_v4, %v21882_v62 }
 0x2d7   :  { %16948 = vsinq.f32 %v2417_v35  ;;  %v13923_v23 = vmin.u32 %v2083_v34, %v18634_v33  ;;  %v3988_v52 = vsel %vm3981_vm11, %v3984_v8, %v3987_v27  ;;  %vm2154_vm0 = vcmp.lt.s32.totalorder %v21883_v16, 2 }
 0x2d8   :  { %v2158_v59 = vsel %vm2156_vm14, %v2146_v1, 2102212464  ;;  %v2167_v0 = vsel %vm2155_vm1, %v2149_v13, %v2166_v61  ;;  %vm2320_vm3 = vcmp.lt.s32.totalorder %v18597_v20, 2  ;;  %v18671_v17 = vsel %vm2317_vm12, nan, %v3988_v52 }
 0x2d9   :  { %21884 = vst [vmem:[#allocation42_spill] sm:$0xff] %v18671_v17  ;;  %v2085_v32 = vclz %v13923_v23  ;;  %v2164_v62 = vsel %vm2154_vm0, %v2161_v44, %v2163_v7  ;;  %v2168_v10 = vsel %vm2154_vm0, %v2165_v53, %v2167_v0  ;;  %vm2321_vm5 = vcmp.eq.s32.totalorder %v18597_v20, 0  ;;  %v21886_v23 = vld [vmem:[#allocation31_spill] sm:$0xff]  ;;  %v21887_v0 = vld [vmem:[#allocation33_spill] sm:$0xff] }
 0x2da   :  { %vm2324_vm6 = vcmp.eq.s32.totalorder %v18597_v20, 2  ;;  %vm4088_vm7 = vcmp.eq.s32.totalorder %v18628_v3, 2  ;;  %v2169_v13 = vshll.u32 %v2129_v29, 8  ;;  %vm2425_vm8 = vcmp.eq.s32.totalorder %v18631_v39, 0 }
 0x2db   :  { %vm4085_vm9 = vcmp.eq.s32.totalorder %v18628_v3, 0  ;;  %v13924_v1 = vadd.s32 4294967294, %v2085_v32  ;;  %v2157_v35 = vsel %vm2153_vm15, %v2137_v6, %v2140_v55  ;;  %v2159_v44 = vsel %vm2155_vm1, %v2143_v22, %v2158_v59  ;;  %v21885_v55 = vld [vmem:[#allocation30_spill] sm:$0xff] }
 0x2dc   :  { %vm4084_vm10 = vcmp.lt.s32.totalorder %v18628_v3, 2  ;;  %v18687_v34 = vmul.u32.u64.low %v2169_v13, %v2168_v10  ;;  %v18688_v53 = vmul.u32.u64.high %v2169_v13, %v2168_v10, %v18687_v34  ;;  %vm2421_vm11 = vweird.f32 %v18103_v42 }
 0x2dd   :  { %v18690_v27 = vmul.u32.u64.low %v2169_v13, %v2164_v62  ;;  %v18691_v7 = vmul.u32.u64.high %v2169_v13, %v2164_v62, %v18690_v27  ;;  %vm2428_vm13 = vcmp.eq.s32.totalorder %v18631_v39, 2  ;;  %v2073_v29 = vadd.s32 %v18559_v60, %v18566_v47 }
 0x2de   :  { %vm13925_vm14 = vcmp.lt.s32.totalorder %v13924_v1, 0  ;;  %16950 = vtanh.f32 %v21885_v55  ;;  %v2326_v22 = vsel %vm2324_vm6, %v2325_v40, %v16945_v63  ;;  %v2160_v8 = vsel %vm2154_vm0, %v2157_v35, %v2159_v44  ;;  %v21888_v40 = vld [vmem:[#allocation35_spill] sm:$0xff] }
 0x2df   :  { %v2088_v61 = vsel %vm13925_vm14, 0, %v13924_v1  ;;  %16952 = vtanh.f32 %v21886_v23  ;;  %v2323_v6 = vsel %vm2321_vm5, %v16943_v28, %v2322_v11  ;;  %v2103_v47 = vsub.s32 4, %v18618_v49 }
 0x2e0   :  { %v2089_v52 = vsub.s32 32, %v2088_v61  ;;  %v2093_v59 = vsub.s32 4294967266, %v2088_v61  ;;  %16954 = vtanh.f32 %v21887_v0  ;;  %v16947_v60 = vpop.eup %16946  ;;  %vm2178_vm15 = vc.u32 %v18688_v53, %v18690_v27 }
 0x2e1   :  { %v2179_v63 = vadd.s32 1, %v18691_v7  ;;  %16956 = vtanh.f32 %v21888_v40  ;;  %v16949_v16 = vpop.eup %16948  ;;  %v2429_v32 = vxor.u32 2147483648, %v16947_v60  ;;  %v2090_v62 = vshll.u32 %v18634_v33, %v2088_v61 }
 0x2e2   :  { %v2091_v10 = vshrl.u32 %v2073_v29, %v2089_v52  ;;  %v2094_v28 = vadd.s32 127, %v2093_v59  ;;  %v2327_v11 = vsel %vm2320_vm3, %v2323_v6, %v2326_v22  ;;  %v2426_v1 = vxor.u32 2147483648, %v16949_v16 }
 0x2e3   :  { %v2176_v35 = vmul.u32 %v2169_v13, %v2160_v8  ;;  %v2180_v44 = vsel %vm2178_vm15, %v2179_v63, %v18691_v7  ;;  %v2430_v34 = vsel %vm2428_vm13, %v2429_v32, %v16949_v16  ;;  %v4090_v38 = vsel %vm4088_vm7, %v2429_v32, %v16949_v16 }
 0x2e4   :  { %v2092_v56 = vor.u32 %v2091_v10, %v2090_v62  ;;  %v2095_v19 = vshll.u32 %v2094_v28, 23  ;;  %vm2424_vm1 = vcmp.lt.s32.totalorder %v18631_v39, 2  ;;  %v2427_v33 = vsel %vm2425_vm8, %v16947_v60, %v2426_v1 }
 0x2e5   :  { %v4087_v20 = vsel %vm4085_vm9, %v16947_v60, %v2426_v1  ;;  %v2181_v29 = vadd.s32 %v2180_v44, %v2176_v35  ;;  %v2431_v13 = vsel %vm2424_vm1, %v2427_v33, %v2430_v34  ;;  %vm2019_vm0 = vcmp.lt.s32.totalorder %v18099_v41, 0  ;;  %v21896_v34 = vld [vmem:[#allocation44_spill] sm:$0xff] }
 0x2e6   :  { %v4091_v7 = vsel %vm4084_vm10, %v4087_v20, %v4090_v38  ;;  %v2096_v22 = vor.u32 4788187, %v2095_v19  ;;  %v2328_v61 = vsel %vm2317_vm12, nan, %v2327_v11  ;;  %v2432_v8 = vsel %vm2421_vm11, nan, %v2431_v13 }
 0x2e7   :  { %v18734_v39 = vsel %vm2421_vm11, nan, %v4091_v7  ;;  %v2182_v6 = vadd.s32 536870912, %v2181_v29  ;;  %v16446_v59 = vpack.i.bf16 %v2432_v8, %v2328_v61  ;;  %v2099_v63 = vcvt.s32.f32 %v2092_v56 }
 0x2e8   :  { %21889 = vst [vmem:[#allocation41_spill] sm:$0xff] %v18734_v39  ;;  %v16951_v52 = vpop.eup %16950  ;;  %v2097_v60 = vand.u32 2147483647, %v2096_v22  ;;  %v2104_v38 = vsel %vm2019_vm0, %v2103_v47, %v18618_v49  ;;  %v21890_v37 = vand.u32 2139095040, %v18196_v2  ;;  %v21891_v16 = vand.u32 2139095040, %v18202_v21 }
 0x2e9   :  { %v16953_v19 = vpop.eup %16952  ;;  %v18747_v42 = vshrl.u32 %v2182_v6, 30  ;;  %v21820_v62 = vand.u32 2147483647, %v21885_v55  ;;  %v18751_v56 = vshrl.u32 %v18571_v25, 5  ;;  %16447 = vrot.lane.b32.xlu1 %v16446_v59, %s17451_s4  ;;  %v21893_v49 = vand.u32 2147483647, %v18099_v41 }
 0x2ea   :  { %v18741_v3 = vshrl.u32 %v21890_v37, 23  ;;  %v18745_v32 = vshrl.u32 %v21891_v16, 23  ;;  %v16955_v10 = vpop.eup %16954  ;;  %v2100_v28 = vmul.f32 %v2099_v63, %v2097_v60  ;;  %v1836_v11 = vpack.c.bf16 %v16953_v19, %v16951_v52  ;;  %v21899_v60 = vld [vmem:[#allocation38_spill] sm:$0xff] }
 0x2eb   :  { %21892 = vst [vmem:[#allocation30_spill] sm:$0xff] %v18751_v56  ;;  %vm18756_vm12 = vcmp.le.f32.partialorder %v21893_v49, 0.7853982  ;;  %v16957_v1 = vpop.eup %16956  ;;  %v2184_v44 = vshll.u32 %v18747_v42, 30  ;;  %v2659_v33 = vshrl.u32 %v21871_v45, %v21896_v34  ;;  %v2662_v20 = vshrl.u32 %v21872_v36, %v21896_v34 }
 0x2ec   :  { %v18762_v35 = vsel %vm18756_vm12, 0, %v2104_v38  ;;  %v2101_v13 = vxor.u32 2147483648, %v2100_v28  ;;  %15194 = vmatmul.mubr.msk.bf16.gmra.mrb[20].mxu1 %vm910_vm4, %v1836_v11  ;;  %v1837_v7 = vpack.c.bf16 %v16957_v1, %v16955_v10  ;;  %v21897_v22 = vmov 2102212464  }
 0x2ed   :  { %v2665_v61 = vshrl.u32 %v21897_v22, %v21896_v34  ;;  %v21898_v8 = vmov 920167782   ;;  %v18774_v52 = vsub.s32 %v2181_v29, %v2184_v44  ;;  %v2648_v59 = vand.u32 8388607, %v21820_v62 }
 0x2ee   :  { %v2668_v6 = vshrl.u32 %v21898_v8, %v21896_v34  ;;  %v2658_v63 = vshll.u32 %v21869_v4, %v21899_v60  ;;  %v21900_v38 = vmov 1326507024   ;;  %v2102_v37 = vsel %vm2019_vm0, %v2101_v13, %v2100_v28  ;;  %15197 = vmatprep.mubr.msk.bf16.mxu1 %vm910_vm4, %v1837_v7 }
 0x2ef   :  { %v2671_v19 = vshrl.u32 %v21900_v38, %v21896_v34  ;;  %v2661_v16 = vshll.u32 %v21871_v45, %v21899_v60  ;;  %v2664_v29 = vshll.u32 %v21872_v36, %v21899_v60  ;;  %v2667_v10 = vshll.u32 %v21897_v22, %v21899_v60 }
 0x2f0   :  { %v2105_v49 = vsel %vm18756_vm12, %v18099_v41, %v2102_v37  ;;  %v2187_v11 = vsub.s32 0, %v18774_v52  ;;  %v2660_v1 = vor.u32 %v2659_v33, %v2658_v63  ;;  %v2670_v28 = vshll.u32 %v21898_v8, %v21899_v60 }
 0x2f1   :  { %16958 = vcosq.f32 %v2105_v49  ;;  %v2663_v44 = vor.u32 %v2662_v20, %v2661_v16  ;;  %v2666_v13 = vor.u32 %v2665_v61, %v2664_v29  ;;  %v2669_v7 = vor.u32 %v2668_v6, %v2667_v10  ;;  %v21904_v6 = vld [vmem:[#allocation43_spill] sm:$0xff] }
 0x2f2   :  { %v18798_v62 = vand.u32 31, %v18571_v25  ;;  %16960 = vsinq.f32 %v2105_v49  ;;  %v13927_v17 = vmin.u32 %v2187_v11, %v18774_v52  ;;  %v2672_v39 = vor.u32 %v2671_v19, %v2670_v28 }
 0x2f3   :  { %v18802_v47 = vadd.s32 1, %v18476_v58  ;;  %vm2123_vm3 = vcmp.lt.s32.totalorder %v18106_v43, 0  ;;  %v3774_v33 = vand.u32 3, %v18762_v35  ;;  %v2649_v63 = vor.u32 8388608, %v2648_v59 }
 0x2f4   :  { %v21901_v60 = vand.u32 2147483647, %v18106_v43  ;;  %v2189_v25 = vclz %v13927_v17  ;;  %v2207_v61 = vsub.s32 4, %v18747_v42  ;;  %vm2673_vm6 = vcmp.lt.s32.totalorder %v21904_v6, 1 }
 0x2f5   :  { %vm2676_vm7 = vcmp.lt.s32.totalorder %v21904_v6, 4  ;;  %vm2675_vm8 = vcmp.lt.s32.totalorder %v21904_v6, 3  ;;  %v2681_v58 = vsel %vm2673_vm6, %v2660_v1, %v2663_v44  ;;  %v2685_v59 = vsel %vm2673_vm6, %v2663_v44, %v2666_v13 }
 0x2f6   :  { %vm18808_vm5 = vcmp.le.f32.partialorder %v21901_v60, 0.7853982  ;;  %v2682_v19 = vsel %vm2676_vm7, %v2669_v7, 920167782  ;;  %v2177_v37 = vadd.s32 %v18690_v27, %v18688_v53  ;;  %v13928_v16 = vadd.s32 4294967294, %v2189_v25 }
 0x2f7   :  { %v2683_v17 = vsel %vm2675_vm8, %v2666_v13, %v2682_v19  ;;  %v2686_v29 = vsel %vm2676_vm7, %v2672_v39, 1326507024  ;;  %vm2674_vm9 = vcmp.lt.s32.totalorder %v21904_v6, 2  ;;  %v2678_v10 = vsel %vm2676_vm7, %v2666_v13, 2102212464 }
 0x2f8   :  { %v2687_v49 = vsel %vm2675_vm8, %v2669_v7, %v2686_v29  ;;  %v2689_v11 = vshll.u32 %v2649_v63, 8  ;;  %vm2109_vm10 = vweird.f32 %v18099_v41  ;;  %vm13929_vm11 = vcmp.lt.s32.totalorder %v13928_v16, 0 }
 0x2f9   :  { %v2657_v28 = vshrl.u32 %v21869_v4, %v21896_v34  ;;  %v2684_v53 = vsel %vm2674_vm9, %v2681_v58, %v2683_v17  ;;  %v2688_v27 = vsel %vm2674_vm9, %v2685_v59, %v2687_v49  ;;  %v2192_v39 = vsel %vm13929_vm11, 0, %v13928_v16 }
 0x2fa   :  { %v2208_v13 = vsel %vm2123_vm3, %v2207_v61, %v18747_v42  ;;  %v18837_v60 = vmul.u32.u64.low %v2689_v11, %v2688_v27  ;;  %v18838_v7 = vmul.u32.u64.high %v2689_v11, %v2688_v27, %v18837_v60  ;;  %v2193_v63 = vsub.s32 32, %v2192_v39 }
 0x2fb   :  { %v2197_v25 = vsub.s32 4294967266, %v2192_v39  ;;  %v2677_v19 = vsel %vm2673_vm6, %v2657_v28, %v2660_v1  ;;  %v2679_v34 = vsel %vm2675_vm8, %v2663_v44, %v2678_v10  ;;  %v18844_v58 = vpop.eup %16958  ;;  %v2110_v59 = vadd.s32 3, %v18762_v35 }
 0x2fc   :  { %vm3776_vm13 = vcmp.eq.s32.totalorder %v3774_v33, 0  ;;  %v18847_v16 = vmul.u32.u64.low %v2689_v11, %v2684_v53  ;;  %v18848_v17 = vmul.u32.u64.high %v2689_v11, %v2684_v53, %v18847_v16  ;;  %v18851_v42 = vpop.eup %16960  ;;  %v21821_v61 = vxor.u32 2147483648, %v18844_v58 }
 0x2fd   :  { %v2194_v29 = vshll.u32 %v18774_v52, %v2192_v39  ;;  %v2195_v49 = vshrl.u32 %v2177_v37, %v2193_v63  ;;  %v2198_v1 = vadd.s32 127, %v2197_v25  ;;  %v21823_v28 = vxor.u32 2147483648, %v18851_v42 }
 0x2fe   :  { %v2210_v44 = vsel %vm18808_vm5, 0, %v2208_v13  ;;  %vm3779_vm14 = vcmp.eq.s32.totalorder %v3774_v33, 2  ;;  %v2680_v35 = vsel %vm2674_vm9, %v2677_v19, %v2679_v34  ;;  %vm2698_vm15 = vc.u32 %v18838_v7, %v18847_v16 }
 0x2ff   :  { %v2196_v10 = vor.u32 %v2195_v49, %v2194_v29  ;;  %v2199_v53 = vshll.u32 %v2198_v1, 23  ;;  %v3781_v27 = vsel %vm3779_vm14, %v21821_v61, %v18851_v42  ;;  %vm3775_vm1 = vcmp.lt.s32.totalorder %v3774_v33, 2  ;;  %v21906_v29 = vld [vmem:[#allocation48_spill] sm:$0xff] }
 0x300   :  { %v3778_v52 = vsel %vm3776_vm13, %v18844_v58, %v21823_v28  ;;  %v2699_v37 = vadd.s32 1, %v18848_v17  ;;  %v21822_v6 = vand.u32 2147483647, %v21886_v23  ;;  %v18871_v39 = vand.u32 3, %v2110_v59 }
 0x301   :  { %v2200_v13 = vor.u32 4788187, %v2199_v53  ;;  %v3782_v60 = vsel %vm3775_vm1, %v3778_v52, %v3781_v27  ;;  %v2696_v63 = vmul.u32 %v2689_v11, %v2680_v35  ;;  %v2214_v25 = vadd.s32 3, %v2210_v44  ;;  %v21907_v11 = vld [vmem:[#allocation40_spill] sm:$0xff] }
 0x302   :  { %v18875_v19 = vsel %vm2109_vm10, nan, %v3782_v60  ;;  %v2700_v34 = vsel %vm2698_vm15, %v2699_v37, %v18848_v17  ;;  %v2763_v33 = vshrl.u32 %v21871_v45, %v21906_v29  ;;  %v2203_v1 = vcvt.s32.f32 %v2196_v10 }
 0x303   :  { %21905 = vst [vmem:[#allocation31_spill] sm:$0xff] %v18875_v19  ;;  %v2201_v49 = vand.u32 2147483647, %v2200_v13  ;;  %v2701_v61 = vadd.s32 %v2700_v34, %v2696_v63  ;;  %v2766_v59 = vshrl.u32 %v21872_v36, %v21906_v29  ;;  %v2752_v53 = vand.u32 8388607, %v21822_v6 }
 0x304   :  { %v2762_v35 = vshll.u32 %v21869_v4, %v21907_v11  ;;  %v2765_v27 = vshll.u32 %v21871_v45, %v21907_v11  ;;  %v2769_v17 = vshrl.u32 %v21897_v22, %v21906_v29  ;;  %vm2113_vm0 = vcmp.eq.s32.totalorder %v18871_v39, 0 }
 0x305   :  { %vm2116_vm12 = vcmp.eq.s32.totalorder %v18871_v39, 2  ;;  %v2204_v10 = vmul.f32 %v2203_v1, %v2201_v49  ;;  %v2702_v52 = vadd.s32 536870912, %v2701_v61  ;;  %v2771_v37 = vshll.u32 %v21897_v22, %v21907_v11 }
 0x306   :  { %v2772_v13 = vshrl.u32 %v21898_v8, %v21906_v29  ;;  %v2764_v60 = vor.u32 %v2763_v33, %v2762_v35  ;;  %v2767_v63 = vor.u32 %v2766_v59, %v2765_v27  ;;  %v2768_v34 = vshll.u32 %v21872_v36, %v21907_v11  ;;  %v21908_v33 = vld [vmem:[#allocation47_spill] sm:$0xff] }
 0x307   :  { %v2775_v6 = vshrl.u32 %v21900_v38, %v21906_v29  ;;  %v2205_v28 = vxor.u32 2147483648, %v2204_v10  ;;  %v18900_v19 = vshrl.u32 %v2702_v52, 30  ;;  %v2774_v49 = vshll.u32 %v21898_v8, %v21907_v11 }
 0x308   :  { %v2773_v2 = vor.u32 %v2772_v13, %v2771_v37  ;;  %v18904_v1 = vand.u32 3, %v2214_v25  ;;  %v18906_v12 = vand.u32 3, %v2210_v44  ;;  %v2770_v56 = vor.u32 %v2769_v17, %v2768_v34 }
 0x309   :  { %vm2777_vm6 = vcmp.lt.s32.totalorder %v21908_v33, 1  ;;  %v2206_v59 = vsel %vm2123_vm3, %v2205_v28, %v2204_v10  ;;  %v2704_v35 = vshll.u32 %v18900_v19, 30  ;;  %v2776_v27 = vor.u32 %v2775_v6, %v2774_v49 }
 0x30a   :  { %vm2780_vm7 = vcmp.lt.s32.totalorder %v21908_v33, 4  ;;  %v2209_v52 = vsel %vm18808_vm5, %v18106_v43, %v2206_v59  ;;  %v2753_v11 = vor.u32 8388608, %v2752_v53  ;;  %v2785_v44 = vsel %vm2777_vm6, %v2764_v60, %v2767_v63 }
 0x30b   :  { %v2786_v25 = vsel %vm2780_vm7, %v2773_v2, 920167782  ;;  %16962 = vcosq.f32 %v2209_v52  ;;  %v18920_v17 = vsub.s32 %v2701_v61, %v2704_v35  ;;  %vm2778_vm3 = vcmp.lt.s32.totalorder %v21908_v33, 2 }
 0x30c   :  { %vm2779_vm8 = vcmp.lt.s32.totalorder %v21908_v33, 3  ;;  %16964 = vsinq.f32 %v2209_v52  ;;  %v2782_v28 = vsel %vm2780_vm7, %v2770_v56, 2102212464  ;;  %v2789_v6 = vsel %vm2777_vm6, %v2767_v63, %v2770_v56 }
 0x30d   :  { %v2787_v20 = vsel %vm2779_vm8, %v2770_v56, %v2786_v25  ;;  %v2707_v53 = vsub.s32 0, %v18920_v17  ;;  %v2761_v10 = vshrl.u32 %v21869_v4, %v21906_v29  ;;  %v2790_v37 = vsel %vm2780_vm7, %v2776_v27, 1326507024 }
 0x30e   :  { %v2788_v61 = vsel %vm2778_vm3, %v2785_v44, %v2787_v20  ;;  %v21909_v13 = vxor.u32 2147483648, %v18851_v42  ;;  %v21910_v56 = vxor.u32 2147483648, %v18844_v58  ;;  %v2791_v59 = vsel %vm2779_vm8, %v2773_v2, %v2790_v37 }
 0x30f   :  { %v2793_v29 = vshll.u32 %v2753_v11, 8  ;;  %v13947_v35 = vmin.u32 %v2707_v53, %v18920_v17  ;;  %v2781_v52 = vsel %vm2777_vm6, %v2761_v10, %v2764_v60  ;;  %v2783_v27 = vsel %vm2779_vm8, %v2767_v63, %v2782_v28 }
 0x310   :  { %v2115_v34 = vsel %vm2113_vm0, %v18844_v58, %v21909_v13  ;;  %v2118_v49 = vsel %vm2116_vm12, %v21910_v56, %v18851_v42  ;;  %v2792_v44 = vsel %vm2778_vm3, %v2789_v6, %v2791_v59  ;;  %v18958_v58 = vadd.s32 4294967169, %v18480_v5 }
 0x311   :  { %v18950_v25 = vmul.u32.u64.low %v2793_v29, %v2792_v44  ;;  %v18951_v20 = vmul.u32.u64.high %v2793_v29, %v2792_v44, %v18950_v25  ;;  %v18953_v13 = vmul.u32.u64.low %v2793_v29, %v2788_v61  ;;  %v18954_v40 = vmul.u32.u64.high %v2793_v29, %v2788_v61, %v18953_v13 }
 0x312   :  { %v18961_v2 = vadd.s32 4294967169, %v18741_v3  ;;  %vm2112_vm5 = vcmp.lt.s32.totalorder %v18871_v39, 2  ;;  %v2709_v42 = vclz %v13947_v35  ;;  %vm2213_vm9 = vweird.f32 %v18106_v43 }
 0x313   :  { %v2119_v60 = vsel %vm2112_vm5, %v2115_v34, %v2118_v49  ;;  %vm3878_vm11 = vcmp.lt.s32.totalorder %v18906_v12, 2  ;;  %vm3879_vm13 = vcmp.eq.s32.totalorder %v18906_v12, 0  ;;  %vm2643_vm14 = vcmp.lt.s32.totalorder %v21885_v55, 0 }
 0x314   :  { %vm3882_vm15 = vcmp.eq.s32.totalorder %v18906_v12, 2  ;;  %v13948_v63 = vadd.s32 4294967294, %v2709_v42  ;;  %v2727_v5 = vsub.s32 4, %v18900_v19  ;;  %v2784_v3 = vsel %vm2778_vm3, %v2781_v52, %v2783_v27 }
 0x315   :  { %vm2216_vm1 = vcmp.lt.s32.totalorder %v18904_v1, 2  ;;  %vm2217_vm0 = vcmp.eq.s32.totalorder %v18904_v1, 0  ;;  %v21911_v39 = vand.u32 2147483647, %v21885_v55  ;;  %vm2802_vm6 = vc.u32 %v18951_v20, %v18953_v13  ;;  %v16963_v6 = vpop.eup %16962 }
 0x316   :  { %v2803_v28 = vadd.s32 1, %v18954_v40  ;;  %v2120_v33 = vsel %vm2109_vm10, nan, %v2119_v60  ;;  %vm2220_vm7 = vcmp.eq.s32.totalorder %v18904_v1, 2  ;;  %v2697_v53 = vadd.s32 %v18847_v16, %v18838_v7  ;;  %v16965_v10 = vpop.eup %16964  ;;  %v21914_v1 = vld [vmem:[#allocation46_spill] sm:$0xff] }
 0x317   :  { %vm18976_vm12 = vcmp.le.f32.partialorder %v21911_v39, 0.7853982  ;;  %vm13949_vm3 = vcmp.lt.s32.totalorder %v13948_v63, 0  ;;  %v2221_v61 = vxor.u32 2147483648, %v16963_v6  ;;  %v2800_v34 = vmul.u32 %v2793_v29, %v2784_v3 }
 0x318   :  { %v2712_v37 = vsel %vm13949_vm3, 0, %v13948_v63  ;;  %v2804_v56 = vsel %vm2802_vm6, %v2803_v28, %v18954_v40  ;;  %v2218_v49 = vxor.u32 2147483648, %v16965_v10  ;;  %v2728_v41 = vsel %vm2643_vm14, %v2727_v5, %v18900_v19 }
 0x319   :  { %v2713_v59 = vsub.s32 32, %v2712_v37  ;;  %v2717_v35 = vsub.s32 4294967266, %v2712_v37  ;;  %v2222_v52 = vsel %vm2220_vm7, %v2221_v61, %v16965_v10  ;;  %v3884_v27 = vsel %vm3882_vm15, %v2221_v61, %v16965_v10 }
 0x31a   :  { %v2714_v7 = vshll.u32 %v18920_v17, %v2712_v37  ;;  %v2805_v16 = vadd.s32 %v2804_v56, %v2800_v34  ;;  %v2219_v44 = vsel %vm2217_vm0, %v16963_v6, %v2218_v49  ;;  %v3881_v40 = vsel %vm3879_vm13, %v16963_v6, %v2218_v49  ;;  %v21915_v37 = vld [vmem:[#allocation39_spill] sm:$0xff] }
 0x31b   :  { %v2715_v29 = vshrl.u32 %v2697_v53, %v2713_v59  ;;  %v2718_v25 = vadd.s32 127, %v2717_v35  ;;  %v2223_v42 = vsel %vm2216_vm1, %v2219_v44, %v2222_v52  ;;  %v3885_v19 = vsel %vm3878_vm11, %v3881_v40, %v3884_v27 }
 0x31c   :  { %v2806_v60 = vadd.s32 536870912, %v2805_v16  ;;  %v21830_v63 = vand.u32 2147483647, %v18110_v14  ;;  %v2224_v17 = vsel %vm2213_vm9, nan, %v2223_v42  ;;  %v19008_v5 = vsel %vm2213_vm9, nan, %v3885_v19 }
 0x31d   :  { %v2716_v3 = vor.u32 %v2715_v29, %v2714_v7  ;;  %v2719_v39 = vshll.u32 %v2718_v25, 23  ;;  %v16441_v28 = vpack.i.bf16 %v2224_v17, %v2120_v33  ;;  %v2451_v53 = vshrl.u32 %v21871_v45, %v21914_v1 }
 0x31e   :  { %v19010_v6 = vshrl.u32 %v2806_v60, 30  ;;  %v2454_v12 = vshrl.u32 %v21872_v36, %v21914_v1  ;;  %vm3484_vm10 = vcmp.gt.s32.totalorder %v18802_v47, 0  ;;  %v19018_v10 = vadd.s32 4294967169, %v18745_v32 }
 0x31f   :  { %v2720_v61 = vor.u32 4788187, %v2719_v39  ;;  %v2730_v43 = vsel %vm18976_vm12, 0, %v2728_v41  ;;  %16442 = vrot.lane.b32.xlu0 %v16441_v28, %s17451_s4  ;;  %v2450_v34 = vshll.u32 %v21869_v4, %v21915_v37  ;;  %v2453_v56 = vshll.u32 %v21871_v45, %v21915_v37 }
 0x320   :  { %v2808_v33 = vshll.u32 %v19010_v6, 30  ;;  %v2460_v49 = vshrl.u32 %v21898_v8, %v21914_v1  ;;  %v2723_v32 = vcvt.s32.f32 %v2716_v3  ;;  %v2457_v35 = vshrl.u32 %v21897_v22, %v21914_v1 }
 0x321   :  { %v2721_v59 = vand.u32 2147483647, %v2720_v61  ;;  %v2459_v41 = vshll.u32 %v21897_v22, %v21915_v37  ;;  %v2440_v27 = vand.u32 8388607, %v21830_v63  ;;  %v2452_v7 = vor.u32 %v2451_v53, %v2450_v34 }
 0x322   :  { %v19034_v52 = vsub.s32 %v2805_v16, %v2808_v33  ;;  %v2455_v44 = vor.u32 %v2454_v12, %v2453_v56  ;;  %v2456_v29 = vshll.u32 %v21872_v36, %v21915_v37  ;;  %v2463_v42 = vshrl.u32 %v21900_v38, %v21914_v1  ;;  %v21916_v33 = vld [vmem:[#allocation45_spill] sm:$0xff] }
 0x323   :  { %v2724_v40 = vmul.f32 %v2723_v32, %v2721_v59  ;;  %v2461_v25 = vor.u32 %v2460_v49, %v2459_v41  ;;  %v19043_v19 = vsub.s32 32, %v18798_v62  ;;  %v19048_v16 = vsel %vm3484_vm10, %v18802_v47, 0 }
 0x324   :  { %v19051_v60 = vadd.s32 1, %v18958_v58  ;;  %v2811_v17 = vsub.s32 0, %v19034_v52  ;;  %v2734_v39 = vadd.s32 3, %v2730_v43  ;;  %v2458_v28 = vor.u32 %v2457_v35, %v2456_v29 }
 0x325   :  { %v2725_v3 = vxor.u32 2147483648, %v2724_v40  ;;  %v2462_v53 = vshll.u32 %v21898_v8, %v21915_v37  ;;  %v2441_v61 = vor.u32 8388608, %v2440_v27  ;;  %vm2465_vm8 = vcmp.lt.s32.totalorder %v21916_v33, 1 }
 0x326   :  { %v13951_v12 = vmin.u32 %v2811_v17, %v19034_v52  ;;  %vm2468_vm5 = vcmp.lt.s32.totalorder %v21916_v33, 4  ;;  %v2473_v34 = vsel %vm2465_vm8, %v2452_v7, %v2455_v44  ;;  %v2449_v59 = vshrl.u32 %v21869_v4, %v21914_v1 }
 0x327   :  { %v2726_v47 = vsel %vm2643_vm14, %v2725_v3, %v2724_v40  ;;  %v2464_v58 = vor.u32 %v2463_v42, %v2462_v53  ;;  %v2474_v56 = vsel %vm2468_vm5, %v2461_v25, 920167782  ;;  %vm2467_vm9 = vcmp.lt.s32.totalorder %v21916_v33, 3 }
 0x328   :  { %v2729_v37 = vsel %vm18976_vm12, %v21885_v55, %v2726_v47  ;;  %v2813_v49 = vclz %v13951_v12  ;;  %v21917_v32 = vand.u32 2147483647, %v21886_v23  ;;  %vm2466_vm13 = vcmp.lt.s32.totalorder %v21916_v33, 2 }
 0x329   :  { %16966 = vcosq.f32 %v2729_v37  ;;  %v2470_v41 = vsel %vm2468_vm5, %v2458_v28, 2102212464  ;;  %v2475_v11 = vsel %vm2467_vm9, %v2458_v28, %v2474_v56  ;;  %v2477_v40 = vsel %vm2465_vm8, %v2455_v44, %v2458_v28 }
 0x32a   :  { %vm19073_vm11 = vcmp.le.f32.partialorder %v21917_v32, 0.7853982  ;;  %16968 = vsinq.f32 %v2729_v37  ;;  %v13952_v27 = vadd.s32 4294967294, %v2813_v49  ;;  %v2476_v1 = vsel %vm2466_vm13, %v2473_v34, %v2475_v11 }
 0x32b   :  { %v2831_v29 = vsub.s32 4, %v19010_v6  ;;  %v4392_v42 = vand.u32 3, %v2730_v43  ;;  %v2478_v17 = vsel %vm2468_vm5, %v2464_v58, 1326507024  ;;  %v2481_v3 = vshll.u32 %v2441_v61, 8 }
 0x32c   :  { %vm13953_vm14 = vcmp.lt.s32.totalorder %v13952_v27, 0  ;;  %v2469_v53 = vsel %vm2465_vm8, %v2449_v59, %v2452_v7  ;;  %v2471_v12 = vsel %vm2467_vm9, %v2455_v44, %v2470_v41  ;;  %v2479_v47 = vsel %vm2467_vm9, %v2461_v25, %v2478_v17 }
 0x32d   :  { %v2816_v34 = vsel %vm13953_vm14, 0, %v13952_v27  ;;  %v2480_v28 = vsel %vm2466_vm13, %v2477_v40, %v2479_v47  ;;  %v19097_v56 = vmul.u32.u64.low %v2481_v3, %v2476_v1  ;;  %v19098_v43 = vmul.u32.u64.high %v2481_v3, %v2476_v1, %v19097_v56 }
 0x32e   :  { %vm2747_vm15 = vcmp.lt.s32.totalorder %v21886_v23, 0  ;;  %v2801_v61 = vadd.s32 %v18953_v13, %v18951_v20  ;;  %v2817_v7 = vsub.s32 32, %v2816_v34  ;;  %v2821_v58 = vsub.s32 4294967266, %v2816_v34 }
 0x32f   :  { %v2832_v44 = vsel %vm2747_vm15, %v2831_v29, %v19010_v6  ;;  %v19107_v25 = vmul.u32.u64.low %v2481_v3, %v2480_v28  ;;  %v19108_v37 = vmul.u32.u64.high %v2481_v3, %v2480_v28, %v19107_v25  ;;  %v21829_v49 = vand.u32 2147483647, %v18132_v48 }
 0x330   :  { %vm2733_vm1 = vweird.f32 %v21885_v55  ;;  %v2818_v59 = vshll.u32 %v19034_v52, %v2816_v34  ;;  %v2819_v32 = vshrl.u32 %v2801_v61, %v2817_v7  ;;  %v2822_v41 = vadd.s32 127, %v2821_v58 }
 0x331   :  { %v2472_v20 = vsel %vm2466_vm13, %v2469_v53, %v2471_v12  ;;  %v19115_v13 = vand.u32 3, %v2734_v39  ;;  %vm4393_vm0 = vcmp.lt.s32.totalorder %v4392_v42, 2  ;;  %vm4394_vm12 = vcmp.eq.s32.totalorder %v4392_v42, 0 }
 0x332   :  { %v2491_v6 = vadd.s32 1, %v19098_v43  ;;  %v2820_v11 = vor.u32 %v2819_v32, %v2818_v59  ;;  %v2823_v27 = vshll.u32 %v2822_v41, 23  ;;  %v2834_v1 = vsel %vm19073_vm11, 0, %v2832_v44 }
 0x333   :  { %vm4397_vm6 = vcmp.eq.s32.totalorder %v4392_v42, 2  ;;  %v19120_v40 = vpop.eup %16966  ;;  %v2488_v52 = vmul.u32 %v2481_v3, %v2472_v20  ;;  %vm2490_vm7 = vc.u32 %v19108_v37, %v19097_v56  ;;  %v2544_v39 = vand.u32 8388607, %v21829_v49  ;;  %v21920_v49 = vld [vmem:[#allocation49_spill] sm:$0xff] }
 0x334   :  { %v2555_v33 = vshrl.u32 %v21871_v45, %v18434_v46  ;;  %v19128_v29 = vpop.eup %16968  ;;  %v2741_v17 = vxor.u32 2147483648, %v19120_v40  ;;  %v2824_v53 = vor.u32 4788187, %v2823_v27  ;;  %v2492_v12 = vsel %vm2490_vm7, %v2491_v6, %v19098_v43 }
 0x335   :  { %v2554_v47 = vshll.u32 %v21869_v4, %v18286_v54  ;;  %v2738_v3 = vxor.u32 2147483648, %v19128_v29  ;;  %v2493_v34 = vadd.s32 %v2492_v12, %v2488_v52  ;;  %v2557_v28 = vshll.u32 %v21871_v45, %v18286_v54 }
 0x336   :  { %v2558_v61 = vshrl.u32 %v21872_v36, %v18434_v46  ;;  %v2825_v7 = vand.u32 2147483647, %v2824_v53  ;;  %v2827_v58 = vcvt.s32.f32 %v2820_v11  ;;  %v4399_v44 = vsel %vm4397_vm6, %v2741_v17, %v19128_v29 }
 0x337   :  { %v2564_v43 = vshrl.u32 %v21898_v8, %v18434_v46  ;;  %v4396_v25 = vsel %vm4394_vm12, %v19120_v40, %v2738_v3  ;;  %v2494_v59 = vadd.s32 536870912, %v2493_v34  ;;  %v2556_v32 = vor.u32 %v2555_v33, %v2554_v47 }
 0x338   :  { %v2561_v41 = vshrl.u32 %v21897_v22, %v18434_v46  ;;  %v2828_v20 = vmul.f32 %v2827_v58, %v2825_v7  ;;  %v4400_v6 = vsel %vm4393_vm0, %v4396_v25, %v4399_v44  ;;  %v2560_v11 = vshll.u32 %v21872_v36, %v18286_v54 }
 0x339   :  { %v2563_v27 = vshll.u32 %v21897_v22, %v18286_v54  ;;  %v19158_v52 = vsel %vm2733_vm1, nan, %v4400_v6  ;;  %v19160_v53 = vshrl.u32 %v2494_v59, 30  ;;  %v2559_v12 = vor.u32 %v2558_v61, %v2557_v28 }
 0x33a   :  { %v2567_v33 = vshrl.u32 %v21900_v38, %v18434_v46  ;;  %v19165_v47 = vadd.s32 1, %v18961_v2  ;;  %v2829_v42 = vxor.u32 2147483648, %v2828_v20  ;;  %v2566_v58 = vshll.u32 %v21898_v8, %v18286_v54 }
 0x33b   :  { %v2565_v7 = vor.u32 %v2564_v43, %v2563_v27  ;;  %v19170_v44 = vand.u32 31, %v19048_v16  ;;  %v2838_v25 = vadd.s32 3, %v2834_v1  ;;  %v2496_v6 = vshll.u32 %v19160_v53, 30 }
 0x33c   :  { %v2562_v59 = vor.u32 %v2561_v41, %v2560_v11  ;;  %vm2737_vm3 = vcmp.eq.s32.totalorder %v19115_v13, 0  ;;  %v2830_v28 = vsel %vm2747_vm15, %v2829_v42, %v2828_v20  ;;  %v2545_v61 = vor.u32 8388608, %v2544_v39 }
 0x33d   :  { %v2568_v2 = vor.u32 %v2567_v33, %v2566_v58  ;;  %vm2569_vm10 = vcmp.lt.s32.totalorder %v21920_v49, 1  ;;  %v2833_v54 = vsel %vm19073_vm11, %v21886_v23, %v2830_v28  ;;  %v19180_v43 = vsub.s32 %v2493_v34, %v2496_v6 }
 0x33e   :  { %vm2572_vm8 = vcmp.lt.s32.totalorder %v21920_v49, 4  ;;  %v2577_v41 = vsel %vm2569_vm10, %v2556_v32, %v2559_v12  ;;  %16970 = vcosq.f32 %v2833_v54  ;;  %v19185_v11 = vand.u32 3, %v2834_v1 }
 0x33f   :  { %vm2571_vm5 = vcmp.lt.s32.totalorder %v21920_v49, 3  ;;  %v2578_v39 = vsel %vm2572_vm8, %v2565_v7, 920167782  ;;  %vm2736_vm9 = vcmp.lt.s32.totalorder %v19115_v13, 2  ;;  %16972 = vsinq.f32 %v2833_v54 }
 0x340   :  { %v2499_v35 = vsub.s32 0, %v19180_v43  ;;  %vm2570_vm11 = vcmp.lt.s32.totalorder %v21920_v49, 2  ;;  %v2579_v34 = vsel %vm2571_vm5, %v2562_v59, %v2578_v39  ;;  %v2581_v1 = vsel %vm2569_vm10, %v2559_v12, %v2562_v59 }
 0x341   :  { %v2580_v20 = vsel %vm2570_vm11, %v2577_v41, %v2579_v34  ;;  %v2582_v27 = vsel %vm2572_vm8, %v2568_v2, 1326507024  ;;  %v2585_v33 = vshll.u32 %v2545_v61, 8  ;;  %v2553_v58 = vshrl.u32 %v21869_v4, %v18434_v46  ;;  %v21921_v2 = vld [vmem:[#allocation32_spill] sm:$0xff] }
 0x342   :  { %v13939_v42 = vmin.u32 %v2499_v35, %v19180_v43  ;;  %v2574_v6 = vsel %vm2572_vm8, %v2562_v59, 2102212464  ;;  %v2583_v28 = vsel %vm2571_vm5, %v2565_v7, %v2582_v27  ;;  %v2839_v54 = vand.u32 3, %v2838_v25 }
 0x343   :  { %v2584_v41 = vsel %vm2570_vm11, %v2581_v1, %v2583_v28  ;;  %v19210_v39 = vmul.u32.u64.low %v2585_v33, %v2580_v20  ;;  %v19211_v34 = vmul.u32.u64.high %v2585_v33, %v2580_v20, %v19210_v39  ;;  %vm2740_vm13 = vcmp.eq.s32.totalorder %v19115_v13, 2  ;;  %v21922_v1 = vld [vmem:[#allocation34_spill] sm:$0xff] }
 0x344   :  { %vm4497_vm14 = vcmp.eq.s32.totalorder %v19185_v11, 0  ;;  %v2501_v61 = vclz %v13939_v42  ;;  %v2573_v46 = vsel %vm2569_vm10, %v2553_v58, %v2556_v32  ;;  %vm4496_vm15 = vcmp.lt.s32.totalorder %v19185_v11, 2 }
 0x345   :  { %v2575_v7 = vsel %vm2571_vm5, %v2559_v12, %v2574_v6  ;;  %v19221_v25 = vmul.u32.u64.low %v2585_v33, %v2584_v41  ;;  %v19222_v59 = vmul.u32.u64.high %v2585_v33, %v2584_v41, %v19221_v25  ;;  %16974 = vtanh.f32 %v21921_v2 }
 0x346   :  { %v2739_v35 = vsel %vm2737_vm3, %v19120_v40, %v2738_v3  ;;  %v2742_v32 = vsel %vm2740_vm13, %v2741_v17, %v19128_v29  ;;  %vm2837_vm0 = vweird.f32 %v21886_v23  ;;  %v13940_v20 = vadd.s32 4294967294, %v2501_v61 }
 0x347   :  { %16976 = vtanh.f32 %v21922_v1  ;;  %vm3276_vm12 = vcmp.gt.s32.totalorder %v19051_v60, 0  ;;  %vm2841_vm6 = vcmp.eq.s32.totalorder %v2839_v54, 0  ;;  %vm2844_vm7 = vcmp.eq.s32.totalorder %v2839_v54, 2 }
 0x348   :  { %vm4500_vm10 = vcmp.eq.s32.totalorder %v19185_v11, 2  ;;  %vm2435_vm8 = vcmp.lt.s32.totalorder %v18110_v14, 0  ;;  %v2595_v12 = vadd.s32 1, %v19211_v34  ;;  %v2489_v3 = vadd.s32 %v19097_v56, %v19108_v37  ;;  %v16971_v29 = vpop.eup %16970 }
 0x349   :  { %vm13941_vm3 = vcmp.lt.s32.totalorder %v13940_v20, 0  ;;  %v2576_v40 = vsel %vm2570_vm11, %v2573_v46, %v2575_v7  ;;  %16978 = vtanh.f32 %v18193_v30  ;;  %v2743_v17 = vsel %vm2736_vm9, %v2739_v35, %v2742_v32  ;;  %v16973_v42 = vpop.eup %16972 }
 0x34a   :  { %v2504_v27 = vsel %vm13941_vm3, 0, %v13940_v20  ;;  %vm2594_vm5 = vc.u32 %v19222_v59, %v19210_v39  ;;  %16980 = vtanh.f32 %v18202_v21  ;;  %v2845_v58 = vxor.u32 2147483648, %v16971_v29 }
 0x34b   :  { %v2505_v6 = vsub.s32 32, %v2504_v27  ;;  %v2509_v56 = vsub.s32 4294967266, %v2504_v27  ;;  %v2519_v37 = vsub.s32 4, %v19160_v53  ;;  %v2842_v49 = vxor.u32 2147483648, %v16973_v42 }
 0x34c   :  { %v2506_v28 = vshll.u32 %v19180_v43, %v2504_v27  ;;  %v2592_v41 = vmul.u32 %v2585_v33, %v2576_v40  ;;  %v2596_v61 = vsel %vm2594_vm5, %v2595_v12, %v19211_v34  ;;  %v2846_v13 = vsel %vm2844_vm7, %v2845_v58, %v16973_v42 }
 0x34d   :  { %v4502_v46 = vsel %vm4500_vm10, %v2845_v58, %v16973_v42  ;;  %v2507_v7 = vshrl.u32 %v2489_v3, %v2505_v6  ;;  %v2510_v25 = vadd.s32 127, %v2509_v56  ;;  %vm2840_vm9 = vcmp.lt.s32.totalorder %v2839_v54, 2 }
 0x34e   :  { %v2843_v35 = vsel %vm2841_vm6, %v16971_v29, %v2842_v49  ;;  %v4499_v32 = vsel %vm4497_vm14, %v16971_v29, %v2842_v49  ;;  %v2597_v20 = vadd.s32 %v2596_v61, %v2592_v41  ;;  %v2744_v40 = vsel %vm2733_vm1, nan, %v2743_v17 }
 0x34f   :  { %v2847_v63 = vsel %vm2840_vm9, %v2843_v35, %v2846_v13  ;;  %v4503_v43 = vsel %vm4496_vm15, %v4499_v32, %v4502_v46  ;;  %v2508_v33 = vor.u32 %v2507_v7, %v2506_v28  ;;  %v2511_v34 = vshll.u32 %v2510_v25, 23  ;;  %v16975_v12 = vpop.eup %16974 }
 0x350   :  { %v2848_v3 = vsel %vm2837_vm0, nan, %v2847_v63  ;;  %v19266_v54 = vsel %vm2837_vm0, nan, %v4503_v43  ;;  %v2598_v27 = vadd.s32 536870912, %v2597_v20  ;;  %v19269_v42 = vadd.s32 1, %v19018_v10 }
 0x351   :  { %v16977_v29 = vpop.eup %16976  ;;  %v16456_v11 = vpack.i.bf16 %v2848_v3, %v2744_v40  ;;  %v2512_v58 = vor.u32 4788187, %v2511_v34  ;;  %v2520_v6 = vsel %vm2435_vm8, %v2519_v37, %v19160_v53  ;;  %v19275_v55 = vshrl.u32 %v19048_v16, 5 }
 0x352   :  { %v19277_v17 = vshrl.u32 %v2598_v27, 30  ;;  %v1838_v63 = vpack.c.bf16 %v16977_v29, %v16975_v12  ;;  %v3057_v23 = vand.u32 2147483647, %v21921_v2  ;;  %v19283_v10 = vsel %vm3276_vm12, %v19051_v60, 0 }
 0x353   :  { %v16979_v56 = vpop.eup %16978  ;;  %16457 = vrot.lane.b32.xlu1 %v16456_v11, %s17451_s4  ;;  %v21923_v49 = vand.u32 2147483647, %v18110_v14  ;;  %v2513_v16 = vand.u32 2147483647, %v2512_v58  ;;  %v2515_v37 = vcvt.s32.f32 %v2508_v33  ;;  %v19293_v41 = vsub.s32 32, %v19170_v44 }
 0x354   :  { %v16981_v28 = vpop.eup %16980  ;;  %v2600_v60 = vshll.u32 %v19277_v17, 30  ;;  %15198 = vmatmul.mubr.msk.bf16.gmra.mrb[24].mxu1 %vm910_vm4, %v1838_v63  ;;  %v3075_v13 = vshrl.u32 %v21871_v45, %v18443_v15  ;;  %v3078_v25 = vshrl.u32 %v21872_v36, %v18443_v15  ;;  %v3084_v35 = vshrl.u32 %v21898_v8, %v18443_v15 }
 0x355   :  { %vm19288_vm1 = vcmp.le.f32.partialorder %v21923_v49, 0.7853982  ;;  %v2516_v46 = vmul.f32 %v2515_v37, %v2513_v16  ;;  %v1839_v7 = vpack.c.bf16 %v16981_v28, %v16979_v56  ;;  %v3064_v43 = vand.u32 8388607, %v3057_v23 }
 0x356   :  { %v2522_v61 = vsel %vm19288_vm1, 0, %v2520_v6  ;;  %v19305_v32 = vsub.s32 %v2597_v20, %v2600_v60  ;;  %v3074_v33 = vshll.u32 %v21869_v4, %v18291_v24  ;;  %v3081_v34 = vshrl.u32 %v21897_v22, %v18443_v15 }
 0x357   :  { %v2517_v12 = vxor.u32 2147483648, %v2516_v46  ;;  %vm2539_vm11 = vcmp.lt.s32.totalorder %v18132_v48, 0  ;;  %15201 = vmatprep.mubr.msk.bf16.mxu1 %vm910_vm4, %v1839_v7  ;;  %v3077_v40 = vshll.u32 %v21871_v45, %v18291_v24  ;;  %v3083_v20 = vshll.u32 %v21897_v22, %v18291_v24 }
 0x358   :  { %v3087_v3 = vshrl.u32 %v21900_v38, %v18443_v15  ;;  %v2526_v27 = vadd.s32 3, %v2522_v61  ;;  %v2603_v29 = vsub.s32 0, %v19305_v32  ;;  %v3076_v11 = vor.u32 %v3075_v13, %v3074_v33 }
 0x359   :  { %v3080_v58 = vshll.u32 %v21872_v36, %v18291_v24  ;;  %v2518_v6 = vsel %vm2435_vm8, %v2517_v12, %v2516_v46  ;;  %v3079_v63 = vor.u32 %v3078_v25, %v3077_v40  ;;  %v3085_v56 = vor.u32 %v3084_v35, %v3083_v20 }
 0x35a   :  { %v3086_v49 = vshll.u32 %v21898_v8, %v18291_v24  ;;  %v2521_v16 = vsel %vm19288_vm1, %v18110_v14, %v2518_v6  ;;  %v21926_v37 = vand.u32 2147483647, %v18132_v48  ;;  %v13943_v60 = vmin.u32 %v2603_v29, %v19305_v32 }
 0x35b   :  { %v19338_v13 = vand.u32 3, %v2522_v61  ;;  %v3082_v46 = vor.u32 %v3081_v34, %v3080_v58  ;;  %16982 = vcosq.f32 %v2521_v16  ;;  %v2623_v7 = vsub.s32 4, %v19277_v17 }
 0x35c   :  { %vm19333_vm13 = vcmp.le.f32.partialorder %v21926_v37, 0.7853982  ;;  %v3065_v25 = vor.u32 8388608, %v3064_v43  ;;  %v3088_v24 = vor.u32 %v3087_v3, %v3086_v49  ;;  %16984 = vsinq.f32 %v2521_v16 }
 0x35d   :  { %v2605_v35 = vclz %v13943_v60  ;;  %vm3089_vm14 = vcmp.lt.s32.totalorder %v18428_v57, 1  ;;  %vm3092_vm15 = vcmp.lt.s32.totalorder %v18428_v57, 4  ;;  %v2593_v53 = vadd.s32 %v19210_v39, %v19222_v59 }
 0x35e   :  { %vm3091_vm0 = vcmp.lt.s32.totalorder %v18428_v57, 3  ;;  %v3097_v61 = vsel %vm3089_vm14, %v3076_v11, %v3079_v63  ;;  %v3098_v33 = vsel %vm3092_vm15, %v3085_v56, 920167782  ;;  %vm3090_vm12 = vcmp.lt.s32.totalorder %v18428_v57, 2 }
 0x35f   :  { %v13944_v34 = vadd.s32 4294967294, %v2605_v35  ;;  %v3099_v43 = vsel %vm3091_vm0, %v3082_v46, %v3098_v33  ;;  %v3101_v12 = vsel %vm3089_vm14, %v3079_v63, %v3082_v46  ;;  %v3094_v40 = vsel %vm3092_vm15, %v3082_v46, 2102212464 }
 0x360   :  { %v3100_v20 = vsel %vm3090_vm12, %v3097_v61, %v3099_v43  ;;  %v3102_v39 = vsel %vm3092_vm15, %v3088_v24, 1326507024  ;;  %v3105_v59 = vshll.u32 %v3065_v25, 8  ;;  %v2624_v3 = vsel %vm2539_vm11, %v2623_v7, %v19277_v17 }
 0x361   :  { %vm13945_vm6 = vcmp.lt.s32.totalorder %v13944_v34, 0  ;;  %v3073_v29 = vshrl.u32 %v21869_v4, %v18443_v15  ;;  %v3103_v58 = vsel %vm3091_vm0, %v3085_v56, %v3102_v39  ;;  %v3095_v17 = vsel %vm3091_vm0, %v3079_v63, %v3094_v40 }
 0x362   :  { %v2608_v6 = vsel %vm13945_vm6, 0, %v13944_v34  ;;  %v3104_v49 = vsel %vm3090_vm12, %v3101_v12, %v3103_v58  ;;  %v19364_v16 = vmul.u32.u64.low %v3105_v59, %v3100_v20  ;;  %v19365_v37 = vmul.u32.u64.high %v3105_v59, %v3100_v20, %v19364_v16 }
 0x363   :  { %v2609_v60 = vsub.s32 32, %v2608_v6  ;;  %v2613_v46 = vsub.s32 4294967266, %v2608_v6  ;;  %v3093_v25 = vsel %vm3089_vm14, %v3073_v29, %v3076_v11  ;;  %vm2525_vm7 = vweird.f32 %v18110_v14 }
 0x364   :  { %v2626_v15 = vsel %vm19333_vm13, 0, %v2624_v3  ;;  %v19375_v56 = vmul.u32.u64.low %v3105_v59, %v3104_v49  ;;  %v19376_v7 = vmul.u32.u64.high %v3105_v59, %v3104_v49, %v19375_v56  ;;  %v2610_v24 = vshll.u32 %v19305_v32, %v2608_v6 }
 0x365   :  { %v2611_v35 = vshrl.u32 %v2593_v53, %v2609_v60  ;;  %v2614_v61 = vadd.s32 127, %v2613_v46  ;;  %v3161_v33 = vand.u32 2147483647, %v21922_v1  ;;  %v19380_v34 = vpop.eup %16982  ;;  %v19382_v11 = vand.u32 3, %v2526_v27 }
 0x366   :  { %vm4187_vm10 = vcmp.lt.s32.totalorder %v19338_v13, 2  ;;  %v3096_v63 = vsel %vm3090_vm12, %v3093_v25, %v3095_v17  ;;  %v3115_v43 = vadd.s32 1, %v19365_v37  ;;  %v19388_v12 = vpop.eup %16984  ;;  %v2533_v40 = vxor.u32 2147483648, %v19380_v34 }
 0x367   :  { %v2612_v32 = vor.u32 %v2611_v35, %v2610_v24  ;;  %v2615_v53 = vshll.u32 %v2614_v61, 23  ;;  %vm4188_vm8 = vcmp.eq.s32.totalorder %v19338_v13, 0  ;;  %v2530_v20 = vxor.u32 2147483648, %v19388_v12 }
 0x368   :  { %v2630_v39 = vadd.s32 3, %v2626_v15  ;;  %vm4191_vm3 = vcmp.eq.s32.totalorder %v19338_v13, 2  ;;  %vm3114_vm5 = vc.u32 %v19376_v7, %v19364_v16  ;;  %v3112_v3 = vmul.u32 %v3105_v59, %v3096_v63 }
 0x369   :  { %v2616_v57 = vor.u32 4788187, %v2615_v53  ;;  %v4193_v27 = vsel %vm4191_vm3, %v2533_v40, %v19388_v12  ;;  %v3168_v29 = vand.u32 8388607, %v3161_v33  ;;  %v4190_v58 = vsel %vm4188_vm8, %v19380_v34, %v2530_v20 }
 0x36a   :  { %v3116_v6 = vsel %vm3114_vm5, %v3115_v43, %v19365_v37  ;;  %v3179_v49 = vshrl.u32 %v21871_v45, %v18529_v31  ;;  %v3182_v60 = vshrl.u32 %v21872_v36, %v18529_v31  ;;  %v2619_v25 = vcvt.s32.f32 %v2612_v32 }
 0x36b   :  { %v2617_v46 = vand.u32 2147483647, %v2616_v57  ;;  %v4194_v17 = vsel %vm4187_vm10, %v4190_v58, %v4193_v27  ;;  %v3117_v56 = vadd.s32 %v3116_v6, %v3112_v3  ;;  %v3178_v24 = vshll.u32 %v21869_v4, %v18471_v51 }
 0x36c   :  { %v19411_v59 = vsel %vm2525_vm7, nan, %v4194_v17  ;;  %v3181_v37 = vshll.u32 %v21871_v45, %v18471_v51  ;;  %v3185_v35 = vshrl.u32 %v21897_v22, %v18529_v31  ;;  %vm2529_vm9 = vcmp.eq.s32.totalorder %v19382_v11, 0 }
 0x36d   :  { %vm2532_vm1 = vcmp.eq.s32.totalorder %v19382_v11, 2  ;;  %v2620_v13 = vmul.f32 %v2619_v25, %v2617_v46  ;;  %v3118_v61 = vadd.s32 536870912, %v3117_v56  ;;  %v3187_v63 = vshll.u32 %v21897_v22, %v18471_v51 }
 0x36e   :  { %v3188_v43 = vshrl.u32 %v21898_v8, %v18529_v31  ;;  %v3180_v32 = vor.u32 %v3179_v49, %v3178_v24  ;;  %v3183_v53 = vor.u32 %v3182_v60, %v3181_v37  ;;  %v3184_v57 = vshll.u32 %v21872_v36, %v18471_v51 }
 0x36f   :  { %v3191_v27 = vshrl.u32 %v21900_v38, %v18529_v31  ;;  %vm3588_vm14 = vcmp.gt.s32.totalorder %v19165_v47, 0  ;;  %v2621_v3 = vxor.u32 2147483648, %v2620_v13  ;;  %v19430_v58 = vshrl.u32 %v3118_v61, 30 }
 0x370   :  { %v3189_v6 = vor.u32 %v3188_v43, %v3187_v63  ;;  %v3190_v46 = vshll.u32 %v21898_v8, %v18471_v51  ;;  %v19434_v25 = vand.u32 3, %v2630_v39  ;;  %v19436_v17 = vand.u32 3, %v2626_v15 }
 0x371   :  { %v3186_v49 = vor.u32 %v3185_v35, %v3184_v57  ;;  %vm3193_vm15 = vcmp.lt.s32.totalorder %v18465_v26, 1  ;;  %v2622_v60 = vsel %vm2539_vm11, %v2621_v3, %v2620_v13  ;;  %v3120_v24 = vshll.u32 %v19430_v58, 30 }
 0x372   :  { %v3192_v37 = vor.u32 %v3191_v27, %v3190_v46  ;;  %vm3196_vm0 = vcmp.lt.s32.totalorder %v18465_v26, 4  ;;  %v2625_v61 = vsel %vm19333_vm13, %v18132_v48, %v2622_v60  ;;  %v3169_v51 = vor.u32 8388608, %v3168_v29 }
 0x373   :  { %v3201_v15 = vsel %vm3193_vm15, %v3180_v32, %v3183_v53  ;;  %v3202_v39 = vsel %vm3196_vm0, %v3189_v6, 920167782  ;;  %16986 = vcosq.f32 %v2625_v61  ;;  %v19450_v35 = vsub.s32 %v3117_v56, %v3120_v24 }
 0x374   :  { %vm3194_vm11 = vcmp.lt.s32.totalorder %v18465_v26, 2  ;;  %vm3195_vm12 = vcmp.lt.s32.totalorder %v18465_v26, 3  ;;  %16988 = vsinq.f32 %v2625_v61  ;;  %v3198_v13 = vsel %vm3196_vm0, %v3186_v49, 2102212464 }
 0x375   :  { %v3203_v28 = vsel %vm3195_vm12, %v3186_v49, %v3202_v39  ;;  %v3205_v29 = vsel %vm3193_vm15, %v3183_v53, %v3186_v49  ;;  %v3123_v63 = vsub.s32 0, %v19450_v35  ;;  %v3177_v43 = vshrl.u32 %v21869_v4, %v18529_v31 }
 0x376   :  { %v3204_v56 = vsel %vm3194_vm11, %v3201_v15, %v3203_v28  ;;  %v3206_v57 = vsel %vm3196_vm0, %v3192_v37, 1326507024  ;;  %v2531_v27 = vsel %vm2529_vm9, %v19380_v34, %v2530_v20  ;;  %v2534_v3 = vsel %vm2532_vm1, %v2533_v40, %v19388_v12 }
 0x377   :  { %v3207_v46 = vsel %vm3195_vm12, %v3189_v6, %v3206_v57  ;;  %v3209_v49 = vshll.u32 %v3169_v51, 8  ;;  %v13963_v31 = vmin.u32 %v3123_v63, %v19450_v35  ;;  %v3197_v60 = vsel %vm3193_vm15, %v3177_v43, %v3180_v32 }
 0x378   :  { %v3199_v24 = vsel %vm3195_vm12, %v3183_v53, %v3198_v13  ;;  %v3208_v37 = vsel %vm3194_vm11, %v3205_v29, %v3207_v46  ;;  %v19486_v34 = vshrl.u32 %v19283_v10, 5  ;;  %v19489_v12 = vand.u32 31, %v19283_v10 }
 0x379   :  { %v19478_v61 = vmul.u32.u64.low %v3209_v49, %v3208_v37  ;;  %v19479_v15 = vmul.u32.u64.high %v3209_v49, %v3208_v37, %v19478_v61  ;;  %v19481_v20 = vmul.u32.u64.low %v3209_v49, %v3204_v56  ;;  %v19482_v39 = vmul.u32.u64.high %v3209_v49, %v3204_v56, %v19481_v20 }
 0x37a   :  { %vm2528_vm13 = vcmp.lt.s32.totalorder %v19382_v11, 2  ;;  %v3125_v40 = vclz %v13963_v31  ;;  %v3589_v32 = vsel %vm3588_vm14, %v19165_v47, 0  ;;  %vm2629_vm6 = vweird.f32 %v18132_v48 }
 0x37b   :  { %v2535_v53 = vsel %vm2528_vm13, %v2531_v27, %v2534_v3  ;;  %vm4290_vm10 = vcmp.lt.s32.totalorder %v19436_v17, 2  ;;  %vm4291_vm8 = vcmp.eq.s32.totalorder %v19436_v17, 0  ;;  %vm4294_vm3 = vcmp.eq.s32.totalorder %v19436_v17, 2 }
 0x37c   :  { %v13964_v6 = vadd.s32 4294967294, %v3125_v40  ;;  %v3200_v10 = vsel %vm3194_vm11, %v3197_v60, %v3199_v24  ;;  %vm2632_vm5 = vcmp.lt.s32.totalorder %v19434_v25, 2  ;;  %vm2633_vm9 = vcmp.eq.s32.totalorder %v19434_v25, 0 }
 0x37d   :  { %vm3059_vm1 = vcmp.lt.s32.totalorder %v21921_v2, 0  ;;  %vm3218_vm14 = vc.u32 %v19479_v15, %v19481_v20  ;;  %v3219_v47 = vadd.s32 1, %v19482_v39  ;;  %v16987_v11 = vpop.eup %16986  ;;  %v2536_v51 = vsel %vm2525_vm7, nan, %v2535_v53 }
 0x37e   :  { %vm2636_vm15 = vcmp.eq.s32.totalorder %v19434_v25, 2  ;;  %v3113_v26 = vadd.s32 %v19364_v16, %v19376_v7  ;;  %vm13965_vm0 = vcmp.lt.s32.totalorder %v13964_v6, 0  ;;  %v16989_v13 = vpop.eup %16988  ;;  %v2637_v28 = vxor.u32 2147483648, %v16987_v11 }
 0x37f   :  { %v3128_v29 = vsel %vm13965_vm0, 0, %v13964_v6  ;;  %v3216_v63 = vmul.u32 %v3209_v49, %v3200_v10  ;;  %v3220_v43 = vsel %vm3218_vm14, %v3219_v47, %v19482_v39  ;;  %vm3380_vm11 = vcmp.gt.s32.totalorder %v19269_v42, 0 }
 0x380   :  { %v2634_v56 = vxor.u32 2147483648, %v16989_v13  ;;  %v3129_v57 = vsub.s32 32, %v3128_v29  ;;  %v3133_v27 = vsub.s32 4294967266, %v3128_v29  ;;  %v3143_v14 = vsub.s32 4, %v19430_v58 }
 0x381   :  { %v2638_v3 = vsel %vm2636_vm15, %v2637_v28, %v16989_v13  ;;  %v4296_v46 = vsel %vm4294_vm3, %v2637_v28, %v16989_v13  ;;  %v3130_v16 = vshll.u32 %v19450_v35, %v3128_v29  ;;  %v3221_v7 = vadd.s32 %v3220_v43, %v3216_v63 }
 0x382   :  { %v2635_v31 = vsel %vm2633_vm9, %v16987_v11, %v2634_v56  ;;  %v4293_v49 = vsel %vm4291_vm8, %v16987_v11, %v2634_v56  ;;  %v3131_v60 = vshrl.u32 %v3113_v26, %v3129_v57  ;;  %v3134_v24 = vadd.s32 127, %v3133_v27 }
 0x383   :  { %v2639_v37 = vsel %vm2632_vm5, %v2635_v31, %v2638_v3  ;;  %v4297_v61 = vsel %vm4290_vm10, %v4293_v49, %v4296_v46  ;;  %v3222_v39 = vadd.s32 536870912, %v3221_v7  ;;  %v2849_v40 = vand.u32 2147483647, %v21887_v0 }
 0x384   :  { %v2640_v35 = vsel %vm2629_vm6, nan, %v2639_v37  ;;  %v19531_v53 = vsel %vm2629_vm6, nan, %v4297_v61  ;;  %v3132_v6 = vor.u32 %v3131_v60, %v3130_v16  ;;  %v3135_v10 = vshll.u32 %v3134_v24, 23 }
 0x385   :  { %v16451_v47 = vpack.i.bf16 %v2640_v35, %v2536_v51  ;;  %v19533_v11 = vshrl.u32 %v3222_v39, 30  ;;  %v2867_v25 = vshrl.u32 %v21871_v45, %v18463_v50  ;;  %v2870_v17 = vshrl.u32 %v21872_v36, %v18463_v50 }
 0x386   :  { %v19539_v26 = vshrl.u32 %v3589_v32, 5  ;;  %v19541_v13 = vand.u32 31, %v3589_v32  ;;  %v3136_v28 = vor.u32 4788187, %v3135_v10  ;;  %v3144_v48 = vsel %vm3059_vm1, %v3143_v14, %v19430_v58 }
 0x387   :  { %16452 = vrot.lane.b32.xlu0 %v16451_v47, %s17451_s4  ;;  %v3224_v51 = vshll.u32 %v19533_v11, 30  ;;  %v2866_v29 = vshll.u32 %v21869_v4, %v18437_v18  ;;  %v2869_v63 = vshll.u32 %v21871_v45, %v18437_v18  ;;  %v2876_v43 = vshrl.u32 %v21898_v8, %v18463_v50 }
 0x388   :  { %v3137_v32 = vand.u32 2147483647, %v3136_v28  ;;  %v3139_v56 = vcvt.s32.f32 %v3132_v6  ;;  %v2873_v57 = vshrl.u32 %v21897_v22, %v18463_v50  ;;  %v2875_v58 = vshll.u32 %v21897_v22, %v18437_v18 }
 0x389   :  { %v19558_v27 = vsub.s32 %v3221_v7, %v3224_v51  ;;  %v2856_v14 = vand.u32 8388607, %v2849_v40  ;;  %v2868_v3 = vor.u32 %v2867_v25, %v2866_v29  ;;  %v2871_v46 = vor.u32 %v2870_v17, %v2869_v63 }
 0x38a   :  { %v3140_v16 = vmul.f32 %v3139_v56, %v3137_v32  ;;  %v2872_v31 = vshll.u32 %v21872_v36, %v18437_v18  ;;  %v2877_v49 = vor.u32 %v2876_v43, %v2875_v58  ;;  %v2879_v60 = vshrl.u32 %v21900_v38, %v18463_v50 }
 0x38b   :  { %v19567_v24 = vsub.s32 32, %v19489_v12  ;;  %v19572_v7 = vsel %vm3380_vm11, %v19269_v42, 0  ;;  %vm3058_vm7 = vcmp.le.f32.partialorder %v3057_v23, 0.7853982  ;;  %v3227_v37 = vsub.s32 0, %v19558_v27 }
 0x38c   :  { %v3141_v61 = vxor.u32 2147483648, %v3140_v16  ;;  %v3146_v39 = vsel %vm3058_vm7, 0, %v3144_v48  ;;  %v2874_v35 = vor.u32 %v2873_v57, %v2872_v31  ;;  %v2878_v6 = vshll.u32 %v21898_v8, %v18437_v18 }
 0x38d   :  { %vm3163_vm12 = vcmp.lt.s32.totalorder %v21922_v1, 0  ;;  %v13967_v10 = vmin.u32 %v3227_v37, %v19558_v27  ;;  %v2857_v47 = vor.u32 8388608, %v2856_v14  ;;  %vm2881_vm13 = vcmp.lt.s32.totalorder %v18446_v9, 1 }
 0x38e   :  { %vm2884_vm6 = vcmp.lt.s32.totalorder %v18446_v9, 4  ;;  %v3142_v42 = vsel %vm3059_vm1, %v3141_v61, %v3140_v16  ;;  %v2880_v23 = vor.u32 %v2879_v60, %v2878_v6  ;;  %v2889_v25 = vsel %vm2881_vm13, %v2868_v3, %v2871_v46 }
 0x38f   :  { %v2890_v17 = vsel %vm2884_vm6, %v2877_v49, 920167782  ;;  %v3145_v18 = vsel %vm3058_vm7, %v21921_v2, %v3142_v42  ;;  %v3229_v28 = vclz %v13967_v10  ;;  %v2865_v48 = vshrl.u32 %v21869_v4, %v18463_v50 }
 0x390   :  { %vm2883_vm10 = vcmp.lt.s32.totalorder %v18446_v9, 3  ;;  %16990 = vcosq.f32 %v3145_v18  ;;  %vm2882_vm8 = vcmp.lt.s32.totalorder %v18446_v9, 2  ;;  %v2886_v51 = vsel %vm2884_vm6, %v2874_v35, 2102212464 }
 0x391   :  { %v2891_v29 = vsel %vm2883_vm10, %v2874_v35, %v2890_v17  ;;  %16992 = vsinq.f32 %v3145_v18  ;;  %v13968_v63 = vadd.s32 4294967294, %v3229_v28  ;;  %v2893_v32 = vsel %vm2881_vm13, %v2871_v46, %v2874_v35 }
 0x392   :  { %v2892_v43 = vsel %vm2882_vm8, %v2889_v25, %v2891_v29  ;;  %v3247_v50 = vsub.s32 4, %v19533_v11  ;;  %v4804_v56 = vand.u32 3, %v3146_v39  ;;  %v2894_v57 = vsel %vm2884_vm6, %v2880_v23, 1326507024  ;;  %v21931_v23 = vld [vmem:[#allocation35_spill] sm:$0xff] }
 0x393   :  { %v2897_v58 = vshll.u32 %v2857_v47, 8  ;;  %vm13969_vm3 = vcmp.lt.s32.totalorder %v13968_v63, 0  ;;  %v2885_v14 = vsel %vm2881_vm13, %v2865_v48, %v2868_v3  ;;  %v2887_v16 = vsel %vm2883_vm10, %v2871_v46, %v2886_v51 }
 0x394   :  { %v2895_v31 = vsel %vm2883_vm10, %v2877_v49, %v2894_v57  ;;  %v3232_v60 = vsel %vm13969_vm3, 0, %v13968_v63  ;;  %vm19619_vm5 = vcmp.le.f32.partialorder %v3161_v33, 0.7853982  ;;  %v3217_v3 = vadd.s32 %v19481_v20, %v19479_v15 }
 0x395   :  { %v2896_v37 = vsel %vm2882_vm8, %v2893_v32, %v2895_v31  ;;  %v19613_v61 = vmul.u32.u64.low %v2897_v58, %v2892_v43  ;;  %v19614_v35 = vmul.u32.u64.high %v2897_v58, %v2892_v43, %v19613_v61  ;;  %v3233_v46 = vsub.s32 32, %v3232_v60 }
 0x396   :  { %v3237_v10 = vsub.s32 4294967266, %v3232_v60  ;;  %v3248_v49 = vsel %vm3163_vm12, %v3247_v50, %v19533_v11  ;;  %v19628_v47 = vmul.u32.u64.low %v2897_v58, %v2896_v37  ;;  %v19629_v42 = vmul.u32.u64.high %v2897_v58, %v2896_v37, %v19628_v47 }
 0x397   :  { %v2953_v25 = vand.u32 2147483647, %v21931_v23  ;;  %vm3149_vm9 = vweird.f32 %v21921_v2  ;;  %v3234_v33 = vshll.u32 %v19558_v27, %v3232_v60  ;;  %v3235_v17 = vshrl.u32 %v3217_v3, %v3233_v46 }
 0x398   :  { %v3238_v18 = vadd.s32 127, %v3237_v10  ;;  %v2888_v15 = vsel %vm2882_vm8, %v2885_v14, %v2887_v16  ;;  %v3150_v20 = vadd.s32 3, %v3146_v39  ;;  %vm4805_vm1 = vcmp.lt.s32.totalorder %v4804_v56, 2 }
 0x399   :  { %vm4806_vm14 = vcmp.eq.s32.totalorder %v4804_v56, 0  ;;  %v2907_v28 = vadd.s32 1, %v19614_v35  ;;  %v3236_v11 = vor.u32 %v3235_v17, %v3234_v33  ;;  %v3250_v51 = vsel %vm19619_vm5, 0, %v3248_v49 }
 0x39a   :  { %v3239_v48 = vshll.u32 %v3238_v18, 23  ;;  %vm4809_vm15 = vcmp.eq.s32.totalorder %v4804_v56, 2  ;;  %v19639_v29 = vpop.eup %16990  ;;  %v2904_v63 = vmul.u32 %v2897_v58, %v2888_v15  ;;  %vm2906_vm0 = vc.u32 %v19629_v42, %v19613_v61 }
 0x39b   :  { %v2960_v9 = vand.u32 8388607, %v2953_v25  ;;  %v2971_v27 = vshrl.u32 %v21871_v45, %v19043_v19  ;;  %v19647_v39 = vpop.eup %16992  ;;  %v3157_v43 = vxor.u32 2147483648, %v19639_v29  ;;  %v2908_v50 = vsel %vm2906_vm0, %v2907_v28, %v19614_v35 }
 0x39c   :  { %v3240_v32 = vor.u32 4788187, %v3239_v48  ;;  %v2970_v57 = vshll.u32 %v21869_v4, %v18798_v62  ;;  %v3154_v58 = vxor.u32 2147483648, %v19647_v39  ;;  %v2909_v14 = vadd.s32 %v2908_v50, %v2904_v63 }
 0x39d   :  { %v2973_v16 = vshll.u32 %v21871_v45, %v18798_v62  ;;  %v2974_v31 = vshrl.u32 %v21872_v36, %v19043_v19  ;;  %v3243_v37 = vcvt.s32.f32 %v3236_v11  ;;  %v4811_v3 = vsel %vm4809_vm15, %v3157_v43, %v19647_v39 }
 0x39e   :  { %v3241_v60 = vand.u32 2147483647, %v3240_v32  ;;  %v2980_v35 = vshrl.u32 %v21898_v8, %v19043_v19  ;;  %v4808_v46 = vsel %vm4806_vm14, %v19639_v29, %v3154_v58  ;;  %v2910_v10 = vadd.s32 536870912, %v2909_v14 }
 0x39f   :  { %v2972_v49 = vor.u32 %v2971_v27, %v2970_v57  ;;  %v2977_v47 = vshrl.u32 %v21897_v22, %v19043_v19  ;;  %v4812_v17 = vsel %vm4805_vm1, %v4808_v46, %v4811_v3  ;;  %v2976_v18 = vshll.u32 %v21872_v36, %v18798_v62 }
 0x3a0   :  { %v3244_v33 = vmul.f32 %v3243_v37, %v3241_v60  ;;  %v2979_v15 = vshll.u32 %v21897_v22, %v18798_v62  ;;  %v19677_v28 = vsel %vm3149_vm9, nan, %v4812_v17  ;;  %v19679_v11 = vshrl.u32 %v2910_v10, 30  ;;  %v21932_v10 = vld [vmem:[#allocation30_spill] sm:$0xff] }
 0x3a1   :  { %v2975_v48 = vor.u32 %v2974_v31, %v2973_v16  ;;  %v2983_v63 = vshrl.u32 %v21900_v38, %v19043_v19  ;;  %v19684_v27 = vshrl.u32 %v19572_v7, 5  ;;  %v2982_v50 = vshll.u32 %v21898_v8, %v18798_v62 }
 0x3a2   :  { %v3245_v56 = vxor.u32 2147483648, %v3244_v33  ;;  %v2981_v32 = vor.u32 %v2980_v35, %v2979_v15  ;;  %v3151_v57 = vand.u32 3, %v3150_v20  ;;  %v3254_v60 = vadd.s32 3, %v3250_v51 }
 0x3a3   :  { %v2912_v37 = vshll.u32 %v19679_v11, 30  ;;  %v2978_v3 = vor.u32 %v2977_v47, %v2976_v18  ;;  %v2961_v16 = vor.u32 8388608, %v2960_v9  ;;  %v2984_v31 = vor.u32 %v2983_v63, %v2982_v50 }
 0x3a4   :  { %v3246_v46 = vsel %vm3163_vm12, %v3245_v56, %v3244_v33  ;;  %vm2985_vm11 = vcmp.lt.s32.totalorder %v21932_v10, 1  ;;  %vm2988_vm7 = vcmp.lt.s32.totalorder %v21932_v10, 4  ;;  %v19700_v20 = vand.u32 3, %v3250_v51 }
 0x3a5   :  { %v3249_v17 = vsel %vm19619_vm5, %v21922_v1, %v3246_v46  ;;  %v19695_v35 = vsub.s32 %v2909_v14, %v2912_v37  ;;  %v2993_v62 = vsel %vm2985_vm11, %v2972_v49, %v2975_v48  ;;  %vm2987_vm12 = vcmp.lt.s32.totalorder %v21932_v10, 3 }
 0x3a6   :  { %16994 = vcosq.f32 %v3249_v17  ;;  %v2994_v9 = vsel %vm2988_vm7, %v2981_v32, 920167782  ;;  %vm2986_vm13 = vcmp.lt.s32.totalorder %v21932_v10, 2  ;;  %v2997_v51 = vsel %vm2985_vm11, %v2975_v48, %v2978_v3 }
 0x3a7   :  { %16996 = vsinq.f32 %v3249_v17  ;;  %v2915_v47 = vsub.s32 0, %v19695_v35  ;;  %v2995_v6 = vsel %vm2987_vm12, %v2978_v3, %v2994_v9  ;;  %v2998_v33 = vsel %vm2988_vm7, %v2984_v31, 1326507024 }
 0x3a8   :  { %v2996_v14 = vsel %vm2986_vm13, %v2993_v62, %v2995_v6  ;;  %v3001_v18 = vshll.u32 %v2961_v16, 8  ;;  %v2969_v63 = vshrl.u32 %v21869_v4, %v19043_v19  ;;  %v2990_v56 = vsel %vm2988_vm7, %v2978_v3, 2102212464  ;;  %v21934_v6 = vld [vmem:[#allocation37_spill] sm:$0xff] }
 0x3a9   :  { %v13955_v15 = vmin.u32 %v2915_v47, %v19695_v35  ;;  %v2999_v50 = vsel %vm2987_vm12, %v2981_v32, %v2998_v33  ;;  %vm3152_vm6 = vcmp.lt.s32.totalorder %v3151_v57, 2  ;;  %vm3153_vm10 = vcmp.eq.s32.totalorder %v3151_v57, 0  ;;  %v21933_v32 = vld [vmem:[#allocation36_spill] sm:$0xff] }
 0x3aa   :  { %v3000_v37 = vsel %vm2986_vm13, %v2997_v51, %v2999_v50  ;;  %v19724_v46 = vmul.u32.u64.low %v3001_v18, %v2996_v14  ;;  %v19725_v17 = vmul.u32.u64.high %v3001_v18, %v2996_v14, %v19724_v46  ;;  %v3255_v16 = vand.u32 3, %v3254_v60 }
 0x3ab   :  { %v2917_v31 = vclz %v13955_v15  ;;  %v2989_v19 = vsel %vm2985_vm11, %v2969_v63, %v2972_v49  ;;  %v2991_v3 = vsel %vm2987_vm12, %v2975_v48, %v2990_v56  ;;  %16998 = vtanh.f32 %v21933_v32 }
 0x3ac   :  { %v19732_v62 = vmul.u32.u64.low %v3001_v18, %v3000_v37  ;;  %v19733_v9 = vmul.u32.u64.high %v3001_v18, %v3000_v37, %v19732_v62  ;;  %vm3156_vm8 = vcmp.eq.s32.totalorder %v3151_v57, 2  ;;  %vm3253_vm3 = vweird.f32 %v21922_v1 }
 0x3ad   :  { %vm4908_vm5 = vcmp.lt.s32.totalorder %v19700_v20, 2  ;;  %v13956_v47 = vadd.s32 4294967294, %v2917_v31  ;;  %17000 = vtanh.f32 %v21934_v6  ;;  %v3155_v49 = vsel %vm3153_vm10, %v19639_v29, %v3154_v58 }
 0x3ae   :  { %v3158_v48 = vsel %vm3156_vm8, %v3157_v43, %v19647_v39  ;;  %vm4909_vm1 = vcmp.eq.s32.totalorder %v19700_v20, 0  ;;  %v3011_v60 = vadd.s32 1, %v19725_v17  ;;  %vm3257_vm14 = vcmp.eq.s32.totalorder %v3255_v16, 0 }
 0x3af   :  { %vm4912_vm15 = vcmp.eq.s32.totalorder %v19700_v20, 2  ;;  %vm13957_vm0 = vcmp.lt.s32.totalorder %v13956_v47, 0  ;;  %v2992_v14 = vsel %vm2986_vm13, %v2989_v19, %v2991_v3  ;;  %vm3260_vm11 = vcmp.eq.s32.totalorder %v3255_v16, 2 }
 0x3b0   :  { %v16995_v51 = vpop.eup %16994  ;;  %v2905_v58 = vadd.s32 %v19613_v61, %v19629_v42  ;;  %v2920_v33 = vsel %vm13957_vm0, 0, %v13956_v47  ;;  %vm3010_vm7 = vc.u32 %v19733_v9, %v19724_v46  ;;  %v3159_v39 = vsel %vm3152_vm6, %v3155_v49, %v3158_v48 }
 0x3b1   :  { %v16997_v29 = vpop.eup %16996  ;;  %v3261_v43 = vxor.u32 2147483648, %v16995_v51  ;;  %v2921_v15 = vsub.s32 32, %v2920_v33  ;;  %v2925_v63 = vsub.s32 4294967266, %v2920_v33  ;;  %v2922_v50 = vshll.u32 %v19695_v35, %v2920_v33 }
 0x3b2   :  { %v3258_v56 = vxor.u32 2147483648, %v16997_v29  ;;  %v3008_v10 = vmul.u32 %v3001_v18, %v2992_v14  ;;  %v3012_v37 = vsel %vm3010_vm7, %v3011_v60, %v19725_v17  ;;  %vm3256_vm12 = vcmp.lt.s32.totalorder %v3255_v16, 2 }
 0x3b3   :  { %v3262_v31 = vsel %vm3260_vm11, %v3261_v43, %v16997_v29  ;;  %v4914_v61 = vsel %vm4912_vm15, %v3261_v43, %v16997_v29  ;;  %v2923_v42 = vshrl.u32 %v2905_v58, %v2921_v15  ;;  %v2926_v19 = vadd.s32 127, %v2925_v63 }
 0x3b4   :  { %v3259_v3 = vsel %vm3257_vm14, %v16995_v51, %v3258_v56  ;;  %v4911_v57 = vsel %vm4909_vm1, %v16995_v51, %v3258_v56  ;;  %v3013_v62 = vadd.s32 %v3012_v37, %v3008_v10  ;;  %v3160_v48 = vsel %vm3149_vm9, nan, %v3159_v39 }
 0x3b5   :  { %v3263_v47 = vsel %vm3256_vm12, %v3259_v3, %v3262_v31  ;;  %v4915_v35 = vsel %vm4908_vm5, %v4911_v57, %v4914_v61  ;;  %v2924_v18 = vor.u32 %v2923_v42, %v2922_v50  ;;  %v2927_v49 = vshll.u32 %v2926_v19, 23  ;;  %v16999_v17 = vpop.eup %16998 }
 0x3b6   :  { %v3264_v60 = vsel %vm3253_vm3, nan, %v3263_v47  ;;  %v19770_v16 = vsel %vm3253_vm3, nan, %v4915_v35  ;;  %v3014_v14 = vadd.s32 536870912, %v3013_v62  ;;  %v19773_v58 = vand.u32 31, %v19572_v7 }
 0x3b7   :  { %v17001_v51 = vpop.eup %17000  ;;  %v16466_v20 = vpack.i.bf16 %v3264_v60, %v3160_v48  ;;  %v2928_v33 = vor.u32 4788187, %v2927_v49  ;;  %v3473_v29 = vand.u32 2147483647, %v21933_v32  ;;  %vm19778_vm13 = vcmp.le.f32.partialorder %v2849_v40, 0.7853982 }
 0x3b8   :  { %v19782_v39 = vshrl.u32 %v3014_v14, 30  ;;  %v1840_v1 = vpack.c.bf16 %v17001_v51, %v16999_v17  ;;  %v3491_v43 = vshrl.u32 %v21871_v45, %v19293_v41  ;;  %v2931_v15 = vcvt.s32.f32 %v2924_v18 }
 0x3b9   :  { %16467 = vrot.lane.b32.xlu1 %v16466_v20, %s17451_s4  ;;  %v2929_v7 = vand.u32 2147483647, %v2928_v33  ;;  %v3494_v63 = vshrl.u32 %v21872_v36, %v19293_v41  ;;  %v3500_v56 = vshrl.u32 %v21898_v8, %v19293_v41  ;;  %v2935_v40 = vsub.s32 4, %v19679_v11 }
 0x3ba   :  { %v3016_v50 = vshll.u32 %v19782_v39, 30  ;;  %15202 = vmatmul.mubr.msk.bf16.gmra.mrb[28].mxu1 %vm910_vm4, %v1840_v1  ;;  %v3497_v10 = vshrl.u32 %v21897_v22, %v19293_v41  ;;  %v3499_v37 = vshll.u32 %v21897_v22, %v19170_v44  ;;  %v3480_v61 = vand.u32 8388607, %v3473_v29 }
 0x3bb   :  { %v2932_v31 = vmul.f32 %v2931_v15, %v2929_v7  ;;  %v3490_v42 = vshll.u32 %v21869_v4, %v19170_v44  ;;  %v3493_v19 = vshll.u32 %v21871_v45, %v19170_v44  ;;  %v3496_v57 = vshll.u32 %v21872_v36, %v19170_v44 }
 0x3bc   :  { %v19804_v3 = vsub.s32 %v3013_v62, %v3016_v50  ;;  %v3501_v47 = vor.u32 %v3500_v56, %v3499_v37  ;;  %v3503_v35 = vshrl.u32 %v21900_v38, %v19293_v41  ;;  %vm2851_vm9 = vcmp.lt.s32.totalorder %v21887_v0, 0 }
 0x3bd   :  { %v2933_v18 = vxor.u32 2147483648, %v2932_v31  ;;  %v3492_v49 = vor.u32 %v3491_v43, %v3490_v42  ;;  %v3495_v17 = vor.u32 %v3494_v63, %v3493_v19  ;;  %v2936_v48 = vsel %vm2851_vm9, %v2935_v40, %v19679_v11 }
 0x3be   :  { %v3019_v60 = vsub.s32 0, %v19804_v3  ;;  %v3498_v14 = vor.u32 %v3497_v10, %v3496_v57  ;;  %v3502_v62 = vshll.u32 %v21898_v8, %v19170_v44  ;;  %v3481_v20 = vor.u32 8388608, %v3480_v61 }
 0x3bf   :  { %v2934_v51 = vsel %vm2851_vm9, %v2933_v18, %v2932_v31  ;;  %vm3505_vm6 = vcmp.lt.s32.totalorder %v19275_v55, 1  ;;  %vm3508_vm10 = vcmp.lt.s32.totalorder %v19275_v55, 4  ;;  %v19824_v7 = vsub.s32 32, %v19541_v13 }
 0x3c0   :  { %v2937_v33 = vsel %vm19778_vm13, %v21887_v0, %v2934_v51  ;;  %v13959_v1 = vmin.u32 %v3019_v60, %v19804_v3  ;;  %v3504_v43 = vor.u32 %v3503_v35, %v3502_v62  ;;  %v3514_v11 = vsel %vm3508_vm10, %v3501_v47, 920167782 }
 0x3c1   :  { %v2938_v44 = vsel %vm19778_vm13, 0, %v2936_v48  ;;  %17002 = vcosq.f32 %v2937_v33  ;;  %v3513_v15 = vsel %vm3505_vm6, %v3492_v49, %v3495_v17  ;;  %vm3507_vm8 = vcmp.lt.s32.totalorder %v19275_v55, 3 }
 0x3c2   :  { %17004 = vsinq.f32 %v2937_v33  ;;  %v3021_v63 = vclz %v13959_v1  ;;  %v3510_v56 = vsel %vm3508_vm10, %v3498_v14, 2102212464  ;;  %v3489_v40 = vshrl.u32 %v21869_v4, %v19293_v41  ;;  %v16506_v1 = vld [vmem:[%s21756_s10 + $0x20] sm:$0xff]  }
 0x3c3   :  { %vm3506_vm3 = vcmp.lt.s32.totalorder %v19275_v55, 2  ;;  %v3515_v50 = vsel %vm3507_vm8, %v3498_v14, %v3514_v11  ;;  %v3517_v2 = vsel %vm3505_vm6, %v3495_v17, %v3498_v14  ;;  %v3518_v31 = vsel %vm3508_vm10, %v3504_v43, 1326507024 }
 0x3c4   :  { %v13960_v10 = vadd.s32 4294967294, %v3021_v63  ;;  %v3516_v37 = vsel %vm3506_vm3, %v3513_v15, %v3515_v50  ;;  %v3521_v61 = vshll.u32 %v3481_v20, 8  ;;  %v2942_v42 = vadd.s32 3, %v2938_v44 }
 0x3c5   :  { %v3509_v19 = vsel %vm3505_vm6, %v3489_v40, %v3492_v49  ;;  %v3511_v57 = vsel %vm3507_vm8, %v3495_v17, %v3510_v56  ;;  %v3519_v41 = vsel %vm3507_vm8, %v3501_v47, %v3518_v31  ;;  %v3039_v14 = vsub.s32 4, %v19782_v39 }
 0x3c6   :  { %vm13961_vm5 = vcmp.lt.s32.totalorder %v13960_v10, 0  ;;  %v3520_v35 = vsel %vm3506_vm3, %v3517_v2, %v3519_v41  ;;  %v19846_v18 = vmul.u32.u64.low %v3521_v61, %v3516_v37  ;;  %v19847_v48 = vmul.u32.u64.high %v3521_v61, %v3516_v37, %v19846_v18 }
 0x3c7   :  { %v3024_v60 = vsel %vm13961_vm5, 0, %v13960_v10  ;;  %v19851_v62 = vmul.u32.u64.low %v3521_v61, %v3520_v35  ;;  %v19852_v51 = vmul.u32.u64.high %v3521_v61, %v3520_v35, %v19851_v62  ;;  %vm2941_vm1 = vweird.f32 %v21887_v0  ;;  %v16502_v10 = vld [vmem:[%s21756_s10] sm:$0xff]  }
 0x3c8   :  { %v3009_v49 = vadd.s32 %v19724_v46, %v19733_v9  ;;  %v3025_v47 = vsub.s32 32, %v3024_v60  ;;  %v3029_v17 = vsub.s32 4294967266, %v3024_v60  ;;  %v3512_v20 = vsel %vm3506_vm3, %v3509_v19, %v3511_v57  ;;  %15205 = vmatprep.subr.bf16.mxu0 %v16502_v10 }
 0x3c9   :  { %v19859_v33 = vand.u32 3, %v2942_v42  ;;  %vm19863_vm14 = vcmp.le.f32.partialorder %v2953_v25, 0.7853982  ;;  %vm2955_vm15 = vcmp.lt.s32.totalorder %v21931_v23, 0  ;;  %v4598_v43 = vand.u32 3, %v2938_v44  ;;  %15206 = vmatpush3.bf16.msra.mxu0 %v16502_v10 }
 0x3ca   :  { %v3026_v11 = vshll.u32 %v19804_v3, %v3024_v60  ;;  %v3027_v15 = vshrl.u32 %v3009_v49, %v3025_v47  ;;  %v3030_v46 = vadd.s32 127, %v3029_v17  ;;  %v3531_v9 = vadd.s32 1, %v19847_v48  ;;  %v16504_v47 = vld [vmem:[%s21756_s10 + $0x10] sm:$0xff]  }
 0x3cb   :  { %v19870_v63 = vpop.eup %17002  ;;  %v3040_v55 = vsel %vm2955_vm15, %v3039_v14, %v19782_v39  ;;  %v3528_v56 = vmul.u32 %v3521_v61, %v3512_v20  ;;  %vm3530_vm0 = vc.u32 %v19852_v51, %v19846_v18  ;;  %v3577_v25 = vand.u32 2147483647, %v21934_v6  ;;  %v16503_v39 = vld [vmem:[%s21756_s10 + $0x8] sm:$0xff]  }
 0x3cc   :  { %v19878_v40 = vpop.eup %17004  ;;  %v2949_v3 = vxor.u32 2147483648, %v19870_v63  ;;  %v3028_v44 = vor.u32 %v3027_v15, %v3026_v11  ;;  %v3031_v50 = vshll.u32 %v3030_v46, 23  ;;  %v3532_v2 = vsel %vm3530_vm0, %v3531_v9, %v19847_v48  ;;  %15207 = vmatprep.subr.bf16.mxu0 %v16503_v39 }
 0x3cd   :  { %v2946_v37 = vxor.u32 2147483648, %v19878_v40  ;;  %vm4599_vm11 = vcmp.lt.s32.totalorder %v4598_v43, 2  ;;  %vm4603_vm7 = vcmp.eq.s32.totalorder %v4598_v43, 2  ;;  %v3533_v31 = vadd.s32 %v3532_v2, %v3528_v56  ;;  %15208 = vmatpush3.bf16.msra.mxu0 %v16503_v39 }
 0x3ce   :  { %v3032_v61 = vor.u32 4788187, %v3031_v50  ;;  %v3042_v42 = vsel %vm19863_vm14, 0, %v3040_v55  ;;  %vm4600_vm12 = vcmp.eq.s32.totalorder %v4598_v43, 0  ;;  %v4605_v19 = vsel %vm4603_vm7, %v2949_v3, %v19878_v40  ;;  %15209 = vmatprep.subr.bf16.mxu0 %v16504_v47 }
 0x3cf   :  { %v4602_v57 = vsel %vm4600_vm12, %v19870_v63, %v2946_v37  ;;  %v3534_v41 = vadd.s32 536870912, %v3533_v31  ;;  %v3584_v35 = vand.u32 8388607, %v3577_v25  ;;  %v3595_v48 = vshrl.u32 %v21871_v45, %v19824_v7 }
 0x3d0   :  { %v3033_v60 = vand.u32 2147483647, %v3032_v61  ;;  %v3035_v14 = vcvt.s32.f32 %v3028_v44  ;;  %v4606_v62 = vsel %vm4599_vm11, %v4602_v57, %v4605_v19  ;;  %v3598_v49 = vshrl.u32 %v21872_v36, %v19824_v7 }
 0x3d1   :  { %v19908_v17 = vsel %vm2941_vm1, nan, %v4606_v62  ;;  %v19910_v20 = vshrl.u32 %v3534_v41, 30  ;;  %v3594_v43 = vshll.u32 %v21869_v4, %v19541_v13  ;;  %v3601_v11 = vshrl.u32 %v21897_v22, %v19824_v7  ;;  %v16505_v41 = vld [vmem:[%s21756_s10 + $0x18] sm:$0xff]   ;;  %15210 = vmatpush3.bf16.msra.mxu0 %v16504_v47 }
 0x3d2   :  { %v3036_v15 = vmul.f32 %v3035_v14, %v3033_v60  ;;  %v3597_v46 = vshll.u32 %v21871_v45, %v19541_v13  ;;  %v3603_v9 = vshll.u32 %v21897_v22, %v19541_v13  ;;  %v3604_v55 = vshrl.u32 %v21898_v8, %v19824_v7  ;;  %15211 = vmatprep.subr.bf16.mxu0 %v16505_v41 }
 0x3d3   :  { %v3536_v56 = vshll.u32 %v19910_v20, 30  ;;  %v3596_v44 = vor.u32 %v3595_v48, %v3594_v43  ;;  %v3600_v50 = vshll.u32 %v21872_v36, %v19541_v13  ;;  %v3607_v2 = vshrl.u32 %v21900_v38, %v19824_v7 }
 0x3d4   :  { %v3037_v10 = vxor.u32 2147483648, %v3036_v15  ;;  %v3599_v61 = vor.u32 %v3598_v49, %v3597_v46  ;;  %v3605_v19 = vor.u32 %v3604_v55, %v3603_v9  ;;  %v3606_v57 = vshll.u32 %v21898_v8, %v19541_v13 }
 0x3d5   :  { %v3046_v60 = vadd.s32 3, %v3042_v42  ;;  %v19932_v48 = vsub.s32 %v3533_v31, %v3536_v56  ;;  %v3593_v14 = vshrl.u32 %v21869_v4, %v19824_v7  ;;  %v3602_v62 = vor.u32 %v3601_v11, %v3600_v50  ;;  %15212 = vmatpush3.bf16.msra.mxu0 %v16505_v41 }
 0x3d6   :  { %v3038_v39 = vsel %vm2955_vm15, %v3037_v10, %v3036_v15  ;;  %v3585_v49 = vor.u32 8388608, %v3584_v35  ;;  %v3608_v43 = vor.u32 %v3607_v2, %v3606_v57  ;;  %vm3609_vm13 = vcmp.lt.s32.totalorder %v19539_v26, 1  ;;  %15213 = vmatprep.subr.bf16.mxu0 %v16506_v1 }
 0x3d7   :  { %v3041_v13 = vsel %vm19863_vm14, %v21931_v23, %v3038_v39  ;;  %v3539_v46 = vsub.s32 0, %v19932_v48  ;;  %vm3610_vm9 = vcmp.lt.s32.totalorder %v19539_v26, 2  ;;  %vm3612_vm6 = vcmp.lt.s32.totalorder %v19539_v26, 4 }
 0x3d8   :  { %vm2944_vm10 = vcmp.lt.s32.totalorder %v19859_v33, 2  ;;  %17006 = vcosq.f32 %v3041_v13  ;;  %vm3611_vm8 = vcmp.lt.s32.totalorder %v19539_v26, 3  ;;  %v3617_v7 = vsel %vm3609_vm13, %v3596_v44, %v3599_v61 }
 0x3d9   :  { %v3618_v31 = vsel %vm3612_vm6, %v3605_v19, 920167782  ;;  %17008 = vsinq.f32 %v3041_v13  ;;  %v13979_v35 = vmin.u32 %v3539_v46, %v19932_v48  ;;  %v3614_v11 = vsel %vm3612_vm6, %v3602_v62, 2102212464  ;;  %15214 = vmatpush3.bf16.msra.mxu0 %v16506_v1 }
 0x3da   :  { %v3619_v47 = vsel %vm3611_vm8, %v3602_v62, %v3618_v31  ;;  %v3621_v9 = vsel %vm3609_vm13, %v3599_v61, %v3602_v62  ;;  %v3622_v55 = vsel %vm3612_vm6, %v3608_v43, 1326507024  ;;  %v3625_v56 = vshll.u32 %v3585_v49, 8 }
 0x3db   :  { %v3620_v15 = vsel %vm3610_vm9, %v3617_v7, %v3619_v47  ;;  %v19959_v50 = vand.u32 3, %v3046_v60  ;;  %v19961_v2 = vand.u32 3, %v3042_v42  ;;  %v3541_v10 = vclz %v13979_v35  ;;  %v16507_v42 = vld [vmem:[%s21756_s10 + $0x28] sm:$0xff]  }
 0x3dc   :  { %v3613_v57 = vsel %vm3609_vm13, %v3593_v14, %v3596_v44  ;;  %v3615_v39 = vsel %vm3611_vm8, %v3599_v61, %v3614_v11  ;;  %v3623_v13 = vsel %vm3611_vm8, %v3605_v19, %v3622_v55  ;;  %vm2945_vm3 = vcmp.eq.s32.totalorder %v19859_v33, 0  ;;  %15215 = vmatprep.subr.bf16.mxu0 %v16507_v42 }
 0x3dd   :  { %v19969_v46 = vmul.u32.u64.low %v3625_v56, %v3620_v15  ;;  %v19970_v7 = vmul.u32.u64.high %v3625_v56, %v3620_v15, %v19969_v46  ;;  %vm2948_vm5 = vcmp.eq.s32.totalorder %v19859_v33, 2  ;;  %v13980_v44 = vadd.s32 4294967294, %v3541_v10  ;;  %15216 = vmatpush3.bf16.msra.mxu0 %v16507_v42 }
 0x3de   :  { %v3624_v61 = vsel %vm3610_vm9, %v3621_v9, %v3623_v13  ;;  %v2947_v19 = vsel %vm2945_vm3, %v19870_v63, %v2946_v37  ;;  %v2950_v41 = vsel %vm2948_vm5, %v2949_v3, %v19878_v40  ;;  %vm3475_vm14 = vcmp.lt.s32.totalorder %v21933_v32, 0  ;;  %v16508_v3 = vld [vmem:[%s21756_s10 + $0x30] sm:$0xff]  }
 0x3df   :  { %v19987_v60 = vmul.u32.u64.low %v3625_v56, %v3624_v61  ;;  %v19988_v14 = vmul.u32.u64.high %v3625_v56, %v3624_v61, %v19987_v60  ;;  %vm3045_vm15 = vweird.f32 %v21931_v23  ;;  %vm4702_vm0 = vcmp.lt.s32.totalorder %v19961_v2, 2  ;;  %15217 = vmatprep.subr.bf16.mxu0 %v16508_v3 }
 0x3e0   :  { %vm4703_vm11 = vcmp.eq.s32.totalorder %v19961_v2, 0  ;;  %vm13981_vm7 = vcmp.lt.s32.totalorder %v13980_v44, 0  ;;  %v3616_v62 = vsel %vm3610_vm9, %v3613_v57, %v3615_v39  ;;  %vm3048_vm12 = vcmp.lt.s32.totalorder %v19959_v50, 2 }
 0x3e1   :  { %vm4706_vm13 = vcmp.eq.s32.totalorder %v19961_v2, 2  ;;  %v3544_v63 = vsel %vm13981_vm7, 0, %v13980_v44  ;;  %v3635_v40 = vadd.s32 1, %v19970_v7  ;;  %v2951_v37 = vsel %vm2944_vm10, %v2947_v19, %v2950_v41  ;;  %15218 = vmatpush3.bf16.msra.mxu0 %v16508_v3 }
 0x3e2   :  { %v3529_v26 = vadd.s32 %v19846_v18, %v19852_v51  ;;  %v3545_v49 = vsub.s32 32, %v3544_v63  ;;  %v3549_v43 = vsub.s32 4294967266, %v3544_v63  ;;  %v17007_v31 = vpop.eup %17006  ;;  %v3546_v1 = vshll.u32 %v19932_v48, %v3544_v63  ;;  %v16509_v48 = vld [vmem:[%s21756_s10 + $0x38] sm:$0xff]  }
 0x3e3   :  { %v3559_v35 = vsub.s32 4, %v19910_v20  ;;  %v3632_v11 = vmul.u32 %v3625_v56, %v3616_v62  ;;  %vm3634_vm9 = vc.u32 %v19988_v14, %v19969_v46  ;;  %v17009_v47 = vpop.eup %17008  ;;  %v3053_v15 = vxor.u32 2147483648, %v17007_v31  ;;  %15219 = vmatprep.subr.bf16.mxu0 %v16509_v48 }
 0x3e4   :  { %v3547_v9 = vshrl.u32 %v3529_v26, %v3545_v49  ;;  %v3550_v55 = vadd.s32 127, %v3549_v43  ;;  %v3636_v33 = vsel %vm3634_vm9, %v3635_v40, %v19970_v7  ;;  %vm3049_vm6 = vcmp.eq.s32.totalorder %v19959_v50, 0 }
 0x3e5   :  { %v3050_v18 = vxor.u32 2147483648, %v17009_v47  ;;  %vm3052_vm10 = vcmp.eq.s32.totalorder %v19959_v50, 2  ;;  %v3637_v51 = vadd.s32 %v3636_v33, %v3632_v11  ;;  %v4708_v10 = vsel %vm4706_vm13, %v3053_v15, %v17009_v47  ;;  %15220 = vmatpush3.bf16.msra.mxu0 %v16509_v48 }
 0x3e6   :  { %v3054_v56 = vsel %vm3052_vm10, %v3053_v15, %v17009_v47  ;;  %v3548_v57 = vor.u32 %v3547_v9, %v3546_v1  ;;  %v3551_v39 = vshll.u32 %v3550_v55, 23  ;;  %v2952_v13 = vsel %vm2941_vm1, nan, %v2951_v37 }
 0x3e7   :  { %v3051_v7 = vsel %vm3049_vm6, %v17007_v31, %v3050_v18  ;;  %v4705_v42 = vsel %vm4703_vm11, %v17007_v31, %v3050_v18  ;;  %v3638_v44 = vadd.s32 536870912, %v3637_v51  ;;  %v3560_v60 = vsel %vm3475_vm14, %v3559_v35, %v19910_v20 }
 0x3e8   :  { %v3055_v61 = vsel %vm3048_vm12, %v3051_v7, %v3054_v56  ;;  %v4709_v19 = vsel %vm4702_vm0, %v4705_v42, %v4708_v10  ;;  %v3552_v41 = vor.u32 4788187, %v3551_v39  ;;  %v3265_v50 = vand.u32 2147483647, %v18193_v30 }
 0x3e9   :  { %v3056_v0 = vsel %vm3045_vm15, nan, %v3055_v61  ;;  %v20032_v62 = vsel %vm3045_vm15, nan, %v4709_v19  ;;  %v3639_v63 = vshrl.u32 %v3638_v44, 30  ;;  %v20036_v2 = vsub.s32 32, %v19773_v58 }
 0x3ea   :  { %v16461_v40 = vpack.i.bf16 %v3056_v0, %v2952_v13  ;;  %v3553_v37 = vand.u32 2147483647, %v3552_v41  ;;  %v3555_v26 = vcvt.s32.f32 %v3548_v57  ;;  %vm20040_vm1 = vcmp.le.f32.partialorder %v3473_v29, 0.7853982 }
 0x3eb   :  { %v3640_v3 = vshll.u32 %v3639_v63, 30  ;;  %v3283_v23 = vshrl.u32 %v21871_v45, %v19567_v24  ;;  %v3286_v49 = vshrl.u32 %v21872_v36, %v19567_v24  ;;  %v3562_v31 = vsel %vm20040_vm1, 0, %v3560_v60 }
 0x3ec   :  { %16462 = vrot.lane.b32.xlu0 %v16461_v40, %s17451_s4  ;;  %v3556_v43 = vmul.f32 %v3555_v26, %v3553_v37  ;;  %v3289_v1 = vshrl.u32 %v21897_v22, %v19567_v24  ;;  %v3292_v29 = vshrl.u32 %v21898_v8, %v19567_v24  ;;  %vm3579_vm8 = vcmp.lt.s32.totalorder %v21934_v6, 0 }
 0x3ed   :  { %v20056_v35 = vsub.s32 %v3637_v51, %v3640_v3  ;;  %v3272_v11 = vand.u32 8388607, %v3265_v50  ;;  %v3282_v47 = vshll.u32 %v21869_v4, %v19489_v12  ;;  %v3285_v15 = vshll.u32 %v21871_v45, %v19489_v12 }
 0x3ee   :  { %v3557_v9 = vxor.u32 2147483648, %v3556_v43  ;;  %v3288_v55 = vshll.u32 %v21872_v36, %v19489_v12  ;;  %v3291_v33 = vshll.u32 %v21897_v22, %v19489_v12  ;;  %v3295_v18 = vshrl.u32 %v21900_v38, %v19567_v24 }
 0x3ef   :  { %v3566_v51 = vadd.s32 3, %v3562_v31  ;;  %v3643_v56 = vsub.s32 0, %v20056_v35  ;;  %v3284_v10 = vor.u32 %v3283_v23, %v3282_v47  ;;  %v3287_v57 = vor.u32 %v3286_v49, %v3285_v15 }
 0x3f0   :  { %v3558_v39 = vsel %vm3475_vm14, %v3557_v9, %v3556_v43  ;;  %v3290_v13 = vor.u32 %v3289_v1, %v3288_v55  ;;  %v3293_v48 = vor.u32 %v3292_v29, %v3291_v33  ;;  %v3294_v7 = vshll.u32 %v21898_v8, %v19489_v12 }
 0x3f1   :  { %v3561_v42 = vsel %vm20040_vm1, %v21933_v32, %v3558_v39  ;;  %vm20080_vm3 = vcmp.le.f32.partialorder %v3577_v25, 0.7853982  ;;  %v13983_v61 = vmin.u32 %v3643_v56, %v20056_v35  ;;  %v20085_v19 = vand.u32 3, %v3562_v31 }
 0x3f2   :  { %v3281_v41 = vshrl.u32 %v21869_v4, %v19567_v24  ;;  %17010 = vcosq.f32 %v3561_v42  ;;  %v3663_v60 = vsub.s32 4, %v3639_v63  ;;  %v3273_v12 = vor.u32 8388608, %v3272_v11 }
 0x3f3   :  { %v3296_v0 = vor.u32 %v3295_v18, %v3294_v7  ;;  %17012 = vsinq.f32 %v3561_v42  ;;  %v3645_v40 = vclz %v13983_v61  ;;  %vm3297_vm5 = vcmp.lt.s32.totalorder %v19486_v34, 1 }
 0x3f4   :  { %vm3300_vm14 = vcmp.lt.s32.totalorder %v19486_v34, 4  ;;  %vm3299_vm15 = vcmp.lt.s32.totalorder %v19486_v34, 3  ;;  %v3305_v37 = vsel %vm3297_vm5, %v3284_v10, %v3287_v57  ;;  %vm3298_vm0 = vcmp.lt.s32.totalorder %v19486_v34, 2 }
 0x3f5   :  { %v3302_v25 = vsel %vm3300_vm14, %v3290_v13, 2102212464  ;;  %v3306_v26 = vsel %vm3300_vm14, %v3293_v48, 920167782  ;;  %v13984_v20 = vadd.s32 4294967294, %v3645_v40  ;;  %v3309_v24 = vsel %vm3297_vm5, %v3287_v57, %v3290_v13 }
 0x3f6   :  { %v3307_v3 = vsel %vm3299_vm15, %v3290_v13, %v3306_v26  ;;  %v3664_v23 = vsel %vm3579_vm8, %v3663_v60, %v3639_v63  ;;  %v3310_v43 = vsel %vm3300_vm14, %v3296_v0, 1326507024  ;;  %v3313_v31 = vshll.u32 %v3273_v12, 8 }
 0x3f7   :  { %v3308_v49 = vsel %vm3298_vm0, %v3305_v37, %v3307_v3  ;;  %vm13985_vm11 = vcmp.lt.s32.totalorder %v13984_v20, 0  ;;  %v3301_v1 = vsel %vm3297_vm5, %v3281_v41, %v3284_v10  ;;  %v3303_v29 = vsel %vm3299_vm15, %v3287_v57, %v3302_v25 }
 0x3f8   :  { %v3311_v11 = vsel %vm3299_vm15, %v3293_v48, %v3310_v43  ;;  %v3648_v47 = vsel %vm13985_vm11, 0, %v13984_v20  ;;  %v20099_v9 = vmul.u32.u64.low %v3313_v31, %v3308_v49  ;;  %v20100_v55 = vmul.u32.u64.high %v3313_v31, %v3308_v49, %v20099_v9 }
 0x3f9   :  { %v3312_v15 = vsel %vm3298_vm0, %v3309_v24, %v3311_v11  ;;  %vm3565_vm7 = vweird.f32 %v21933_v32  ;;  %v20104_v63 = vand.u32 3, %v3566_v51  ;;  %v3633_v33 = vadd.s32 %v19969_v46, %v19988_v14 }
 0x3fa   :  { %v3649_v18 = vsub.s32 32, %v3648_v47  ;;  %v3653_v56 = vsub.s32 4294967266, %v3648_v47  ;;  %v3666_v10 = vsel %vm20080_vm3, 0, %v3664_v23  ;;  %v3304_v57 = vsel %vm3298_vm0, %v3301_v1, %v3303_v29 }
 0x3fb   :  { %v20112_v39 = vmul.u32.u64.low %v3313_v31, %v3312_v15  ;;  %v20113_v13 = vmul.u32.u64.high %v3313_v31, %v3312_v15, %v20112_v39  ;;  %v3650_v48 = vshll.u32 %v20056_v35, %v3648_v47  ;;  %v3369_v51 = vand.u32 2147483647, %v18202_v21 }
 0x3fc   :  { %v3651_v7 = vshrl.u32 %v3633_v33, %v3649_v18  ;;  %v3654_v42 = vadd.s32 127, %v3653_v56  ;;  %v17011_v61 = vpop.eup %17010  ;;  %vm5217_vm12 = vcmp.lt.s32.totalorder %v20085_v19, 2  ;;  %vm5218_vm13 = vcmp.eq.s32.totalorder %v20085_v19, 0 }
 0x3fd   :  { %vm5221_vm9 = vcmp.eq.s32.totalorder %v20085_v19, 2  ;;  %v3323_v46 = vadd.s32 1, %v20100_v55  ;;  %v17013_v34 = vpop.eup %17012  ;;  %vm3572_vm6 = vcmp.eq.s32.totalorder %v20104_v63, 2  ;;  %v3573_v14 = vxor.u32 2147483648, %v17011_v61 }
 0x3fe   :  { %v3652_v41 = vor.u32 %v3651_v7, %v3650_v48  ;;  %v3655_v60 = vshll.u32 %v3654_v42, 23  ;;  %v3670_v35 = vadd.s32 3, %v3666_v10  ;;  %v3570_v12 = vxor.u32 2147483648, %v17013_v34 }
 0x3ff   :  { %v20122_v0 = vand.u32 3, %v3666_v10  ;;  %v3320_v40 = vmul.u32 %v3313_v31, %v3304_v57  ;;  %vm3322_vm10 = vc.u32 %v20113_v13, %v20099_v9  ;;  %vm3569_vm1 = vcmp.eq.s32.totalorder %v20104_v63, 0 }
 0x400   :  { %v3656_v25 = vor.u32 4788187, %v3655_v60  ;;  %v5223_v37 = vsel %vm5221_vm9, %v3573_v14, %v17013_v34  ;;  %v3376_v26 = vand.u32 8388607, %v3369_v51  ;;  %v3386_v20 = vshll.u32 %v21869_v4, %v19773_v58 }
 0x401   :  { %v5220_v3 = vsel %vm5218_vm13, %v17011_v61, %v3570_v12  ;;  %v3324_v24 = vsel %vm3322_vm10, %v3323_v46, %v20100_v55  ;;  %v3387_v23 = vshrl.u32 %v21871_v45, %v20036_v2  ;;  %v3390_v49 = vshrl.u32 %v21872_v36, %v20036_v2 }
 0x402   :  { %v3657_v43 = vand.u32 2147483647, %v3656_v25  ;;  %v3659_v31 = vcvt.s32.f32 %v3652_v41  ;;  %v5224_v1 = vsel %vm5217_vm12, %v5220_v3, %v5223_v37  ;;  %v3325_v29 = vadd.s32 %v3324_v24, %v3320_v40 }
 0x403   :  { %v20142_v11 = vsel %vm3565_vm7, nan, %v5224_v1  ;;  %v3389_v47 = vshll.u32 %v21871_v45, %v19773_v58  ;;  %v3392_v15 = vshll.u32 %v21872_v36, %v19773_v58  ;;  %v3393_v55 = vshrl.u32 %v21897_v22, %v20036_v2 }
 0x404   :  { %v3660_v33 = vmul.f32 %v3659_v31, %v3657_v43  ;;  %v3326_v18 = vadd.s32 536870912, %v3325_v29  ;;  %v3395_v19 = vshll.u32 %v21897_v22, %v19773_v58  ;;  %v3396_v56 = vshrl.u32 %v21898_v8, %v20036_v2 }
 0x405   :  { %vm3568_vm5 = vcmp.lt.s32.totalorder %v20104_v63, 2  ;;  %v3388_v10 = vor.u32 %v3387_v23, %v3386_v20  ;;  %v3391_v57 = vor.u32 %v3390_v49, %v3389_v47  ;;  %v3394_v39 = vor.u32 %v3393_v55, %v3392_v15 }
 0x406   :  { %v3399_v45 = vshrl.u32 %v21900_v38, %v20036_v2  ;;  %v3661_v36 = vxor.u32 2147483648, %v3660_v33  ;;  %v20157_v48 = vshrl.u32 %v3326_v18, 30  ;;  %v3397_v7 = vor.u32 %v3396_v56, %v3395_v19 }
 0x407   :  { %v3398_v42 = vshll.u32 %v21898_v8, %v19773_v58  ;;  %v3574_v22 = vsel %vm3572_vm6, %v3573_v14, %v17013_v34  ;;  %v3377_v46 = vor.u32 8388608, %v3376_v26  ;;  %v3385_v41 = vshrl.u32 %v21869_v4, %v20036_v2 }
 0x408   :  { %vm3401_vm14 = vcmp.lt.s32.totalorder %v19684_v27, 1  ;;  %v3662_v60 = vsel %vm3579_vm8, %v3661_v36, %v3660_v33  ;;  %v3328_v38 = vshll.u32 %v20157_v48, 30  ;;  %vm3404_vm15 = vcmp.lt.s32.totalorder %v19684_v27, 4  ;;  %v16443_v33 = vpop.permute.xlu0 %16442 }
 0x409   :  { %v3400_v40 = vor.u32 %v3399_v45, %v3398_v42  ;;  %v3571_v8 = vsel %vm3569_vm1, %v17011_v61, %v3570_v12  ;;  %v3665_v58 = vsel %vm20080_vm3, %v21934_v6, %v3662_v60  ;;  %v3409_v4 = vsel %vm3401_vm14, %v3388_v10, %v3391_v57  ;;  %v16448_v12 = vpop.permute.xlu1 %16447 }
 0x40a   :  { %v3410_v2 = vsel %vm3404_vm15, %v3397_v7, 920167782  ;;  %17014 = vcosq.f32 %v3665_v58  ;;  %v20179_v34 = vsub.s32 %v3325_v29, %v3328_v38  ;;  %vm3403_vm8 = vcmp.lt.s32.totalorder %v19684_v27, 3 }
 0x40b   :  { %v3406_v14 = vsel %vm3404_vm15, %v3394_v39, 2102212464  ;;  %17016 = vsinq.f32 %v3665_v58  ;;  %vm3402_vm0 = vcmp.lt.s32.totalorder %v19684_v27, 2  ;;  %v3411_v61 = vsel %vm3403_vm8, %v3394_v39, %v3410_v2 }
 0x40c   :  { %v3413_v44 = vsel %vm3401_vm14, %v3391_v57, %v3394_v39  ;;  %v3671_v25 = vand.u32 3, %v3670_v35  ;;  %v3331_v37 = vsub.s32 0, %v20179_v34  ;;  %v3412_v26 = vsel %vm3402_vm0, %v3409_v4, %v3411_v61  ;;  %v21943_v39 = vld [vmem:[#allocation41_spill] sm:$0xff] }
 0x40d   :  { %v3414_v20 = vsel %vm3404_vm15, %v3400_v40, 1326507024  ;;  %v3405_v3 = vsel %vm3401_vm14, %v3385_v41, %v3388_v10  ;;  %v3407_v24 = vsel %vm3403_vm8, %v3391_v57, %v3406_v14  ;;  %v3417_v49 = vshll.u32 %v3377_v46, 8  ;;  %v16458_v10 = vpop.permute.xlu1 %16457  ;;  %v21944_v46 = vld [vmem:[#allocation42_spill] sm:$0xff] }
 0x40e   :  { %v3415_v23 = vsel %vm3403_vm8, %v3397_v7, %v3414_v20  ;;  %v3575_v43 = vsel %vm3568_vm5, %v3571_v8, %v3574_v22  ;;  %v13971_v31 = vmin.u32 %v3331_v37, %v20179_v34  ;;  %v16450_v1 = vunpack.i.h.bf16 %v16448_v12 }
 0x40f   :  { %v3416_v35 = vsel %vm3402_vm0, %v3413_v44, %v3415_v23  ;;  %vm5321_vm3 = vcmp.eq.s32.totalorder %v20122_v0, 0  ;;  %v20203_v15 = vmul.u32.u64.low %v3417_v49, %v3412_v26  ;;  %v20204_v55 = vmul.u32.u64.high %v3417_v49, %v3412_v26, %v20203_v15  ;;  %v21945_v26 = vld [vmem:[#allocation31_spill] sm:$0xff] }
 0x410   :  { %v20200_v29 = vmul.u32.u64.low %v3417_v49, %v3416_v35  ;;  %v20201_v47 = vmul.u32.u64.high %v3417_v49, %v3416_v35, %v20200_v29  ;;  %vm3672_vm11 = vcmp.lt.s32.totalorder %v3671_v25, 2  ;;  %vm5320_vm12 = vcmp.lt.s32.totalorder %v20122_v0, 2 }
 0x411   :  { %vm5324_vm13 = vcmp.eq.s32.totalorder %v20122_v0, 2  ;;  %v3333_v63 = vclz %v13971_v31  ;;  %v3408_v18 = vsel %vm3402_vm0, %v3405_v3, %v3407_v24  ;;  %v3576_v19 = vsel %vm3565_vm7, nan, %v3575_v43 }
 0x412   :  { %vm3669_vm9 = vweird.f32 %v21934_v6  ;;  %vm3673_vm6 = vcmp.eq.s32.totalorder %v3671_v25, 0  ;;  %vm3676_vm10 = vcmp.eq.s32.totalorder %v3671_v25, 2  ;;  %v3321_v56 = vadd.s32 %v20099_v9, %v20113_v13 }
 0x413   :  { %v13972_v57 = vadd.s32 4294967294, %v3333_v63  ;;  %v5396_v45 = vsel %vm910_vm4, %v16450_v1, %v21943_v39  ;;  %v16449_v36 = vunpack.i.l.bf16 %v16448_v12  ;;  %v16445_v7 = vunpack.i.h.bf16 %v16443_v33 }
 0x414   :  { %v3424_v42 = vmul.u32 %v3417_v49, %v3408_v18  ;;  %vm3426_vm1 = vc.u32 %v20201_v47, %v20203_v15  ;;  %v3427_v27 = vadd.s32 1, %v20204_v55  ;;  %v16444_v32 = vunpack.i.l.bf16 %v16443_v33  ;;  %v17015_v22 = vpop.eup %17014  ;;  %v16453_v49 = vpop.permute.xlu0 %16452 }
 0x415   :  { %vm13973_vm7 = vcmp.lt.s32.totalorder %v13972_v57, 0  ;;  %v5395_v41 = vsel %vm910_vm4, %v16449_v36, %v21944_v46  ;;  %v5394_v9 = vsel %vm910_vm4, %v16445_v7, %v19008_v5  ;;  %v16460_v13 = vunpack.i.h.bf16 %v16458_v10  ;;  %v17017_v60 = vpop.eup %17016 }
 0x416   :  { %v3677_v38 = vxor.u32 2147483648, %v17015_v22  ;;  %v3336_v40 = vsel %vm13973_vm7, 0, %v13972_v57  ;;  %v3428_v8 = vsel %vm3426_vm1, %v3427_v27, %v20204_v55  ;;  %v5410_v58 = vpack.c.bf16 %v5396_v45, %v5395_v41 }
 0x417   :  { %v3674_v4 = vxor.u32 2147483648, %v17017_v60  ;;  %v3337_v2 = vsub.s32 32, %v3336_v40  ;;  %v3338_v14 = vshll.u32 %v20179_v34, %v3336_v40  ;;  %v3341_v61 = vsub.s32 4294967266, %v3336_v40 }
 0x418   :  { %v3678_v44 = vsel %vm3676_vm10, %v3677_v38, %v17017_v60  ;;  %v5326_v12 = vsel %vm5324_vm13, %v3677_v38, %v17017_v60  ;;  %v3429_v37 = vadd.s32 %v3428_v8, %v3424_v42  ;;  %v5393_v5 = vsel %vm910_vm4, %v16444_v32, %v21945_v26 }
 0x419   :  { %v3675_v20 = vsel %vm3673_vm6, %v17015_v22, %v3674_v4  ;;  %v5323_v3 = vsel %vm5321_vm3, %v17015_v22, %v3674_v4  ;;  %v3339_v24 = vshrl.u32 %v3321_v56, %v3337_v2  ;;  %v3342_v23 = vadd.s32 127, %v3341_v61 }
 0x41a   :  { %v3679_v34 = vsel %vm3672_vm11, %v3675_v20, %v3678_v44  ;;  %v5327_v43 = vsel %vm5320_vm12, %v5323_v3, %v5326_v12  ;;  %v3430_v31 = vadd.s32 536870912, %v3429_v37  ;;  %v5409_v35 = vpack.c.bf16 %v5394_v9, %v5393_v5 }
 0x41b   :  { %v3680_v1 = vsel %vm3669_vm9, nan, %v3679_v34  ;;  %v20242_v29 = vsel %vm3669_vm9, nan, %v5327_v43  ;;  %v3340_v55 = vor.u32 %v3339_v24, %v3338_v14  ;;  %v3343_v33 = vshll.u32 %v3342_v23, 23 }
 0x41c   :  { %v16476_v63 = vpack.i.bf16 %v3680_v1, %v3576_v19  ;;  %v20244_v18 = vshrl.u32 %v3430_v31, 30  ;;  %15221 = vmatprep.mubr.bf16.mxu0 %v5409_v35  ;;  %v16459_v25 = vunpack.i.l.bf16 %v16458_v10  ;;  %v16455_v56 = vunpack.i.h.bf16 %v16453_v49 }
 0x41d   :  { %v3344_v57 = vor.u32 4788187, %v3343_v33  ;;  %15222 = vmatmul.mubr.bf16.vlgmr.msra.gmra.mrb[32].mxu0 %v5410_v58  ;;  %v16454_v0 = vunpack.i.l.bf16 %v16453_v49  ;;  %v5400_v39 = vsel %vm910_vm4, %v16460_v13, %v19266_v54  ;;  %v3347_v7 = vcvt.s32.f32 %v3340_v55 }
 0x41e   :  { %16477 = vrot.lane.b32.xlu1 %v16476_v63, %s17451_s4  ;;  %v3432_v6 = vshll.u32 %v20244_v18, 30  ;;  %v5398_v45 = vsel %vm910_vm4, %v16455_v56, %v19531_v53  ;;  %v5399_v19 = vsel %vm910_vm4, %v16459_v25, %v19158_v52  ;;  %vm3267_vm5 = vcmp.lt.s32.totalorder %v18193_v30, 0 }
 0x41f   :  { %v3345_v36 = vand.u32 2147483647, %v3344_v57  ;;  %v5397_v10 = vsel %vm910_vm4, %v16454_v0, %v19411_v59  ;;  %v5412_v42 = vpack.c.bf16 %v5400_v39, %v5399_v19  ;;  %vm3266_vm14 = vcmp.le.f32.partialorder %v3265_v50, 0.7853982 }
 0x420   :  { %v3433_v27 = vsub.s32 %v3429_v37, %v3432_v6  ;;  %v5411_v32 = vpack.c.bf16 %v5398_v45, %v5397_v10  ;;  %v3351_v52 = vsub.s32 4, %v20157_v48  ;;  %v3425_v8 = vadd.s32 %v20203_v15, %v20201_v47 }
 0x421   :  { %v3348_v22 = vmul.f32 %v3347_v7, %v3345_v36  ;;  %vm3357_vm11 = vweird.f32 %v18193_v30  ;;  %vm3371_vm12 = vcmp.lt.s32.totalorder %v18202_v21, 0  ;;  %vm3370_vm13 = vcmp.le.f32.partialorder %v3369_v51, 0.7853982 }
 0x422   :  { %v3435_v54 = vsub.s32 0, %v3433_v27  ;;  %15225 = vmatprep.mubr.bf16.mxu0 %v5411_v32  ;;  %v3352_v60 = vsel %vm3267_vm5, %v3351_v52, %v20157_v48 }
 0x423   :  { %v3349_v46 = vxor.u32 2147483648, %v3348_v22  ;;  %v3354_v40 = vsel %vm3266_vm14, 0, %v3352_v60 }
 0x424   :  { %v13975_v41 = vmin.u32 %v3435_v54, %v3433_v27  ;;  %v5010_v44 = vand.u32 3, %v3354_v40  ;;  %v3358_v57 = vadd.s32 3, %v3354_v40 }
 0x425   :  { %v3350_v53 = vsel %vm3267_vm5, %v3349_v46, %v3348_v22  ;;  %15226 = vmatmul.mubr.bf16.gmra.mrb[36].mxu0 %v5412_v42 }
 0x426   :  { %v3353_v9 = vsel %vm3266_vm14, %v18193_v30, %v3350_v53  ;;  %v3437_v59 = vclz %v13975_v41  ;;  %vm5015_vm8 = vcmp.eq.s32.totalorder %v5010_v44, 2  ;;  %vm5012_vm0 = vcmp.eq.s32.totalorder %v5010_v44, 0 }
 0x427   :  { %17018 = vcosq.f32 %v3353_v9  ;;  %vm5011_vm3 = vcmp.lt.s32.totalorder %v5010_v44, 2  ;;  %v3359_v6 = vand.u32 3, %v3358_v57 }
 0x428   :  { %17020 = vsinq.f32 %v3353_v9  ;;  %v13976_v13 = vadd.s32 4294967294, %v3437_v59 }
 0x429   :  { %vm3361_vm9 = vcmp.eq.s32.totalorder %v3359_v6, 0  ;;  %vm3364_vm6 = vcmp.eq.s32.totalorder %v3359_v6, 2  ;;  %vm3360_vm10 = vcmp.lt.s32.totalorder %v3359_v6, 2 }
 0x42a   :  { %vm13977_vm15 = vcmp.lt.s32.totalorder %v13976_v13, 0 }
 0x42b   :  { %v3440_v38 = vsel %vm13977_vm15, 0, %v13976_v13  ;;  %v16468_v61 = vpop.permute.xlu1 %16467 }
 0x42c   :  { %v3441_v58 = vsub.s32 32, %v3440_v38  ;;  %v3445_v50 = vsub.s32 4294967266, %v3440_v38  ;;  %v3442_v4 = vshll.u32 %v3433_v27, %v3440_v38  ;;  %v16470_v12 = vunpack.i.h.bf16 %v16468_v61 }
 0x42d   :  { %v16469_v37 = vunpack.i.l.bf16 %v16468_v61 }
 0x42e   :  { %v3443_v2 = vshrl.u32 %v3425_v8, %v3441_v58  ;;  %v3446_v14 = vadd.s32 127, %v3445_v50  ;;  %v20270_v3 = vsel %vm910_vm4, %v16470_v12, %v19770_v16  ;;  %v3455_v16 = vsub.s32 4, %v20244_v18 }
 0x42f   :  { %v20266_v48 = vsel %vm910_vm4, %v16469_v37, %v19677_v28 }
 0x430   :  { %v3444_v26 = vor.u32 %v3443_v2, %v3442_v4  ;;  %v3447_v5 = vshll.u32 %v3446_v14, 23  ;;  %v5414_v23 = vpack.c.bf16 %v20270_v3, %v20266_v48  ;;  %v3456_v25 = vsel %vm3371_vm12, %v3455_v16, %v20244_v18  ;;  %v20285_v18 = vpop.f32.mrb[0].mxu1  ;;  %v20307_v2 = vld [vmem:[#allocation7] ss:$0 sm:$0xff] }
 0x431   :  { %v17019_v20 = vpop.eup %17018  ;;  %v3458_v0 = vsel %vm3370_vm13, 0, %v3456_v25  ;;  %v20287_v46 = vpop.f32.mrb[1].mxu1 }
 0x432   :  { %v17021_v47 = vpop.eup %17020  ;;  %v3365_v15 = vxor.u32 2147483648, %v17019_v20  ;;  %v3448_v24 = vor.u32 4788187, %v3447_v5  ;;  %v3451_v43 = vcvt.s32.f32 %v3444_v26  ;;  %v3462_v39 = vadd.s32 3, %v3458_v0  ;;  %v20289_v52 = vpop.f32.mrb[2].mxu1 }
 0x433   :  { %v3362_v49 = vxor.u32 2147483648, %v17021_v47  ;;  %v5113_v19 = vand.u32 3, %v3458_v0  ;;  %v20292_v13 = vpop.f32.mrb[3].mxu1 }
 0x434   :  { %v3449_v34 = vand.u32 2147483647, %v3448_v24  ;;  %v5017_v31 = vsel %vm5015_vm8, %v3365_v15, %v17021_v47  ;;  %v3463_v45 = vand.u32 3, %v3462_v39  ;;  %v3366_v10 = vsel %vm3364_vm6, %v3365_v15, %v17021_v47  ;;  %v20298_v8 = vpop.f32.mrb[4].mxu1 }
 0x435   :  { %v5014_v35 = vsel %vm5012_vm0, %v17019_v20, %v3362_v49  ;;  %v3363_v7 = vsel %vm3361_vm9, %v17019_v20, %v3362_v49  ;;  %vm5115_vm7 = vcmp.eq.s32.totalorder %v5113_v19, 0  ;;  %vm5118_vm5 = vcmp.eq.s32.totalorder %v5113_v19, 2  ;;  %v20300_v50 = vpop.f32.mrb[5].mxu1 }
 0x436   :  { %v3452_v28 = vmul.f32 %v3451_v43, %v3449_v34  ;;  %v5018_v1 = vsel %vm5011_vm3, %v5014_v35, %v5017_v31  ;;  %vm3468_vm1 = vcmp.eq.s32.totalorder %v3463_v45, 2  ;;  %v3367_v32 = vsel %vm3360_vm10, %v3363_v7, %v3366_v10  ;;  %v20302_v4 = vpop.f32.mrb[6].mxu1  ;;  %v20353_v10 = vld [vmem:[#allocation11] ss:$0 sm:$0xff] }
 0x437   :  { %v20278_v55 = vsel %vm3357_vm11, nan, %v5018_v1  ;;  %vm3465_vm14 = vcmp.eq.s32.totalorder %v3463_v45, 0  ;;  %vm3464_vm15 = vcmp.lt.s32.totalorder %v3463_v45, 2  ;;  %vm5114_vm8 = vcmp.lt.s32.totalorder %v5113_v19, 2 }
 0x438   :  { %v3453_v33 = vxor.u32 2147483648, %v3452_v28  ;;  %vm3461_vm0 = vweird.f32 %v18202_v21  ;;  %v3368_v60 = vsel %vm3357_vm11, nan, %v3367_v32  ;;  %vm7992_vm3 = vcmask 1042434  }
 0x439   :  { %vm7994_vm11 = vcmask 1043459   ;;  %vm8000_vm9 = vcmask 1046534   ;;  %vm8002_vm6 = vcmask 1047559   ;;  %vm17473_vm10 = vmmov 0  }
 0x43a   :  { %v3454_v63 = vsel %vm3371_vm12, %v3453_v33, %v3452_v28  ;;  %vm7996_vm12 = vcmask 1044484  }
 0x43b   :  { %v3457_v56 = vsel %vm3370_vm13, %v18202_v21, %v3454_v63  ;;  %v20305_v21 = vpop.f32.mrb[7].mxu1  ;;  %vm7998_vm13 = vcmask 1045509  }
 0x43c   :  { %17022 = vcosq.f32 %v3457_v56  ;;  %v15155_v14 = vpop.f32.mrb[8].mxu1 }
 0x43d   :  { %17024 = vsinq.f32 %v3457_v56  ;;  %v20310_v30 = vadd.f32 %v15155_v14, %v20307_v2  ;;  %v1441_v61 = vpop.f32.mrb[9].mxu1 }
 0x43e   :  { %v20313_v44 = vadd.f32 %v20307_v2, %v1441_v61  ;;  %v15156_v12 = vpop.f32.mrb[10].mxu1 }
 0x43f   :  { %v20316_v37 = vadd.f32 %v15156_v12, %v20307_v2  ;;  %v1444_v26 = vpop.f32.mrb[11].mxu1 }
 0x440   :  { %v20319_v5 = vadd.f32 %v20307_v2, %v1444_v26  ;;  %v15159_v20 = vpop.f32.mrb[12].mxu1 }
 0x441   :  { %v20322_v47 = vadd.f32 %v15159_v20, %v20307_v2  ;;  %v1457_v15 = vpop.f32.mrb[13].mxu1 }
 0x442   :  { %v20325_v24 = vadd.f32 %v20307_v2, %v1457_v15  ;;  %v15160_v49 = vpop.f32.mrb[14].mxu1 }
 0x443   :  { %v20328_v34 = vadd.f32 %v15160_v49, %v20307_v2  ;;  %v1460_v43 = vpop.f32.mrb[15].mxu1 }
 0x444   :  { %v20331_v31 = vadd.f32 %v20307_v2, %v1460_v43  ;;  %v20333_v35 = vpop.f32.mrb[16].mxu1  ;;  %v16024_v43 = vadd.f32 %v20307_v2, %v20292_v13  ;;  %v16025_v13 = vadd.f32 %v20298_v8, %v20307_v2 }
 0x445   :  { %v20335_v28 = vpop.f32.mrb[17].mxu1 }
 0x446   :  { %v17023_v36 = vpop.eup %17022  ;;  %v20337_v16 = vpop.f32.mrb[18].mxu1 }
 0x447   :  { %v17025_v42 = vpop.eup %17024  ;;  %v3469_v51 = vxor.u32 2147483648, %v17023_v36  ;;  %v20339_v1 = vpop.f32.mrb[19].mxu1 }
 0x448   :  { %v3466_v27 = vxor.u32 2147483648, %v17025_v42  ;;  %v20341_v33 = vpop.f32.mrb[20].mxu1 }
 0x449   :  { %v3470_v22 = vsel %vm3468_vm1, %v3469_v51, %v17025_v42  ;;  %v5120_v54 = vsel %vm5118_vm5, %v3469_v51, %v17025_v42  ;;  %v20343_v63 = vpop.f32.mrb[21].mxu1  ;;  %vm13800_vm1 = vcmask 64512   ;;  %vm13804_vm5 = vcmask 123904  }
 0x44a   :  { %v3467_v41 = vsel %vm3465_vm14, %v17023_v36, %v3466_v27  ;;  %v5117_v53 = vsel %vm5115_vm7, %v17023_v36, %v3466_v27  ;;  %v20345_v25 = vpop.f32.mrb[22].mxu1  ;;  %vm13802_vm7 = vcmask 113664  }
 0x44b   :  { %v3471_v9 = vsel %vm3464_vm15, %v3467_v41, %v3470_v22  ;;  %v5121_v59 = vsel %vm5114_vm8, %v5117_v53, %v5120_v54  ;;  %v20347_v56 = vpop.f32.mrb[23].mxu1 }
 0x44c   :  { %v3472_v38 = vsel %vm3461_vm0, nan, %v3471_v9  ;;  %v20296_v40 = vsel %vm3461_vm0, nan, %v5121_v59  ;;  %v15199_v0 = vpop.f32.mrb[24].mxu1 }
 0x44d   :  { %v16471_v58 = vpack.i.bf16 %v3472_v38, %v3368_v60  ;;  %v1970_v45 = vpop.f32.mrb[25].mxu1  ;;  %v20356_v27 = vadd.f32 %v15199_v0, %v20353_v10 }
 0x44e   :  { %v15200_v19 = vpop.f32.mrb[26].mxu1  ;;  %v20359_v32 = vadd.f32 %v20353_v10, %v1970_v45 }
 0x44f   :  { %16472 = vrot.lane.b32.xlu0 %v16471_v58, %s17451_s4  ;;  %v1973_v42 = vpop.f32.mrb[27].mxu1  ;;  %v20362_v22 = vadd.f32 %v15200_v19, %v20353_v10 }
 0x450   :  { %v20365_v54 = vadd.f32 %v20353_v10, %v1973_v42 }
 0x45e   :  { %v16463_v57 = vpop.permute.xlu0 %16462 }
 0x45f   :  { %v16465_v39 = vunpack.i.h.bf16 %v16463_v57  ;;  %v16464_v6 = vunpack.i.l.bf16 %v16463_v57  ;;  %v16021_v57 = vadd.f32 %v20285_v18, %v20307_v2 }
 0x461   :  { %v5401_v36 = vsel %vm910_vm4, %v16464_v6, %v19908_v17  ;;  %v5402_v7 = vsel %vm910_vm4, %v16465_v39, %v20032_v62  ;;  %v16023_v39 = vadd.f32 %v20289_v52, %v20307_v2  ;;  %v13884_v6 = vmul.f32 -1.442695, %v16021_v57 }
 0x462   :  { %v5413_v51 = vpack.c.bf16 %v5402_v7, %v5401_v36  ;;  %v16027_v52 = vadd.f32 %v20302_v4, %v20307_v2  ;;  %v13888_v36 = vmul.f32 -1.442695, %v16025_v13 }
 0x463   :  { %v13885_v45 = vmul.f32 -1.442695, %v16023_v39 }
 0x464   :  { %15229 = vmatprep.mubr.bf16.mxu0 %v5413_v51  ;;  %v13889_v42 = vmul.f32 -1.442695, %v16027_v52 }
 0x465   :  { %15230 = vmatmul.mubr.bf16.gmra.mrb[40].mxu0 %v5414_v23 }
 0x48d   :  { %v15203_v62 = vpop.f32.mrb[28].mxu1 }
 0x48e   :  { %v20371_v9 = vadd.f32 %v15203_v62, %v20353_v10  ;;  %v1986_v59 = vpop.f32.mrb[29].mxu1 }
 0x48f   :  { %v20374_v60 = vadd.f32 %v20353_v10, %v1986_v59  ;;  %v15204_v38 = vpop.f32.mrb[30].mxu1 }
 0x490   :  { %v16478_v17 = vpop.permute.xlu1 %16477  ;;  %v20381_v48 = vadd.f32 %v15204_v38, %v20353_v10  ;;  %v1989_v3 = vpop.f32.mrb[31].mxu1 }
 0x491   :  { %v16480_v41 = vunpack.i.h.bf16 %v16478_v17  ;;  %v16479_v53 = vunpack.i.l.bf16 %v16478_v17  ;;  %v20384_v61 = vadd.f32 %v20353_v10, %v1989_v3 }
 0x493   :  { %v5407_v58 = vsel %vm910_vm4, %v16479_v53, %v20142_v11  ;;  %v5408_v14 = vsel %vm910_vm4, %v16480_v41, %v20242_v29  ;;  %v16022_v29 = vadd.f32 %v20307_v2, %v20287_v46  ;;  %v16028_v46 = vadd.f32 %v20307_v2, %v20305_v21 }
 0x494   :  { %v5416_v23 = vpack.c.bf16 %v5408_v14, %v5407_v58 }
 0x495   :  { %v13882_v0 = vmul.f32 -1.442695, %v16022_v29  ;;  %v13887_v19 = vmul.f32 -1.442695, %v16028_v46 }
 0x497   :  { %17026 = vpow2.f32 %v13882_v0 }
 0x4a1   :  { %v17027_v7 = vpop.eup %17026 }
 0x4a2   :  { %v1536_v51 = vadd.f32 1.0, %v17027_v7 }
 0x4c1   :  { %v16473_v12 = vpop.permute.xlu0 %16472 }
 0x4c2   :  { %v16475_v26 = vunpack.i.h.bf16 %v16473_v12  ;;  %v16474_v20 = vunpack.i.l.bf16 %v16473_v12 }
 0x4c4   :  { %v5405_v15 = vsel %vm910_vm4, %v16474_v20, %v20278_v55  ;;  %v5406_v11 = vsel %vm910_vm4, %v16475_v26, %v20296_v40  ;;  %v13883_v55 = vmul.f32 -1.442695, %v16024_v43  ;;  %v16026_v40 = vadd.f32 %v20307_v2, %v20300_v50  ;;  %v20406_v2 = vld [vmem:[#allocation13] ss:$0 sm:$0xff] }
 0x4c5   :  { %v5415_v49 = vpack.c.bf16 %v5406_v11, %v5405_v15 }
 0x4c6   :  { %17028 = vpow2.f32 %v13883_v55  ;;  %v13886_v18 = vmul.f32 -1.442695, %v16026_v40 }
 0x4c7   :  { %15233 = vmatprep.mubr.bf16.mxu0 %v5415_v49  ;;  %17030 = vpow2.f32 %v13884_v6 }
 0x4c8   :  { %15234 = vmatmul.mubr.bf16.gmra.mrb[44].mxu0 %v5416_v23  ;;  %17032 = vpow2.f32 %v13885_v45 }
 0x4c9   :  { %17034 = vpow2.f32 %v13886_v18 }
 0x4ca   :  { %17036 = vpow2.f32 %v13887_v19 }
 0x4cb   :  { %17038 = vpow2.f32 %v13888_v36 }
 0x4cc   :  { %17040 = vpow2.f32 %v13889_v42 }
 0x4cd   :  { %17042 = vrcp.f32 %v1536_v51 }
 0x4d0   :  { %v17029_v50 = vpop.eup %17028 }
 0x4d1   :  { %v17031_v17 = vpop.eup %17030  ;;  %v1537_v21 = vadd.f32 1.0, %v17029_v50 }
 0x4d2   :  { %v17033_v62 = vpop.eup %17032  ;;  %v1538_v41 = vadd.f32 1.0, %v17031_v17 }
 0x4d3   :  { %v17035_v8 = vpop.eup %17034  ;;  %v1539_v53 = vadd.f32 1.0, %v17033_v62  ;;  %17044 = vrcp.f32 %v1537_v21 }
 0x4d4   :  { %v17037_v59 = vpop.eup %17036  ;;  %17046 = vrcp.f32 %v1538_v41  ;;  %v1540_v4 = vadd.f32 1.0, %v17035_v8 }
 0x4d5   :  { %v17039_v38 = vpop.eup %17038  ;;  %17048 = vrcp.f32 %v1539_v53  ;;  %v1541_v14 = vadd.f32 1.0, %v17037_v59 }
 0x4d6   :  { %v17041_v23 = vpop.eup %17040  ;;  %v1542_v15 = vadd.f32 1.0, %v17039_v38  ;;  %17050 = vrcp.f32 %v1540_v4 }
 0x4d7   :  { %v20412_v57 = vpop.eup %17042  ;;  %v1543_v0 = vadd.f32 1.0, %v17041_v23  ;;  %17052 = vrcp.f32 %v1541_v14 }
 0x4d8   :  { %17054 = vrcp.f32 %v1542_v15  ;;  %v13891_v15 = vmul.f32 -1.442695, %v20319_v5  ;;  %v16513_v5 = vld [vmem:[#allocation14 + $0x18] sm:$0xff]  }
 0x4d9   :  { %17056 = vrcp.f32 %v1543_v0  ;;  %v16512_v0 = vld [vmem:[#allocation14 + $0x10] sm:$0xff]  }
 0x4dd   :  { %v20415_v40 = vpop.eup %17044 }
 0x4de   :  { %v20419_v18 = vpop.eup %17046 }
 0x4df   :  { %v20425_v50 = vpop.eup %17048 }
 0x4e0   :  { %v20431_v8 = vpop.eup %17050 }
 0x4e1   :  { %v20435_v38 = vpop.eup %17052 }
 0x4f0   :  { %v15223_v58 = vpop.f32.mrb[32].mxu0 }
 0x4f1   :  { %v5522_v3 = vpop.f32.mrb[33].mxu0  ;;  %v5531_v12 = vadd.f32 %v15223_v58, %v20406_v2 }
 0x4f2   :  { %v5523_v26 = vadd.f32 %v20406_v2, %v5522_v3  ;;  %v15224_v20 = vpop.f32.mrb[34].mxu0  ;;  %v20439_v3 = vpop.eup %17054 }
 0x4f3   :  { %v5525_v11 = vpop.f32.mrb[35].mxu0  ;;  %v5534_v29 = vadd.f32 %v15224_v20, %v20406_v2  ;;  %v5587_v39 = vmax.f32 %v5531_v12, 0.0  ;;  %v20443_v12 = vpop.eup %17056  ;;  %v13890_v20 = vmul.f32 -1.442695, %v20313_v44 }
 0x4f4   :  { %v5585_v49 = vmax.f32 %v5523_v26, 0.0  ;;  %v5526_v43 = vadd.f32 %v20406_v2, %v5525_v11  ;;  %v13892_v11 = vmul.f32 -1.442695, %v20310_v30 }
 0x4f5   :  { %v5588_v45 = vmax.f32 %v5534_v29, 0.0  ;;  %v5619_v42 = vmul.f32 %v20419_v18, %v5587_v39  ;;  %17058 = vpow2.f32 %v13890_v20  ;;  %v16510_v29 = vld [vmem:[#allocation14] sm:$0xff]  }
 0x4f6   :  { %v5586_v55 = vmax.f32 %v5526_v43, 0.0  ;;  %v5617_v6 = vmul.f32 %v20412_v57, %v5585_v49  ;;  %v13893_v49 = vmul.f32 -1.442695, %v20316_v37  ;;  %17060 = vpow2.f32 %v13891_v15  ;;  %v16511_v43 = vld [vmem:[#allocation14 + $0x8] sm:$0xff]   ;;  %15237 = vmatprep.subr.bf16.mxu1 %v16510_v29 }
 0x4f7   :  { %v5620_v41 = vmul.f32 %v20425_v50, %v5588_v45  ;;  %17062 = vpow2.f32 %v13892_v11  ;;  %15238 = vmatpush3.bf16.msra.mxu1 %v16510_v29 }
 0x4f8   :  { %v15227_v46 = vpop.f32.mrb[36].mxu0  ;;  %5649 = vrot.lane.b32.xlu0 %v5617_v6, %s17451_s4  ;;  %v5618_v13 = vmul.f32 %v20415_v40, %v5586_v55  ;;  %17064 = vpow2.f32 %v13893_v49  ;;  %15239 = vmatprep.subr.bf16.mxu1 %v16511_v43 }
 0x4f9   :  { %v5538_v52 = vpop.f32.mrb[37].mxu0  ;;  %v5547_v19 = vadd.f32 %v15227_v46, %v20406_v2  ;;  %v16514_v46 = vld [vmem:[#allocation14 + $0x20] sm:$0xff]  }
 0x4fa   :  { %v5539_v36 = vadd.f32 %v20406_v2, %v5538_v52  ;;  %v15228_v7 = vpop.f32.mrb[38].mxu0  ;;  %5651 = vrot.lane.b32.xlu1 %v5618_v13, %s17451_s4  ;;  %v16515_v52 = vld [vmem:[#allocation14 + $0x28] sm:$0xff]  }
 0x4fb   :  { %v5541_v51 = vpop.f32.mrb[39].mxu0  ;;  %v5550_v21 = vadd.f32 %v15228_v7, %v20406_v2  ;;  %v5591_v53 = vmax.f32 %v5547_v19, 0.0  ;;  %15240 = vmatpush3.bf16.msra.mxu1 %v16511_v43  ;;  %v20469_v43 = vld [vmem:[#allocation14 + $0x40] sm:$0xff]  }
 0x4fc   :  { %v5589_v17 = vmax.f32 %v5539_v36, 0.0  ;;  %v5542_v62 = vadd.f32 %v20406_v2, %v5541_v51  ;;  %5653 = vrot.lane.b32.xlu0 %v5619_v42, %s17451_s4  ;;  %15241 = vmatprep.subr.bf16.mxu1 %v16512_v0 }
 0x4fd   :  { %v5592_v58 = vmax.f32 %v5550_v21, 0.0  ;;  %v5623_v23 = vmul.f32 %v20439_v3, %v5591_v53  ;;  %v16516_v21 = vld [vmem:[#allocation14 + $0x30] sm:$0xff]  }
 0x4fe   :  { %v5590_v59 = vmax.f32 %v5542_v62, 0.0  ;;  %5655 = vrot.lane.b32.xlu1 %v5620_v41, %s17451_s4  ;;  %v5621_v4 = vmul.f32 %v20431_v8, %v5589_v17 }
 0x4ff   :  { %v5624_v26 = vmul.f32 %v20443_v12, %v5592_v58  ;;  %v17059_v39 = vpop.eup %17058  ;;  %15242 = vmatpush3.bf16.msra.mxu1 %v16512_v0 }
 0x500   :  { %5657 = vrot.lane.b32.xlu0 %v5621_v4, %s17451_s4  ;;  %v5622_v14 = vmul.f32 %v20435_v38, %v5590_v59  ;;  %v17061_v55 = vpop.eup %17060  ;;  %v1544_v44 = vadd.f32 1.0, %v17059_v39  ;;  %15243 = vmatprep.subr.bf16.mxu1 %v16513_v5  ;;  %v1939_v39 = vadd.f32 %v20353_v10, %v20335_v28 }
 0x501   :  { %v17063_v6 = vpop.eup %17062  ;;  %v1545_v30 = vadd.f32 1.0, %v17061_v55  ;;  %v1942_v55 = vadd.f32 %v20353_v10, %v20339_v1  ;;  %v1958_v1 = vadd.f32 %v20353_v10, %v20347_v56 }
 0x502   :  { %5659 = vrot.lane.b32.xlu1 %v5622_v14, %s17451_s4  ;;  %v17065_v45 = vpop.eup %17064  ;;  %v1546_v37 = vadd.f32 1.0, %v17063_v6  ;;  %17066 = vrcp.f32 %v1544_v44  ;;  %v1947_v44 = vadd.f32 %v20333_v35, %v20353_v10  ;;  %v1950_v6 = vadd.f32 %v20337_v16, %v20353_v10 }
 0x503   :  { %v1547_v13 = vadd.f32 1.0, %v17065_v45  ;;  %17068 = vrcp.f32 %v1545_v30  ;;  %15244 = vmatpush3.bf16.msra.mxu1 %v16513_v5  ;;  %v2001_v5 = vmax.f32 %v1939_v39, 0.0  ;;  %v2002_v30 = vmax.f32 %v1942_v55, 0.0 }
 0x504   :  { %5661 = vrot.lane.b32.xlu0 %v5623_v23, %s17451_s4  ;;  %17070 = vrcp.f32 %v1546_v37  ;;  %15245 = vmatprep.subr.bf16.mxu1 %v16514_v46  ;;  %v2003_v45 = vmax.f32 %v1947_v44, 0.0  ;;  %v16519_v44 = vld [vmem:[#allocation14 + $0x48] sm:$0xff]  }
 0x505   :  { %17072 = vrcp.f32 %v1547_v13  ;;  %v5601_v37 = vmul.f32 %v20412_v57, %v2001_v5  ;;  %v5602_v28 = vmul.f32 %v20415_v40, %v2002_v30  ;;  %v1963_v57 = vadd.f32 %v20341_v33, %v20353_v10 }
 0x506   :  { %5663 = vrot.lane.b32.xlu1 %v5624_v26, %s17451_s4  ;;  %v16517_v26 = vld [vmem:[#allocation14 + $0x38] sm:$0xff]   ;;  %v13894_v30 = vmul.f32 -1.442695, %v20325_v24 }
 0x507   :  { %15246 = vmatpush3.bf16.msra.mxu1 %v16514_v46  ;;  %v1955_v46 = vadd.f32 %v20353_v10, %v20343_v63  ;;  %v2007_v33 = vmax.f32 %v1963_v57, 0.0 }
 0x508   :  { %15247 = vmatprep.subr.bf16.mxu1 %v16515_v52  ;;  %17074 = vpow2.f32 %v13894_v30 }
 0x50b   :  { %15248 = vmatpush3.bf16.msra.mxu1 %v16515_v52  ;;  %v2004_v52 = vmax.f32 %v1950_v6, 0.0 }
 0x50c   :  { %v20456_v59 = vpop.eup %17066  ;;  %15249 = vmatprep.subr.bf16.mxu1 %v16516_v21 }
 0x50d   :  { %v20459_v23 = vpop.eup %17068  ;;  %v5604_v56 = vmul.f32 %v20425_v50, %v2004_v52 }
 0x50e   :  { %v20463_v11 = vpop.eup %17070 }
 0x50f   :  { %15250 = vmatpush3.bf16.msra.mxu1 %v16516_v21  ;;  %v20467_v29 = vpop.eup %17072 }
 0x510   :  { %15251 = vmatprep.subr.bf16.mxu1 %v16517_v26 }
 0x513   :  { %15252 = vmatpush3.bf16.msra.mxu1 %v16517_v26 }
 0x514   :  { %15269 = vmatprep.subr.bf16.mxu1 %v20469_v43 }
 0x538   :  { %v15231_v19 = vpop.f32.mrb[40].mxu0 }
 0x539   :  { %v5554_v36 = vpop.f32.mrb[41].mxu0  ;;  %v5563_v7 = vadd.f32 %v15231_v19, %v20406_v2  ;;  %v5603_v19 = vmul.f32 %v20419_v18, %v2003_v45  ;;  %v13895_v45 = vmul.f32 -1.442695, %v20331_v31 }
 0x53a   :  { %v5555_v42 = vadd.f32 %v20406_v2, %v5554_v36  ;;  %v15232_v51 = vpop.f32.mrb[42].mxu0  ;;  %v2005_v36 = vmax.f32 %v1955_v46, 0.0  ;;  %v13897_v46 = vmul.f32 -1.442695, %v20328_v34  ;;  %v16520_v34 = vld [vmem:[#allocation14 + $0x50] sm:$0xff]  }
 0x53b   :  { %v5557_v17 = vpop.f32.mrb[43].mxu0  ;;  %v5566_v41 = vadd.f32 %v15232_v51, %v20406_v2  ;;  %v5595_v4 = vmax.f32 %v5563_v7, 0.0  ;;  %v1966_v7 = vadd.f32 %v20345_v25, %v20353_v10  ;;  %17076 = vpow2.f32 %v13895_v45  ;;  %v16524_v45 = vld [vmem:[#allocation14 + $0x70] sm:$0xff]  }
 0x53c   :  { %v5593_v62 = vmax.f32 %v5555_v42, 0.0  ;;  %v5558_v53 = vadd.f32 %v20406_v2, %v5557_v17  ;;  %v2006_v42 = vmax.f32 %v1958_v1, 0.0  ;;  %v5605_v17 = vmul.f32 %v20431_v8, %v2005_v36 }
 0x53d   :  { %v5596_v20 = vmax.f32 %v5566_v41, 0.0  ;;  %v5627_v49 = vmul.f32 %v20463_v11, %v5595_v4  ;;  %v2008_v50 = vmax.f32 %v1966_v7, 0.0  ;;  %v5607_v8 = vmul.f32 %v20439_v3, %v2007_v33 }
 0x53e   :  { %v5594_v58 = vmax.f32 %v5558_v53, 0.0  ;;  %v5625_v14 = vmul.f32 %v20456_v59, %v5593_v62  ;;  %v5606_v41 = vmul.f32 %v20435_v38, %v2006_v42  ;;  %v21946_v53 = vmov 0.0   ;;  %v16521_v42 = vld [vmem:[#allocation14 + $0x58] sm:$0xff]  }
 0x53f   :  { %v5628_v0 = vmul.f32 %v20467_v29, %v5596_v20  ;;  %v5608_v38 = vmul.f32 %v20443_v12, %v2008_v50  ;;  %v16522_v50 = vld [vmem:[#allocation14 + $0x60] sm:$0xff]  }
 0x540   :  { %5665 = vrot.lane.b32.xlu0 %v5625_v14, %s17451_s4  ;;  %v5626_v15 = vmul.f32 %v20459_v23, %v5594_v58 }
 0x542   :  { %5667 = vrot.lane.b32.xlu1 %v5626_v15, %s17451_s4 }
 0x544   :  { %5669 = vrot.lane.b32.xlu0 %v5627_v49, %s17451_s4 }
 0x546   :  { %5671 = vrot.lane.b32.xlu1 %v5628_v0, %s17451_s4 }
 0x56a   :  { %v5650_v13 = vpop.permute.xlu0 %5649 }
 0x56b   :  { %v20490_v35 = vsel %vm910_vm4, %v5601_v37, %v5650_v13  ;;  %v13896_v37 = vmul.f32 -1.442695, %v20322_v47  ;;  %v17075_v13 = vpop.eup %17074 }
 0x56c   :  { %5766 = vst [vmem:[#allocation2 + $0x1] sm:$0xff] %v20490_v35  ;;  %v5652_v16 = vpop.permute.xlu1 %5651  ;;  %v1548_v52 = vadd.f32 1.0, %v17075_v13  ;;  %v20569_v13 = vld [vmem:[#allocation14 + $0x80] sm:$0xff]  }
 0x56d   :  { %v20497_v63 = vsel %vm910_vm4, %v5602_v28, %v5652_v16  ;;  %17078 = vpow2.f32 %v13896_v37  ;;  %v16525_v37 = vld [vmem:[#allocation14 + $0x78] sm:$0xff]  }
 0x56e   :  { %5767 = vst [vmem:[#allocation2 + $0x9] sm:$0xff] %v20497_v63  ;;  %v5654_v40 = vpop.permute.xlu0 %5653  ;;  %17080 = vpow2.f32 %v13897_v46  ;;  %v5989_v28 = vpack.c.bf16 %v20497_v63, %v20490_v35  ;;  %v2009_v46 = vmax.f32 %v20359_v32, 0.0  ;;  %v16530_v35 = vld [vmem:[#allocation14 + $0xa0] sm:$0xff]   ;;  %v16531_v63 = vld [vmem:[#allocation14 + $0xa8] sm:$0xff]  }
 0x56f   :  { %v20504_v51 = vsel %vm910_vm4, %v5603_v19, %v5654_v40  ;;  %17082 = vrcp.f32 %v1548_v52  ;;  %v2011_v52 = vmax.f32 %v20356_v27, 0.0 }
 0x570   :  { %5768 = vst [vmem:[#allocation2 + $0x11] sm:$0xff] %v20504_v51  ;;  %v5656_v18 = vpop.permute.xlu1 %5655 }
 0x571   :  { %v20509_v21 = vsel %vm910_vm4, %v5604_v56, %v5656_v18 }
 0x572   :  { %5769 = vst [vmem:[#allocation2 + $0x19] sm:$0xff] %v20509_v21  ;;  %v5658_v62 = vpop.permute.xlu0 %5657  ;;  %v5990_v47 = vpack.c.bf16 %v20509_v21, %v20504_v51  ;;  %v16532_v51 = vld [vmem:[#allocation14 + $0xb0] sm:$0xff]  }
 0x573   :  { %v5782_v25 = vld [vmem:[#allocation2] sm:$0xff]  ;;  %v20514_v10 = vsel %vm910_vm4, %v5605_v17, %v5658_v62 }
 0x574   :  { %6410 = vst [vmem:[#allocation2] sm:$0x1] %v21946_v53  ;;  %5770 = vst [vmem:[#allocation2 + $0x21] sm:$0xff] %v20514_v10  ;;  %v5660_v4 = vpop.permute.xlu1 %5659 }
 0x575   :  { %v20520_v58 = vsel %vm910_vm4, %v5606_v41, %v5660_v4  ;;  %v5783_v14 = vld [vmem:[#allocation2 + $0x8] sm:$0xff] }
 0x576   :  { %5771 = vst [vmem:[#allocation2 + $0x29] sm:$0xff] %v20520_v58  ;;  %v5662_v26 = vpop.permute.xlu0 %5661  ;;  %v5798_v20 = vpack.c.bf16 %v5783_v14, %v5782_v25  ;;  %v5991_v56 = vpack.c.bf16 %v20520_v58, %v20514_v10  ;;  %v6158_v10 = vld [vmem:[#allocation2 + $0x2] sm:$0xff]  ;;  %v16533_v58 = vld [vmem:[#allocation14 + $0xb8] sm:$0xff]  }
 0x577   :  { %v20525_v15 = vsel %vm910_vm4, %v5607_v8, %v5662_v26  ;;  %v5784_v3 = vld [vmem:[#allocation2 + $0x10] sm:$0xff] }
 0x578   :  { %5772 = vst [vmem:[#allocation2 + $0x31] sm:$0xff] %v20525_v15  ;;  %v5664_v49 = vpop.permute.xlu1 %5663  ;;  %15253 = vmatprep.mubr.bf16.mxu1 %v5798_v20  ;;  %v6159_v21 = vld [vmem:[#allocation2 + $0xa] sm:$0xff] }
 0x579   :  { %v20529_v0 = vsel %vm910_vm4, %v5608_v38, %v5664_v49  ;;  %v5785_v39 = vld [vmem:[#allocation2 + $0x18] sm:$0xff] }
 0x57a   :  { %5773 = vst [vmem:[#allocation2 + $0x39] sm:$0xff] %v20529_v0  ;;  %v5799_v55 = vpack.c.bf16 %v5785_v39, %v5784_v3  ;;  %v5992_v25 = vpack.c.bf16 %v20529_v0, %v20525_v15  ;;  %v6174_v15 = vpack.c.bf16 %v6159_v21, %v6158_v10 }
 0x57b   :  { %v5786_v12 = vld [vmem:[#allocation2 + $0x20] sm:$0xff] }
 0x57c   :  { %15254 = vmatmul.mubr.bf16.vlgmr.msra.gmra.mrb[32].mxu1 %v5799_v55  ;;  %v6161_v0 = vld [vmem:[#allocation2 + $0x1a] sm:$0xff] }
 0x57d   :  { %15270 = vmatpush3.bf16.msra.mxu1 %v20469_v43  ;;  %v5787_v5 = vld [vmem:[#allocation2 + $0x28] sm:$0xff]  ;;  %v17077_v43 = vpop.eup %17076 }
 0x57e   :  { %v5800_v6 = vpack.c.bf16 %v5787_v5, %v5786_v12  ;;  %15271 = vmatprep.subr.bf16.mxu1 %v16519_v44  ;;  %v17079_v1 = vpop.eup %17078  ;;  %v1549_v16 = vadd.f32 1.0, %v17077_v43  ;;  %v2010_v43 = vmax.f32 %v20365_v54, 0.0 }
 0x57f   :  { %v17081_v24 = vpop.eup %17080  ;;  %v1550_v19 = vadd.f32 1.0, %v17079_v1  ;;  %v5788_v31 = vld [vmem:[#allocation2 + $0x30] sm:$0xff]  ;;  %v5609_v1 = vmul.f32 %v20456_v59, %v2009_v46 }
 0x580   :  { %15257 = vmatprep.mubr.bf16.mxu1 %v5800_v6  ;;  %v1551_v36 = vadd.f32 1.0, %v17081_v24  ;;  %17084 = vrcp.f32 %v1549_v16  ;;  %v20549_v26 = vpop.eup %17082  ;;  %v2012_v24 = vmax.f32 %v20362_v22, 0.0 }
 0x581   :  { %15272 = vmatpush3.bf16.msra.mxu1 %v16519_v44  ;;  %v5789_v57 = vld [vmem:[#allocation2 + $0x38] sm:$0xff]  ;;  %17086 = vrcp.f32 %v1550_v19  ;;  %v16523_v44 = vld [vmem:[#allocation14 + $0x68] sm:$0xff]   ;;  %v5610_v19 = vmul.f32 %v20459_v23, %v2010_v43 }
 0x582   :  { %v5801_v40 = vpack.c.bf16 %v5789_v57, %v5788_v31  ;;  %15273 = vmatprep.subr.bf16.mxu1 %v16520_v34  ;;  %17088 = vrcp.f32 %v1551_v36  ;;  %v20560_v5 = vld [vmem:[#allocation2 + $0x3a] sm:$0xff]  ;;  %v5611_v57 = vmul.f32 %v20463_v11, %v2011_v52  ;;  %v5612_v22 = vmul.f32 %v20467_v29, %v2012_v24  ;;  %v16528_v24 = vld [vmem:[#allocation14 + $0x90] sm:$0xff]  }
 0x583   :  { %6412 = vst [vmem:[#allocation2 + $0x41] sm:$0x1] %v21946_v53 }
 0x584   :  { %15258 = vmatmul.mubr.bf16.gmra.mrb[36].mxu1 %v5801_v40 }
 0x585   :  { %15274 = vmatpush3.bf16.msra.mxu1 %v16520_v34 }
 0x586   :  { %15275 = vmatprep.subr.bf16.mxu1 %v16521_v42 }
 0x589   :  { %15276 = vmatpush3.bf16.msra.mxu1 %v16521_v42 }
 0x58a   :  { %15277 = vmatprep.subr.bf16.mxu1 %v16522_v50  ;;  %v20552_v3 = vpop.eup %17084 }
 0x58b   :  { %v20556_v12 = vpop.eup %17086 }
 0x58c   :  { %v20562_v6 = vpop.eup %17088 }
 0x58d   :  { %15278 = vmatpush3.bf16.msra.mxu1 %v16522_v50  ;;  %v16536_v50 = vld [vmem:[#allocation14 + $0xd0] sm:$0xff]  }
 0x58e   :  { %15279 = vmatprep.subr.bf16.mxu1 %v16523_v44 }
 0x591   :  { %15280 = vmatpush3.bf16.msra.mxu1 %v16523_v44 }
 0x592   :  { %15281 = vmatprep.subr.bf16.mxu1 %v16524_v45 }
 0x595   :  { %15282 = vmatpush3.bf16.msra.mxu1 %v16524_v45 }
 0x596   :  { %15283 = vmatprep.subr.bf16.mxu1 %v16525_v37 }
 0x599   :  { %15284 = vmatpush3.bf16.msra.mxu1 %v16525_v37 }
 0x59a   :  { %15301 = vmatprep.subr.bf16.mxu1 %v20569_v13 }
 0x59b   :  { %v15235_v7 = vpop.f32.mrb[44].mxu0 }
 0x59c   :  { %v5570_v18 = vpop.f32.mrb[45].mxu0  ;;  %v5579_v33 = vadd.f32 %v15235_v7, %v20406_v2 }
 0x59d   :  { %v5571_v17 = vadd.f32 %v20406_v2, %v5570_v18  ;;  %v15236_v62 = vpop.f32.mrb[46].mxu0 }
 0x59e   :  { %v5573_v41 = vpop.f32.mrb[47].mxu0  ;;  %v5582_v8 = vadd.f32 %v15236_v62, %v20406_v2  ;;  %v5599_v20 = vmax.f32 %v5579_v33, 0.0  ;;  %v16535_v62 = vld [vmem:[#allocation14 + $0xc8] sm:$0xff]  }
 0x59f   :  { %v5597_v4 = vmax.f32 %v5571_v17, 0.0  ;;  %v5574_v14 = vadd.f32 %v20406_v2, %v5573_v41  ;;  %v16534_v17 = vld [vmem:[#allocation14 + $0xc0] sm:$0xff]   ;;  %v16537_v41 = vld [vmem:[#allocation14 + $0xd8] sm:$0xff]  }
 0x5a0   :  { %v5600_v39 = vmax.f32 %v5582_v8, 0.0  ;;  %v5631_v2 = vmul.f32 %v20556_v12, %v5599_v20  ;;  %15333 = vmatprep.subr.bf16.mxu0 %v16534_v17  ;;  %v2014_v8 = vmax.f32 %v20384_v61, 0.0 }
 0x5a1   :  { %v5598_v38 = vmax.f32 %v5574_v14, 0.0  ;;  %v5629_v49 = vmul.f32 %v20549_v26, %v5597_v4  ;;  %15334 = vmatpush3.bf16.msra.mxu0 %v16534_v17  ;;  %v2013_v4 = vmax.f32 %v20374_v60, 0.0  ;;  %v2015_v14 = vmax.f32 %v20371_v9, 0.0  ;;  %v20636_v17 = vld [vmem:[#allocation16] ss:$0 sm:$0xff] }
 0x5a2   :  { %v5632_v30 = vmul.f32 %v20562_v6, %v5600_v39  ;;  %15335 = vmatprep.subr.bf16.mxu0 %v16535_v62  ;;  %v5614_v39 = vmul.f32 %v20552_v3, %v2014_v8 }
 0x5a3   :  { %5673 = vrot.lane.b32.xlu0 %v5629_v49, %s17451_s4  ;;  %v5630_v55 = vmul.f32 %v20552_v3, %v5598_v38  ;;  %v5613_v20 = vmul.f32 %v20549_v26, %v2013_v4  ;;  %v2016_v49 = vmax.f32 %v20381_v48, 0.0 }
 0x5a5   :  { %5675 = vrot.lane.b32.xlu1 %v5630_v55, %s17451_s4  ;;  %15336 = vmatpush3.bf16.msra.mxu0 %v16535_v62  ;;  %v5616_v9 = vmul.f32 %v20562_v6, %v2016_v49  ;;  %v16527_v6 = vld [vmem:[#allocation14 + $0x88] sm:$0xff]  }
 0x5a6   :  { %15337 = vmatprep.subr.bf16.mxu0 %v16536_v50 }
 0x5a7   :  { %5677 = vrot.lane.b32.xlu0 %v5631_v2, %s17451_s4  ;;  %v5615_v2 = vmul.f32 %v20556_v12, %v2015_v14 }
 0x5a9   :  { %5679 = vrot.lane.b32.xlu1 %v5632_v30, %s17451_s4  ;;  %15338 = vmatpush3.bf16.msra.mxu0 %v16536_v50 }
 0x5aa   :  { %15339 = vmatprep.subr.bf16.mxu0 %v16537_v41 }
 0x5ad   :  { %15340 = vmatpush3.bf16.msra.mxu0 %v16537_v41 }
 0x5b2   :  { %v5666_v16 = vpop.permute.xlu0 %5665 }
 0x5b3   :  { %v20578_v31 = vsel %vm910_vm4, %v5609_v1, %v5666_v16 }
 0x5b4   :  { %5774 = vst [vmem:[#allocation2 + $0x49] sm:$0xff] %v20578_v31  ;;  %v5668_v32 = vpop.permute.xlu1 %5667 }
 0x5b5   :  { %v20583_v54 = vsel %vm910_vm4, %v5610_v19, %v5668_v32  ;;  %v16529_v19 = vld [vmem:[#allocation14 + $0x98] sm:$0xff]  }
 0x5b6   :  { %5775 = vst [vmem:[#allocation2 + $0x51] sm:$0xff] %v20583_v54  ;;  %v5670_v27 = vpop.permute.xlu0 %5669  ;;  %v5993_v59 = vpack.c.bf16 %v20583_v54, %v20578_v31  ;;  %v6164_v31 = vld [vmem:[#allocation2 + $0x32] sm:$0xff] }
 0x5b7   :  { %v20590_v23 = vsel %vm910_vm4, %v5611_v57, %v5670_v27  ;;  %v6177_v54 = vpack.c.bf16 %v20560_v5, %v6164_v31  ;;  %v16540_v5 = vld [vmem:[#allocation14 + $0xf0] sm:$0xff]  }
 0x5b8   :  { %5776 = vst [vmem:[#allocation2 + $0x59] sm:$0xff] %v20590_v23  ;;  %v5672_v34 = vpop.permute.xlu1 %5671 }
 0x5b9   :  { %v20594_v36 = vsel %vm910_vm4, %v5612_v22, %v5672_v34 }
 0x5ba   :  { %5777 = vst [vmem:[#allocation2 + $0x61] sm:$0xff] %v20594_v36  ;;  %v5994_v11 = vpack.c.bf16 %v20594_v36, %v20590_v23 }
 0x5bb   :  { %v5790_v40 = vld [vmem:[#allocation2 + $0x48] sm:$0xff] }
 0x5bc   :  { %6411 = vst [vmem:[#allocation2 + $0x48] sm:$0x1] %v21946_v53 }
 0x5bd   :  { %v5791_v7 = vld [vmem:[#allocation2 + $0x50] sm:$0xff] }
 0x5be   :  { %v5802_v42 = vpack.c.bf16 %v5791_v7, %v5790_v40  ;;  %v6166_v57 = vld [vmem:[#allocation2 + $0x4a] sm:$0xff] }
 0x5bf   :  { %v5792_v29 = vld [vmem:[#allocation2 + $0x58] sm:$0xff] }
 0x5c0   :  { %15261 = vmatprep.mubr.bf16.mxu1 %v5802_v42  ;;  %v6167_v32 = vld [vmem:[#allocation2 + $0x52] sm:$0xff]  ;;  %v16538_v42 = vld [vmem:[#allocation14 + $0xe0] sm:$0xff]  }
 0x5c1   :  { %v5793_v18 = vld [vmem:[#allocation2 + $0x60] sm:$0xff]  ;;  %v6178_v27 = vpack.c.bf16 %v6167_v32, %v6166_v57  ;;  %15341 = vmatprep.subr.bf16.mxu0 %v16538_v42 }
 0x5c2   :  { %v5803_v33 = vpack.c.bf16 %v5793_v18, %v5792_v29  ;;  %v6168_v23 = vld [vmem:[#allocation2 + $0x5a] sm:$0xff]  ;;  %v16539_v29 = vld [vmem:[#allocation14 + $0xe8] sm:$0xff]   ;;  %15342 = vmatpush3.bf16.msra.mxu0 %v16538_v42 }
 0x5c3   :  { %15343 = vmatprep.subr.bf16.mxu0 %v16539_v29  ;;  %v16541_v18 = vld [vmem:[#allocation14 + $0xf8] sm:$0xff]  }
 0x5c4   :  { %15262 = vmatmul.mubr.bf16.gmra.mrb[40].mxu1 %v5803_v33  ;;  %v16542_v33 = vld [vmem:[#allocation14 + $0x100] sm:$0xff]  }
 0x5c6   :  { %15344 = vmatpush3.bf16.msra.mxu0 %v16539_v29 }
 0x5c7   :  { %15345 = vmatprep.subr.bf16.mxu0 %v16540_v5 }
 0x5ca   :  { %15346 = vmatpush3.bf16.msra.mxu0 %v16540_v5 }
 0x5cb   :  { %15347 = vmatprep.subr.bf16.mxu0 %v16541_v18 }
 0x5ce   :  { %15348 = vmatpush3.bf16.msra.mxu0 %v16541_v18  ;;  %v16545_v18 = vld [vmem:[#allocation14 + $0x118] sm:$0xff]  }
 0x5cf   :  { %15365 = vmatprep.subr.bf16.mxu0 %v16542_v33 }
 0x615   :  { %v5674_v38 = vpop.permute.xlu0 %5673 }
 0x616   :  { %v5709_v55 = vsel %vm910_vm4, %v5613_v20, %v5674_v38 }
 0x617   :  { %5778 = vst [vmem:[#allocation2 + $0x69] sm:$0xff] %v5709_v55  ;;  %v5676_v44 = vpop.permute.xlu1 %5675 }
 0x618   :  { %v5710_v30 = vsel %vm910_vm4, %v5614_v39, %v5676_v44 }
 0x619   :  { %5779 = vst [vmem:[#allocation2 + $0x71] sm:$0xff] %v5710_v30  ;;  %v5678_v60 = vpop.permute.xlu0 %5677  ;;  %v5995_v61 = vpack.c.bf16 %v5710_v30, %v5709_v55 }
 0x61a   :  { %v5711_v26 = vsel %vm910_vm4, %v5615_v2, %v5678_v60 }
 0x61b   :  { %5780 = vst [vmem:[#allocation2 + $0x79] sm:$0xff] %v5711_v26  ;;  %v5680_v45 = vpop.permute.xlu1 %5679 }
 0x61c   :  { %v5712_v48 = vsel %vm910_vm4, %v5616_v9, %v5680_v45  ;;  %vm7990_vm4 = vcmask 1041409  }
 0x61d   :  { %5781 = vst [vmem:[#allocation2 + $0x81] sm:$0xff] %v5712_v48  ;;  %v5996_v3 = vpack.c.bf16 %v5712_v48, %v5711_v26 }
 0x61e   :  { %v5794_v37 = vld [vmem:[#allocation2 + $0x68] sm:$0xff] }
 0x620   :  { %v5795_v46 = vld [vmem:[#allocation2 + $0x70] sm:$0xff] }
 0x621   :  { %v5804_v43 = vpack.c.bf16 %v5795_v46, %v5794_v37  ;;  %v6170_v36 = vld [vmem:[#allocation2 + $0x6a] sm:$0xff] }
 0x622   :  { %v5796_v12 = vld [vmem:[#allocation2 + $0x78] sm:$0xff] }
 0x623   :  { %15265 = vmatprep.mubr.bf16.mxu1 %v5804_v43  ;;  %v6171_v22 = vld [vmem:[#allocation2 + $0x72] sm:$0xff] }
 0x624   :  { %v5797_v52 = vld [vmem:[#allocation2 + $0x80] sm:$0xff] }
 0x625   :  { %v20612_v1 = vld [vmem:[#allocation2 + $0x82] sm:$0xff]  ;;  %v5805_v16 = vpack.c.bf16 %v5797_v52, %v5796_v12  ;;  %v6172_v40 = vld [vmem:[#allocation2 + $0x7a] sm:$0xff] }
 0x626   :  { %6413 = vst [vmem:[#allocation2 + $0x89] sm:$0x1] %v21946_v53  ;;  %v6181_v7 = vpack.c.bf16 %v20612_v1, %v6172_v40 }
 0x627   :  { %15266 = vmatmul.mubr.bf16.gmra.mrb[44].mxu1 %v5805_v16 }
 0x628   :  { %15285 = vmatprep.mubr.bf16.mxu1 %v5989_v28  ;;  %v6163_v28 = vld [vmem:[#allocation2 + $0x2a] sm:$0xff] }
 0x62f   :  { %15286 = vmatmul.mubr.bf16.vlgmr.msra.gmra.mrb[32].mxu1 %v5990_v47  ;;  %v6160_v47 = vld [vmem:[#allocation2 + $0x12] sm:$0xff] }
 0x630   :  { %15289 = vmatprep.mubr.bf16.mxu1 %v5991_v56  ;;  %15302 = vmatpush3.bf16.msra.mxu1 %v20569_v13  ;;  %v6175_v56 = vpack.c.bf16 %v6161_v0, %v6160_v47 }
 0x631   :  { %15303 = vmatprep.subr.bf16.mxu1 %v16527_v6 }
 0x634   :  { %15304 = vmatpush3.bf16.msra.mxu1 %v16527_v6 }
 0x635   :  { %15305 = vmatprep.subr.bf16.mxu1 %v16528_v24 }
 0x637   :  { %15290 = vmatmul.mubr.bf16.gmra.mrb[36].mxu1 %v5992_v25  ;;  %v6162_v25 = vld [vmem:[#allocation2 + $0x22] sm:$0xff] }
 0x638   :  { %15293 = vmatprep.mubr.bf16.mxu1 %v5993_v59  ;;  %15306 = vmatpush3.bf16.msra.mxu1 %v16528_v24  ;;  %v6176_v13 = vpack.c.bf16 %v6163_v28, %v6162_v25  ;;  %v6169_v59 = vld [vmem:[#allocation2 + $0x62] sm:$0xff] }
 0x639   :  { %15307 = vmatprep.subr.bf16.mxu1 %v16529_v19  ;;  %v6179_v34 = vpack.c.bf16 %v6169_v59, %v6168_v23 }
 0x63c   :  { %15308 = vmatpush3.bf16.msra.mxu1 %v16529_v19 }
 0x63d   :  { %15309 = vmatprep.subr.bf16.mxu1 %v16530_v35 }
 0x63f   :  { %15294 = vmatmul.mubr.bf16.gmra.mrb[40].mxu1 %v5994_v11  ;;  %v6180_v11 = vpack.c.bf16 %v6171_v22, %v6170_v36 }
 0x640   :  { %15297 = vmatprep.mubr.bf16.mxu1 %v5995_v61  ;;  %15310 = vmatpush3.bf16.msra.mxu1 %v16530_v35 }
 0x641   :  { %15311 = vmatprep.subr.bf16.mxu1 %v16531_v63 }
 0x644   :  { %15312 = vmatpush3.bf16.msra.mxu1 %v16531_v63 }
 0x645   :  { %15313 = vmatprep.subr.bf16.mxu1 %v16532_v51 }
 0x647   :  { %15298 = vmatmul.mubr.bf16.gmra.mrb[44].mxu1 %v5996_v3 }
 0x648   :  { %15314 = vmatpush3.bf16.msra.mxu1 %v16532_v51  ;;  %15317 = vmatprep.mubr.bf16.mxu1 %v6174_v15  ;;  %v16543_v15 = vld [vmem:[#allocation14 + $0x108] sm:$0xff]  }
 0x649   :  { %15315 = vmatprep.subr.bf16.mxu1 %v16533_v58 }
 0x64c   :  { %15316 = vmatpush3.bf16.msra.mxu1 %v16533_v58 }
 0x64f   :  { %15318 = vmatmul.mubr.bf16.vlgmr.msra.gmra.mrb[32].mxu1 %v6175_v56 }
 0x650   :  { %15321 = vmatprep.mubr.bf16.mxu1 %v6176_v13 }
 0x657   :  { %15322 = vmatmul.mubr.bf16.gmra.mrb[36].mxu1 %v6177_v54  ;;  %v16544_v54 = vld [vmem:[#allocation14 + $0x110] sm:$0xff]  }
 0x658   :  { %15325 = vmatprep.mubr.bf16.mxu1 %v6178_v27 }
 0x65f   :  { %15326 = vmatmul.mubr.bf16.gmra.mrb[40].mxu1 %v6179_v34 }
 0x660   :  { %15329 = vmatprep.mubr.bf16.mxu1 %v6180_v11 }
 0x667   :  { %15330 = vmatmul.mubr.bf16.gmra.mrb[44].mxu1 %v6181_v7 }
 0x722   :  { %v15319_v62 = vpop.f32.mrb[32].mxu1 }
 0x723   :  { %v16037_v50 = vadd.f32 %v15319_v62, %v20636_v17  ;;  %v6264_v41 = vpop.f32.mrb[33].mxu1 }
 0x724   :  { %v16038_v4 = vadd.f32 %v20636_v17, %v6264_v41  ;;  %v15320_v8 = vpop.f32.mrb[34].mxu1 }
 0x725   :  { %v6345_v14 = vmax.f32 %v16037_v50, 0.0  ;;  %v16039_v20 = vadd.f32 %v15320_v8, %v20636_v17  ;;  %v6267_v38 = vpop.f32.mrb[35].mxu1 }
 0x726   :  { %v6343_v49 = vmax.f32 %v16038_v4, 0.0  ;;  %v16040_v39 = vadd.f32 %v20636_v17, %v6267_v38 }
 0x727   :  { %6416 = vst [vmem:[#allocation2 + $0x11] sm:$0xff] %v6345_v14  ;;  %v6346_v55 = vmax.f32 %v16039_v20, 0.0 }
 0x728   :  { %6414 = vst [vmem:[#allocation2 + $0x1] sm:$0xff] %v6343_v49  ;;  %v6344_v44 = vmax.f32 %v16040_v39, 0.0 }
 0x729   :  { %6417 = vst [vmem:[#allocation2 + $0x19] sm:$0xff] %v6346_v55  ;;  %v20642_v2 = vpack.c.bf16 %v6346_v55, %v6345_v14 }
 0x72a   :  { %6415 = vst [vmem:[#allocation2 + $0x9] sm:$0xff] %v6344_v44  ;;  %v15323_v30 = vpop.f32.mrb[36].mxu1  ;;  %v20644_v60 = vpack.c.bf16 %v6344_v44, %v6343_v49  ;;  %v16546_v49 = vld [vmem:[#allocation14 + $0x120] sm:$0xff]  }
 0x72b   :  { %v16041_v61 = vadd.f32 %v15323_v30, %v20636_v17  ;;  %v6280_v9 = vpop.f32.mrb[37].mxu1 }
 0x72c   :  { %v16042_v26 = vadd.f32 %v20636_v17, %v6280_v9  ;;  %v15324_v45 = vpop.f32.mrb[38].mxu1 }
 0x72d   :  { %v6349_v48 = vmax.f32 %v16041_v61, 0.0  ;;  %v16043_v3 = vadd.f32 %v15324_v45, %v20636_v17  ;;  %v6283_v37 = vpop.f32.mrb[39].mxu1  ;;  %v16547_v45 = vld [vmem:[#allocation14 + $0x128] sm:$0xff]  }
 0x72e   :  { %v6347_v46 = vmax.f32 %v16042_v26, 0.0  ;;  %v16044_v43 = vadd.f32 %v20636_v17, %v6283_v37 }
 0x72f   :  { %6420 = vst [vmem:[#allocation2 + $0x31] sm:$0xff] %v6349_v48  ;;  %v6350_v12 = vmax.f32 %v16043_v3, 0.0  ;;  %v6430_v52 = vld [vmem:[#allocation2] sm:$0xff]  ;;  %v16548_v3 = vld [vmem:[#allocation14 + $0x130] sm:$0xff]  }
 0x730   :  { %6418 = vst [vmem:[#allocation2 + $0x21] sm:$0xff] %v6347_v46  ;;  %v6348_v1 = vmax.f32 %v16044_v43, 0.0  ;;  %7666 = vst [vmem:[#allocation2] sm:$0x1] %v21946_v53  ;;  %v6433_v16 = vld [vmem:[#allocation2 + $0x18] sm:$0xff] }
 0x731   :  { %6421 = vst [vmem:[#allocation2 + $0x39] sm:$0xff] %v6350_v12  ;;  %v6431_v6 = vld [vmem:[#allocation2 + $0x8] sm:$0xff]  ;;  %v6432_v24 = vld [vmem:[#allocation2 + $0x10] sm:$0xff]  ;;  %v20651_v19 = vpack.c.bf16 %v6350_v12, %v6349_v48 }
 0x732   :  { %6419 = vst [vmem:[#allocation2 + $0x29] sm:$0xff] %v6348_v1  ;;  %v15327_v35 = vpop.f32.mrb[40].mxu1  ;;  %v6446_v63 = vpack.c.bf16 %v6431_v6, %v6430_v52  ;;  %v6447_v51 = vpack.c.bf16 %v6433_v16, %v6432_v24  ;;  %v20653_v21 = vpack.c.bf16 %v6348_v1, %v6347_v46  ;;  %v16549_v16 = vld [vmem:[#allocation14 + $0x138] sm:$0xff]   ;;  %v16550_v6 = vld [vmem:[#allocation14 + $0x140] sm:$0xff]   ;;  %v16551_v24 = vld [vmem:[#allocation14 + $0x148] sm:$0xff]  }
 0x733   :  { %v16045_v10 = vadd.f32 %v15327_v35, %v20636_v17  ;;  %v6296_v58 = vpop.f32.mrb[41].mxu1  ;;  %v16552_v35 = vld [vmem:[#allocation14 + $0x150] sm:$0xff]  }
 0x734   :  { %v16046_v0 = vadd.f32 %v20636_v17, %v6296_v58  ;;  %v15328_v28 = vpop.f32.mrb[42].mxu1  ;;  %15349 = vmatprep.mubr.bf16.mxu0 %v6446_v63  ;;  %v16553_v63 = vld [vmem:[#allocation14 + $0x158] sm:$0xff]  }
 0x735   :  { %v6353_v47 = vmax.f32 %v16045_v10, 0.0  ;;  %v16047_v56 = vadd.f32 %v15328_v28, %v20636_v17  ;;  %v6299_v25 = vpop.f32.mrb[43].mxu1  ;;  %15350 = vmatmul.mubr.bf16.vlgmr.msra.gmra.mrb[48].mxu0 %v6447_v51  ;;  %v16555_v51 = vld [vmem:[#allocation14 + $0x168] sm:$0xff]   ;;  %v16557_v58 = vld [vmem:[#allocation14 + $0x178] sm:$0xff]   ;;  %v6808_v28 = vld [vmem:[#allocation2 + $0x12] sm:$0xff] }
 0x736   :  { %v6351_v13 = vmax.f32 %v16046_v0, 0.0  ;;  %v16048_v31 = vadd.f32 %v20636_v17, %v6299_v25  ;;  %15366 = vmatpush3.bf16.msra.mxu0 %v16542_v33  ;;  %v6807_v10 = vld [vmem:[#allocation2 + $0xa] sm:$0xff] }
 0x737   :  { %6424 = vst [vmem:[#allocation2 + $0x59] sm:$0xff] %v6353_v47  ;;  %v6354_v32 = vmax.f32 %v16047_v56, 0.0  ;;  %15367 = vmatprep.subr.bf16.mxu0 %v16543_v15  ;;  %v6434_v57 = vld [vmem:[#allocation2 + $0x20] sm:$0xff] }
 0x738   :  { %v20659_v27 = vld [vmem:[#allocation2 + $0x1a] sm:$0xff]  ;;  %6422 = vst [vmem:[#allocation2 + $0x49] sm:$0xff] %v6351_v13  ;;  %v6352_v59 = vmax.f32 %v16048_v31, 0.0  ;;  %v6812_v25 = vld [vmem:[#allocation2 + $0x32] sm:$0xff] }
 0x739   :  { %v6437_v22 = vld [vmem:[#allocation2 + $0x38] sm:$0xff]  ;;  %7668 = vst [vmem:[#allocation2 + $0x21] sm:$0x1] %v21946_v53  ;;  %6425 = vst [vmem:[#allocation2 + $0x61] sm:$0xff] %v6354_v32  ;;  %v6435_v23 = vld [vmem:[#allocation2 + $0x28] sm:$0xff]  ;;  %v20662_v36 = vpack.c.bf16 %v6354_v32, %v6353_v47  ;;  %v6823_v47 = vpack.c.bf16 %v20659_v27, %v6808_v28 }
 0x73a   :  { %v6436_v34 = vld [vmem:[#allocation2 + $0x30] sm:$0xff]  ;;  %6423 = vst [vmem:[#allocation2 + $0x51] sm:$0xff] %v6352_v59  ;;  %v15331_v11 = vpop.f32.mrb[44].mxu1  ;;  %15368 = vmatpush3.bf16.msra.mxu0 %v16543_v15  ;;  %v6448_v40 = vpack.c.bf16 %v6435_v23, %v6434_v57  ;;  %v20664_v42 = vpack.c.bf16 %v6352_v59, %v6351_v13  ;;  %v6810_v15 = vld [vmem:[#allocation2 + $0x22] sm:$0xff]  ;;  %v6813_v13 = vld [vmem:[#allocation2 + $0x3a] sm:$0xff] }
 0x73b   :  { %v6449_v7 = vpack.c.bf16 %v6437_v22, %v6436_v34  ;;  %v16049_v29 = vadd.f32 %v15331_v11, %v20636_v17  ;;  %v6312_v5 = vpop.f32.mrb[45].mxu1  ;;  %15369 = vmatprep.subr.bf16.mxu0 %v16544_v54  ;;  %v6811_v0 = vld [vmem:[#allocation2 + $0x2a] sm:$0xff]  ;;  %v6825_v57 = vpack.c.bf16 %v6813_v13, %v6812_v25 }
 0x73c   :  { %v16050_v33 = vadd.f32 %v20636_v17, %v6312_v5  ;;  %v15332_v62 = vpop.f32.mrb[46].mxu1  ;;  %15353 = vmatprep.mubr.bf16.mxu0 %v6448_v40  ;;  %v6824_v56 = vpack.c.bf16 %v6811_v0, %v6810_v15  ;;  %v16561_v5 = vld [vmem:[#allocation14 + $0x198] sm:$0xff]  }
 0x73d   :  { %v6357_v50 = vmax.f32 %v16049_v29, 0.0  ;;  %v16051_v41 = vadd.f32 %v15332_v62, %v20636_v17  ;;  %v6315_v4 = vpop.f32.mrb[47].mxu1  ;;  %15354 = vmatmul.mubr.bf16.gmra.mrb[52].mxu0 %v6449_v7  ;;  %v16558_v7 = vld [vmem:[#allocation14 + $0x180] sm:$0xff]   ;;  %v16560_v29 = vld [vmem:[#allocation14 + $0x190] sm:$0xff]  }
 0x73e   :  { %v6355_v8 = vmax.f32 %v16050_v33, 0.0  ;;  %v16052_v14 = vadd.f32 %v20636_v17, %v6315_v4  ;;  %15370 = vmatpush3.bf16.msra.mxu0 %v16544_v54  ;;  %15429 = vmatprep.subr.bf16.mxu1 %v16558_v7  ;;  %v16563_v33 = vld [vmem:[#allocation14 + $0x1a8] sm:$0xff]   ;;  %v16564_v62 = vld [vmem:[#allocation14 + $0x1b0] sm:$0xff]   ;;  %v17472_v4 = vmov 1983009808  }
 0x73f   :  { %6428 = vst [vmem:[#allocation2 + $0x79] sm:$0xff] %v6357_v50  ;;  %v6358_v20 = vmax.f32 %v16051_v41, 0.0  ;;  %15371 = vmatprep.subr.bf16.mxu0 %v16545_v18  ;;  %v6438_v38 = vld [vmem:[#allocation2 + $0x48] sm:$0xff]  ;;  %15430 = vmatpush3.bf16.msra.mxu1 %v16558_v7 }
 0x740   :  { %6426 = vst [vmem:[#allocation2 + $0x69] sm:$0xff] %v6355_v8  ;;  %v6356_v39 = vmax.f32 %v16052_v14, 0.0  ;;  %7667 = vst [vmem:[#allocation2 + $0x48] sm:$0x1] %v21946_v53  ;;  %v6441_v55 = vld [vmem:[#allocation2 + $0x60] sm:$0xff]  ;;  %v7027_v14 = vlaneseq }
 0x741   :  { %6429 = vst [vmem:[#allocation2 + $0x81] sm:$0xff] %v6358_v20  ;;  %v6439_v44 = vld [vmem:[#allocation2 + $0x50] sm:$0xff]  ;;  %v6440_v30 = vld [vmem:[#allocation2 + $0x58] sm:$0xff]  ;;  %v6644_v61 = vpack.c.bf16 %v6358_v20, %v6357_v50  ;;  %v20682_v41 = vld [vmem:[#allocation14 + $0x1c0] sm:$0xff]  }
 0x742   :  { %6427 = vst [vmem:[#allocation2 + $0x71] sm:$0xff] %v6356_v39  ;;  %15372 = vmatpush3.bf16.msra.mxu0 %v16545_v18  ;;  %v6450_v9 = vpack.c.bf16 %v6439_v44, %v6438_v38  ;;  %v6451_v26 = vpack.c.bf16 %v6441_v55, %v6440_v30  ;;  %v6643_v17 = vpack.c.bf16 %v6356_v39, %v6355_v8  ;;  %v6814_v31 = vld [vmem:[#allocation2 + $0x4a] sm:$0xff]  ;;  %v6815_v32 = vld [vmem:[#allocation2 + $0x52] sm:$0xff]  ;;  %v6816_v23 = vld [vmem:[#allocation2 + $0x5a] sm:$0xff]  ;;  %v7025_v8 = vunpack.c.l.s4 %v17472_v4 }
 0x743   :  { %15373 = vmatprep.subr.bf16.mxu0 %v16546_v49  ;;  %v6826_v54 = vpack.c.bf16 %v6815_v32, %v6814_v31  ;;  %v16562_v18 = vld [vmem:[#allocation14 + $0x1a0] sm:$0xff]   ;;  %v16565_v50 = vld [vmem:[#allocation14 + $0x1b8] sm:$0xff]   ;;  %v20686_v38 = vshrl.u32 %v7027_v14, 7 }
 0x744   :  { %15357 = vmatprep.mubr.bf16.mxu0 %v6450_v9  ;;  %v7026_v20 = vunpack.c.0.s8 %v7025_v8 }
 0x745   :  { %15358 = vmatmul.mubr.bf16.gmra.mrb[56].mxu0 %v6451_v26 }
 0x746   :  { %15374 = vmatpush3.bf16.msra.mxu0 %v16546_v49  ;;  %v20688_v49 = vld [vmem:[#allocation16 + $0x1] ss:$0 sm:$0xff]  ;;  %v20692_v44 = vsub.s32 %v7026_v20, %v20686_v38 }
 0x747   :  { %15375 = vmatprep.subr.bf16.mxu0 %v16547_v45  ;;  %v6442_v48 = vld [vmem:[#allocation2 + $0x68] sm:$0xff] }
 0x748   :  { %v20671_v37 = vld [vmem:[#allocation2 + $0x62] sm:$0xff]  ;;  %v6820_v27 = vld [vmem:[#allocation2 + $0x7a] sm:$0xff] }
 0x749   :  { %v6445_v46 = vld [vmem:[#allocation2 + $0x80] sm:$0xff]  ;;  %7669 = vst [vmem:[#allocation2 + $0x69] sm:$0x1] %v21946_v53  ;;  %v6443_v43 = vld [vmem:[#allocation2 + $0x70] sm:$0xff]  ;;  %v6444_v12 = vld [vmem:[#allocation2 + $0x78] sm:$0xff]  ;;  %v6827_v34 = vpack.c.bf16 %v20671_v37, %v6816_v23 }
 0x74a   :  { %15376 = vmatpush3.bf16.msra.mxu0 %v16547_v45  ;;  %v6452_v52 = vpack.c.bf16 %v6443_v43, %v6442_v48  ;;  %v6453_v1 = vpack.c.bf16 %v6445_v46, %v6444_v12  ;;  %v6818_v59 = vld [vmem:[#allocation2 + $0x6a] sm:$0xff]  ;;  %v6819_v22 = vld [vmem:[#allocation2 + $0x72] sm:$0xff]  ;;  %v6821_v11 = vld [vmem:[#allocation2 + $0x82] sm:$0xff]  ;;  %v20697_v48 = vsub.s32 0, %v20686_v38 }
 0x74b   :  { %15377 = vmatprep.subr.bf16.mxu0 %v16548_v3  ;;  %v6829_v40 = vpack.c.bf16 %v6821_v11, %v6820_v27 }
 0x74c   :  { %15361 = vmatprep.mubr.bf16.mxu0 %v6452_v52 }
 0x74d   :  { %15362 = vmatmul.mubr.bf16.gmra.mrb[60].mxu0 %v6453_v1 }
 0x74e   :  { %15378 = vmatpush3.bf16.msra.mxu0 %v16548_v3  ;;  %15381 = vmatprep.mubr.bf16.mxu0 %v20644_v60  ;;  %v16554_v60 = vld [vmem:[#allocation14 + $0x160] sm:$0xff]  }
 0x74f   :  { %15379 = vmatprep.subr.bf16.mxu0 %v16549_v16 }
 0x752   :  { %15380 = vmatpush3.bf16.msra.mxu0 %v16549_v16 }
 0x753   :  { %15397 = vmatprep.subr.bf16.mxu0 %v16550_v6 }
 0x755   :  { %15382 = vmatmul.mubr.bf16.vlgmr.msra.gmra.mrb[48].mxu0 %v20642_v2  ;;  %v16556_v2 = vld [vmem:[#allocation14 + $0x170] sm:$0xff]  }
 0x756   :  { %15385 = vmatprep.mubr.bf16.mxu0 %v20653_v21  ;;  %15398 = vmatpush3.bf16.msra.mxu0 %v16550_v6  ;;  %v6806_v21 = vld [vmem:[#allocation2 + $0x2] sm:$0xff] }
 0x757   :  { %15399 = vmatprep.subr.bf16.mxu0 %v16551_v24 }
 0x75a   :  { %15400 = vmatpush3.bf16.msra.mxu0 %v16551_v24 }
 0x75b   :  { %15401 = vmatprep.subr.bf16.mxu0 %v16552_v35 }
 0x75d   :  { %15386 = vmatmul.mubr.bf16.gmra.mrb[52].mxu0 %v20651_v19  ;;  %v6822_v19 = vpack.c.bf16 %v6807_v10, %v6806_v21 }
 0x75e   :  { %15389 = vmatprep.mubr.bf16.mxu0 %v20664_v42  ;;  %15402 = vmatpush3.bf16.msra.mxu0 %v16552_v35  ;;  %v16559_v42 = vld [vmem:[#allocation14 + $0x188] sm:$0xff]  }
 0x75f   :  { %15403 = vmatprep.subr.bf16.mxu0 %v16553_v63  ;;  %15431 = vmatprep.subr.bf16.mxu1 %v16559_v42 }
 0x760   :  { %15432 = vmatpush3.bf16.msra.mxu1 %v16559_v42 }
 0x761   :  { %15433 = vmatprep.subr.bf16.mxu1 %v16560_v29 }
 0x762   :  { %15404 = vmatpush3.bf16.msra.mxu0 %v16553_v63 }
 0x763   :  { %15405 = vmatprep.subr.bf16.mxu0 %v16554_v60 }
 0x764   :  { %15434 = vmatpush3.bf16.msra.mxu1 %v16560_v29 }
 0x765   :  { %15390 = vmatmul.mubr.bf16.gmra.mrb[56].mxu0 %v20662_v36  ;;  %v6828_v36 = vpack.c.bf16 %v6819_v22, %v6818_v59  ;;  %15435 = vmatprep.subr.bf16.mxu1 %v16561_v5 }
 0x766   :  { %15393 = vmatprep.mubr.bf16.mxu0 %v6643_v17  ;;  %15406 = vmatpush3.bf16.msra.mxu0 %v16554_v60 }
 0x767   :  { %15407 = vmatprep.subr.bf16.mxu0 %v16555_v51 }
 0x768   :  { %15436 = vmatpush3.bf16.msra.mxu1 %v16561_v5 }
 0x769   :  { %15437 = vmatprep.subr.bf16.mxu1 %v16562_v18 }
 0x76a   :  { %15408 = vmatpush3.bf16.msra.mxu0 %v16555_v51 }
 0x76b   :  { %15409 = vmatprep.subr.bf16.mxu0 %v16556_v2 }
 0x76c   :  { %15438 = vmatpush3.bf16.msra.mxu1 %v16562_v18 }
 0x76d   :  { %15394 = vmatmul.mubr.bf16.gmra.mrb[60].mxu0 %v6644_v61  ;;  %15439 = vmatprep.subr.bf16.mxu1 %v16563_v33 }
 0x76e   :  { %15410 = vmatpush3.bf16.msra.mxu0 %v16556_v2  ;;  %15413 = vmatprep.mubr.bf16.mxu0 %v6822_v19 }
 0x76f   :  { %15411 = vmatprep.subr.bf16.mxu0 %v16557_v58 }
 0x770   :  { %15440 = vmatpush3.bf16.msra.mxu1 %v16563_v33 }
 0x771   :  { %15441 = vmatprep.subr.bf16.mxu1 %v16564_v62 }
 0x772   :  { %15412 = vmatpush3.bf16.msra.mxu0 %v16557_v58 }
 0x774   :  { %15442 = vmatpush3.bf16.msra.mxu1 %v16564_v62 }
 0x775   :  { %15414 = vmatmul.mubr.bf16.vlgmr.msra.gmra.mrb[48].mxu0 %v6823_v47  ;;  %15443 = vmatprep.subr.bf16.mxu1 %v16565_v50 }
 0x776   :  { %15417 = vmatprep.mubr.bf16.mxu0 %v6824_v56 }
 0x778   :  { %15444 = vmatpush3.bf16.msra.mxu1 %v16565_v50 }
 0x779   :  { %15453 = vmatprep.subr.bf16.mxu1 %v20682_v41 }
 0x77d   :  { %15418 = vmatmul.mubr.bf16.gmra.mrb[52].mxu0 %v6825_v57 }
 0x77e   :  { %15421 = vmatprep.mubr.bf16.mxu0 %v6826_v54 }
 0x785   :  { %15422 = vmatmul.mubr.bf16.gmra.mrb[56].mxu0 %v6827_v34 }
 0x786   :  { %15425 = vmatprep.mubr.bf16.mxu0 %v6828_v36 }
 0x78d   :  { %15426 = vmatmul.mubr.bf16.gmra.mrb[60].mxu0 %v6829_v40 }
 0x848   :  { %v15415_v39 = vpop.f32.mrb[48].mxu0 }
 0x849   :  { %v16053_v55 = vadd.f32 %v15415_v39, %v20688_v49  ;;  %v6912_v30 = vpop.f32.mrb[49].mxu0 }
 0x84a   :  { %v16054_v61 = vadd.f32 %v20688_v49, %v6912_v30  ;;  %v15416_v9 = vpop.f32.mrb[50].mxu0 }
 0x84b   :  { %v6993_v26 = vmax.f32 %v16053_v55, 0.0  ;;  %v16055_v17 = vadd.f32 %v15416_v9, %v20688_v49  ;;  %v6915_v45 = vpop.f32.mrb[51].mxu0 }
 0x84c   :  { %v6991_v3 = vmax.f32 %v16054_v61, 0.0  ;;  %v16056_v37 = vadd.f32 %v20688_v49, %v6915_v45 }
 0x84d   :  { %v7057_v46 = vcombine.high %v6993_v26, %v6993_v26  ;;  %v7064_v43 = vrot.slane %v6993_v26, %v20692_v44  ;;  %v6994_v12 = vmax.f32 %v16055_v17, 0.0 }
 0x84e   :  { %v7023_v52 = vcombine.high %v6991_v3, %v6991_v3  ;;  %v7030_v1 = vrot.slane %v6991_v3, %v20692_v44  ;;  %v20702_v16 = vmax.f32 %v16056_v37, 0.0 }
 0x84f   :  { %v7071_v6 = vrot.slane %v7057_v46, %v20692_v44  ;;  %v7072_v24 = vcombine.high %v7064_v43, %v7064_v43  ;;  %v14117_v35 = vrot.slane %v7064_v43, 9  ;;  %v7074_v63 = vcombine.high %v6994_v12, %v6994_v12 }
 0x850   :  { %v7037_v60 = vrot.slane %v7023_v52, %v20692_v44  ;;  %v7038_v51 = vcombine.high %v7030_v1, %v7030_v1  ;;  %v14109_v2 = vrot.slane %v7030_v1, 9  ;;  %v7081_v21 = vrot.slane %v6994_v12, %v20692_v44  ;;  %v20707_v10 = vpop.f32.mrb[52].mxu0 }
 0x851   :  { %v7073_v58 = vcombine.high %v7071_v6, %v7071_v6  ;;  %v14118_v19 = vrot.slane %v7072_v24, 9  ;;  %v14119_v15 = vrot.slane %v7071_v6, 9  ;;  %v7559_v0 = vmax.f32 %v7064_v43, %v14117_v35  ;;  %v20709_v28 = vpop.f32.mrb[53].mxu0 }
 0x852   :  { %v7039_v47 = vcombine.high %v7037_v60, %v7037_v60  ;;  %v14110_v56 = vrot.slane %v7038_v51, 9  ;;  %v14111_v25 = vrot.slane %v7037_v60, 9  ;;  %v7551_v13 = vmax.f32 %v7030_v1, %v14109_v2  ;;  %v20711_v31 = vpop.f32.mrb[54].mxu0 }
 0x853   :  { %v14120_v32 = vrot.slane %v7073_v58, 9  ;;  %v7560_v57 = vmax.f32 %v7072_v24, %v14118_v19  ;;  %v7561_v54 = vmax.f32 %v7071_v6, %v14119_v15  ;;  %v7769_v59 = vrot.slane %v7559_v0, %v20697_v48  ;;  %v20714_v22 = vpop.f32.mrb[55].mxu0 }
 0x854   :  { %v14112_v23 = vrot.slane %v7039_v47, 9  ;;  %v7552_v34 = vmax.f32 %v7038_v51, %v14110_v56  ;;  %v7553_v36 = vmax.f32 %v7037_v60, %v14111_v25  ;;  %v7737_v27 = vrot.slane %v7551_v13, %v20697_v48 }
 0x855   :  { %v7562_v11 = vmax.f32 %v7073_v58, %v14120_v32  ;;  %v7773_v40 = vrot.slane %v7560_v57, %v20697_v48  ;;  %v7777_v7 = vrot.slane %v7561_v54, %v20697_v48  ;;  %v7088_v42 = vrot.slane %v7074_v63, %v20692_v44 }
 0x856   :  { %v7554_v29 = vmax.f32 %v7039_v47, %v14112_v23  ;;  %v7741_v5 = vrot.slane %v7552_v34, %v20697_v48  ;;  %v7745_v18 = vrot.slane %v7553_v36, %v20697_v48  ;;  %v7089_v33 = vcombine.high %v7081_v21, %v7081_v21 }
 0x857   :  { %v7781_v62 = vrot.slane %v7562_v11, %v20697_v48  ;;  %v8004_v50 = vsel %vm7990_vm4, %v7773_v40, %v7769_v59  ;;  %v7090_v4 = vcombine.high %v7088_v42, %v7088_v42  ;;  %v14121_v8 = vrot.slane %v7081_v21, 9 }
 0x858   :  { %v8005_v20 = vsel %vm7992_vm3, %v7777_v7, %v8004_v50  ;;  %v7749_v39 = vrot.slane %v7554_v29, %v20697_v48  ;;  %v7991_v55 = vsel %vm7990_vm4, %v7741_v5, %v7737_v27  ;;  %v14122_v30 = vrot.slane %v7089_v33, 9  ;;  %v20727_v61 = vpop.f32.mrb[56].mxu0 }
 0x859   :  { %v7993_v9 = vsel %vm7992_vm3, %v7745_v18, %v7991_v55  ;;  %v14123_v26 = vrot.slane %v7088_v42, 9  ;;  %v14124_v17 = vrot.slane %v7090_v4, 9  ;;  %v7563_v45 = vmax.f32 %v7081_v21, %v14121_v8  ;;  %v20730_v3 = vpop.f32.mrb[57].mxu0 }
 0x85a   :  { %v7564_v37 = vmax.f32 %v7089_v33, %v14122_v30  ;;  %v8006_v46 = vsel %vm7994_vm11, %v7781_v62, %v8005_v20  ;;  %v7040_v43 = vcombine.high %v20702_v16, %v20702_v16  ;;  %v7047_v12 = vrot.slane %v20702_v16, %v20692_v44  ;;  %v20737_v52 = vpop.f32.mrb[58].mxu0 }
 0x85b   :  { %v7565_v1 = vmax.f32 %v7088_v42, %v14123_v26  ;;  %v7566_v6 = vmax.f32 %v7090_v4, %v14124_v17  ;;  %v7785_v24 = vrot.slane %v7563_v45, %v20697_v48  ;;  %v7995_v35 = vsel %vm7994_vm11, %v7749_v39, %v7993_v9  ;;  %v20741_v63 = vpop.f32.mrb[59].mxu0 }
 0x85c   :  { %v7789_v60 = vrot.slane %v7564_v37, %v20697_v48  ;;  %v7054_v51 = vrot.slane %v7040_v43, %v20692_v44  ;;  %v7055_v2 = vcombine.high %v7047_v12, %v7047_v12  ;;  %v14113_v21 = vrot.slane %v7047_v12, 9 }
 0x85d   :  { %v7793_v58 = vrot.slane %v7565_v1, %v20697_v48  ;;  %v7797_v16 = vrot.slane %v7566_v6, %v20697_v48  ;;  %v8007_v19 = vsel %vm7996_vm12, %v7785_v24, %v8006_v46  ;;  %v16057_v15 = vadd.f32 %v20707_v10, %v20688_v49  ;;  %v16582_v1 = vld [vmem:[#allocation14 + $0x240] sm:$0xff]   ;;  %v16583_v6 = vld [vmem:[#allocation14 + $0x248] sm:$0xff]  }
 0x85e   :  { %v8008_v0 = vsel %vm7998_vm13, %v7789_v60, %v8007_v19  ;;  %v7056_v47 = vcombine.high %v7054_v51, %v7054_v51  ;;  %v14114_v56 = vrot.slane %v7055_v2, 9  ;;  %v14115_v25 = vrot.slane %v7054_v51, 9  ;;  %15501 = vmatprep.subr.bf16.mxu0 %v16582_v1 }
 0x85f   :  { %v8009_v13 = vsel %vm8000_vm9, %v7793_v58, %v8008_v0  ;;  %v7555_v32 = vmax.f32 %v7047_v12, %v14113_v21  ;;  %v6997_v57 = vmax.f32 %v16057_v15, 0.0  ;;  %v16058_v54 = vadd.f32 %v20688_v49, %v20709_v28  ;;  %15502 = vmatpush3.bf16.msra.mxu0 %v16582_v1 }
 0x860   :  { %v20755_v59 = vsel %vm8002_vm6, %v7797_v16, %v8009_v13  ;;  %v14116_v23 = vrot.slane %v7056_v47, 9  ;;  %v7556_v34 = vmax.f32 %v7055_v2, %v14114_v56  ;;  %v7557_v36 = vmax.f32 %v7054_v51, %v14115_v25  ;;  %v20757_v27 = vpop.f32.mrb[60].mxu0  ;;  %15503 = vmatprep.subr.bf16.mxu0 %v16583_v6 }
 0x861   :  { %8062 = vst [vmem:[#allocation2 + $0x9] sm:$0xff] %v20755_v59  ;;  %v7753_v10 = vrot.slane %v7555_v32, %v20697_v48  ;;  %v7125_v11 = vcombine.high %v6997_v57, %v6997_v57  ;;  %v7132_v40 = vrot.slane %v6997_v57, %v20692_v44  ;;  %v6995_v7 = vmax.f32 %v16058_v54, 0.0  ;;  %v20762_v42 = vpop.f32.mrb[61].mxu0  ;;  %v16584_v57 = vld [vmem:[#allocation14 + $0x250] sm:$0xff]  }
 0x862   :  { %v7558_v29 = vmax.f32 %v7056_v47, %v14116_v23  ;;  %v7757_v28 = vrot.slane %v7556_v34, %v20697_v48  ;;  %v7761_v5 = vrot.slane %v7557_v36, %v20697_v48  ;;  %v16059_v18 = vadd.f32 %v20711_v31, %v20688_v49  ;;  %v20768_v33 = vpop.f32.mrb[62].mxu0 }
 0x863   :  { %v7997_v62 = vsel %vm7996_vm12, %v7753_v10, %v7995_v35  ;;  %v7139_v50 = vrot.slane %v7125_v11, %v20692_v44  ;;  %v7140_v4 = vcombine.high %v7132_v40, %v7132_v40  ;;  %v14133_v8 = vrot.slane %v7132_v40, 9  ;;  %v20772_v20 = vpop.f32.mrb[63].mxu0  ;;  %15504 = vmatpush3.bf16.msra.mxu0 %v16583_v6 }
 0x864   :  { %v7765_v39 = vrot.slane %v7558_v29, %v20697_v48  ;;  %v7999_v55 = vsel %vm7998_vm13, %v7757_v28, %v7997_v62  ;;  %v7091_v30 = vcombine.high %v6995_v7, %v6995_v7  ;;  %v7098_v9 = vrot.slane %v6995_v7, %v20692_v44  ;;  %15505 = vmatprep.subr.bf16.mxu0 %v16584_v57 }
 0x865   :  { %v8001_v26 = vsel %vm8000_vm9, %v7761_v5, %v7999_v55  ;;  %v7141_v31 = vcombine.high %v7139_v50, %v7139_v50  ;;  %v14134_v17 = vrot.slane %v7140_v4, 9  ;;  %v14135_v45 = vrot.slane %v7139_v50, 9 }
 0x866   :  { %v20779_v37 = vsel %vm8002_vm6, %v7765_v39, %v8001_v26  ;;  %v7575_v46 = vmax.f32 %v7132_v40, %v14133_v8  ;;  %v7105_v43 = vrot.slane %v7091_v30, %v20692_v44  ;;  %v7106_v12 = vcombine.high %v7098_v9, %v7098_v9  ;;  %v16585_v39 = vld [vmem:[#allocation14 + $0x258] sm:$0xff]  }
 0x867   :  { %8061 = vst [vmem:[#allocation2 + $0x1] sm:$0xff] %v20779_v37  ;;  %v14136_v24 = vrot.slane %v7141_v31, 9  ;;  %v7576_v35 = vmax.f32 %v7140_v4, %v14134_v17  ;;  %v7577_v60 = vmax.f32 %v7139_v50, %v14135_v45  ;;  %v14125_v51 = vrot.slane %v7098_v9, 9  ;;  %15506 = vmatpush3.bf16.msra.mxu0 %v16584_v57 }
 0x868   :  { %v7833_v2 = vrot.slane %v7575_v46, %v20697_v48  ;;  %v7107_v21 = vcombine.high %v7105_v43, %v7105_v43  ;;  %v14126_v58 = vrot.slane %v7106_v12, 9  ;;  %v14127_v16 = vrot.slane %v7105_v43, 9  ;;  %15507 = vmatprep.subr.bf16.mxu0 %v16585_v39 }
 0x869   :  { %v7578_v19 = vmax.f32 %v7141_v31, %v14136_v24  ;;  %v7837_v15 = vrot.slane %v7576_v35, %v20697_v48  ;;  %v7841_v0 = vrot.slane %v7577_v60, %v20697_v48  ;;  %v7567_v47 = vmax.f32 %v7098_v9, %v14125_v51 }
 0x86a   :  { %v14128_v56 = vrot.slane %v7107_v21, 9  ;;  %v7568_v25 = vmax.f32 %v7106_v12, %v14126_v58  ;;  %v7569_v13 = vmax.f32 %v7105_v43, %v14127_v16  ;;  %v6998_v32 = vmax.f32 %v16059_v18, 0.0 }
 0x86b   :  { %v7845_v54 = vrot.slane %v7578_v19, %v20697_v48  ;;  %v8018_v23 = vsel %vm7990_vm4, %v7837_v15, %v7833_v2  ;;  %v7801_v34 = vrot.slane %v7567_v47, %v20697_v48  ;;  %v16060_v36 = vadd.f32 %v20688_v49, %v20714_v22  ;;  %15508 = vmatpush3.bf16.msra.mxu0 %v16585_v39 }
 0x86c   :  { %v8019_v10 = vsel %vm7992_vm3, %v7841_v0, %v8018_v23  ;;  %v7570_v11 = vmax.f32 %v7107_v21, %v14128_v56  ;;  %v7805_v40 = vrot.slane %v7568_v25, %v20697_v48  ;;  %v7809_v7 = vrot.slane %v7569_v13, %v20697_v48 }
 0x86d   :  { %v7142_v29 = vcombine.high %v6998_v32, %v6998_v32  ;;  %v7149_v28 = vrot.slane %v6998_v32, %v20692_v44  ;;  %v8020_v5 = vsel %vm7994_vm11, %v7845_v54, %v8019_v10  ;;  %v6996_v18 = vmax.f32 %v16060_v36, 0.0 }
 0x86e   :  { %v7813_v62 = vrot.slane %v7570_v11, %v20697_v48  ;;  %v8011_v50 = vsel %vm7990_vm4, %v7805_v40, %v7801_v34  ;;  %v16061_v22 = vadd.f32 %v20727_v61, %v20688_v49  ;;  %v16062_v4 = vadd.f32 %v20688_v49, %v20730_v3  ;;  %v20802_v8 = vld [vmem:[#allocation2] sm:$0xff] }
 0x86f   :  { %v8012_v55 = vsel %vm7992_vm3, %v7809_v7, %v8011_v50  ;;  %v7156_v30 = vrot.slane %v7142_v29, %v20692_v44  ;;  %v7157_v9 = vcombine.high %v7149_v28, %v7149_v28  ;;  %v14137_v26 = vrot.slane %v7149_v28, 9  ;;  %8533 = vst [vmem:[#allocation2] sm:$0x1] %v21946_v53 }
 0x870   :  { %v7108_v31 = vcombine.high %v6996_v18, %v6996_v18  ;;  %v7115_v17 = vrot.slane %v6996_v18, %v20692_v44  ;;  %v8013_v61 = vsel %vm7994_vm11, %v7813_v62, %v8012_v55  ;;  %v7001_v45 = vmax.f32 %v16061_v22, 0.0 }
 0x871   :  { %v7158_v46 = vcombine.high %v7156_v30, %v7156_v30  ;;  %v14138_v3 = vrot.slane %v7157_v9, 9  ;;  %v14139_v43 = vrot.slane %v7156_v30, 9  ;;  %v7579_v12 = vmax.f32 %v7149_v28, %v14137_v26 }
 0x872   :  { %v7122_v1 = vrot.slane %v7108_v31, %v20692_v44  ;;  %v7123_v6 = vcombine.high %v7115_v17, %v7115_v17  ;;  %v14129_v24 = vrot.slane %v7115_v17, 9  ;;  %v7193_v35 = vcombine.high %v7001_v45, %v7001_v45 }
 0x873   :  { %v14140_v60 = vrot.slane %v7158_v46, 9  ;;  %v7580_v51 = vmax.f32 %v7157_v9, %v14138_v3  ;;  %v7581_v2 = vmax.f32 %v7156_v30, %v14139_v43  ;;  %v7849_v21 = vrot.slane %v7579_v12, %v20697_v48 }
 0x874   :  { %v7124_v58 = vcombine.high %v7122_v1, %v7122_v1  ;;  %v14130_v16 = vrot.slane %v7123_v6, 9  ;;  %v14131_v19 = vrot.slane %v7122_v1, 9  ;;  %v7571_v15 = vmax.f32 %v7115_v17, %v14129_v24 }
 0x875   :  { %v7582_v0 = vmax.f32 %v7158_v46, %v14140_v60  ;;  %v7853_v47 = vrot.slane %v7580_v51, %v20697_v48  ;;  %v7857_v56 = vrot.slane %v7581_v2, %v20697_v48  ;;  %v8021_v25 = vsel %vm7996_vm12, %v7849_v21, %v8020_v5 }
 0x876   :  { %v14132_v13 = vrot.slane %v7124_v58, 9  ;;  %v7572_v32 = vmax.f32 %v7123_v6, %v14130_v16  ;;  %v7573_v57 = vmax.f32 %v7122_v1, %v14131_v19  ;;  %v7817_v54 = vrot.slane %v7571_v15, %v20697_v48 }
 0x877   :  { %v7861_v23 = vrot.slane %v7582_v0, %v20697_v48  ;;  %v8022_v34 = vsel %vm7998_vm13, %v7853_v47, %v8021_v25  ;;  %v7200_v36 = vrot.slane %v7001_v45, %v20692_v44  ;;  %v7207_v10 = vrot.slane %v7193_v35, %v20692_v44 }
 0x878   :  { %v8023_v11 = vsel %vm8000_vm9, %v7857_v56, %v8022_v34  ;;  %v7574_v40 = vmax.f32 %v7124_v58, %v14132_v13  ;;  %v7821_v7 = vrot.slane %v7572_v32, %v20697_v48  ;;  %v7825_v29 = vrot.slane %v7573_v57, %v20697_v48 }
 0x879   :  { %v20823_v28 = vsel %vm8002_vm6, %v7861_v23, %v8023_v11  ;;  %v8014_v5 = vsel %vm7996_vm12, %v7817_v54, %v8013_v61  ;;  %v7208_v18 = vcombine.high %v7200_v36, %v7200_v36  ;;  %v7209_v62 = vcombine.high %v7207_v10, %v7207_v10 }
 0x87a   :  { %8064 = vst [vmem:[#allocation2 + $0x19] sm:$0xff] %v20823_v28  ;;  %v7829_v50 = vrot.slane %v7574_v40, %v20697_v48  ;;  %v8015_v22 = vsel %vm7998_vm13, %v7821_v7, %v8014_v5  ;;  %v14149_v39 = vrot.slane %v7200_v36, 9  ;;  %v14151_v55 = vrot.slane %v7207_v10, 9 }
 0x87b   :  { %v8016_v30 = vsel %vm8000_vm9, %v7825_v29, %v8015_v22  ;;  %v14150_v9 = vrot.slane %v7208_v18, 9  ;;  %v14152_v26 = vrot.slane %v7209_v62, 9  ;;  %v6999_v31 = vmax.f32 %v16062_v4, 0.0 }
 0x87c   :  { %v20831_v17 = vsel %vm8002_vm6, %v7829_v50, %v8016_v30  ;;  %v7591_v45 = vmax.f32 %v7200_v36, %v14149_v39  ;;  %v7593_v61 = vmax.f32 %v7207_v10, %v14151_v55  ;;  %v16063_v46 = vadd.f32 %v20737_v52, %v20688_v49 }
 0x87d   :  { %8063 = vst [vmem:[#allocation2 + $0x11] sm:$0xff] %v20831_v17  ;;  %v7592_v3 = vmax.f32 %v7208_v18, %v14150_v9  ;;  %v7594_v43 = vmax.f32 %v7209_v62, %v14152_v26  ;;  %v7159_v12 = vcombine.high %v6999_v31, %v6999_v31  ;;  %v7166_v1 = vrot.slane %v6999_v31, %v20692_v44 }
 0x87e   :  { %v7897_v6 = vrot.slane %v7591_v45, %v20697_v48  ;;  %v7905_v24 = vrot.slane %v7593_v61, %v20697_v48  ;;  %v7002_v4 = vmax.f32 %v16063_v46, 0.0  ;;  %v16064_v35 = vadd.f32 %v20688_v49, %v20741_v63 }
 0x87f   :  { %v7901_v60 = vrot.slane %v7592_v3, %v20697_v48  ;;  %v7909_v51 = vrot.slane %v7594_v43, %v20697_v48  ;;  %v7173_v52 = vrot.slane %v7159_v12, %v20692_v44  ;;  %v7174_v2 = vcombine.high %v7166_v1, %v7166_v1 }
 0x880   :  { %v14141_v21 = vrot.slane %v7166_v1, 9  ;;  %v7210_v58 = vcombine.high %v7002_v4, %v7002_v4  ;;  %v7217_v16 = vrot.slane %v7002_v4, %v20692_v44  ;;  %v7000_v19 = vmax.f32 %v16064_v35, 0.0 }
 0x881   :  { %v8032_v15 = vsel %vm7990_vm4, %v7901_v60, %v7897_v6  ;;  %v7175_v0 = vcombine.high %v7173_v52, %v7173_v52  ;;  %v14142_v47 = vrot.slane %v7174_v2, 9  ;;  %v14143_v56 = vrot.slane %v7173_v52, 9  ;;  %v20846_v25 = vld [vmem:[#allocation2 + $0x1a] sm:$0xff] }
 0x882   :  { %v8033_v63 = vsel %vm7992_vm3, %v7905_v24, %v8032_v15  ;;  %v7583_v13 = vmax.f32 %v7166_v1, %v14141_v21  ;;  %v7224_v32 = vrot.slane %v7210_v58, %v20692_v44  ;;  %v7225_v57 = vcombine.high %v7217_v16, %v7217_v16  ;;  %8535 = vst [vmem:[#allocation2 + $0x21] sm:$0x1] %v21946_v53 }
 0x883   :  { %v14144_v54 = vrot.slane %v7175_v0, 9  ;;  %v7584_v23 = vmax.f32 %v7174_v2, %v14142_v47  ;;  %v7585_v34 = vmax.f32 %v7173_v52, %v14143_v56  ;;  %v14153_v36 = vrot.slane %v7217_v16, 9 }
 0x884   :  { %v7865_v10 = vrot.slane %v7583_v13, %v20697_v48  ;;  %v7226_v11 = vcombine.high %v7224_v32, %v7224_v32  ;;  %v14154_v40 = vrot.slane %v7225_v57, 9  ;;  %v14155_v7 = vrot.slane %v7224_v32, 9 }
 0x885   :  { %v7586_v29 = vmax.f32 %v7175_v0, %v14144_v54  ;;  %v7869_v5 = vrot.slane %v7584_v23, %v20697_v48  ;;  %v7873_v18 = vrot.slane %v7585_v34, %v20697_v48  ;;  %v7595_v62 = vmax.f32 %v7217_v16, %v14153_v36 }
 0x886   :  { %v14156_v50 = vrot.slane %v7226_v11, 9  ;;  %v7596_v22 = vmax.f32 %v7225_v57, %v14154_v40  ;;  %v7597_v39 = vmax.f32 %v7224_v32, %v14155_v7  ;;  %v8034_v55 = vsel %vm7994_vm11, %v7909_v51, %v8033_v63 }
 0x887   :  { %v7877_v30 = vrot.slane %v7586_v29, %v20697_v48  ;;  %v8025_v9 = vsel %vm7990_vm4, %v7869_v5, %v7865_v10  ;;  %v7913_v26 = vrot.slane %v7595_v62, %v20697_v48  ;;  %v7176_v31 = vcombine.high %v7000_v19, %v7000_v19 }
 0x888   :  { %v8026_v45 = vsel %vm7992_vm3, %v7873_v18, %v8025_v9  ;;  %v7598_v61 = vmax.f32 %v7226_v11, %v14156_v50  ;;  %v7917_v46 = vrot.slane %v7596_v22, %v20697_v48  ;;  %v7921_v3 = vrot.slane %v7597_v39, %v20697_v48 }
 0x889   :  { %v8035_v43 = vsel %vm7996_vm12, %v7913_v26, %v8034_v55  ;;  %v7183_v12 = vrot.slane %v7000_v19, %v20692_v44  ;;  %v7190_v1 = vrot.slane %v7176_v31, %v20692_v44  ;;  %v8027_v6 = vsel %vm7994_vm11, %v7877_v30, %v8026_v45 }
 0x88a   :  { %v7925_v24 = vrot.slane %v7598_v61, %v20697_v48  ;;  %v8036_v4 = vsel %vm7998_vm13, %v7917_v46, %v8035_v43  ;;  %v16065_v35 = vadd.f32 %v20757_v27, %v20688_v49  ;;  %v16066_v60 = vadd.f32 %v20688_v49, %v20762_v42 }
 0x88b   :  { %v8037_v51 = vsel %vm8000_vm9, %v7921_v3, %v8036_v4  ;;  %v7191_v52 = vcombine.high %v7183_v12, %v7183_v12  ;;  %v7192_v2 = vcombine.high %v7190_v1, %v7190_v1  ;;  %v14145_v21 = vrot.slane %v7183_v12, 9 }
 0x88c   :  { %v20873_v58 = vsel %vm8002_vm6, %v7925_v24, %v8037_v51  ;;  %v14147_v16 = vrot.slane %v7190_v1, 9  ;;  %v7005_v19 = vmax.f32 %v16065_v35, 0.0  ;;  %v7003_v15 = vmax.f32 %v16066_v60, 0.0 }
 0x88d   :  { %8066 = vst [vmem:[#allocation2 + $0x51] sm:$0xff] %v20873_v58  ;;  %v14146_v0 = vrot.slane %v7191_v52, 9  ;;  %v14148_v47 = vrot.slane %v7192_v2, 9  ;;  %v7587_v56 = vmax.f32 %v7183_v12, %v14145_v21  ;;  %v16067_v27 = vadd.f32 %v20768_v33, %v20688_v49 }
 0x88e   :  { %v7589_v42 = vmax.f32 %v7190_v1, %v14147_v16  ;;  %v7261_v63 = vcombine.high %v7005_v19, %v7005_v19  ;;  %v7268_v13 = vrot.slane %v7005_v19, %v20692_v44  ;;  %v7227_v32 = vcombine.high %v7003_v15, %v7003_v15 }
 0x88f   :  { %v7588_v57 = vmax.f32 %v7191_v52, %v14146_v0  ;;  %v7590_v54 = vmax.f32 %v7192_v2, %v14148_v47  ;;  %v7881_v23 = vrot.slane %v7587_v56, %v20697_v48  ;;  %v7234_v34 = vrot.slane %v7003_v15, %v20692_v44  ;;  %v8070_v15 = vld [vmem:[#allocation2 + $0x8] sm:$0xff]  ;;  %v8071_v0 = vld [vmem:[#allocation2 + $0x10] sm:$0xff]  ;;  %v8072_v47 = vld [vmem:[#allocation2 + $0x18] sm:$0xff] }
 0x890   :  { %v7889_v36 = vrot.slane %v7589_v42, %v20697_v48  ;;  %v7275_v10 = vrot.slane %v7261_v63, %v20692_v44  ;;  %v7276_v11 = vcombine.high %v7268_v13, %v7268_v13  ;;  %v14165_v40 = vrot.slane %v7268_v13, 9 }
 0x891   :  { %v7885_v7 = vrot.slane %v7588_v57, %v20697_v48  ;;  %v7893_v33 = vrot.slane %v7590_v54, %v20697_v48  ;;  %v8028_v29 = vsel %vm7996_vm12, %v7881_v23, %v8027_v6  ;;  %v7241_v5 = vrot.slane %v7227_v32, %v20692_v44 }
 0x892   :  { %v7277_v18 = vcombine.high %v7275_v10, %v7275_v10  ;;  %v14166_v62 = vrot.slane %v7276_v11, 9  ;;  %v14167_v50 = vrot.slane %v7275_v10, 9  ;;  %v7607_v22 = vmax.f32 %v7268_v13, %v14165_v40 }
 0x893   :  { %v8029_v39 = vsel %vm7998_vm13, %v7885_v7, %v8028_v29  ;;  %v7242_v55 = vcombine.high %v7234_v34, %v7234_v34  ;;  %v7243_v30 = vcombine.high %v7241_v5, %v7241_v5  ;;  %v14157_v9 = vrot.slane %v7234_v34, 9  ;;  %v16567_v7 = vld [vmem:[#allocation14 + $0x1c8] sm:$0xff]  }
 0x894   :  { %v8030_v26 = vsel %vm8000_vm9, %v7889_v36, %v8029_v39  ;;  %v14168_v31 = vrot.slane %v7277_v18, 9  ;;  %v7608_v45 = vmax.f32 %v7276_v11, %v14166_v62  ;;  %v7609_v61 = vmax.f32 %v7275_v10, %v14167_v50 }
 0x895   :  { %v20890_v46 = vsel %vm8002_vm6, %v7893_v33, %v8030_v26  ;;  %v7961_v3 = vrot.slane %v7607_v22, %v20697_v48  ;;  %v14158_v43 = vrot.slane %v7242_v55, 9  ;;  %v14159_v12 = vrot.slane %v7241_v5, 9 }
 0x896   :  { %8065 = vst [vmem:[#allocation2 + $0x49] sm:$0xff] %v20890_v46  ;;  %v7610_v1 = vmax.f32 %v7277_v18, %v14168_v31  ;;  %v7965_v6 = vrot.slane %v7608_v45, %v20697_v48  ;;  %v7969_v24 = vrot.slane %v7609_v61, %v20697_v48  ;;  %v14160_v4 = vrot.slane %v7243_v30, 9 }
 0x897   :  { %v7599_v35 = vmax.f32 %v7234_v34, %v14157_v9  ;;  %v7600_v60 = vmax.f32 %v7242_v55, %v14158_v43  ;;  %v7601_v51 = vmax.f32 %v7241_v5, %v14159_v12  ;;  %v7006_v52 = vmax.f32 %v16067_v27, 0.0  ;;  %v16568_v12 = vld [vmem:[#allocation14 + $0x1d0] sm:$0xff]  }
 0x898   :  { %v7973_v2 = vrot.slane %v7610_v1, %v20697_v48  ;;  %v8046_v21 = vsel %vm7990_vm4, %v7965_v6, %v7961_v3  ;;  %v7602_v16 = vmax.f32 %v7243_v30, %v14160_v4  ;;  %v16068_v19 = vadd.f32 %v20688_v49, %v20772_v20 }
 0x899   :  { %v8047_v56 = vsel %vm7992_vm3, %v7969_v24, %v8046_v21  ;;  %v7929_v42 = vrot.slane %v7599_v35, %v20697_v48  ;;  %v7933_v63 = vrot.slane %v7600_v60, %v20697_v48  ;;  %v7937_v13 = vrot.slane %v7601_v51, %v20697_v48 }
 0x89a   :  { %v7941_v27 = vrot.slane %v7602_v16, %v20697_v48  ;;  %v7278_v32 = vcombine.high %v7006_v52, %v7006_v52  ;;  %v7285_v57 = vrot.slane %v7006_v52, %v20692_v44  ;;  %v8048_v54 = vsel %vm7994_vm11, %v7973_v2, %v8047_v56 }
 0x89b   :  { %v8039_v49 = vsel %vm7990_vm4, %v7933_v63, %v7929_v42  ;;  %v7004_v20 = vmax.f32 %v16068_v19, 0.0  ;;  %v8077_v23 = vpack.c.bf16 %v8070_v15, %v20802_v8  ;;  %v8078_v34 = vpack.c.bf16 %v8072_v47, %v8071_v0  ;;  %v16569_v0 = vld [vmem:[#allocation14 + $0x1d8] sm:$0xff]  }
 0x89c   :  { %v8040_v36 = vsel %vm7992_vm3, %v7937_v13, %v8039_v49  ;;  %v7292_v10 = vrot.slane %v7278_v32, %v20692_v44  ;;  %v7293_v11 = vcombine.high %v7285_v57, %v7285_v57  ;;  %v14169_v40 = vrot.slane %v7285_v57, 9 }
 0x89d   :  { %v7244_v33 = vcombine.high %v7004_v20, %v7004_v20  ;;  %v7251_v29 = vrot.slane %v7004_v20, %v20692_v44  ;;  %v8041_v5 = vsel %vm7994_vm11, %v7941_v27, %v8040_v36  ;;  %15445 = vmatprep.mubr.bf16.mxu1 %v8077_v23  ;;  %v8073_v18 = vld [vmem:[#allocation2 + $0x48] sm:$0xff]  ;;  %v8074_v62 = vld [vmem:[#allocation2 + $0x50] sm:$0xff]  ;;  %v8216_v50 = vpack.c.bf16 %v20755_v59, %v20779_v37 }
 0x89e   :  { %v7294_v8 = vcombine.high %v7292_v10, %v7292_v10  ;;  %v14170_v22 = vrot.slane %v7293_v11, 9  ;;  %v14171_v39 = vrot.slane %v7292_v10, 9  ;;  %v7611_v55 = vmax.f32 %v7285_v57, %v14169_v40  ;;  %15446 = vmatmul.mubr.bf16.vlgmr.msra.gmra.mrb[48].mxu1 %v8078_v34  ;;  %8534 = vst [vmem:[#allocation2 + $0x48] sm:$0x1] %v21946_v53  ;;  %v16571_v20 = vld [vmem:[#allocation14 + $0x1e8] sm:$0xff]   ;;  %v16572_v34 = vld [vmem:[#allocation14 + $0x1f0] sm:$0xff]  }
 0x89f   :  { %v7258_v30 = vrot.slane %v7244_v33, %v20692_v44  ;;  %v7259_v9 = vcombine.high %v7251_v29, %v7251_v29  ;;  %v14161_v26 = vrot.slane %v7251_v29, 9  ;;  %15454 = vmatpush3.bf16.msra.mxu1 %v20682_v41  ;;  %v8079_v31 = vpack.c.bf16 %v8074_v62, %v8073_v18  ;;  %v16573_v40 = vld [vmem:[#allocation14 + $0x1f8] sm:$0xff]   ;;  %v16575_v33 = vld [vmem:[#allocation14 + $0x208] sm:$0xff]   ;;  %v8341_v18 = vld [vmem:[#allocation2 + $0x2] sm:$0xff] }
 0x8a0   :  { %v14172_v45 = vrot.slane %v7294_v8, 9  ;;  %v7612_v61 = vmax.f32 %v7293_v11, %v14170_v22  ;;  %v7613_v3 = vmax.f32 %v7292_v10, %v14171_v39  ;;  %v7977_v43 = vrot.slane %v7611_v55, %v20697_v48  ;;  %15455 = vmatprep.subr.bf16.mxu1 %v16567_v7  ;;  %v16577_v62 = vld [vmem:[#allocation14 + $0x218] sm:$0xff]   ;;  %v16578_v59 = vld [vmem:[#allocation14 + $0x220] sm:$0xff]   ;;  %v16579_v37 = vld [vmem:[#allocation14 + $0x228] sm:$0xff]  }
 0x8a1   :  { %v7260_v1 = vcombine.high %v7258_v30, %v7258_v30  ;;  %v14162_v6 = vrot.slane %v7259_v9, 9  ;;  %v14163_v24 = vrot.slane %v7258_v30, 9  ;;  %v7603_v4 = vmax.f32 %v7251_v29, %v14161_v26  ;;  %15449 = vmatprep.mubr.bf16.mxu1 %v8079_v31  ;;  %v16576_v29 = vld [vmem:[#allocation14 + $0x210] sm:$0xff]   ;;  %v16581_v22 = vld [vmem:[#allocation14 + $0x238] sm:$0xff]  }
 0x8a2   :  { %v7614_v35 = vmax.f32 %v7294_v8, %v14172_v45  ;;  %v7981_v60 = vrot.slane %v7612_v61, %v20697_v48  ;;  %v7985_v51 = vrot.slane %v7613_v3, %v20697_v48  ;;  %v8049_v41 = vsel %vm7996_vm12, %v7977_v43, %v8048_v54  ;;  %v8343_v39 = vld [vmem:[#allocation2 + $0x12] sm:$0xff]  ;;  %v16586_v61 = vld [vmem:[#allocation14 + $0x260] sm:$0xff]   ;;  %v16587_v3 = vld [vmem:[#allocation14 + $0x268] sm:$0xff]  }
 0x8a3   :  { %v14164_v52 = vrot.slane %v7260_v1, 9  ;;  %v7604_v2 = vmax.f32 %v7259_v9, %v14162_v6  ;;  %v7605_v21 = vmax.f32 %v7258_v30, %v14163_v24  ;;  %v7945_v16 = vrot.slane %v7603_v4, %v20697_v48  ;;  %15456 = vmatpush3.bf16.msra.mxu1 %v16567_v7  ;;  %v16574_v7 = vld [vmem:[#allocation14 + $0x200] sm:$0xff]   ;;  %v8345_v9 = vld [vmem:[#allocation2 + $0x4a] sm:$0xff]  ;;  %15509 = vmatprep.subr.bf16.mxu0 %v16586_v61  ;;  %v16588_v43 = vld [vmem:[#allocation14 + $0x270] sm:$0xff]  }
 0x8a4   :  { %v7989_v19 = vrot.slane %v7614_v35, %v20697_v48  ;;  %v8050_v15 = vsel %vm7998_vm13, %v7981_v60, %v8049_v41  ;;  %15457 = vmatprep.subr.bf16.mxu1 %v16568_v12  ;;  %v8217_v47 = vpack.c.bf16 %v20823_v28, %v20831_v17  ;;  %v8218_v56 = vpack.c.bf16 %v20873_v58, %v20890_v46  ;;  %v16570_v17 = vld [vmem:[#allocation14 + $0x1e0] sm:$0xff]  }
 0x8a5   :  { %v8051_v42 = vsel %vm8000_vm9, %v7985_v51, %v8050_v15  ;;  %v7606_v63 = vmax.f32 %v7260_v1, %v14164_v52  ;;  %v7949_v13 = vrot.slane %v7604_v2, %v20697_v48  ;;  %v7953_v32 = vrot.slane %v7605_v21, %v20697_v48  ;;  %15510 = vmatpush3.bf16.msra.mxu0 %v16586_v61  ;;  %v16590_v1 = vld [vmem:[#allocation14 + $0x280] sm:$0xff]   ;;  %v16601_v61 = vld [vmem:[#allocation14 + $0x2d8] sm:$0xff]  }
 0x8a6   :  { %v8052_v27 = vsel %vm8002_vm6, %v7989_v19, %v8051_v42  ;;  %v8042_v57 = vsel %vm7996_vm12, %v7945_v16, %v8041_v5  ;;  %v8342_v5 = vld [vmem:[#allocation2 + $0xa] sm:$0xff]  ;;  %v8350_v30 = vpack.c.bf16 %v20846_v25, %v8343_v39  ;;  %15511 = vmatprep.subr.bf16.mxu0 %v16587_v3  ;;  %v14181_v25 = vld [vmem:[#allocation16 + $0x2] ss:$0 sm:$0xff] }
 0x8a7   :  { %8068 = vst [vmem:[#allocation2 + $0x61] sm:$0xff] %v8052_v27  ;;  %v7957_v54 = vrot.slane %v7606_v63, %v20697_v48  ;;  %v8043_v49 = vsel %vm7998_vm13, %v7949_v13, %v8042_v57  ;;  %15458 = vmatpush3.bf16.msra.mxu1 %v16568_v12  ;;  %v8349_v8 = vpack.c.bf16 %v8342_v5, %v8341_v18  ;;  %v16589_v12 = vld [vmem:[#allocation14 + $0x278] sm:$0xff]   ;;  %v16595_v39 = vld [vmem:[#allocation14 + $0x2a8] sm:$0xff]  }
 0x8a8   :  { %v8044_v28 = vsel %vm8000_vm9, %v7953_v32, %v8043_v49  ;;  %15459 = vmatprep.subr.bf16.mxu1 %v16569_v0 }
 0x8a9   :  { %v8045_v58 = vsel %vm8002_vm6, %v7957_v54, %v8044_v28  ;;  %15512 = vmatpush3.bf16.msra.mxu0 %v16587_v3 }
 0x8aa   :  { %8067 = vst [vmem:[#allocation2 + $0x59] sm:$0xff] %v8045_v58  ;;  %v8219_v46 = vpack.c.bf16 %v8052_v27, %v8045_v58  ;;  %15513 = vmatprep.subr.bf16.mxu0 %v16588_v43 }
 0x8ab   :  { %15460 = vmatpush3.bf16.msra.mxu1 %v16569_v0 }
 0x8ac   :  { %15461 = vmatprep.subr.bf16.mxu1 %v16570_v17 }
 0x8ad   :  { %15514 = vmatpush3.bf16.msra.mxu0 %v16588_v43  ;;  %v16602_v43 = vld [vmem:[#allocation14 + $0x2e0] sm:$0xff]  }
 0x8ae   :  { %v8348_v23 = vld [vmem:[#allocation2 + $0x62] sm:$0xff]  ;;  %15515 = vmatprep.subr.bf16.mxu0 %v16589_v12 }
 0x8af   :  { %15462 = vmatpush3.bf16.msra.mxu1 %v16570_v17  ;;  %8536 = vst [vmem:[#allocation2 + $0x69] sm:$0x1] %v21946_v53 }
 0x8b0   :  { %15463 = vmatprep.subr.bf16.mxu1 %v16571_v20 }
 0x8b1   :  { %v8075_v36 = vld [vmem:[#allocation2 + $0x58] sm:$0xff]  ;;  %v8076_v10 = vld [vmem:[#allocation2 + $0x60] sm:$0xff]  ;;  %15516 = vmatpush3.bf16.msra.mxu0 %v16589_v12  ;;  %v16603_v12 = vld [vmem:[#allocation14 + $0x2e8] sm:$0xff]  }
 0x8b2   :  { %v8080_v11 = vpack.c.bf16 %v8076_v10, %v8075_v36  ;;  %v8346_v55 = vld [vmem:[#allocation2 + $0x52] sm:$0xff]  ;;  %v8347_v31 = vld [vmem:[#allocation2 + $0x5a] sm:$0xff]  ;;  %15525 = vmatprep.subr.bf16.mxu0 %v16590_v1 }
 0x8b3   :  { %15464 = vmatpush3.bf16.msra.mxu1 %v16571_v20  ;;  %v8351_v26 = vpack.c.bf16 %v8346_v55, %v8345_v9  ;;  %v8352_v45 = vpack.c.bf16 %v8348_v23, %v8347_v31  ;;  %v16596_v55 = vld [vmem:[#allocation14 + $0x2b0] sm:$0xff]   ;;  %v16598_v9 = vld [vmem:[#allocation14 + $0x2c0] sm:$0xff]  }
 0x8b4   :  { %15450 = vmatmul.mubr.bf16.gmra.mrb[52].mxu1 %v8080_v11  ;;  %15465 = vmatprep.subr.bf16.mxu1 %v16572_v34  ;;  %v16600_v31 = vld [vmem:[#allocation14 + $0x2d0] sm:$0xff]  }
 0x8b5   :  { %15469 = vmatprep.mubr.bf16.mxu1 %v8216_v50  ;;  %v16580_v50 = vld [vmem:[#allocation14 + $0x230] sm:$0xff]  }
 0x8b7   :  { %15466 = vmatpush3.bf16.msra.mxu1 %v16572_v34 }
 0x8b8   :  { %15467 = vmatprep.subr.bf16.mxu1 %v16573_v40 }
 0x8bb   :  { %15468 = vmatpush3.bf16.msra.mxu1 %v16573_v40 }
 0x8bc   :  { %15477 = vmatprep.subr.bf16.mxu1 %v16574_v7 }
 0x8be   :  { %15470 = vmatmul.mubr.bf16.vlgmr.msra.gmra.mrb[48].mxu1 %v8217_v47 }
 0x8bf   :  { %15473 = vmatprep.mubr.bf16.mxu1 %v8218_v56  ;;  %15478 = vmatpush3.bf16.msra.mxu1 %v16574_v7  ;;  %v16591_v7 = vld [vmem:[#allocation14 + $0x288] sm:$0xff]  }
 0x8c0   :  { %15479 = vmatprep.subr.bf16.mxu1 %v16575_v33 }
 0x8c3   :  { %15480 = vmatpush3.bf16.msra.mxu1 %v16575_v33 }
 0x8c4   :  { %15481 = vmatprep.subr.bf16.mxu1 %v16576_v29 }
 0x8c6   :  { %15474 = vmatmul.mubr.bf16.gmra.mrb[52].mxu1 %v8219_v46 }
 0x8c7   :  { %15482 = vmatpush3.bf16.msra.mxu1 %v16576_v29  ;;  %15493 = vmatprep.mubr.bf16.mxu1 %v8349_v8  ;;  %v16592_v29 = vld [vmem:[#allocation14 + $0x290] sm:$0xff]  }
 0x8c8   :  { %15483 = vmatprep.subr.bf16.mxu1 %v16577_v62 }
 0x8cb   :  { %15484 = vmatpush3.bf16.msra.mxu1 %v16577_v62 }
 0x8cc   :  { %15485 = vmatprep.subr.bf16.mxu1 %v16578_v59 }
 0x8cf   :  { %15486 = vmatpush3.bf16.msra.mxu1 %v16578_v59 }
 0x8d0   :  { %15487 = vmatprep.subr.bf16.mxu1 %v16579_v37 }
 0x8d3   :  { %15488 = vmatpush3.bf16.msra.mxu1 %v16579_v37 }
 0x8d4   :  { %15489 = vmatprep.subr.bf16.mxu1 %v16580_v50 }
 0x8d7   :  { %15490 = vmatpush3.bf16.msra.mxu1 %v16580_v50  ;;  %v16593_v50 = vld [vmem:[#allocation14 + $0x298] sm:$0xff]  }
 0x8d8   :  { %15491 = vmatprep.subr.bf16.mxu1 %v16581_v22 }
 0x8db   :  { %15492 = vmatpush3.bf16.msra.mxu1 %v16581_v22  ;;  %v16594_v22 = vld [vmem:[#allocation14 + $0x2a0] sm:$0xff]  }
 0x8de   :  { %15494 = vmatmul.mubr.bf16.vlgmr.msra.gmra.mrb[48].mxu1 %v8350_v30  ;;  %v16597_v30 = vld [vmem:[#allocation14 + $0x2b8] sm:$0xff]  }
 0x8df   :  { %15497 = vmatprep.mubr.bf16.mxu1 %v8351_v26  ;;  %v16599_v26 = vld [vmem:[#allocation14 + $0x2c8] sm:$0xff]  }
 0x8e6   :  { %15498 = vmatmul.mubr.bf16.gmra.mrb[52].mxu1 %v8352_v45 }
 0x9b1   :  { %v15495_v6 = vpop.f32.mrb[48].mxu1 }
 0x9b2   :  { %v16069_v24 = vadd.f32 %v15495_v6, %v14181_v25  ;;  %v8435_v4 = vpop.f32.mrb[49].mxu1 }
 0x9b3   :  { %v16070_v35 = vadd.f32 %v14181_v25, %v8435_v4  ;;  %v15496_v60 = vpop.f32.mrb[50].mxu1 }
 0x9b4   :  { %v8476_v51 = vmax.f32 %v16069_v24, 0.0  ;;  %v16071_v41 = vadd.f32 %v15496_v60, %v14181_v25  ;;  %v8438_v52 = vpop.f32.mrb[51].mxu1 }
 0x9b5   :  { %v8474_v2 = vmax.f32 %v16070_v35, 0.0  ;;  %v16072_v21 = vadd.f32 %v14181_v25, %v8438_v52 }
 0x9b6   :  { %8539 = vst [vmem:[#allocation2 + $0x11] sm:$0xff] %v8476_v51  ;;  %v8477_v16 = vmax.f32 %v16071_v41, 0.0 }
 0x9b7   :  { %8537 = vst [vmem:[#allocation2 + $0x1] sm:$0xff] %v8474_v2  ;;  %v8475_v19 = vmax.f32 %v16072_v21, 0.0  ;;  %v16607_v21 = vld [vmem:[#allocation14 + $0x308] sm:$0xff]  }
 0x9b8   :  { %8540 = vst [vmem:[#allocation2 + $0x19] sm:$0xff] %v8477_v16  ;;  %v20943_v15 = vpack.c.bf16 %v8477_v16, %v8476_v51  ;;  %v16608_v16 = vld [vmem:[#allocation14 + $0x310] sm:$0xff]  }
 0x9b9   :  { %8538 = vst [vmem:[#allocation2 + $0x9] sm:$0xff] %v8475_v19  ;;  %v15499_v0 = vpop.f32.mrb[52].mxu1  ;;  %v8692_v47 = vpack.c.bf16 %v8475_v19, %v8474_v2  ;;  %v16606_v2 = vld [vmem:[#allocation14 + $0x300] sm:$0xff]   ;;  %v16609_v19 = vld [vmem:[#allocation14 + $0x318] sm:$0xff]  }
 0x9ba   :  { %v16073_v56 = vadd.f32 %v15499_v0, %v14181_v25  ;;  %v8451_v42 = vpop.f32.mrb[53].mxu1  ;;  %15573 = vmatprep.subr.bf16.mxu1 %v16606_v2  ;;  %v16611_v0 = vld [vmem:[#allocation14 + $0x328] sm:$0xff]  }
 0x9bb   :  { %v16074_v63 = vadd.f32 %v14181_v25, %v8451_v42  ;;  %v15500_v13 = vpop.f32.mrb[54].mxu1  ;;  %15574 = vmatpush3.bf16.msra.mxu1 %v16606_v2  ;;  %v20950_v42 = vld [vmem:[#allocation14 + $0x340] sm:$0xff]  }
 0x9bc   :  { %v8480_v27 = vmax.f32 %v16073_v56, 0.0  ;;  %v16075_v32 = vadd.f32 %v15500_v13, %v14181_v25  ;;  %v8454_v57 = vpop.f32.mrb[55].mxu1  ;;  %15575 = vmatprep.subr.bf16.mxu1 %v16607_v21  ;;  %v16613_v56 = vld [vmem:[#allocation14 + $0x338] sm:$0xff]   ;;  %v16630_v13 = vld [vmem:[#allocation14 + $0x3c0] sm:$0xff]  }
 0x9bd   :  { %v8478_v54 = vmax.f32 %v16074_v63, 0.0  ;;  %v16076_v49 = vadd.f32 %v14181_v25, %v8454_v57  ;;  %v16605_v25 = vld [vmem:[#allocation14 + $0x2f8] sm:$0xff]   ;;  %v20953_v63 = vld [vmem:[#allocation16 + $0x3] ss:$0 sm:$0xff] }
 0x9be   :  { %8543 = vst [vmem:[#allocation2 + $0x59] sm:$0xff] %v8480_v27  ;;  %v8481_v28 = vmax.f32 %v16075_v32, 0.0  ;;  %v8545_v17 = vld [vmem:[#allocation2] sm:$0xff] }
 0x9bf   :  { %8541 = vst [vmem:[#allocation2 + $0x49] sm:$0xff] %v8478_v54  ;;  %v8479_v58 = vmax.f32 %v16076_v49, 0.0  ;;  %9313 = vst [vmem:[#allocation2] sm:$0x1] %v21946_v53  ;;  %v8548_v46 = vld [vmem:[#allocation2 + $0x18] sm:$0xff]  ;;  %15576 = vmatpush3.bf16.msra.mxu1 %v16607_v21 }
 0x9c0   :  { %8544 = vst [vmem:[#allocation2 + $0x61] sm:$0xff] %v8481_v28  ;;  %v8546_v20 = vld [vmem:[#allocation2 + $0x8] sm:$0xff]  ;;  %v8547_v23 = vld [vmem:[#allocation2 + $0x10] sm:$0xff]  ;;  %v8695_v34 = vpack.c.bf16 %v8481_v28, %v8480_v27  ;;  %v8820_v24 = vld [vmem:[#allocation2 + $0x1a] sm:$0xff]  ;;  %15577 = vmatprep.subr.bf16.mxu1 %v16608_v16 }
 0x9c1   :  { %8542 = vst [vmem:[#allocation2 + $0x51] sm:$0xff] %v8479_v58  ;;  %v8553_v36 = vpack.c.bf16 %v8546_v20, %v8545_v17  ;;  %v8554_v10 = vpack.c.bf16 %v8548_v46, %v8547_v23  ;;  %v8694_v11 = vpack.c.bf16 %v8479_v58, %v8478_v54  ;;  %v8818_v40 = vld [vmem:[#allocation2 + $0xa] sm:$0xff]  ;;  %v8817_v45 = vld [vmem:[#allocation2 + $0x2] sm:$0xff]  ;;  %v8819_v6 = vld [vmem:[#allocation2 + $0x12] sm:$0xff] }
 0x9c2   :  { %9315 = vst [vmem:[#allocation2 + $0x11] sm:$0x1] %v21946_v53  ;;  %v8825_v3 = vpack.c.bf16 %v8818_v40, %v8817_v45  ;;  %v8826_v35 = vpack.c.bf16 %v8820_v24, %v8819_v6  ;;  %v16631_v27 = vld [vmem:[#allocation14 + $0x3c8] sm:$0xff]   ;;  %v16632_v20 = vld [vmem:[#allocation14 + $0x3d0] sm:$0xff]  }
 0x9c3   :  { %15517 = vmatprep.mubr.bf16.mxu0 %v8553_v36  ;;  %15578 = vmatpush3.bf16.msra.mxu1 %v16608_v16 }
 0x9c4   :  { %15518 = vmatmul.mubr.bf16.vlgmr.msra.gmra.mrb[64].mxu0 %v8554_v10  ;;  %15579 = vmatprep.subr.bf16.mxu1 %v16609_v19 }
 0x9c5   :  { %15526 = vmatpush3.bf16.msra.mxu0 %v16590_v1  ;;  %v16604_v1 = vld [vmem:[#allocation14 + $0x2f0] sm:$0xff]  }
 0x9c6   :  { %15527 = vmatprep.subr.bf16.mxu0 %v16591_v7  ;;  %v8549_v33 = vld [vmem:[#allocation2 + $0x48] sm:$0xff] }
 0x9c7   :  { %9314 = vst [vmem:[#allocation2 + $0x48] sm:$0x1] %v21946_v53  ;;  %v8552_v5 = vld [vmem:[#allocation2 + $0x60] sm:$0xff]  ;;  %15580 = vmatpush3.bf16.msra.mxu1 %v16609_v19 }
 0x9c8   :  { %v8550_v18 = vld [vmem:[#allocation2 + $0x50] sm:$0xff]  ;;  %v8551_v62 = vld [vmem:[#allocation2 + $0x58] sm:$0xff]  ;;  %v8824_v41 = vld [vmem:[#allocation2 + $0x62] sm:$0xff] }
 0x9c9   :  { %15528 = vmatpush3.bf16.msra.mxu0 %v16591_v7  ;;  %v8555_v8 = vpack.c.bf16 %v8550_v18, %v8549_v33  ;;  %v8556_v59 = vpack.c.bf16 %v8552_v5, %v8551_v62  ;;  %v8822_v37 = vld [vmem:[#allocation2 + $0x52] sm:$0xff]  ;;  %v8821_v4 = vld [vmem:[#allocation2 + $0x4a] sm:$0xff]  ;;  %v8823_v51 = vld [vmem:[#allocation2 + $0x5a] sm:$0xff] }
 0x9ca   :  { %15529 = vmatprep.subr.bf16.mxu0 %v16592_v29  ;;  %9316 = vst [vmem:[#allocation2 + $0x59] sm:$0x1] %v21946_v53  ;;  %v8827_v60 = vpack.c.bf16 %v8822_v37, %v8821_v4  ;;  %v8828_v52 = vpack.c.bf16 %v8824_v41, %v8823_v51 }
 0x9cb   :  { %15521 = vmatprep.mubr.bf16.mxu0 %v8555_v8  ;;  %v16633_v8 = vld [vmem:[#allocation14 + $0x3d8] sm:$0xff]  }
 0x9cc   :  { %15522 = vmatmul.mubr.bf16.gmra.mrb[68].mxu0 %v8556_v59 }
 0x9cd   :  { %15530 = vmatpush3.bf16.msra.mxu0 %v16592_v29  ;;  %15541 = vmatprep.mubr.bf16.mxu0 %v8692_v47  ;;  %v16612_v47 = vld [vmem:[#allocation14 + $0x330] sm:$0xff]  }
 0x9ce   :  { %15531 = vmatprep.subr.bf16.mxu0 %v16593_v50 }
 0x9d1   :  { %15532 = vmatpush3.bf16.msra.mxu0 %v16593_v50 }
 0x9d2   :  { %15533 = vmatprep.subr.bf16.mxu0 %v16594_v22 }
 0x9d5   :  { %15534 = vmatpush3.bf16.msra.mxu0 %v16594_v22 }
 0x9d6   :  { %15535 = vmatprep.subr.bf16.mxu0 %v16595_v39 }
 0x9d9   :  { %15536 = vmatpush3.bf16.msra.mxu0 %v16595_v39 }
 0x9da   :  { %15537 = vmatprep.subr.bf16.mxu0 %v16596_v55 }
 0x9dd   :  { %15538 = vmatpush3.bf16.msra.mxu0 %v16596_v55 }
 0x9de   :  { %15539 = vmatprep.subr.bf16.mxu0 %v16597_v30 }
 0x9e1   :  { %15540 = vmatpush3.bf16.msra.mxu0 %v16597_v30 }
 0x9e2   :  { %15549 = vmatprep.subr.bf16.mxu0 %v16598_v9 }
 0x9e4   :  { %15542 = vmatmul.mubr.bf16.vlgmr.msra.gmra.mrb[64].mxu0 %v20943_v15  ;;  %v16610_v15 = vld [vmem:[#allocation14 + $0x320] sm:$0xff]  }
 0x9e5   :  { %15545 = vmatprep.mubr.bf16.mxu0 %v8694_v11  ;;  %15550 = vmatpush3.bf16.msra.mxu0 %v16598_v9 }
 0x9e6   :  { %15551 = vmatprep.subr.bf16.mxu0 %v16599_v26  ;;  %15581 = vmatprep.subr.bf16.mxu1 %v16610_v15 }
 0x9e7   :  { %15582 = vmatpush3.bf16.msra.mxu1 %v16610_v15 }
 0x9e8   :  { %15583 = vmatprep.subr.bf16.mxu1 %v16611_v0 }
 0x9e9   :  { %15552 = vmatpush3.bf16.msra.mxu0 %v16599_v26 }
 0x9ea   :  { %15553 = vmatprep.subr.bf16.mxu0 %v16600_v31 }
 0x9eb   :  { %15584 = vmatpush3.bf16.msra.mxu1 %v16611_v0 }
 0x9ec   :  { %15546 = vmatmul.mubr.bf16.gmra.mrb[68].mxu0 %v8695_v34  ;;  %15585 = vmatprep.subr.bf16.mxu1 %v16612_v47 }
 0x9ed   :  { %15554 = vmatpush3.bf16.msra.mxu0 %v16600_v31  ;;  %15565 = vmatprep.mubr.bf16.mxu0 %v8825_v3 }
 0x9ee   :  { %15555 = vmatprep.subr.bf16.mxu0 %v16601_v61 }
 0x9ef   :  { %15586 = vmatpush3.bf16.msra.mxu1 %v16612_v47 }
 0x9f0   :  { %15587 = vmatprep.subr.bf16.mxu1 %v16613_v56 }
 0x9f1   :  { %15556 = vmatpush3.bf16.msra.mxu0 %v16601_v61 }
 0x9f2   :  { %15557 = vmatprep.subr.bf16.mxu0 %v16602_v43 }
 0x9f3   :  { %15588 = vmatpush3.bf16.msra.mxu1 %v16613_v56 }
 0x9f4   :  { %15593 = vmatprep.subr.bf16.mxu1 %v20950_v42 }
 0x9f5   :  { %15558 = vmatpush3.bf16.msra.mxu0 %v16602_v43 }
 0x9f6   :  { %15559 = vmatprep.subr.bf16.mxu0 %v16603_v12 }
 0x9f9   :  { %15560 = vmatpush3.bf16.msra.mxu0 %v16603_v12 }
 0x9fa   :  { %15561 = vmatprep.subr.bf16.mxu0 %v16604_v1 }
 0x9fd   :  { %15562 = vmatpush3.bf16.msra.mxu0 %v16604_v1 }
 0x9fe   :  { %15563 = vmatprep.subr.bf16.mxu0 %v16605_v25 }
 0xa01   :  { %15564 = vmatpush3.bf16.msra.mxu0 %v16605_v25 }
 0xa02   :  { %15633 = vmatprep.subr.bf16.mxu0 %v16630_v13 }
 0xa04   :  { %15566 = vmatmul.mubr.bf16.vlgmr.msra.gmra.mrb[64].mxu0 %v8826_v35 }
 0xa05   :  { %15569 = vmatprep.mubr.bf16.mxu0 %v8827_v60  ;;  %15634 = vmatpush3.bf16.msra.mxu0 %v16630_v13 }
 0xa06   :  { %15635 = vmatprep.subr.bf16.mxu0 %v16631_v27 }
 0xa09   :  { %15636 = vmatpush3.bf16.msra.mxu0 %v16631_v27 }
 0xa0a   :  { %15637 = vmatprep.subr.bf16.mxu0 %v16632_v20 }
 0xa0c   :  { %15570 = vmatmul.mubr.bf16.gmra.mrb[68].mxu0 %v8828_v52 }
 0xa0d   :  { %15638 = vmatpush3.bf16.msra.mxu0 %v16632_v20 }
 0xa0e   :  { %15639 = vmatprep.subr.bf16.mxu0 %v16633_v8 }
 0xa11   :  { %15640 = vmatpush3.bf16.msra.mxu0 %v16633_v8 }
 0xad7   :  { %v15567_v32 = vpop.f32.mrb[64].mxu0 }
 0xad8   :  { %v16077_v57 = vadd.f32 %v15567_v32, %v20953_v63  ;;  %v8911_v54 = vpop.f32.mrb[65].mxu0 }
 0xad9   :  { %v16078_v49 = vadd.f32 %v20953_v63, %v8911_v54  ;;  %v15568_v28 = vpop.f32.mrb[66].mxu0 }
 0xada   :  { %v8952_v17 = vmax.f32 %v16077_v57, 0.0  ;;  %v16079_v58 = vadd.f32 %v15568_v28, %v20953_v63  ;;  %v8914_v46 = vpop.f32.mrb[67].mxu0 }
 0xadb   :  { %v8950_v23 = vmax.f32 %v16078_v49, 0.0  ;;  %v16080_v34 = vadd.f32 %v20953_v63, %v8914_v46 }
 0xadc   :  { %v9000_v36 = vcombine.high %v8952_v17, %v8952_v17  ;;  %v9007_v10 = vrot.slane %v8952_v17, %v20692_v44  ;;  %v8953_v11 = vmax.f32 %v16079_v58, 0.0 }
 0xadd   :  { %v8966_v40 = vcombine.high %v8950_v23, %v8950_v23  ;;  %v8973_v7 = vrot.slane %v8950_v23, %v20692_v44  ;;  %v20961_v33 = vmax.f32 %v16080_v34, 0.0 }
 0xade   :  { %v9014_v29 = vrot.slane %v9000_v36, %v20692_v44  ;;  %v9015_v5 = vcombine.high %v9007_v10, %v9007_v10  ;;  %v14231_v18 = vrot.slane %v9007_v10, 9  ;;  %v9017_v62 = vcombine.high %v8953_v11, %v8953_v11 }
 0xadf   :  { %v8980_v59 = vrot.slane %v8966_v40, %v20692_v44  ;;  %v8981_v37 = vcombine.high %v8973_v7, %v8973_v7  ;;  %v14223_v50 = vrot.slane %v8973_v7, 9  ;;  %v9024_v22 = vrot.slane %v8953_v11, %v20692_v44  ;;  %v15571_v39 = vpop.f32.mrb[68].mxu0 }
 0xae0   :  { %v9016_v55 = vcombine.high %v9014_v29, %v9014_v29  ;;  %v14232_v30 = vrot.slane %v9015_v5, 9  ;;  %v14233_v9 = vrot.slane %v9014_v29, 9  ;;  %v9238_v26 = vmax.f32 %v9007_v10, %v14231_v18  ;;  %v8927_v31 = vpop.f32.mrb[69].mxu0 }
 0xae1   :  { %v8982_v45 = vcombine.high %v8980_v59, %v8980_v59  ;;  %v14224_v61 = vrot.slane %v8981_v37, 9  ;;  %v14225_v3 = vrot.slane %v8980_v59, 9  ;;  %v9230_v43 = vmax.f32 %v8973_v7, %v14223_v50  ;;  %v20966_v12 = vpop.f32.mrb[70].mxu0 }
 0xae2   :  { %v14234_v1 = vrot.slane %v9016_v55, 9  ;;  %v9239_v25 = vmax.f32 %v9015_v5, %v14232_v30  ;;  %v9240_v6 = vmax.f32 %v9014_v29, %v14233_v9  ;;  %v9384_v24 = vrot.slane %v9238_v26, %v20697_v48  ;;  %v20969_v4 = vpop.f32.mrb[71].mxu0 }
 0xae3   :  { %v14226_v35 = vrot.slane %v8982_v45, 9  ;;  %v9231_v60 = vmax.f32 %v8981_v37, %v14224_v61  ;;  %v9232_v51 = vmax.f32 %v8980_v59, %v14225_v3  ;;  %v9352_v41 = vrot.slane %v9230_v43, %v20697_v48 }
 0xae4   :  { %v9241_v52 = vmax.f32 %v9016_v55, %v14234_v1  ;;  %v9388_v2 = vrot.slane %v9239_v25, %v20697_v48  ;;  %v9392_v21 = vrot.slane %v9240_v6, %v20697_v48  ;;  %v9031_v16 = vrot.slane %v9017_v62, %v20692_v44 }
 0xae5   :  { %v9233_v19 = vmax.f32 %v8982_v45, %v14226_v35  ;;  %v9356_v15 = vrot.slane %v9231_v60, %v20697_v48  ;;  %v9360_v0 = vrot.slane %v9232_v51, %v20697_v48  ;;  %v9032_v47 = vcombine.high %v9024_v22, %v9024_v22 }
 0xae6   :  { %v9396_v56 = vrot.slane %v9241_v52, %v20697_v48  ;;  %v9484_v13 = vsel %vm7990_vm4, %v9388_v2, %v9384_v24  ;;  %v9033_v27 = vcombine.high %v9031_v16, %v9031_v16  ;;  %v14235_v32 = vrot.slane %v9024_v22, 9 }
 0xae7   :  { %v9485_v57 = vsel %vm7992_vm3, %v9392_v21, %v9484_v13  ;;  %v9364_v54 = vrot.slane %v9233_v19, %v20697_v48  ;;  %v9477_v49 = vsel %vm7990_vm4, %v9356_v15, %v9352_v41  ;;  %v14236_v28 = vrot.slane %v9032_v47, 9 }
 0xae8   :  { %v9478_v17 = vsel %vm7992_vm3, %v9360_v0, %v9477_v49  ;;  %v14237_v58 = vrot.slane %v9031_v16, 9  ;;  %v14238_v46 = vrot.slane %v9033_v27, 9  ;;  %v9242_v20 = vmax.f32 %v9024_v22, %v14235_v32 }
 0xae9   :  { %v9243_v23 = vmax.f32 %v9032_v47, %v14236_v28  ;;  %v9486_v34 = vsel %vm7994_vm11, %v9396_v56, %v9485_v57  ;;  %v8983_v36 = vcombine.high %v20961_v33, %v20961_v33  ;;  %v8990_v10 = vrot.slane %v20961_v33, %v20692_v44 }
 0xaea   :  { %v9244_v11 = vmax.f32 %v9031_v16, %v14237_v58  ;;  %v9245_v40 = vmax.f32 %v9033_v27, %v14238_v46  ;;  %v9400_v7 = vrot.slane %v9242_v20, %v20697_v48  ;;  %v9479_v29 = vsel %vm7994_vm11, %v9364_v54, %v9478_v17 }
 0xaeb   :  { %v9404_v5 = vrot.slane %v9243_v23, %v20697_v48  ;;  %v8997_v18 = vrot.slane %v8983_v36, %v20692_v44  ;;  %v8998_v62 = vcombine.high %v8990_v10, %v8990_v10  ;;  %v14227_v8 = vrot.slane %v8990_v10, 9 }
 0xaec   :  { %v9408_v59 = vrot.slane %v9244_v11, %v20697_v48  ;;  %v9412_v37 = vrot.slane %v9245_v40, %v20697_v48  ;;  %v9487_v50 = vsel %vm7996_vm12, %v9400_v7, %v9486_v34  ;;  %v16081_v33 = vadd.f32 %v15571_v39, %v20953_v63 }
 0xaed   :  { %v9488_v22 = vsel %vm7998_vm13, %v9404_v5, %v9487_v50  ;;  %v8999_v55 = vcombine.high %v8997_v18, %v8997_v18  ;;  %v14228_v30 = vrot.slane %v8998_v62, 9  ;;  %v14229_v9 = vrot.slane %v8997_v18, 9 }
 0xaee   :  { %v9489_v26 = vsel %vm8000_vm9, %v9408_v59, %v9488_v22  ;;  %v9234_v45 = vmax.f32 %v8990_v10, %v14227_v8  ;;  %v8956_v61 = vmax.f32 %v16081_v33, 0.0  ;;  %v16082_v3 = vadd.f32 %v20953_v63, %v8927_v31 }
 0xaef   :  { %v21000_v43 = vsel %vm8002_vm6, %v9412_v37, %v9489_v26  ;;  %v14230_v1 = vrot.slane %v8999_v55, 9  ;;  %v9235_v25 = vmax.f32 %v8998_v62, %v14228_v30  ;;  %v9236_v6 = vmax.f32 %v8997_v18, %v14229_v9 }
 0xaf0   :  { %9510 = vst [vmem:[#allocation2 + $0x9] sm:$0xff] %v21000_v43  ;;  %v9368_v39 = vrot.slane %v9234_v45, %v20697_v48  ;;  %v9068_v24 = vcombine.high %v8956_v61, %v8956_v61  ;;  %v9075_v35 = vrot.slane %v8956_v61, %v20692_v44  ;;  %v8954_v60 = vmax.f32 %v16082_v3, 0.0 }
 0xaf1   :  { %v9237_v51 = vmax.f32 %v8999_v55, %v14230_v1  ;;  %v9372_v41 = vrot.slane %v9235_v25, %v20697_v48  ;;  %v9376_v52 = vrot.slane %v9236_v6, %v20697_v48  ;;  %v16083_v31 = vadd.f32 %v20966_v12, %v20953_v63 }
 0xaf2   :  { %v9480_v2 = vsel %vm7996_vm12, %v9368_v39, %v9479_v29  ;;  %v9082_v21 = vrot.slane %v9068_v24, %v20692_v44  ;;  %v9083_v16 = vcombine.high %v9075_v35, %v9075_v35  ;;  %v14247_v19 = vrot.slane %v9075_v35, 9 }
 0xaf3   :  { %v9380_v15 = vrot.slane %v9237_v51, %v20697_v48  ;;  %v9481_v0 = vsel %vm7998_vm13, %v9372_v41, %v9480_v2  ;;  %v9034_v47 = vcombine.high %v8954_v60, %v8954_v60  ;;  %v9041_v56 = vrot.slane %v8954_v60, %v20692_v44 }
 0xaf4   :  { %v9482_v13 = vsel %vm8000_vm9, %v9376_v52, %v9481_v0  ;;  %v9084_v27 = vcombine.high %v9082_v21, %v9082_v21  ;;  %v14248_v32 = vrot.slane %v9083_v16, 9  ;;  %v14249_v57 = vrot.slane %v9082_v21, 9 }
 0xaf5   :  { %v21016_v12 = vsel %vm8002_vm6, %v9380_v15, %v9482_v13  ;;  %v9254_v54 = vmax.f32 %v9075_v35, %v14247_v19  ;;  %v9048_v49 = vrot.slane %v9034_v47, %v20692_v44  ;;  %v9049_v28 = vcombine.high %v9041_v56, %v9041_v56 }
 0xaf6   :  { %9509 = vst [vmem:[#allocation2 + $0x1] sm:$0xff] %v21016_v12  ;;  %v14250_v17 = vrot.slane %v9084_v27, 9  ;;  %v9255_v58 = vmax.f32 %v9083_v16, %v14248_v32  ;;  %v9256_v46 = vmax.f32 %v9082_v21, %v14249_v57  ;;  %v14239_v20 = vrot.slane %v9041_v56, 9 }
 0xaf7   :  { %v9448_v23 = vrot.slane %v9254_v54, %v20697_v48  ;;  %v9050_v34 = vcombine.high %v9048_v49, %v9048_v49  ;;  %v14240_v36 = vrot.slane %v9049_v28, 9  ;;  %v14241_v10 = vrot.slane %v9048_v49, 9  ;;  %v21021_v11 = vld [vmem:[#allocation2 + $0xa] sm:$0xff] }
 0xaf8   :  { %v9257_v40 = vmax.f32 %v9084_v27, %v14250_v17  ;;  %v9452_v7 = vrot.slane %v9255_v58, %v20697_v48  ;;  %v9456_v29 = vrot.slane %v9256_v46, %v20697_v48  ;;  %v9246_v5 = vmax.f32 %v9041_v56, %v14239_v20  ;;  %9897 = vst [vmem:[#allocation2 + $0x11] sm:$0x1] %v21946_v53 }
 0xaf9   :  { %v14242_v18 = vrot.slane %v9050_v34, 9  ;;  %v9247_v62 = vmax.f32 %v9049_v28, %v14240_v36  ;;  %v9248_v8 = vmax.f32 %v9048_v49, %v14241_v10  ;;  %v8957_v59 = vmax.f32 %v16083_v31, 0.0 }
 0xafa   :  { %v9460_v37 = vrot.slane %v9257_v40, %v20697_v48  ;;  %v9498_v50 = vsel %vm7990_vm4, %v9452_v7, %v9448_v23  ;;  %v16084_v33 = vadd.f32 %v20953_v63, %v20969_v4  ;;  %v9416_v9 = vrot.slane %v9246_v5, %v20697_v48 }
 0xafb   :  { %v9499_v22 = vsel %vm7992_vm3, %v9456_v29, %v9498_v50  ;;  %v9249_v55 = vmax.f32 %v9050_v34, %v14242_v18  ;;  %v9420_v30 = vrot.slane %v9247_v62, %v20697_v48  ;;  %v9085_v26 = vcombine.high %v8957_v59, %v8957_v59 }
 0xafc   :  { %v9092_v45 = vrot.slane %v8957_v59, %v20692_v44  ;;  %v8955_v61 = vmax.f32 %v16084_v33, 0.0  ;;  %v9424_v3 = vrot.slane %v9248_v8, %v20697_v48  ;;  %v9500_v1 = vsel %vm7994_vm11, %v9460_v37, %v9499_v22 }
 0xafd   :  { %v9513_v25 = vld [vmem:[#allocation2] sm:$0xff]  ;;  %v9514_v6 = vld [vmem:[#allocation2 + $0x8] sm:$0xff]  ;;  %v9630_v63 = vpack.c.bf16 %v21000_v43, %v21016_v12  ;;  %v9491_v4 = vsel %vm7990_vm4, %v9420_v30, %v9416_v9  ;;  %v9099_v39 = vrot.slane %v9085_v26, %v20692_v44  ;;  %v9428_v60 = vrot.slane %v9249_v55, %v20697_v48 }
 0xafe   :  { %v9100_v24 = vcombine.high %v9092_v45, %v9092_v45  ;;  %v14251_v35 = vrot.slane %v9092_v45, 9  ;;  %9895 = vst [vmem:[#allocation2] sm:$0x1] %v21946_v53  ;;  %v9051_v51 = vcombine.high %v8955_v61, %v8955_v61  ;;  %v9058_v41 = vrot.slane %v8955_v61, %v20692_v44  ;;  %v16616_v61 = vld [vmem:[#allocation14 + $0x350] sm:$0xff]  }
 0xaff   :  { %v9517_v52 = vpack.c.bf16 %v9514_v6, %v9513_v25  ;;  %v9101_v31 = vcombine.high %v9099_v39, %v9099_v39  ;;  %v14253_v21 = vrot.slane %v9099_v39, 9  ;;  %v9492_v43 = vsel %vm7992_vm3, %v9424_v3, %v9491_v4  ;;  %v16617_v3 = vld [vmem:[#allocation14 + $0x358] sm:$0xff]   ;;  %v16619_v25 = vld [vmem:[#allocation14 + $0x368] sm:$0xff]   ;;  %v16620_v6 = vld [vmem:[#allocation14 + $0x370] sm:$0xff]  }
 0xb00   :  { %v14252_v2 = vrot.slane %v9100_v24, 9  ;;  %v9258_v16 = vmax.f32 %v9092_v45, %v14251_v35  ;;  %v9065_v19 = vrot.slane %v9051_v51, %v20692_v44  ;;  %v9066_v15 = vcombine.high %v9058_v41, %v9058_v41  ;;  %v16615_v45 = vld [vmem:[#allocation14 + $0x348] sm:$0xff]   ;;  %v16621_v4 = vld [vmem:[#allocation14 + $0x378] sm:$0xff]   ;;  %v16624_v35 = vld [vmem:[#allocation14 + $0x390] sm:$0xff]  }
 0xb01   :  { %v14243_v0 = vrot.slane %v9058_v41, 9  ;;  %15589 = vmatprep.mubr.bf16.mxu1 %v9517_v52  ;;  %v14254_v47 = vrot.slane %v9101_v31, 9  ;;  %v9260_v13 = vmax.f32 %v9099_v39, %v14253_v21  ;;  %v9493_v58 = vsel %vm7994_vm11, %v9428_v60, %v9492_v43  ;;  %v16623_v39 = vld [vmem:[#allocation14 + $0x388] sm:$0xff]   ;;  %v16625_v60 = vld [vmem:[#allocation14 + $0x398] sm:$0xff]   ;;  %v16626_v51 = vld [vmem:[#allocation14 + $0x3a0] sm:$0xff]  }
 0xb02   :  { %v9259_v56 = vmax.f32 %v9100_v24, %v14252_v2  ;;  %v9464_v27 = vrot.slane %v9258_v16, %v20697_v48  ;;  %v9067_v32 = vcombine.high %v9065_v19, %v9065_v19  ;;  %v14244_v57 = vrot.slane %v9066_v15, 9  ;;  %v16628_v52 = vld [vmem:[#allocation14 + $0x3b0] sm:$0xff]   ;;  %v16634_v21 = vld [vmem:[#allocation14 + $0x3e0] sm:$0xff]   ;;  %v16635_v16 = vld [vmem:[#allocation14 + $0x3e8] sm:$0xff]  }
 0xb03   :  { %v14245_v12 = vrot.slane %v9065_v19, 9  ;;  %v9250_v54 = vmax.f32 %v9058_v41, %v14243_v0  ;;  %v9261_v49 = vmax.f32 %v9101_v31, %v14254_v47  ;;  %v9472_v46 = vrot.slane %v9260_v13, %v20697_v48  ;;  %v16627_v41 = vld [vmem:[#allocation14 + $0x3a8] sm:$0xff]   ;;  %15641 = vmatprep.subr.bf16.mxu0 %v16634_v21  ;;  %v16636_v43 = vld [vmem:[#allocation14 + $0x3f0] sm:$0xff]   ;;  %v14263_v0 = vld [vmem:[#allocation16 + $0x4] ss:$0 sm:$0xff] }
 0xb04   :  { %v9468_v28 = vrot.slane %v9259_v56, %v20697_v48  ;;  %v9501_v17 = vsel %vm7996_vm12, %v9464_v27, %v9500_v1  ;;  %v14246_v20 = vrot.slane %v9067_v32, 9  ;;  %v9251_v23 = vmax.f32 %v9066_v15, %v14244_v57  ;;  %v16618_v1 = vld [vmem:[#allocation14 + $0x360] sm:$0xff]   ;;  %15642 = vmatpush3.bf16.msra.mxu0 %v16634_v21 }
 0xb05   :  { %v9252_v34 = vmax.f32 %v9065_v19, %v14245_v12  ;;  %v9476_v36 = vrot.slane %v9261_v49, %v20697_v48  ;;  %v9432_v40 = vrot.slane %v9250_v54, %v20697_v48  ;;  %15643 = vmatprep.subr.bf16.mxu0 %v16635_v16  ;;  %v16637_v19 = vld [vmem:[#allocation14 + $0x3f8] sm:$0xff]   ;;  %v16638_v15 = vld [vmem:[#allocation14 + $0x400] sm:$0xff]  }
 0xb06   :  { %v9502_v10 = vsel %vm7998_vm13, %v9468_v28, %v9501_v17  ;;  %v9253_v29 = vmax.f32 %v9067_v32, %v14246_v20  ;;  %v9436_v5 = vrot.slane %v9251_v23, %v20697_v48  ;;  %v14288_v21 = vld [vmem:[#allocation16 + $0x5] ss:$0 sm:$0xff] }
 0xb07   :  { %v9503_v7 = vsel %vm8000_vm9, %v9472_v46, %v9502_v10  ;;  %v9440_v62 = vrot.slane %v9252_v34, %v20697_v48  ;;  %v9494_v8 = vsel %vm7996_vm12, %v9432_v40, %v9493_v58 }
 0xb08   :  { %v9504_v18 = vsel %vm8002_vm6, %v9476_v36, %v9503_v7  ;;  %v9444_v59 = vrot.slane %v9253_v29, %v20697_v48  ;;  %v9495_v37 = vsel %vm7998_vm13, %v9436_v5, %v9494_v8  ;;  %15644 = vmatpush3.bf16.msra.mxu0 %v16635_v16  ;;  %v16641_v8 = vld [vmem:[#allocation14 + $0x418] sm:$0xff]  }
 0xb09   :  { %9512 = vst [vmem:[#allocation2 + $0x51] sm:$0xff] %v9504_v18  ;;  %v9496_v50 = vsel %vm8000_vm9, %v9440_v62, %v9495_v37  ;;  %15645 = vmatprep.subr.bf16.mxu0 %v16636_v43  ;;  %v16640_v62 = vld [vmem:[#allocation14 + $0x410] sm:$0xff]   ;;  %v16643_v37 = vld [vmem:[#allocation14 + $0x428] sm:$0xff]  }
 0xb0a   :  { %v9497_v33 = vsel %vm8002_vm6, %v9444_v59, %v9496_v50  ;;  %v16642_v59 = vld [vmem:[#allocation14 + $0x420] sm:$0xff]   ;;  %v16644_v50 = vld [vmem:[#allocation14 + $0x430] sm:$0xff]  }
 0xb0b   :  { %9511 = vst [vmem:[#allocation2 + $0x49] sm:$0xff] %v9497_v33  ;;  %v9631_v22 = vpack.c.bf16 %v9504_v18, %v9497_v33  ;;  %v16639_v18 = vld [vmem:[#allocation14 + $0x408] sm:$0xff]   ;;  %v16645_v33 = vld [vmem:[#allocation14 + $0x438] sm:$0xff]  }
 0xb0c   :  { %15646 = vmatpush3.bf16.msra.mxu0 %v16636_v43 }
 0xb0d   :  { %15647 = vmatprep.subr.bf16.mxu0 %v16637_v19 }
 0xb10   :  { %v9736_v55 = vld [vmem:[#allocation2 + $0x52] sm:$0xff]  ;;  %15648 = vmatpush3.bf16.msra.mxu0 %v16637_v19 }
 0xb11   :  { %9898 = vst [vmem:[#allocation2 + $0x59] sm:$0x1] %v21946_v53  ;;  %15653 = vmatprep.subr.bf16.mxu0 %v16638_v15 }
 0xb12   :  { %v9515_v30 = vld [vmem:[#allocation2 + $0x48] sm:$0xff]  ;;  %v9516_v9 = vld [vmem:[#allocation2 + $0x50] sm:$0xff] }
 0xb13   :  { %v9518_v26 = vpack.c.bf16 %v9516_v9, %v9515_v30  ;;  %9896 = vst [vmem:[#allocation2 + $0x48] sm:$0x1] %v21946_v53  ;;  %v9735_v31 = vld [vmem:[#allocation2 + $0x4a] sm:$0xff] }
 0xb14   :  { %v9738_v2 = vpack.c.bf16 %v9736_v55, %v9735_v31  ;;  %v16647_v30 = vld [vmem:[#allocation14 + $0x448] sm:$0xff]   ;;  %v16680_v31 = vld [vmem:[#allocation14 + $0x550] sm:$0xff]  }
 0xb15   :  { %15590 = vmatmul.mubr.bf16.vlgmr.msra.gmra.mrb[56].mxu1 %v9518_v26  ;;  %v16648_v26 = vld [vmem:[#allocation14 + $0x450] sm:$0xff]  }
 0xb16   :  { %15594 = vmatpush3.bf16.msra.mxu1 %v20950_v42  ;;  %15609 = vmatprep.mubr.bf16.mxu1 %v9630_v63  ;;  %v16622_v42 = vld [vmem:[#allocation14 + $0x380] sm:$0xff]  }
 0xb17   :  { %15595 = vmatprep.subr.bf16.mxu1 %v16615_v45  ;;  %v9733_v63 = vld [vmem:[#allocation2 + $0x2] sm:$0xff] }
 0xb18   :  { %v9737_v24 = vpack.c.bf16 %v21021_v11, %v9733_v63  ;;  %v16629_v11 = vld [vmem:[#allocation14 + $0x3b8] sm:$0xff]   ;;  %v16655_v63 = vld [vmem:[#allocation14 + $0x488] sm:$0xff]  }
 0xb1a   :  { %15596 = vmatpush3.bf16.msra.mxu1 %v16615_v45  ;;  %v16649_v45 = vld [vmem:[#allocation14 + $0x458] sm:$0xff]  }
 0xb1b   :  { %15597 = vmatprep.subr.bf16.mxu1 %v16616_v61 }
 0xb1e   :  { %15598 = vmatpush3.bf16.msra.mxu1 %v16616_v61  ;;  %v16650_v61 = vld [vmem:[#allocation14 + $0x460] sm:$0xff]  }
 0xb1f   :  { %15599 = vmatprep.subr.bf16.mxu1 %v16617_v3 }
 0xb22   :  { %15600 = vmatpush3.bf16.msra.mxu1 %v16617_v3  ;;  %v16651_v3 = vld [vmem:[#allocation14 + $0x468] sm:$0xff]  }
 0xb23   :  { %15601 = vmatprep.subr.bf16.mxu1 %v16618_v1 }
 0xb26   :  { %15602 = vmatpush3.bf16.msra.mxu1 %v16618_v1  ;;  %v16652_v1 = vld [vmem:[#allocation14 + $0x470] sm:$0xff]  }
 0xb27   :  { %15603 = vmatprep.subr.bf16.mxu1 %v16619_v25 }
 0xb2a   :  { %15604 = vmatpush3.bf16.msra.mxu1 %v16619_v25  ;;  %v16653_v25 = vld [vmem:[#allocation14 + $0x478] sm:$0xff]  }
 0xb2b   :  { %15605 = vmatprep.subr.bf16.mxu1 %v16620_v6 }
 0xb2e   :  { %15606 = vmatpush3.bf16.msra.mxu1 %v16620_v6 }
 0xb2f   :  { %15607 = vmatprep.subr.bf16.mxu1 %v16621_v4 }
 0xb32   :  { %15608 = vmatpush3.bf16.msra.mxu1 %v16621_v4 }
 0xb33   :  { %15613 = vmatprep.subr.bf16.mxu1 %v16622_v42 }
 0xb35   :  { %15610 = vmatmul.mubr.bf16.vlgmr.msra.gmra.mrb[56].mxu1 %v9631_v22  ;;  %v16646_v22 = vld [vmem:[#allocation14 + $0x440] sm:$0xff]  }
 0xb36   :  { %15614 = vmatpush3.bf16.msra.mxu1 %v16622_v42  ;;  %15629 = vmatprep.mubr.bf16.mxu1 %v9737_v24  ;;  %v16654_v42 = vld [vmem:[#allocation14 + $0x480] sm:$0xff]   ;;  %v16657_v24 = vld [vmem:[#allocation14 + $0x498] sm:$0xff]  }
 0xb37   :  { %15615 = vmatprep.subr.bf16.mxu1 %v16623_v39 }
 0xb3a   :  { %15616 = vmatpush3.bf16.msra.mxu1 %v16623_v39  ;;  %v16656_v39 = vld [vmem:[#allocation14 + $0x490] sm:$0xff]  }
 0xb3b   :  { %15617 = vmatprep.subr.bf16.mxu1 %v16624_v35 }
 0xb3e   :  { %15618 = vmatpush3.bf16.msra.mxu1 %v16624_v35  ;;  %v16658_v35 = vld [vmem:[#allocation14 + $0x4a0] sm:$0xff]  }
 0xb3f   :  { %15619 = vmatprep.subr.bf16.mxu1 %v16625_v60 }
 0xb42   :  { %15620 = vmatpush3.bf16.msra.mxu1 %v16625_v60  ;;  %v16659_v60 = vld [vmem:[#allocation14 + $0x4a8] sm:$0xff]  }
 0xb43   :  { %15621 = vmatprep.subr.bf16.mxu1 %v16626_v51 }
 0xb46   :  { %15622 = vmatpush3.bf16.msra.mxu1 %v16626_v51  ;;  %v16660_v51 = vld [vmem:[#allocation14 + $0x4b0] sm:$0xff]  }
 0xb47   :  { %15623 = vmatprep.subr.bf16.mxu1 %v16627_v41 }
 0xb4a   :  { %15624 = vmatpush3.bf16.msra.mxu1 %v16627_v41  ;;  %v16661_v41 = vld [vmem:[#allocation14 + $0x4b8] sm:$0xff]  }
 0xb4b   :  { %15625 = vmatprep.subr.bf16.mxu1 %v16628_v52 }
 0xb4e   :  { %15626 = vmatpush3.bf16.msra.mxu1 %v16628_v52  ;;  %v16678_v52 = vld [vmem:[#allocation14 + $0x540] sm:$0xff]  }
 0xb4f   :  { %15627 = vmatprep.subr.bf16.mxu1 %v16629_v11 }
 0xb52   :  { %15628 = vmatpush3.bf16.msra.mxu1 %v16629_v11  ;;  %v16679_v11 = vld [vmem:[#allocation14 + $0x548] sm:$0xff]  }
 0xb53   :  { %15693 = vmatprep.subr.bf16.mxu1 %v21946_v53 }
 0xb55   :  { %15630 = vmatmul.mubr.bf16.vlgmr.msra.gmra.mrb[56].mxu1 %v9738_v2  ;;  %v16681_v2 = vld [vmem:[#allocation14 + $0x558] sm:$0xff]  }
 0xb56   :  { %15694 = vmatpush3.bf16.msra.mxu1 %v16654_v42  ;;  %15709 = vmatprep.mubr.msk.bf16.mxu1 %vm17473_vm10, %v21946_v53 }
 0xb57   :  { %15695 = vmatprep.subr.bf16.mxu1 %v21946_v53 }
 0xb5a   :  { %15696 = vmatpush3.bf16.msra.mxu1 %v16655_v63 }
 0xb5b   :  { %15697 = vmatprep.subr.bf16.mxu1 %v21946_v53 }
 0xb5e   :  { %15698 = vmatpush3.bf16.msra.mxu1 %v16656_v39 }
 0xb5f   :  { %15699 = vmatprep.subr.bf16.mxu1 %v21946_v53 }
 0xb62   :  { %15700 = vmatpush3.bf16.msra.mxu1 %v16657_v24 }
 0xb63   :  { %15701 = vmatprep.subr.bf16.mxu1 %v21946_v53 }
 0xb66   :  { %15702 = vmatpush3.bf16.msra.mxu1 %v16658_v35 }
 0xb67   :  { %15703 = vmatprep.subr.bf16.mxu1 %v21946_v53 }
 0xb6a   :  { %15704 = vmatpush3.bf16.msra.mxu1 %v16659_v60 }
 0xb6b   :  { %15705 = vmatprep.subr.bf16.mxu1 %v21946_v53 }
 0xb6e   :  { %15706 = vmatpush3.bf16.msra.mxu1 %v16660_v51 }
 0xb6f   :  { %15707 = vmatprep.subr.bf16.mxu1 %v21946_v53 }
 0xb72   :  { %15708 = vmatpush3.bf16.msra.mxu1 %v16661_v41 }
 0xb73   :  { %15713 = vmatprep.subr.bf16.mxu1 %v21946_v53 }
 0xc28   :  { %v15631_v47 = vpop.f32.mrb[56].mxu1 }
 0xc29   :  { %v16085_v56 = vadd.f32 %v15631_v47, %v14263_v0  ;;  %v9821_v13 = vpop.f32.mrb[57].mxu1 }
 0xc2a   :  { %v16086_v27 = vadd.f32 %v14263_v0, %v9821_v13  ;;  %v15632_v32 = vpop.f32.mrb[58].mxu1 }
 0xc2b   :  { %v9842_v57 = vmax.f32 %v16085_v56, 0.0  ;;  %v16087_v12 = vadd.f32 %v15632_v32, %v14263_v0  ;;  %v9824_v54 = vpop.f32.mrb[59].mxu1 }
 0xc2c   :  { %v9840_v49 = vmax.f32 %v16086_v27, 0.0  ;;  %v16088_v28 = vadd.f32 %v14263_v0, %v9824_v54 }
 0xc2d   :  { %9901 = vst [vmem:[#allocation2 + $0x49] sm:$0xff] %v9842_v57  ;;  %v9843_v17 = vmax.f32 %v16087_v12, 0.0 }
 0xc2e   :  { %9899 = vst [vmem:[#allocation2 + $0x1] sm:$0xff] %v9840_v49  ;;  %v9841_v58 = vmax.f32 %v16088_v28, 0.0 }
 0xc2f   :  { %9902 = vst [vmem:[#allocation2 + $0x51] sm:$0xff] %v9843_v17  ;;  %v10021_v46 = vpack.c.bf16 %v9843_v17, %v9842_v57 }
 0xc30   :  { %9900 = vst [vmem:[#allocation2 + $0x9] sm:$0xff] %v9841_v58  ;;  %v10020_v20 = vpack.c.bf16 %v9841_v58, %v9840_v49 }
 0xc34   :  { %v9905_v23 = vld [vmem:[#allocation2 + $0x48] sm:$0xff] }
 0xc35   :  { %v9903_v34 = vld [vmem:[#allocation2] sm:$0xff]  ;;  %10438 = vst [vmem:[#allocation2 + $0x48] sm:$0x1] %v21946_v53 }
 0xc36   :  { %10437 = vst [vmem:[#allocation2] sm:$0x1] %v21946_v53  ;;  %v9906_v36 = vld [vmem:[#allocation2 + $0x50] sm:$0xff] }
 0xc37   :  { %v21069_v10 = vld [vmem:[#allocation2 + $0x4a] sm:$0xff]  ;;  %v10123_v7 = vld [vmem:[#allocation2 + $0x2] sm:$0xff]  ;;  %v9908_v5 = vpack.c.bf16 %v9906_v36, %v9905_v23  ;;  %v10126_v6 = vld [vmem:[#allocation2 + $0x52] sm:$0xff] }
 0xc38   :  { %v9904_v40 = vld [vmem:[#allocation2 + $0x8] sm:$0xff]  ;;  %10440 = vst [vmem:[#allocation2 + $0x51] sm:$0x1] %v21946_v53  ;;  %v10128_v4 = vpack.c.bf16 %v10126_v6, %v21069_v10 }
 0xc39   :  { %v9907_v29 = vpack.c.bf16 %v9904_v40, %v9903_v34  ;;  %10439 = vst [vmem:[#allocation2 + $0x9] sm:$0x1] %v21946_v53  ;;  %v10124_v55 = vld [vmem:[#allocation2 + $0xa] sm:$0xff] }
 0xc3a   :  { %v10127_v9 = vpack.c.bf16 %v10124_v55, %v10123_v7 }
 0xc3b   :  { %15649 = vmatprep.mubr.bf16.mxu0 %v9907_v29 }
 0xc3c   :  { %15650 = vmatmul.mubr.bf16.vlgmr.msra.gmra.mrb[72].mxu0 %v9908_v5 }
 0xc3d   :  { %15654 = vmatpush3.bf16.msra.mxu0 %v16638_v15  ;;  %15669 = vmatprep.mubr.bf16.mxu0 %v10020_v20 }
 0xc3e   :  { %15655 = vmatprep.subr.bf16.mxu0 %v16639_v18 }
 0xc41   :  { %15656 = vmatpush3.bf16.msra.mxu0 %v16639_v18 }
 0xc42   :  { %15657 = vmatprep.subr.bf16.mxu0 %v16640_v62 }
 0xc45   :  { %15658 = vmatpush3.bf16.msra.mxu0 %v16640_v62 }
 0xc46   :  { %15659 = vmatprep.subr.bf16.mxu0 %v16641_v8 }
 0xc49   :  { %15660 = vmatpush3.bf16.msra.mxu0 %v16641_v8 }
 0xc4a   :  { %15661 = vmatprep.subr.bf16.mxu0 %v16642_v59 }
 0xc4d   :  { %15662 = vmatpush3.bf16.msra.mxu0 %v16642_v59 }
 0xc4e   :  { %15663 = vmatprep.subr.bf16.mxu0 %v16643_v37 }
 0xc51   :  { %15664 = vmatpush3.bf16.msra.mxu0 %v16643_v37 }
 0xc52   :  { %15665 = vmatprep.subr.bf16.mxu0 %v16644_v50 }
 0xc55   :  { %15666 = vmatpush3.bf16.msra.mxu0 %v16644_v50 }
 0xc56   :  { %15667 = vmatprep.subr.bf16.mxu0 %v16645_v33 }
 0xc59   :  { %15668 = vmatpush3.bf16.msra.mxu0 %v16645_v33 }
 0xc5a   :  { %15673 = vmatprep.subr.bf16.mxu0 %v16646_v22 }
 0xc5c   :  { %15670 = vmatmul.mubr.bf16.vlgmr.msra.gmra.mrb[72].mxu0 %v10021_v46 }
 0xc5d   :  { %15674 = vmatpush3.bf16.msra.mxu0 %v16646_v22  ;;  %15689 = vmatprep.mubr.bf16.mxu0 %v10127_v9 }
 0xc5e   :  { %15675 = vmatprep.subr.bf16.mxu0 %v16647_v30 }
 0xc61   :  { %15676 = vmatpush3.bf16.msra.mxu0 %v16647_v30 }
 0xc62   :  { %15677 = vmatprep.subr.bf16.mxu0 %v16648_v26 }
 0xc65   :  { %15678 = vmatpush3.bf16.msra.mxu0 %v16648_v26 }
 0xc66   :  { %15679 = vmatprep.subr.bf16.mxu0 %v16649_v45 }
 0xc69   :  { %15680 = vmatpush3.bf16.msra.mxu0 %v16649_v45 }
 0xc6a   :  { %15681 = vmatprep.subr.bf16.mxu0 %v16650_v61 }
 0xc6d   :  { %15682 = vmatpush3.bf16.msra.mxu0 %v16650_v61 }
 0xc6e   :  { %15683 = vmatprep.subr.bf16.mxu0 %v16651_v3 }
 0xc71   :  { %15684 = vmatpush3.bf16.msra.mxu0 %v16651_v3 }
 0xc72   :  { %15685 = vmatprep.subr.bf16.mxu0 %v16652_v1 }
 0xc75   :  { %15686 = vmatpush3.bf16.msra.mxu0 %v16652_v1 }
 0xc76   :  { %15687 = vmatprep.subr.bf16.mxu0 %v16653_v25 }
 0xc79   :  { %15688 = vmatpush3.bf16.msra.mxu0 %v16653_v25 }
 0xc7a   :  { %15753 = vmatprep.subr.bf16.mxu0 %v21946_v53 }
 0xc7c   :  { %15690 = vmatmul.mubr.bf16.vlgmr.msra.gmra.mrb[72].mxu0 %v10128_v4 }
 0xc7d   :  { %15769 = vmatprep.mubr.msk.bf16.mxu0 %vm17473_vm10, %v21946_v53  ;;  %15754 = vmatpush3.bf16.msra.mxu0 %v16678_v52 }
 0xc7e   :  { %15755 = vmatprep.subr.bf16.mxu0 %v21946_v53 }
 0xc81   :  { %15756 = vmatpush3.bf16.msra.mxu0 %v16679_v11 }
 0xc82   :  { %15757 = vmatprep.subr.bf16.mxu0 %v21946_v53 }
 0xc85   :  { %15758 = vmatpush3.bf16.msra.mxu0 %v16680_v31 }
 0xc86   :  { %15759 = vmatprep.subr.bf16.mxu0 %v21946_v53 }
 0xc89   :  { %15760 = vmatpush3.bf16.msra.mxu0 %v16681_v2 }
 0xc8a   :  { %15761 = vmatprep.subr.bf16.mxu0 %v21946_v53 }
 0xd4f   :  { %v15691_v16 = vpop.f32.mrb[72].mxu0 }
 0xd50   :  { %v16089_v43 = vadd.f32 %v15691_v16, %v14288_v21  ;;  %v10211_v19 = vpop.f32.mrb[73].mxu0 }
 0xd51   :  { %v16090_v15 = vadd.f32 %v14288_v21, %v10211_v19  ;;  %v15692_v0 = vpop.f32.mrb[74].mxu0 }
 0xd52   :  { %v10232_v47 = vmax.f32 %v16089_v43, 0.0  ;;  %v16091_v56 = vadd.f32 %v15692_v0, %v14288_v21  ;;  %v10214_v13 = vpop.f32.mrb[75].mxu0 }
 0xd53   :  { %v10230_v27 = vmax.f32 %v16090_v15, 0.0  ;;  %v16092_v32 = vadd.f32 %v14288_v21, %v10214_v13 }
 0xd54   :  { %v10272_v57 = vcombine.high %v10232_v47, %v10232_v47  ;;  %v10279_v12 = vrot.slane %v10232_v47, %v20692_v44  ;;  %v10233_v54 = vmax.f32 %v16091_v56, 0.0 }
 0xd55   :  { %v10238_v49 = vcombine.high %v10230_v27, %v10230_v27  ;;  %v10245_v28 = vrot.slane %v10230_v27, %v20692_v44  ;;  %v10231_v17 = vmax.f32 %v16092_v32, 0.0 }
 0xd56   :  { %v10286_v58 = vrot.slane %v10272_v57, %v20692_v44  ;;  %v10287_v46 = vcombine.high %v10279_v12, %v10279_v12  ;;  %v14313_v20 = vrot.slane %v10279_v12, 9  ;;  %v10289_v23 = vcombine.high %v10233_v54, %v10233_v54 }
 0xd57   :  { %v10252_v34 = vrot.slane %v10238_v49, %v20692_v44  ;;  %v10253_v36 = vcombine.high %v10245_v28, %v10245_v28  ;;  %v14305_v10 = vrot.slane %v10245_v28, 9  ;;  %v10296_v40 = vrot.slane %v10233_v54, %v20692_v44 }
 0xd58   :  { %v10288_v7 = vcombine.high %v10286_v58, %v10286_v58  ;;  %v14314_v29 = vrot.slane %v10287_v46, 9  ;;  %v14315_v5 = vrot.slane %v10286_v58, 9  ;;  %v10378_v18 = vmax.f32 %v10279_v12, %v14313_v20 }
 0xd59   :  { %v10254_v62 = vcombine.high %v10252_v34, %v10252_v34  ;;  %v14306_v8 = vrot.slane %v10253_v36, 9  ;;  %v14307_v59 = vrot.slane %v10252_v34, 9  ;;  %v10370_v37 = vmax.f32 %v10245_v28, %v14305_v10 }
 0xd5a   :  { %v14316_v50 = vrot.slane %v10288_v7, 9  ;;  %v10379_v33 = vmax.f32 %v10287_v46, %v14314_v29  ;;  %v10380_v22 = vmax.f32 %v10286_v58, %v14315_v5  ;;  %v10492_v55 = vrot.slane %v10378_v18, %v20697_v48 }
 0xd5b   :  { %v14308_v30 = vrot.slane %v10254_v62, 9  ;;  %v10371_v9 = vmax.f32 %v10253_v36, %v14306_v8  ;;  %v10372_v26 = vmax.f32 %v10252_v34, %v14307_v59  ;;  %v10460_v45 = vrot.slane %v10370_v37, %v20697_v48 }
 0xd5c   :  { %v10381_v61 = vmax.f32 %v10288_v7, %v14316_v50  ;;  %v10496_v3 = vrot.slane %v10379_v33, %v20697_v48  ;;  %v10500_v1 = vrot.slane %v10380_v22, %v20697_v48  ;;  %v10303_v25 = vrot.slane %v10289_v23, %v20692_v44 }
 0xd5d   :  { %v10373_v6 = vmax.f32 %v10254_v62, %v14308_v30  ;;  %v10464_v4 = vrot.slane %v10371_v9, %v20697_v48  ;;  %v10468_v42 = vrot.slane %v10372_v26, %v20697_v48  ;;  %v10304_v63 = vcombine.high %v10296_v40, %v10296_v40 }
 0xd5e   :  { %v10504_v39 = vrot.slane %v10381_v61, %v20697_v48  ;;  %v10528_v24 = vsel %vm7990_vm4, %v10496_v3, %v10492_v55  ;;  %v10305_v35 = vcombine.high %v10303_v25, %v10303_v25  ;;  %v14317_v60 = vrot.slane %v10296_v40, 9 }
 0xd5f   :  { %v10529_v51 = vsel %vm7992_vm3, %v10500_v1, %v10528_v24  ;;  %v10521_v41 = vsel %vm7990_vm4, %v10464_v4, %v10460_v45  ;;  %v14318_v52 = vrot.slane %v10304_v63, 9  ;;  %v10472_v11 = vrot.slane %v10373_v6, %v20697_v48  ;;  %v16662_v45 = vld [vmem:[#allocation14 + $0x4c0] sm:$0xff]   ;;  %v16663_v1 = vld [vmem:[#allocation14 + $0x4c8] sm:$0xff]   ;;  %v16665_v6 = vld [vmem:[#allocation14 + $0x4d8] sm:$0xff]  }
 0xd60   :  { %v14319_v31 = vrot.slane %v10303_v25, 9  ;;  %v14320_v2 = vrot.slane %v10305_v35, 9  ;;  %v10382_v21 = vmax.f32 %v10296_v40, %v14317_v60  ;;  %v10530_v43 = vsel %vm7994_vm11, %v10504_v39, %v10529_v51  ;;  %v16666_v4 = vld [vmem:[#allocation14 + $0x4e0] sm:$0xff]   ;;  %v16669_v39 = vld [vmem:[#allocation14 + $0x4f8] sm:$0xff]   ;;  %v16672_v60 = vld [vmem:[#allocation14 + $0x510] sm:$0xff]  }
 0xd61   :  { %v10383_v16 = vmax.f32 %v10304_v63, %v14318_v52  ;;  %v10255_v19 = vcombine.high %v10231_v17, %v10231_v17  ;;  %v10262_v15 = vrot.slane %v10231_v17, %v20692_v44  ;;  %v10522_v0 = vsel %vm7992_vm3, %v10468_v42, %v10521_v41  ;;  %v16667_v42 = vld [vmem:[#allocation14 + $0x4e8] sm:$0xff]   ;;  %v16668_v63 = vld [vmem:[#allocation14 + $0x4f0] sm:$0xff]   ;;  %v16670_v24 = vld [vmem:[#allocation14 + $0x500] sm:$0xff]  }
 0xd62   :  { %v10384_v47 = vmax.f32 %v10303_v25, %v14319_v31  ;;  %v10385_v56 = vmax.f32 %v10305_v35, %v14320_v2  ;;  %v10508_v13 = vrot.slane %v10382_v21, %v20697_v48  ;;  %v10523_v36 = vsel %vm7994_vm11, %v10472_v11, %v10522_v0  ;;  %v16664_v25 = vld [vmem:[#allocation14 + $0x4d0] sm:$0xff]   ;;  %v16671_v35 = vld [vmem:[#allocation14 + $0x508] sm:$0xff]   ;;  %v16673_v51 = vld [vmem:[#allocation14 + $0x518] sm:$0xff]  }
 0xd63   :  { %v10512_v27 = vrot.slane %v10383_v16, %v20697_v48  ;;  %v10269_v32 = vrot.slane %v10255_v19, %v20692_v44  ;;  %v10270_v57 = vcombine.high %v10262_v15, %v10262_v15  ;;  %v14309_v12 = vrot.slane %v10262_v15, 9  ;;  %v16674_v41 = vld [vmem:[#allocation14 + $0x520] sm:$0xff]   ;;  %v16675_v52 = vld [vmem:[#allocation14 + $0x528] sm:$0xff]   ;;  %v16676_v11 = vld [vmem:[#allocation14 + $0x530] sm:$0xff]  }
 0xd64   :  { %v10516_v54 = vrot.slane %v10384_v47, %v20697_v48  ;;  %v10520_v49 = vrot.slane %v10385_v56, %v20697_v48  ;;  %v10531_v28 = vsel %vm7996_vm12, %v10508_v13, %v10530_v43  ;;  %v16677_v31 = vld [vmem:[#allocation14 + $0x538] sm:$0xff]   ;;  %v16682_v21 = vld [vmem:[#allocation14 + $0x560] sm:$0xff]   ;;  %v16683_v16 = vld [vmem:[#allocation14 + $0x568] sm:$0xff]  }
 0xd65   :  { %v10532_v17 = vsel %vm7998_vm13, %v10512_v27, %v10531_v28  ;;  %v10271_v58 = vcombine.high %v10269_v32, %v10269_v32  ;;  %v14310_v46 = vrot.slane %v10270_v57, 9  ;;  %v14311_v20 = vrot.slane %v10269_v32, 9  ;;  %15762 = vmatpush3.bf16.msra.mxu0 %v16682_v21  ;;  %v16684_v43 = vld [vmem:[#allocation14 + $0x570] sm:$0xff]   ;;  %v16685_v19 = vld [vmem:[#allocation14 + $0x578] sm:$0xff]  }
 0xd66   :  { %v10533_v23 = vsel %vm8000_vm9, %v10516_v54, %v10532_v17  ;;  %v10374_v34 = vmax.f32 %v10262_v15, %v14309_v12  ;;  %15763 = vmatprep.subr.bf16.mxu0 %v21946_v53  ;;  %v14330_v15 = vld [vmem:[#allocation16 + $0x6] ss:$0 sm:$0xff] }
 0xd67   :  { %v10534_v10 = vsel %vm8002_vm6, %v10520_v49, %v10533_v23  ;;  %v14312_v40 = vrot.slane %v10271_v58, 9  ;;  %v10375_v7 = vmax.f32 %v10270_v57, %v14310_v46  ;;  %v10376_v29 = vmax.f32 %v10269_v32, %v14311_v20  ;;  %v16687_v23 = vld [vmem:[#allocation14 + $0x588] sm:$0xff]  }
 0xd68   :  { %10538 = vst [vmem:[#allocation2 + $0x49] sm:$0xff] %v10534_v10  ;;  %v10476_v5 = vrot.slane %v10374_v34, %v20697_v48  ;;  %v16688_v34 = vld [vmem:[#allocation14 + $0x590] sm:$0xff]  }
 0xd69   :  { %v10377_v18 = vmax.f32 %v10271_v58, %v14312_v40  ;;  %v10480_v62 = vrot.slane %v10375_v7, %v20697_v48  ;;  %v10484_v8 = vrot.slane %v10376_v29, %v20697_v48  ;;  %15764 = vmatpush3.bf16.msra.mxu0 %v16683_v16  ;;  %v16686_v58 = vld [vmem:[#allocation14 + $0x580] sm:$0xff]   ;;  %v16691_v40 = vld [vmem:[#allocation14 + $0x5a8] sm:$0xff]   ;;  %v16692_v7 = vld [vmem:[#allocation14 + $0x5b0] sm:$0xff]  }
 0xd6a   :  { %v10524_v59 = vsel %vm7996_vm12, %v10476_v5, %v10523_v36  ;;  %15765 = vmatprep.subr.bf16.mxu0 %v21946_v53  ;;  %v16689_v36 = vld [vmem:[#allocation14 + $0x598] sm:$0xff]   ;;  %v16694_v5 = vld [vmem:[#allocation14 + $0x5c0] sm:$0xff]  }
 0xd6b   :  { %v10488_v37 = vrot.slane %v10377_v18, %v20697_v48  ;;  %v10525_v50 = vsel %vm7998_vm13, %v10480_v62, %v10524_v59  ;;  %v16693_v29 = vld [vmem:[#allocation14 + $0x5b8] sm:$0xff]   ;;  %v16695_v18 = vld [vmem:[#allocation14 + $0x5c8] sm:$0xff]   ;;  %v16696_v62 = vld [vmem:[#allocation14 + $0x5d0] sm:$0xff]  }
 0xd6c   :  { %v10526_v33 = vsel %vm8000_vm9, %v10484_v8, %v10525_v50  ;;  %v16697_v8 = vld [vmem:[#allocation14 + $0x5d8] sm:$0xff]   ;;  %v16698_v59 = vld [vmem:[#allocation14 + $0x5e0] sm:$0xff]   ;;  %v16700_v50 = vld [vmem:[#allocation14 + $0x5f0] sm:$0xff]  }
 0xd6d   :  { %v10527_v22 = vsel %vm8002_vm6, %v10488_v37, %v10526_v33  ;;  %15766 = vmatpush3.bf16.msra.mxu0 %v16684_v43  ;;  %v16699_v37 = vld [vmem:[#allocation14 + $0x5e8] sm:$0xff]   ;;  %v16701_v33 = vld [vmem:[#allocation14 + $0x5f8] sm:$0xff]  }
 0xd6e   :  { %10537 = vst [vmem:[#allocation2 + $0x1] sm:$0xff] %v10527_v22  ;;  %v14566_v55 = vpack.c.bf16 %v10534_v10, %v10527_v22  ;;  %15767 = vmatprep.subr.bf16.mxu0 %v21946_v53  ;;  %v16690_v10 = vld [vmem:[#allocation14 + $0x5a0] sm:$0xff]  }
 0xd6f   :  { %v10540_v30 = vld [vmem:[#allocation2 + $0x48] sm:$0xff] }
 0xd70   :  { %v10748_v9 = vld [vmem:[#allocation2 + $0x4a] sm:$0xff]  ;;  %10902 = vst [vmem:[#allocation2 + $0x48] sm:$0x1] %v21946_v53 }
 0xd71   :  { %10904 = vst [vmem:[#allocation2 + $0x51] sm:$0x1] %v21946_v53  ;;  %15768 = vmatpush3.bf16.msra.mxu0 %v16685_v19 }
 0xd72   :  { %15773 = vmatprep.subr.bf16.mxu0 %v21946_v53 }
 0xd75   :  { %v10539_v26 = vld [vmem:[#allocation2] sm:$0xff] }
 0xd76   :  { %v10747_v61 = vld [vmem:[#allocation2 + $0x2] sm:$0xff]  ;;  %v14565_v3 = vpack.c.bf16 %v10540_v30, %v10539_v26  ;;  %10901 = vst [vmem:[#allocation2] sm:$0x1] %v21946_v53  ;;  %v16703_v30 = vld [vmem:[#allocation14 + $0x608] sm:$0xff]   ;;  %v16705_v26 = vld [vmem:[#allocation14 + $0x618] sm:$0xff]  }
 0xd77   :  { %10903 = vst [vmem:[#allocation2 + $0x9] sm:$0x1] %v21946_v53  ;;  %v14567_v2 = vpack.c.bf16 %v10748_v9, %v10747_v61  ;;  %v16704_v9 = vld [vmem:[#allocation14 + $0x610] sm:$0xff]   ;;  %v16707_v61 = vld [vmem:[#allocation14 + $0x628] sm:$0xff]  }
 0xd78   :  { %15710 = vmatmul.mubr.bf16.vlgmr.msra.gmra.mrb[60].mxu1 %v14565_v3  ;;  %v16708_v3 = vld [vmem:[#allocation14 + $0x630] sm:$0xff]  }
 0xd79   :  { %15714 = vmatpush3.bf16.msra.mxu1 %v16662_v45  ;;  %15729 = vmatprep.mubr.msk.bf16.mxu1 %vm17473_vm10, %v21946_v53  ;;  %v16706_v45 = vld [vmem:[#allocation14 + $0x620] sm:$0xff]  }
 0xd7a   :  { %15715 = vmatprep.subr.bf16.mxu1 %v21946_v53 }
 0xd7d   :  { %15716 = vmatpush3.bf16.msra.mxu1 %v16663_v1  ;;  %v16709_v1 = vld [vmem:[#allocation14 + $0x638] sm:$0xff]  }
 0xd7e   :  { %15717 = vmatprep.subr.bf16.mxu1 %v21946_v53 }
 0xd81   :  { %15718 = vmatpush3.bf16.msra.mxu1 %v16664_v25  ;;  %v16726_v25 = vld [vmem:[#allocation14 + $0x6c0] sm:$0xff]  }
 0xd82   :  { %15719 = vmatprep.subr.bf16.mxu1 %v21946_v53 }
 0xd85   :  { %15720 = vmatpush3.bf16.msra.mxu1 %v16665_v6  ;;  %v16727_v6 = vld [vmem:[#allocation14 + $0x6c8] sm:$0xff]  }
 0xd86   :  { %15721 = vmatprep.subr.bf16.mxu1 %v21946_v53 }
 0xd89   :  { %15722 = vmatpush3.bf16.msra.mxu1 %v16666_v4  ;;  %v16728_v4 = vld [vmem:[#allocation14 + $0x6d0] sm:$0xff]  }
 0xd8a   :  { %15723 = vmatprep.subr.bf16.mxu1 %v21946_v53 }
 0xd8d   :  { %15724 = vmatpush3.bf16.msra.mxu1 %v16667_v42  ;;  %v16729_v42 = vld [vmem:[#allocation14 + $0x6d8] sm:$0xff]  }
 0xd8e   :  { %15725 = vmatprep.subr.bf16.mxu1 %v21946_v53 }
 0xd91   :  { %15726 = vmatpush3.bf16.msra.mxu1 %v16668_v63  ;;  %v14358_v63 = vld [vmem:[#allocation16 + $0x7] ss:$0 sm:$0xff] }
 0xd92   :  { %15727 = vmatprep.subr.bf16.mxu1 %v21946_v53 }
 0xd95   :  { %15728 = vmatpush3.bf16.msra.mxu1 %v16669_v39 }
 0xd96   :  { %15733 = vmatprep.subr.bf16.mxu1 %v21946_v53 }
 0xd98   :  { %15730 = vmatmul.mubr.bf16.vlgmr.msra.gmra.mrb[60].mxu1 %v14566_v55  ;;  %v16702_v55 = vld [vmem:[#allocation14 + $0x600] sm:$0xff]  }
 0xd99   :  { %15734 = vmatpush3.bf16.msra.mxu1 %v16670_v24  ;;  %15749 = vmatprep.mubr.msk.bf16.mxu1 %vm17473_vm10, %v21946_v53 }
 0xd9a   :  { %15735 = vmatprep.subr.bf16.mxu1 %v21946_v53 }
 0xd9d   :  { %15736 = vmatpush3.bf16.msra.mxu1 %v16671_v35 }
 0xd9e   :  { %15737 = vmatprep.subr.bf16.mxu1 %v21946_v53 }
 0xda1   :  { %15738 = vmatpush3.bf16.msra.mxu1 %v16672_v60 }
 0xda2   :  { %15739 = vmatprep.subr.bf16.mxu1 %v21946_v53 }
 0xda5   :  { %15740 = vmatpush3.bf16.msra.mxu1 %v16673_v51 }
 0xda6   :  { %15741 = vmatprep.subr.bf16.mxu1 %v21946_v53 }
 0xda9   :  { %15742 = vmatpush3.bf16.msra.mxu1 %v16674_v41 }
 0xdaa   :  { %15743 = vmatprep.subr.bf16.mxu1 %v21946_v53 }
 0xdad   :  { %15744 = vmatpush3.bf16.msra.mxu1 %v16675_v52 }
 0xdae   :  { %15745 = vmatprep.subr.bf16.mxu1 %v21946_v53 }
 0xdb1   :  { %15746 = vmatpush3.bf16.msra.mxu1 %v16676_v11 }
 0xdb2   :  { %15747 = vmatprep.subr.bf16.mxu1 %v21946_v53 }
 0xdb5   :  { %15748 = vmatpush3.bf16.msra.mxu1 %v16677_v31 }
 0xdb6   :  { %15813 = vmatprep.subr.bf16.mxu1 %v21946_v53 }
 0xdb8   :  { %15750 = vmatmul.mubr.bf16.vlgmr.msra.gmra.mrb[60].mxu1 %v14567_v2 }
 0xdb9   :  { %15829 = vmatprep.mubr.msk.bf16.mxu1 %vm17473_vm10, %v21946_v53  ;;  %15814 = vmatpush3.bf16.msra.mxu1 %v16702_v55 }
 0xdba   :  { %15815 = vmatprep.subr.bf16.mxu1 %v21946_v53 }
 0xdbd   :  { %15816 = vmatpush3.bf16.msra.mxu1 %v16703_v30 }
 0xdbe   :  { %15817 = vmatprep.subr.bf16.mxu1 %v21946_v53 }
 0xdc1   :  { %15818 = vmatpush3.bf16.msra.mxu1 %v16704_v9 }
 0xdc2   :  { %15819 = vmatprep.subr.bf16.mxu1 %v21946_v53 }
 0xdc5   :  { %15820 = vmatpush3.bf16.msra.mxu1 %v16705_v26 }
 0xdc6   :  { %15821 = vmatprep.subr.bf16.mxu1 %v21946_v53 }
 0xdc9   :  { %15822 = vmatpush3.bf16.msra.mxu1 %v16706_v45 }
 0xdca   :  { %15823 = vmatprep.subr.bf16.mxu1 %v21946_v53 }
 0xdcd   :  { %15824 = vmatpush3.bf16.msra.mxu1 %v16707_v61 }
 0xdce   :  { %15825 = vmatprep.subr.bf16.mxu1 %v21946_v53 }
 0xdd1   :  { %15826 = vmatpush3.bf16.msra.mxu1 %v16708_v3 }
 0xdd2   :  { %15827 = vmatprep.subr.bf16.mxu1 %v21946_v53 }
 0xdd5   :  { %15828 = vmatpush3.bf16.msra.mxu1 %v16709_v1  ;;  %v16710_v1 = vld [vmem:[#allocation14 + $0x640] sm:$0xff]  }
 0xdd6   :  { %15833 = vmatprep.subr.bf16.mxu1 %v21946_v53 }
 0xe8b   :  { %v10839_v0 = vpop.f32.mrb[60].mxu1 }
 0xe8c   :  { %v16093_v47 = vadd.f32 %v14330_v15, %v10839_v0  ;;  %v15751_v56 = vpop.f32.mrb[61].mxu1 }
 0xe8d   :  { %v10842_v13 = vpop.f32.mrb[62].mxu1 }
 0xe8e   :  { %v10848_v27 = vmax.f32 %v16093_v47, 0.0  ;;  %v16094_v32 = vadd.f32 %v14330_v15, %v10842_v13  ;;  %v15752_v57 = vpop.f32.mrb[63].mxu1 }
 0xe90   :  { %10905 = vst [vmem:[#allocation2 + $0x1] sm:$0xff] %v10848_v27  ;;  %v10849_v12 = vmax.f32 %v16094_v32, 0.0 }
 0xe92   :  { %10906 = vst [vmem:[#allocation2 + $0x49] sm:$0xff] %v10849_v12  ;;  %v14569_v54 = vpack.c.bf16 %v10849_v12, %v10848_v27 }
 0xe97   :  { %v10907_v49 = vld [vmem:[#allocation2] sm:$0xff] }
 0xe98   :  { %v11115_v28 = vld [vmem:[#allocation2 + $0x2] sm:$0xff]  ;;  %11345 = vst [vmem:[#allocation2] sm:$0x1] %v21946_v53 }
 0xe99   :  { %11347 = vst [vmem:[#allocation2 + $0x5] sm:$0x1] %v21946_v53  ;;  %v10908_v17 = vld [vmem:[#allocation2 + $0x48] sm:$0xff] }
 0xe9a   :  { %v11116_v46 = vld [vmem:[#allocation2 + $0x4a] sm:$0xff]  ;;  %v14568_v20 = vpack.c.bf16 %v10908_v17, %v10907_v49  ;;  %11346 = vst [vmem:[#allocation2 + $0x48] sm:$0x1] %v21946_v53 }
 0xe9b   :  { %11348 = vst [vmem:[#allocation2 + $0x4d] sm:$0x1] %v21946_v53  ;;  %v14570_v22 = vpack.c.bf16 %v11116_v46, %v11115_v28 }
 0xe9c   :  { %15770 = vmatmul.mubr.bf16.vlgmr.msra.gmra.mrb[76].mxu0 %v14568_v20 }
 0xe9d   :  { %15774 = vmatpush3.bf16.msra.mxu0 %v16686_v58  ;;  %15789 = vmatprep.mubr.msk.bf16.mxu0 %vm17473_vm10, %v21946_v53 }
 0xe9e   :  { %15775 = vmatprep.subr.bf16.mxu0 %v21946_v53 }
 0xea1   :  { %15776 = vmatpush3.bf16.msra.mxu0 %v16687_v23 }
 0xea2   :  { %15777 = vmatprep.subr.bf16.mxu0 %v21946_v53 }
 0xea5   :  { %15778 = vmatpush3.bf16.msra.mxu0 %v16688_v34 }
 0xea6   :  { %15779 = vmatprep.subr.bf16.mxu0 %v21946_v53 }
 0xea9   :  { %15780 = vmatpush3.bf16.msra.mxu0 %v16689_v36 }
 0xeaa   :  { %15781 = vmatprep.subr.bf16.mxu0 %v21946_v53 }
 0xead   :  { %15782 = vmatpush3.bf16.msra.mxu0 %v16690_v10 }
 0xeae   :  { %15783 = vmatprep.subr.bf16.mxu0 %v21946_v53 }
 0xeb1   :  { %15784 = vmatpush3.bf16.msra.mxu0 %v16691_v40 }
 0xeb2   :  { %15785 = vmatprep.subr.bf16.mxu0 %v21946_v53 }
 0xeb5   :  { %15786 = vmatpush3.bf16.msra.mxu0 %v16692_v7 }
 0xeb6   :  { %15787 = vmatprep.subr.bf16.mxu0 %v21946_v53 }
 0xeb9   :  { %15788 = vmatpush3.bf16.msra.mxu0 %v16693_v29 }
 0xeba   :  { %15793 = vmatprep.subr.bf16.mxu0 %v21946_v53 }
 0xebc   :  { %15790 = vmatmul.mubr.bf16.vlgmr.msra.gmra.mrb[76].mxu0 %v14569_v54 }
 0xebd   :  { %15794 = vmatpush3.bf16.msra.mxu0 %v16694_v5  ;;  %15809 = vmatprep.mubr.msk.bf16.mxu0 %vm17473_vm10, %v21946_v53 }
 0xebe   :  { %15795 = vmatprep.subr.bf16.mxu0 %v21946_v53 }
 0xec1   :  { %15796 = vmatpush3.bf16.msra.mxu0 %v16695_v18 }
 0xec2   :  { %15797 = vmatprep.subr.bf16.mxu0 %v21946_v53 }
 0xec5   :  { %15798 = vmatpush3.bf16.msra.mxu0 %v16696_v62 }
 0xec6   :  { %15799 = vmatprep.subr.bf16.mxu0 %v21946_v53 }
 0xec9   :  { %15800 = vmatpush3.bf16.msra.mxu0 %v16697_v8 }
 0xeca   :  { %15801 = vmatprep.subr.bf16.mxu0 %v21946_v53 }
 0xecd   :  { %15802 = vmatpush3.bf16.msra.mxu0 %v16698_v59 }
 0xece   :  { %15803 = vmatprep.subr.bf16.mxu0 %v21946_v53 }
 0xed1   :  { %15804 = vmatpush3.bf16.msra.mxu0 %v16699_v37 }
 0xed2   :  { %15805 = vmatprep.subr.bf16.mxu0 %v21946_v53 }
 0xed5   :  { %15806 = vmatpush3.bf16.msra.mxu0 %v16700_v50 }
 0xed6   :  { %15807 = vmatprep.subr.bf16.mxu0 %v21946_v53 }
 0xed9   :  { %15808 = vmatpush3.bf16.msra.mxu0 %v16701_v33 }
 0xeda   :  { %15873 = vmatprep.subr.bf16.mxu0 %v21946_v53 }
 0xedc   :  { %15810 = vmatmul.mubr.bf16.vlgmr.msra.gmra.mrb[76].mxu0 %v14570_v22 }
 0xedd   :  { %15889 = vmatprep.mubr.msk.bf16.mxu0 %vm17473_vm10, %v21946_v53  ;;  %15874 = vmatpush3.bf16.msra.mxu0 %v16726_v25 }
 0xede   :  { %15875 = vmatprep.subr.bf16.mxu0 %v21946_v53 }
 0xee1   :  { %15876 = vmatpush3.bf16.msra.mxu0 %v16727_v6  ;;  %v16711_v6 = vld [vmem:[#allocation14 + $0x648] sm:$0xff]  }
 0xee2   :  { %15877 = vmatprep.subr.bf16.mxu0 %v21946_v53 }
 0xee5   :  { %15878 = vmatpush3.bf16.msra.mxu0 %v16728_v4  ;;  %v16712_v4 = vld [vmem:[#allocation14 + $0x650] sm:$0xff]  }
 0xee6   :  { %15879 = vmatprep.subr.bf16.mxu0 %v21946_v53 }
 0xee9   :  { %15880 = vmatpush3.bf16.msra.mxu0 %v16729_v42  ;;  %v16713_v42 = vld [vmem:[#allocation14 + $0x658] sm:$0xff]  }
 0xeea   :  { %15881 = vmatprep.subr.bf16.mxu0 %v21946_v53 }
 0xfaf   :  { %v11207_v39 = vpop.f32.mrb[76].mxu0 }
 0xfb0   :  { %v16095_v24 = vadd.f32 %v14358_v63, %v11207_v39  ;;  %v15811_v35 = vpop.f32.mrb[77].mxu0  ;;  %v16715_v39 = vld [vmem:[#allocation14 + $0x668] sm:$0xff]  }
 0xfb1   :  { %v11210_v60 = vpop.f32.mrb[78].mxu0 }
 0xfb2   :  { %v11216_v51 = vmax.f32 %v16095_v24, 0.0  ;;  %v16096_v41 = vadd.f32 %v14358_v63, %v11210_v60  ;;  %v15812_v52 = vpop.f32.mrb[79].mxu0  ;;  %v16714_v63 = vld [vmem:[#allocation14 + $0x660] sm:$0xff]   ;;  %v16716_v24 = vld [vmem:[#allocation14 + $0x670] sm:$0xff]   ;;  %v16717_v60 = vld [vmem:[#allocation14 + $0x678] sm:$0xff]  }
 0xfb3   :  { %v16718_v52 = vld [vmem:[#allocation14 + $0x680] sm:$0xff]  }
 0xfb4   :  { %v11220_v11 = vcombine.high %v11216_v51, %v11216_v51  ;;  %v11227_v31 = vrot.slane %v11216_v51, %v20692_v44  ;;  %v11217_v2 = vmax.f32 %v16096_v41, 0.0 }
 0xfb6   :  { %v11234_v21 = vrot.slane %v11220_v11, %v20692_v44  ;;  %v11235_v16 = vcombine.high %v11227_v31, %v11227_v31  ;;  %v14377_v43 = vrot.slane %v11227_v31, 9  ;;  %v11237_v19 = vcombine.high %v11217_v2, %v11217_v2 }
 0xfb7   :  { %v11244_v15 = vrot.slane %v11217_v2, %v20692_v44  ;;  %v16720_v2 = vld [vmem:[#allocation14 + $0x690] sm:$0xff]  }
 0xfb8   :  { %v11236_v0 = vcombine.high %v11234_v21, %v11234_v21  ;;  %v14378_v47 = vrot.slane %v11235_v16, 9  ;;  %v14379_v56 = vrot.slane %v11234_v21, 9  ;;  %v11286_v13 = vmax.f32 %v11227_v31, %v14377_v43  ;;  %v16719_v31 = vld [vmem:[#allocation14 + $0x688] sm:$0xff]  }
 0xfb9   :  { %v11251_v27 = vrot.slane %v11237_v19, %v20692_v44  ;;  %v11252_v32 = vcombine.high %v11244_v15, %v11244_v15  ;;  %v14381_v57 = vrot.slane %v11244_v15, 9  ;;  %v16723_v43 = vld [vmem:[#allocation14 + $0x6a8] sm:$0xff]   ;;  %v16724_v19 = vld [vmem:[#allocation14 + $0x6b0] sm:$0xff]  }
 0xfba   :  { %v14380_v12 = vrot.slane %v11236_v0, 9  ;;  %v11287_v54 = vmax.f32 %v11235_v16, %v14378_v47  ;;  %v11288_v49 = vmax.f32 %v11234_v21, %v14379_v56  ;;  %v11360_v23 = vrot.slane %v11286_v13, %v20697_v48  ;;  %v16721_v21 = vld [vmem:[#allocation14 + $0x698] sm:$0xff]   ;;  %v16722_v16 = vld [vmem:[#allocation14 + $0x6a0] sm:$0xff]   ;;  %v16731_v13 = vld [vmem:[#allocation14 + $0x6e8] sm:$0xff]  }
 0xfbb   :  { %v11253_v28 = vcombine.high %v11251_v27, %v11251_v27  ;;  %v14382_v17 = vrot.slane %v11252_v32, 9  ;;  %v14383_v58 = vrot.slane %v11251_v27, 9  ;;  %v11290_v46 = vmax.f32 %v11244_v15, %v14381_v57  ;;  %v16725_v15 = vld [vmem:[#allocation14 + $0x6b8] sm:$0xff]   ;;  %v16730_v56 = vld [vmem:[#allocation14 + $0x6e0] sm:$0xff]  }
 0xfbc   :  { %v11289_v20 = vmax.f32 %v11236_v0, %v14380_v12  ;;  %v11364_v34 = vrot.slane %v11287_v54, %v20697_v48  ;;  %v11368_v36 = vrot.slane %v11288_v49, %v20697_v48  ;;  %15882 = vmatpush3.bf16.msra.mxu0 %v16730_v56  ;;  %v16750_v57 = vld [vmem:[%s21761_s15] ss:$24 sps:$4 sm:$0xff]   ;;  %v16752_v12 = vld [vmem:[%s21761_s15 + $0x4] ss:$24 sps:$4 sm:$0xff]   ;;  %v16758_v54 = vld [vmem:[%s21761_s15 + $0x34] ss:$24 sps:$4 sm:$0xff]  }
 0xfbd   :  { %v14384_v10 = vrot.slane %v11253_v28, 9  ;;  %v11291_v40 = vmax.f32 %v11252_v32, %v14382_v17  ;;  %v11292_v7 = vmax.f32 %v11251_v27, %v14383_v58  ;;  %v11376_v18 = vrot.slane %v11290_v46, %v20697_v48  ;;  %15883 = vmatprep.subr.bf16.mxu0 %v21946_v53  ;;  %v16732_v27 = vld [vmem:[#allocation14 + $0x6f0] sm:$0xff]   ;;  %v16733_v32 = vld [vmem:[#allocation14 + $0x6f8] sm:$0xff]   ;;  %v14394_v58 = vld [vmem:[#allocation16 + $0x8] ss:$0 sm:$0xff] }
 0xfbe   :  { %v11372_v29 = vrot.slane %v11289_v20, %v20697_v48  ;;  %v11389_v5 = vsel %vm7990_vm4, %v11364_v34, %v11360_v23  ;;  %v16756_v49 = vld [vmem:[%s21761_s15 + $0x30] ss:$24 sps:$4 sm:$0xff]   ;;  %v16762_v17 = vld [vmem:[%s21761_s15 + $0x60] ss:$24 sps:$4 sm:$0xff]  }
 0xfbf   :  { %v11390_v62 = vsel %vm7992_vm3, %v11368_v36, %v11389_v5  ;;  %v11293_v8 = vmax.f32 %v11253_v28, %v14384_v10  ;;  %v11380_v59 = vrot.slane %v11291_v40, %v20697_v48  ;;  %v11384_v37 = vrot.slane %v11292_v7, %v20697_v48  ;;  %v16764_v28 = vld [vmem:[%s21761_s15 + $0x64] ss:$24 sps:$4 sm:$0xff]   ;;  %v16777_v56 = vld [vmem:[%s21761_s15 + $0xc8] ss:$24 sps:$4 sm:$0xff]  }
 0xfc0   :  { %v11391_v50 = vsel %vm7994_vm11, %v11372_v29, %v11390_v62  ;;  %15884 = vmatpush3.bf16.msra.mxu0 %v16731_v13  ;;  %v16782_v13 = vld [vmem:[%s21761_s15 + $0xf4] ss:$24 sps:$4 sm:$0xff]  }
 0xfc1   :  { %11397 = vst [vmem:[#allocation2 + $0x1] sm:$0xf] %v11391_v50  ;;  %v11388_v33 = vrot.slane %v11293_v8, %v20697_v48  ;;  %v11392_v22 = vsel %vm7990_vm4, %v11380_v59, %v11376_v18  ;;  %15885 = vmatprep.subr.bf16.mxu0 %v21946_v53  ;;  %v16734_v18 = vld [vmem:[#allocation14 + $0x700] sm:$0xff]   ;;  %v16735_v8 = vld [vmem:[#allocation14 + $0x708] sm:$0xff]   ;;  %v16736_v59 = vld [vmem:[#allocation14 + $0x710] sm:$0xff]  }
 0xfc2   :  { %v11393_v55 = vsel %vm7992_vm3, %v11384_v37, %v11392_v22  ;;  %v16737_v37 = vld [vmem:[#allocation14 + $0x718] sm:$0xff]   ;;  %v16738_v50 = vld [vmem:[#allocation14 + $0x720] sm:$0xff]   ;;  %v16740_v22 = vld [vmem:[#allocation14 + $0x730] sm:$0xff]  }
 0xfc3   :  { %v11394_v30 = vsel %vm7994_vm11, %v11388_v33, %v11393_v55  ;;  %v16739_v33 = vld [vmem:[#allocation14 + $0x728] sm:$0xff]  }
 0xfc4   :  { %11398 = vst [vmem:[#allocation2 + $0x49] sm:$0xf] %v11394_v30  ;;  %15886 = vmatpush3.bf16.msra.mxu0 %v16732_v27  ;;  %v16741_v30 = vld [vmem:[#allocation14 + $0x738] sm:$0xff]  }
 0xfc5   :  { %15887 = vmatprep.subr.bf16.mxu0 %v21946_v53  ;;  %v16785_v27 = vld [vmem:[%s21761_s15 + $0xfc] ss:$24 sps:$4 sm:$0xff]  }
 0xfc8   :  { %v11399_v9 = vld [vmem:[#allocation2] sm:$0xf]  ;;  %15888 = vmatpush3.bf16.msra.mxu0 %v16733_v32  ;;  %v16780_v32 = vld [vmem:[%s21761_s15 + $0xf0] ss:$24 sps:$4 sm:$0xff]  }
 0xfc9   :  { %v21215_v26 = vld [vmem:[#allocation2 + $0x2] sm:$0xf]  ;;  %11772 = vst [vmem:[#allocation2] sm:$0x1] %v21946_v53  ;;  %15893 = vmatprep.subr.bf16.mxu0 %v21946_v53 }
 0xfca   :  { %11774 = vst [vmem:[#allocation2 + $0x5] sm:$0x1] %v21946_v53  ;;  %v11509_v51 = vld [vmem:[#allocation2 + $0x1] sm:$0xf] }
 0xfcb   :  { %v11400_v45 = vld [vmem:[#allocation2 + $0x48] sm:$0xf] }
 0xfcc   :  { %v11614_v61 = vld [vmem:[#allocation2 + $0x4a] sm:$0xf]  ;;  %v14385_v3 = vpack.c.bf16 %v11400_v45, %v11399_v9  ;;  %11773 = vst [vmem:[#allocation2 + $0x48] sm:$0x1] %v21946_v53  ;;  %v16742_v45 = vld [vmem:[#allocation14 + $0x740] sm:$0xff]  }
 0xfcd   :  { %11775 = vst [vmem:[#allocation2 + $0x4d] sm:$0x1] %v21946_v53  ;;  %v11510_v35 = vld [vmem:[#allocation2 + $0x49] sm:$0xf]  ;;  %v14404_v0 = vpack.c.bf16 %v11614_v61, %v21215_v26 }
 0xfce   :  { %v11412_v25 = vrot.slane %v14385_v3, %v20692_v44  ;;  %v14395_v41 = vpack.c.bf16 %v11510_v35, %v11509_v51  ;;  %v16743_v3 = vld [vmem:[#allocation14 + $0x748] sm:$0xff]  }
 0xfcf   :  { %v11626_v47 = vrot.slane %v14404_v0, %v20692_v44  ;;  %v16753_v51 = vld [vmem:[%s21761_s15 + $0x8] ss:$24 sps:$4 sm:$0xff]   ;;  %v16779_v0 = vld [vmem:[%s21761_s15 + $0xcc] ss:$24 sps:$4 sm:$0xff]  }
 0xfd0   :  { %15830 = vmatmul.mubr.bf16.vlgmr.msra.gmra.mrb[64].mxu1 %v11412_v25  ;;  %v11522_v11 = vrot.slane %v14395_v41, %v20692_v44  ;;  %v16745_v25 = vld [vmem:[#allocation14 + $0x758] sm:$0xff]  }
 0xfd1   :  { %15834 = vmatpush3.bf16.msra.mxu1 %v16710_v1  ;;  %15849 = vmatprep.mubr.msk.bf16.mxu1 %vm17473_vm10, %v21946_v53  ;;  %v16744_v1 = vld [vmem:[#allocation14 + $0x750] sm:$0xff]  }
 0xfd2   :  { %15835 = vmatprep.subr.bf16.mxu1 %v21946_v53 }
 0xfd5   :  { %15836 = vmatpush3.bf16.msra.mxu1 %v16711_v6  ;;  %v16746_v6 = vld [vmem:[#allocation14 + $0x760] sm:$0xff]  }
 0xfd6   :  { %15837 = vmatprep.subr.bf16.mxu1 %v21946_v53 }
 0xfd9   :  { %15838 = vmatpush3.bf16.msra.mxu1 %v16712_v4  ;;  %v16747_v4 = vld [vmem:[#allocation14 + $0x768] sm:$0xff]  }
 0xfda   :  { %15839 = vmatprep.subr.bf16.mxu1 %v21946_v53 }
 0xfdd   :  { %15840 = vmatpush3.bf16.msra.mxu1 %v16713_v42  ;;  %v16748_v42 = vld [vmem:[#allocation14 + $0x770] sm:$0xff]  }
 0xfde   :  { %15841 = vmatprep.subr.bf16.mxu1 %v21946_v53 }
 0xfe1   :  { %15842 = vmatpush3.bf16.msra.mxu1 %v16714_v63 }
 0xfe2   :  { %15843 = vmatprep.subr.bf16.mxu1 %v21946_v53 }
 0xfe5   :  { %15844 = vmatpush3.bf16.msra.mxu1 %v16715_v39  ;;  %v16749_v39 = vld [vmem:[#allocation14 + $0x778] sm:$0xff]  }
 0xfe6   :  { %15845 = vmatprep.subr.bf16.mxu1 %v21946_v53 }
 0xfe9   :  { %15846 = vmatpush3.bf16.msra.mxu1 %v16716_v24 }
 0xfea   :  { %15847 = vmatprep.subr.bf16.mxu1 %v21946_v53 }
 0xfed   :  { %15848 = vmatpush3.bf16.msra.mxu1 %v16717_v60  ;;  %v16755_v60 = vld [vmem:[%s21761_s15 + $0xc] ss:$24 sps:$4 sm:$0xff]  }
 0xfee   :  { %15853 = vmatprep.subr.bf16.mxu1 %v21946_v53 }
 0xff0   :  { %15850 = vmatmul.mubr.bf16.vlgmr.msra.gmra.mrb[64].mxu1 %v11522_v11  ;;  %v16759_v11 = vld [vmem:[%s21761_s15 + $0x38] ss:$24 sps:$4 sm:$0xff]  }
 0xff1   :  { %15854 = vmatpush3.bf16.msra.mxu1 %v16718_v52  ;;  %15869 = vmatprep.mubr.msk.bf16.mxu1 %vm17473_vm10, %v21946_v53  ;;  %v16761_v52 = vld [vmem:[%s21761_s15 + $0x3c] ss:$24 sps:$4 sm:$0xff]  }
 0xff2   :  { %15855 = vmatprep.subr.bf16.mxu1 %v21946_v53 }
 0xff5   :  { %15856 = vmatpush3.bf16.msra.mxu1 %v16719_v31  ;;  %v16767_v31 = vld [vmem:[%s21761_s15 + $0x6c] ss:$24 sps:$4 sm:$0xff]  }
 0xff6   :  { %15857 = vmatprep.subr.bf16.mxu1 %v21946_v53 }
 0xff9   :  { %15858 = vmatpush3.bf16.msra.mxu1 %v16720_v2  ;;  %v16765_v2 = vld [vmem:[%s21761_s15 + $0x68] ss:$24 sps:$4 sm:$0xff]  }
 0xffa   :  { %15859 = vmatprep.subr.bf16.mxu1 %v21946_v53 }
 0xffd   :  { %15860 = vmatpush3.bf16.msra.mxu1 %v16721_v21  ;;  %v16770_v21 = vld [vmem:[%s21761_s15 + $0x94] ss:$24 sps:$4 sm:$0xff]  }
 0xffe   :  { %15861 = vmatprep.subr.bf16.mxu1 %v21946_v53 }
0x1001   :  { %15862 = vmatpush3.bf16.msra.mxu1 %v16722_v16  ;;  %v16773_v16 = vld [vmem:[%s21761_s15 + $0x9c] ss:$24 sps:$4 sm:$0xff]  }
0x1002   :  { %15863 = vmatprep.subr.bf16.mxu1 %v21946_v53 }
0x1005   :  { %15864 = vmatpush3.bf16.msra.mxu1 %v16723_v43  ;;  %v16768_v43 = vld [vmem:[%s21761_s15 + $0x90] ss:$24 sps:$4 sm:$0xff]  }
0x1006   :  { %15865 = vmatprep.subr.bf16.mxu1 %v21946_v53 }
0x1009   :  { %15866 = vmatpush3.bf16.msra.mxu1 %v16724_v19  ;;  %v16771_v19 = vld [vmem:[%s21761_s15 + $0x98] ss:$24 sps:$4 sm:$0xff]  }
0x100a   :  { %15867 = vmatprep.subr.bf16.mxu1 %v21946_v53 }
0x100d   :  { %15868 = vmatpush3.bf16.msra.mxu1 %v16725_v15  ;;  %v16776_v15 = vld [vmem:[%s21761_s15 + $0xc4] ss:$24 sps:$4 sm:$0xff]  }
0x100e   :  { %12483 = vmatprep.subr.bf16.mxu1 %v16752_v12  ;;  %v16788_v12 = vld [vmem:[%s21761_s15 + $0x124] ss:$24 sps:$4 sm:$0xff]  }
0x1010   :  { %15870 = vmatmul.mubr.bf16.vlgmr.msra.gmra.mrb[64].mxu1 %v11626_v47  ;;  %v16774_v47 = vld [vmem:[%s21761_s15 + $0xc0] ss:$24 sps:$4 sm:$0xff]  }
0x1011   :  { %12484 = vmatpush1.bf16.msra.mxu1 %v16750_v57  ;;  %v16783_v57 = vld [vmem:[%s21761_s15 + $0xf8] ss:$24 sps:$4 sm:$0xff]  }
0x1012   :  { %12485 = vmatprep.subr.bf16.mxu1 %v16758_v54  ;;  %v16791_v54 = vld [vmem:[%s21761_s15 + $0x12c] ss:$24 sps:$4 sm:$0xff]  }
0x1015   :  { %12486 = vmatpush1.bf16.msra.mxu1 %v16756_v49  ;;  %v16786_v49 = vld [vmem:[%s21761_s15 + $0x120] ss:$24 sps:$4 sm:$0xff]  }
0x1016   :  { %12487 = vmatprep.subr.bf16.mxu1 %v16764_v28  ;;  %v16789_v28 = vld [vmem:[%s21761_s15 + $0x128] ss:$24 sps:$4 sm:$0xff]  }
0x1019   :  { %12488 = vmatpush1.bf16.msra.mxu1 %v16762_v17  ;;  %v16792_v17 = vld [vmem:[%s21761_s15 + $0x150] ss:$24 sps:$4 sm:$0xff]  }
0x101a   :  { %12489 = vmatprep.subr.bf16.mxu1 %v16770_v21  ;;  %v16819_v21 = vld [vmem:[%s21760_s14 + $0x90] ss:$24 sps:$4 sm:$0xff]  }
0x101d   :  { %12490 = vmatpush1.bf16.msra.mxu1 %v16768_v43  ;;  %v16827_v43 = vld [vmem:[%s21760_s14 + $0xc4] ss:$24 sps:$4 sm:$0xff]  }
0x101e   :  { %12491 = vmatprep.subr.bf16.mxu1 %v16776_v15 }
0x1021   :  { %12492 = vmatpush1.bf16.msra.mxu1 %v16774_v47  ;;  %v16825_v47 = vld [vmem:[%s21760_s14 + $0xc0] ss:$24 sps:$4 sm:$0xff]  }
0x1022   :  { %12493 = vmatprep.subr.bf16.mxu1 %v16782_v13  ;;  %v16833_v13 = vld [vmem:[%s21760_s14 + $0xf4] ss:$24 sps:$4 sm:$0xff]  }
0x1025   :  { %12494 = vmatpush1.bf16.msra.mxu1 %v16780_v32 }
0x1026   :  { %12495 = vmatprep.subr.bf16.mxu1 %v16788_v12  ;;  %v16831_v12 = vld [vmem:[%s21760_s14 + $0xf0] ss:$24 sps:$4 sm:$0xff]  }
0x1029   :  { %12496 = vmatpush1.bf16.msra.mxu1 %v16786_v49  ;;  %v16839_v49 = vld [vmem:[%s21760_s14 + $0x124] ss:$24 sps:$4 sm:$0xff]  }
0x10e3   :  { %v11710_v46 = vpop.f32.mrb[64].mxu1 }
0x10e4   :  { %v16097_v20 = vadd.f32 %v14394_v58, %v11710_v46  ;;  %v15871_v23 = vpop.f32.mrb[65].mxu1  ;;  %v16794_v58 = vld [vmem:[%s21761_s15 + $0x154] ss:$24 sps:$4 sm:$0xff]   ;;  %v16795_v46 = vld [vmem:[%s21761_s15 + $0x158] ss:$24 sps:$4 sm:$0xff]  }
0x10e5   :  { %v11713_v34 = vpop.f32.mrb[66].mxu1  ;;  %12497 = vmatprep.subr.bf16.mxu1 %v16794_v58  ;;  %v17474_v23 = vmov 0   ;;  %v16834_v58 = vld [vmem:[%s21761_s15 + $0x130] ss:$24 sps:$4 sm:$0xff]  }
0x10e6   :  { %v11717_v36 = vmax.f32 %v16097_v20, 0.0  ;;  %v15872_v10 = vpop.f32.mrb[67].mxu1  ;;  %v16797_v20 = vld [vmem:[%s21761_s15 + $0x15c] ss:$24 sps:$4 sm:$0xff]   ;;  %12515 = vmatprep.mubr.bf16.mxu1 %v17474_v23  ;;  %12498 = vmatpush1.bf16.msra.mxu1 %v16792_v17 }
0x10e7   :  { %v16800_v34 = vld [vmem:[%s21761_s15 + $0x14] ss:$24 sps:$4 sm:$0xff]   ;;  %v14422_v10 = vld [vmem:[#allocation16 + $0x9] ss:$0 sm:$0xff] }
0x10e8   :  { %v11719_v40 = vcombine.high %v11717_v36, %v11717_v36  ;;  %11776 = vst [vmem:[#allocation2 + $0x1] sm:$0xf] %v11717_v36  ;;  %v16803_v36 = vld [vmem:[%s21760_s14 + $0x4] ss:$24 sps:$4 sm:$0xff]   ;;  %12565 = vmatprep.subr.bf16.mxu1 %v16800_v34  ;;  %v16845_v34 = vld [vmem:[%s21760_s14 + $0x154] ss:$24 sps:$4 sm:$0xff]  }
0x10ea   :  { %11777 = vst [vmem:[#allocation2 + $0x49] sm:$0xf] %v11719_v40 }
0x10ef   :  { %v11778_v7 = vld [vmem:[#allocation2] sm:$0xf] }
0x10f0   :  { %v11888_v9 = vld [vmem:[#allocation2 + $0x1] sm:$0xf] }
0x10f1   :  { %v11779_v29 = vld [vmem:[#allocation2 + $0x48] sm:$0xf]  ;;  %v11992_v24 = vld [vmem:[#allocation2 + $0x2] sm:$0xf] }
0x10f2   :  { %v14413_v5 = vpack.c.bf16 %v11779_v29, %v11778_v7  ;;  %v11889_v55 = vld [vmem:[#allocation2 + $0x49] sm:$0xf] }
0x10f3   :  { %v14423_v26 = vpack.c.bf16 %v11889_v55, %v11888_v9  ;;  %v11993_v63 = vld [vmem:[#allocation2 + $0x4a] sm:$0xf] }
0x10f4   :  { %v11791_v62 = vrot.slane %v14413_v5, %v20692_v44  ;;  %v14432_v35 = vpack.c.bf16 %v11993_v63, %v11992_v24  ;;  %v16809_v63 = vld [vmem:[%s21760_s14 + $0x34] ss:$24 sps:$4 sm:$0xff]   ;;  %v16807_v24 = vld [vmem:[%s21760_s14 + $0x30] ss:$24 sps:$4 sm:$0xff]  }
0x10f5   :  { %v11901_v61 = vrot.slane %v14423_v26, %v20692_v44 }
0x10f6   :  { %15890 = vmatmul.mubr.bf16.vlgmr.msra.gmra.mrb[80].mxu0 %v11791_v62  ;;  %v12005_v41 = vrot.slane %v14432_v35, %v20692_v44  ;;  %v16812_v35 = vld [vmem:[%s21761_s15 + $0x74] ss:$24 sps:$4 sm:$0xff]  }
0x10f7   :  { %15894 = vmatpush3.bf16.msra.mxu0 %v16734_v18  ;;  %15909 = vmatprep.mubr.msk.bf16.mxu0 %vm17473_vm10, %v21946_v53 }
0x10f8   :  { %15895 = vmatprep.subr.bf16.mxu0 %v21946_v53 }
0x10fb   :  { %15896 = vmatpush3.bf16.msra.mxu0 %v16735_v8 }
0x10fc   :  { %15897 = vmatprep.subr.bf16.mxu0 %v21946_v53 }
0x10ff   :  { %15898 = vmatpush3.bf16.msra.mxu0 %v16736_v59 }
0x1100   :  { %15899 = vmatprep.subr.bf16.mxu0 %v21946_v53 }
0x1103   :  { %15900 = vmatpush3.bf16.msra.mxu0 %v16737_v37 }
0x1104   :  { %15901 = vmatprep.subr.bf16.mxu0 %v21946_v53 }
0x1107   :  { %15902 = vmatpush3.bf16.msra.mxu0 %v16738_v50 }
0x1108   :  { %15903 = vmatprep.subr.bf16.mxu0 %v21946_v53 }
0x110b   :  { %15904 = vmatpush3.bf16.msra.mxu0 %v16739_v33 }
0x110c   :  { %15905 = vmatprep.subr.bf16.mxu0 %v21946_v53 }
0x110f   :  { %15906 = vmatpush3.bf16.msra.mxu0 %v16740_v22 }
0x1110   :  { %15907 = vmatprep.subr.bf16.mxu0 %v21946_v53 }
0x1113   :  { %15908 = vmatpush3.bf16.msra.mxu0 %v16741_v30 }
0x1114   :  { %15913 = vmatprep.subr.bf16.mxu0 %v21946_v53 }
0x1116   :  { %15910 = vmatmul.mubr.bf16.vlgmr.msra.gmra.mrb[80].mxu0 %v11901_v61 }
0x1117   :  { %15914 = vmatpush3.bf16.msra.mxu0 %v16742_v45  ;;  %15929 = vmatprep.mubr.msk.bf16.mxu0 %vm17473_vm10, %v21946_v53 }
0x1118   :  { %15915 = vmatprep.subr.bf16.mxu0 %v21946_v53 }
0x111b   :  { %15916 = vmatpush3.bf16.msra.mxu0 %v16743_v3 }
0x111c   :  { %15917 = vmatprep.subr.bf16.mxu0 %v21946_v53 }
0x111f   :  { %15918 = vmatpush3.bf16.msra.mxu0 %v16744_v1 }
0x1120   :  { %15919 = vmatprep.subr.bf16.mxu0 %v21946_v53 }
0x1123   :  { %15920 = vmatpush3.bf16.msra.mxu0 %v16745_v25  ;;  %v16798_v25 = vld [vmem:[%s21761_s15 + $0x10] ss:$24 sps:$4 sm:$0xff]  }
0x1124   :  { %15921 = vmatprep.subr.bf16.mxu0 %v21946_v53 }
0x1127   :  { %15922 = vmatpush3.bf16.msra.mxu0 %v16746_v6  ;;  %v16801_v6 = vld [vmem:[%s21760_s14] ss:$24 sps:$4 sm:$0xff]  }
0x1128   :  { %15923 = vmatprep.subr.bf16.mxu0 %v21946_v53 }
0x112b   :  { %15924 = vmatpush3.bf16.msra.mxu0 %v16747_v4 }
0x112c   :  { %15925 = vmatprep.subr.bf16.mxu0 %v21946_v53 }
0x112f   :  { %15926 = vmatpush3.bf16.msra.mxu0 %v16748_v42  ;;  %v16806_v42 = vld [vmem:[%s21761_s15 + $0x44] ss:$24 sps:$4 sm:$0xff]  }
0x1130   :  { %15927 = vmatprep.subr.bf16.mxu0 %v21946_v53 }
0x1133   :  { %15928 = vmatpush3.bf16.msra.mxu0 %v16749_v39  ;;  %v16804_v39 = vld [vmem:[%s21761_s15 + $0x40] ss:$24 sps:$4 sm:$0xff]  }
0x1134   :  { %12524 = vmatprep.subr.bf16.mxu0 %v16755_v60  ;;  %v16815_v60 = vld [vmem:[%s21760_s14 + $0x64] ss:$24 sps:$4 sm:$0xff]  }
0x1136   :  { %15930 = vmatmul.mubr.bf16.vlgmr.msra.gmra.mrb[80].mxu0 %v12005_v41  ;;  %v16813_v41 = vld [vmem:[%s21760_s14 + $0x60] ss:$24 sps:$4 sm:$0xff]  }
0x1137   :  { %12525 = vmatpush1.bf16.msra.mxu0 %v16753_v51  ;;  %12556 = vmatprep.mubr.bf16.mxu0 %v17474_v23  ;;  %v16810_v51 = vld [vmem:[%s21761_s15 + $0x70] ss:$24 sps:$4 sm:$0xff]  }
0x1138   :  { %12526 = vmatprep.subr.bf16.mxu0 %v16761_v52  ;;  %v16818_v52 = vld [vmem:[%s21761_s15 + $0xa4] ss:$24 sps:$4 sm:$0xff]  }
0x113b   :  { %12527 = vmatpush1.bf16.msra.mxu0 %v16759_v11  ;;  %v16821_v11 = vld [vmem:[%s21760_s14 + $0x94] ss:$24 sps:$4 sm:$0xff]  }
0x113c   :  { %12528 = vmatprep.subr.bf16.mxu0 %v16767_v31 }
0x113f   :  { %12529 = vmatpush1.bf16.msra.mxu0 %v16765_v2  ;;  %v16816_v2 = vld [vmem:[%s21761_s15 + $0xa0] ss:$24 sps:$4 sm:$0xff]  }
0x1140   :  { %12530 = vmatprep.subr.bf16.mxu0 %v16773_v16  ;;  %v16824_v16 = vld [vmem:[%s21761_s15 + $0xd4] ss:$24 sps:$4 sm:$0xff]  }
0x1143   :  { %12531 = vmatpush1.bf16.msra.mxu0 %v16771_v19 }
0x1144   :  { %12532 = vmatprep.subr.bf16.mxu0 %v16779_v0  ;;  %v16822_v0 = vld [vmem:[%s21761_s15 + $0xd0] ss:$24 sps:$4 sm:$0xff]  }
0x1147   :  { %12533 = vmatpush1.bf16.msra.mxu0 %v16777_v56  ;;  %v16830_v56 = vld [vmem:[%s21761_s15 + $0x104] ss:$24 sps:$4 sm:$0xff]  }
0x1148   :  { %12534 = vmatprep.subr.bf16.mxu0 %v16785_v27 }
0x114b   :  { %12535 = vmatpush1.bf16.msra.mxu0 %v16783_v57  ;;  %v16828_v57 = vld [vmem:[%s21761_s15 + $0x100] ss:$24 sps:$4 sm:$0xff]  }
0x114c   :  { %12536 = vmatprep.subr.bf16.mxu0 %v16791_v54  ;;  %v16836_v54 = vld [vmem:[%s21761_s15 + $0x134] ss:$24 sps:$4 sm:$0xff]  }
0x114f   :  { %12537 = vmatpush1.bf16.msra.mxu0 %v16789_v28 }
0x1150   :  { %12538 = vmatprep.subr.bf16.mxu0 %v16797_v20  ;;  %v16842_v20 = vld [vmem:[%s21761_s15 + $0x164] ss:$24 sps:$4 sm:$0xff]  }
0x1153   :  { %12539 = vmatpush1.bf16.msra.mxu0 %v16795_v46  ;;  %v16837_v46 = vld [vmem:[%s21760_s14 + $0x120] ss:$24 sps:$4 sm:$0xff]  }
0x1154   :  { %12854 = vmatprep.subr.bf16.mxu0 %v16803_v36 }
0x1209   :  { %v12089_v40 = vpop.f32.mrb[80].mxu0 }
0x120a   :  { %v16098_v7 = vadd.f32 %v14422_v10, %v12089_v40  ;;  %v15931_v29 = vpop.f32.mrb[81].mxu0  ;;  %v16840_v40 = vld [vmem:[%s21761_s15 + $0x160] ss:$24 sps:$4 sm:$0xff]  }
0x120b   :  { %v12092_v5 = vpop.f32.mrb[82].mxu0  ;;  %v16848_v29 = vld [vmem:[%s21760_s14 + $0xc] ss:$24 sps:$4 sm:$0xff]  }
0x120c   :  { %v12096_v18 = vmax.f32 %v16098_v7, 0.0  ;;  %v15932_v62 = vpop.f32.mrb[83].mxu0  ;;  %v16843_v7 = vld [vmem:[%s21760_s14 + $0x150] ss:$24 sps:$4 sm:$0xff]   ;;  %v16851_v5 = vld [vmem:[%s21760_s14 + $0x14] ss:$24 sps:$4 sm:$0xff]  }
0x120d   :  { %v16846_v62 = vld [vmem:[%s21760_s14 + $0x8] ss:$24 sps:$4 sm:$0xff]  }
0x120e   :  { %v12098_v8 = vcombine.high %v12096_v18, %v12096_v18  ;;  %v12105_v59 = vrot.slane %v12096_v18, %v20692_v44 }
0x1210   :  { %v12112_v37 = vrot.slane %v12098_v8, %v20692_v44  ;;  %v12113_v50 = vcombine.high %v12105_v59, %v12105_v59  ;;  %v14441_v15 = vrot.slane %v12105_v59, 9  ;;  %v16849_v8 = vld [vmem:[%s21760_s14 + $0x10] ss:$24 sps:$4 sm:$0xff]  }
0x1212   :  { %v12114_v33 = vcombine.high %v12112_v37, %v12112_v37  ;;  %v14442_v22 = vrot.slane %v12113_v50, 9  ;;  %v14443_v31 = vrot.slane %v12112_v37, 9  ;;  %v12131_v32 = vmax.f32 %v12105_v59, %v14441_v15 }
0x1214   :  { %v14444_v55 = vrot.slane %v12114_v33, 9  ;;  %v12132_v30 = vmax.f32 %v12113_v50, %v14442_v22  ;;  %v12133_v19 = vmax.f32 %v12112_v37, %v14443_v31  ;;  %v12135_v17 = vpack.c.bf16 %v12131_v32, %v12131_v32  ;;  %v16854_v37 = vld [vmem:[%s21760_s14 + $0x3c] ss:$24 sps:$4 sm:$0xff]   ;;  %v16855_v22 = vld [vmem:[%s21760_s14 + $0x40] ss:$24 sps:$4 sm:$0xff]  }
0x1215   :  { %v16857_v50 = vld [vmem:[%s21760_s14 + $0x44] ss:$24 sps:$4 sm:$0xff]   ;;  %v16888_v31 = vld [vmem:[%s21760_s14 + $0x158] ss:$24 sps:$4 sm:$0xff]  }
0x1216   :  { %v12134_v9 = vmax.f32 %v12114_v33, %v14444_v55  ;;  %v12185_v26 = vpack.c.bf16 %v12132_v30, %v12132_v30  ;;  %v12136_v27 = vpack.c.bf16 %v12133_v19, %v12133_v19  ;;  %v12608_v10 = vunpack.c.l.b16 %v12135_v17  ;;  %v16852_v33 = vld [vmem:[%s21760_s14 + $0x38] ss:$24 sps:$4 sm:$0xff]   ;;  %v16860_v55 = vld [vmem:[%s21760_s14 + $0x6c] ss:$24 sps:$4 sm:$0xff]  }
0x1217   :  { %v16863_v30 = vld [vmem:[%s21760_s14 + $0x74] ss:$24 sps:$4 sm:$0xff]  }
0x1218   :  { %v12186_v45 = vpack.c.bf16 %v12134_v9, %v12134_v9  ;;  %v12237_v3 = vunpack.c.l.b16 %v12185_v26  ;;  %v12609_v28 = vunpack.c.l.b16 %v12136_v27  ;;  %v16858_v9 = vld [vmem:[%s21760_s14 + $0x68] ss:$24 sps:$4 sm:$0xff]   ;;  %v12977_v32 = vld [vmem:[#allocation17] sm:$0x3f] }
0x1219   :  { %v16861_v26 = vld [vmem:[%s21760_s14 + $0x70] ss:$24 sps:$4 sm:$0xff]  }
0x121a   :  { %v12238_v61 = vunpack.c.l.b16 %v12186_v45  ;;  %v12610_v36 = vrot.slane %v12609_v28, 7  ;;  %v16866_v45 = vld [vmem:[%s21760_s14 + $0x9c] ss:$24 sps:$4 sm:$0xff]  }
0x121c   :  { %v12239_v1 = vrot.slane %v12238_v61, 7  ;;  %v12611_v18 = vsel %vm7990_vm4, %v12610_v36, %v12608_v10  ;;  %v16869_v61 = vld [vmem:[%s21760_s14 + $0xa4] ss:$24 sps:$4 sm:$0xff]  }
0x121d   :  { %v21486_v59 = vpack.c.b16 %v12611_v18, %v12611_v18 }
0x121e   :  { %v12240_v44 = vsel %vm7990_vm4, %v12239_v1, %v12237_v3  ;;  %v16864_v3 = vld [vmem:[%s21760_s14 + $0x98] ss:$24 sps:$4 sm:$0xff]  }
0x121f   :  { %v21383_v4 = vpack.c.b16 %v12240_v44, %v12240_v44  ;;  %v16867_v1 = vld [vmem:[%s21760_s14 + $0xa0] ss:$24 sps:$4 sm:$0xff]  }
0x1220   :  { %v16870_v44 = vld [vmem:[%s21760_s14 + $0xc8] ss:$24 sps:$4 sm:$0xff]  }
0x1221   :  { %12516 = vmatmul.mubr.bf16.vlgmr.msra.gmra.mrb[68].mxu1 %v21383_v4  ;;  %12557 = vmatmul.mubr.bf16.vlgmr.msra.gmra.mrb[84].mxu0 %v21383_v4 }
0x1222   :  { %12566 = vmatpush1.bf16.msra.mxu1 %v16798_v25  ;;  %12855 = vmatpush1.bf16.msra.mxu0 %v16801_v6  ;;  %v16872_v25 = vld [vmem:[%s21760_s14 + $0xcc] ss:$24 sps:$4 sm:$0xff]  }
0x1223   :  { %12567 = vmatprep.subr.bf16.mxu1 %v16806_v42  ;;  %12856 = vmatprep.subr.bf16.mxu0 %v16809_v63  ;;  %v16875_v6 = vld [vmem:[%s21760_s14 + $0xd4] ss:$24 sps:$4 sm:$0xff]   ;;  %v16881_v63 = vld [vmem:[%s21760_s14 + $0x104] ss:$24 sps:$4 sm:$0xff]  }
0x1224   :  { %12597 = vmatprep.mubr.bf16.mxu1 %v17474_v23  ;;  %12886 = vmatprep.mubr.bf16.mxu0 %v17474_v23  ;;  %v16878_v42 = vld [vmem:[%s21760_s14 + $0xfc] ss:$24 sps:$4 sm:$0xff]  }
0x1226   :  { %12568 = vmatpush1.bf16.msra.mxu1 %v16804_v39  ;;  %12857 = vmatpush1.bf16.msra.mxu0 %v16807_v24  ;;  %v16876_v39 = vld [vmem:[%s21760_s14 + $0xf8] ss:$24 sps:$4 sm:$0xff]  }
0x1227   :  { %12569 = vmatprep.subr.bf16.mxu1 %v16812_v35  ;;  %12858 = vmatprep.subr.bf16.mxu0 %v16815_v60  ;;  %v16879_v24 = vld [vmem:[%s21760_s14 + $0x100] ss:$24 sps:$4 sm:$0xff]   ;;  %v16884_v35 = vld [vmem:[%s21760_s14 + $0x12c] ss:$24 sps:$4 sm:$0xff]  }
0x1228   :  { %v16887_v60 = vld [vmem:[%s21760_s14 + $0x134] ss:$24 sps:$4 sm:$0xff]  }
0x122a   :  { %12570 = vmatpush1.bf16.msra.mxu1 %v16810_v51  ;;  %12859 = vmatpush1.bf16.msra.mxu0 %v16813_v41  ;;  %v16882_v51 = vld [vmem:[%s21760_s14 + $0x128] ss:$24 sps:$4 sm:$0xff]  }
0x122b   :  { %12571 = vmatprep.subr.bf16.mxu1 %v16818_v52  ;;  %12860 = vmatprep.subr.bf16.mxu0 %v16821_v11  ;;  %v16885_v41 = vld [vmem:[%s21760_s14 + $0x130] ss:$24 sps:$4 sm:$0xff]   ;;  %v16890_v52 = vld [vmem:[%s21760_s14 + $0x15c] ss:$24 sps:$4 sm:$0xff]  }
0x122c   :  { %v16893_v11 = vld [vmem:[%s21760_s14 + $0x164] ss:$24 sps:$4 sm:$0xff]  }
0x122e   :  { %12572 = vmatpush1.bf16.msra.mxu1 %v16816_v2  ;;  %12861 = vmatpush1.bf16.msra.mxu0 %v16819_v21  ;;  %v16891_v2 = vld [vmem:[%s21760_s14 + $0x160] ss:$24 sps:$4 sm:$0xff]  }
0x122f   :  { %12573 = vmatprep.subr.bf16.mxu1 %v16824_v16  ;;  %12862 = vmatprep.subr.bf16.mxu0 %v16827_v43  ;;  %v21576_v21 = vld [vmem:[#allocation19] sm:$0xff]   ;;  %v21583_v16 = vld [vmem:[#allocation19 + $0x8] sm:$0xff]  }
0x1232   :  { %12574 = vmatpush1.bf16.msra.mxu1 %v16822_v0  ;;  %12863 = vmatpush1.bf16.msra.mxu0 %v16825_v47 }
0x1233   :  { %12575 = vmatprep.subr.bf16.mxu1 %v16830_v56  ;;  %12864 = vmatprep.subr.bf16.mxu0 %v16833_v13 }
0x1236   :  { %12576 = vmatpush1.bf16.msra.mxu1 %v16828_v57  ;;  %12865 = vmatpush1.bf16.msra.mxu0 %v16831_v12 }
0x1237   :  { %12577 = vmatprep.subr.bf16.mxu1 %v16836_v54  ;;  %12866 = vmatprep.subr.bf16.mxu0 %v16839_v49 }
0x123a   :  { %12578 = vmatpush1.bf16.msra.mxu1 %v16834_v58  ;;  %12867 = vmatpush1.bf16.msra.mxu0 %v16837_v46 }
0x123b   :  { %12579 = vmatprep.subr.bf16.mxu1 %v16842_v20  ;;  %12868 = vmatprep.subr.bf16.mxu0 %v16845_v34 }
0x123e   :  { %12580 = vmatpush1.bf16.msra.mxu1 %v16840_v40  ;;  %12869 = vmatpush1.bf16.msra.mxu0 %v16843_v7  ;;  %v12989_v40 = vsub.s32 2, %v20686_v38  ;;  %v12997_v7 = vsub.s32 4, %v20686_v38 }
0x123f   :  { %12895 = vmatprep.subr.bf16.mxu1 %v16848_v29  ;;  %12936 = vmatprep.subr.bf16.mxu0 %v16851_v5  ;;  %v12993_v29 = vsub.s32 3, %v20686_v38  ;;  %v13001_v5 = vsub.s32 5, %v20686_v38 }
0x1240   :  { %v12990_v18 = vrot.slane %v12977_v32, %v12989_v40 }
0x1241   :  { %12598 = vmatmul.mubr.bf16.vlgmr.msra.gmra.mrb[72].mxu1 %v21383_v4  ;;  %12887 = vmatmul.mubr.bf16.vlgmr.msra.gmra.mrb[88].mxu0 %v21486_v59  ;;  %v16873_v4 = vld [vmem:[%s21760_s14 + $0xd0] ss:$24 sps:$4 sm:$0xff]   ;;  %s17475_s14 = smov 96  }
0x1242   :  { %12896 = vmatpush1.bf16.msra.mxu1 %v16846_v62  ;;  %12937 = vmatpush1.bf16.msra.mxu0 %v16849_v8  ;;  %v12998_v62 = vrot.slane %v12977_v32, %v12997_v7 }
0x1243   :  { %12897 = vmatprep.subr.bf16.mxu1 %v16854_v37  ;;  %12938 = vmatprep.subr.bf16.mxu0 %v16857_v50  ;;  %v12994_v37 = vrot.slane %v12977_v32, %v12993_v29  ;;  %v13002_v50 = vrot.slane %v12977_v32, %v13001_v5 }
0x1244   :  { %12927 = vmatprep.mubr.bf16.mxu1 %v17474_v23  ;;  %12968 = vmatprep.mubr.bf16.mxu0 %v17474_v23 }
0x1246   :  { %12898 = vmatpush1.bf16.msra.mxu1 %v16852_v33  ;;  %12939 = vmatpush1.bf16.msra.mxu0 %v16855_v22 }
0x1247   :  { %12899 = vmatprep.subr.bf16.mxu1 %v16860_v55  ;;  %12940 = vmatprep.subr.bf16.mxu0 %v16863_v30 }
0x124a   :  { %12900 = vmatpush1.bf16.msra.mxu1 %v16858_v9  ;;  %12941 = vmatpush1.bf16.msra.mxu0 %v16861_v26 }
0x124b   :  { %12901 = vmatprep.subr.bf16.mxu1 %v16866_v45  ;;  %12942 = vmatprep.subr.bf16.mxu0 %v16869_v61 }
0x124e   :  { %12902 = vmatpush1.bf16.msra.mxu1 %v16864_v3  ;;  %12943 = vmatpush1.bf16.msra.mxu0 %v16867_v1 }
0x124f   :  { %12903 = vmatprep.subr.bf16.mxu1 %v16872_v25  ;;  %12944 = vmatprep.subr.bf16.mxu0 %v16875_v6 }
0x1252   :  { %12904 = vmatpush1.bf16.msra.mxu1 %v16870_v44  ;;  %12945 = vmatpush1.bf16.msra.mxu0 %v16873_v4 }
0x1253   :  { %12905 = vmatprep.subr.bf16.mxu1 %v16878_v42  ;;  %12946 = vmatprep.subr.bf16.mxu0 %v16881_v63  ;;  %v21618_v42 = vld [vmem:[#allocation20] ss:$0 sm:$0xff] }
0x1256   :  { %12906 = vmatpush1.bf16.msra.mxu1 %v16876_v39  ;;  %12947 = vmatpush1.bf16.msra.mxu0 %v16879_v24 }
0x1257   :  { %12907 = vmatprep.subr.bf16.mxu1 %v16884_v35  ;;  %12948 = vmatprep.subr.bf16.mxu0 %v16887_v60 }
0x125a   :  { %12908 = vmatpush1.bf16.msra.mxu1 %v16882_v51  ;;  %12949 = vmatpush1.bf16.msra.mxu0 %v16885_v41  ;;  %v12982_v51 = vrot.slane %v12977_v32, %v20697_v48 }
0x125b   :  { %12909 = vmatprep.subr.bf16.mxu1 %v16890_v52  ;;  %12950 = vmatprep.subr.bf16.mxu0 %v16893_v11 }
0x125e   :  { %12910 = vmatpush1.bf16.msra.mxu1 %v16888_v31  ;;  %12951 = vmatpush1.bf16.msra.mxu0 %v16891_v2 }
0x125f   :  { %15933 = vmatprep.subr.bf16.mxu1 %v21946_v53  ;;  %15957 = vmatprep.subr.bf16.mxu0 %v21946_v53 }
0x1261   :  { %12928 = vmatmul.mubr.bf16.vlgmr.msra.gmra.mrb[76].mxu1 %v21486_v59  ;;  %12969 = vmatmul.mubr.bf16.vlgmr.msra.gmra.mrb[92].mxu0 %v21486_v59 }
0x1262   :  { %15934 = vmatpush3.bf16.msra.mxu1 %v21576_v21  ;;  %15937 = vmatprep.mubr.msk.bf16.mxu1 %vm17473_vm10, %v21946_v53 }
0x1263   :  { %15935 = vmatprep.subr.bf16.mxu1 %v21946_v53  ;;  %15958 = vmatpush3.bf16.msra.mxu0 %v21576_v21 }
0x1264   :  { %15959 = vmatprep.subr.bf16.mxu0 %v21946_v53  ;;  %15961 = vmatprep.mubr.msk.bf16.mxu0 %vm17473_vm10, %v21946_v53 }
0x1266   :  { %15936 = vmatpush3.bf16.msra.mxu1 %v21583_v16 }
0x1267   :  { %15941 = vmatprep.subr.bf16.mxu1 %v21946_v53  ;;  %15960 = vmatpush3.bf16.msra.mxu0 %v21583_v16 }
0x1268   :  { %15973 = vmatprep.subr.bf16.mxu0 %v21946_v53 }
0x1269   :  { %15938 = vmatmul.mubr.bf16.vlgmr.msra.gmra.mrb[80].mxu1 %v17474_v23  ;;  %v12985_v23 = vsub.s32 1, %v20686_v38 }
0x126a   :  { %15942 = vmatpush3.bf16.msra.mxu1 %v21576_v21  ;;  %15945 = vmatprep.mubr.msk.bf16.mxu1 %vm17473_vm10, %v21946_v53 }
0x126b   :  { %15943 = vmatprep.subr.bf16.mxu1 %v21946_v53  ;;  %v12986_v54 = vrot.slane %v12977_v32, %v12985_v23 }
0x126e   :  { %15944 = vmatpush3.bf16.msra.mxu1 %v21583_v16 }
0x126f   :  { %15949 = vmatprep.subr.bf16.mxu1 %v21946_v53 }
0x12f4   :  { %v12517_v43 = vpop.f32.mrb[68].mxu1  ;;  %v12558_v19 = vpop.f32.mrb[84].mxu0 }
0x12f5   :  { %v12519_v15 = vpop.f32.mrb[69].mxu1  ;;  %v12560_v0 = vpop.f32.mrb[85].mxu0 }
0x12f6   :  { %v12521_v47 = vpop.f32.mrb[70].mxu1  ;;  %v12562_v56 = vpop.f32.mrb[86].mxu0 }
0x12f7   :  { %v12522_v13 = vpop.f32.mrb[71].mxu1  ;;  %v12563_v27 = vpop.f32.mrb[87].mxu0 }
0x1314   :  { %v12599_v57 = vpop.f32.mrb[72].mxu1  ;;  %v12888_v12 = vpop.f32.mrb[88].mxu0 }
0x1315   :  { %v12889_v49 = vadd.f32 %v12888_v12, %v12517_v43  ;;  %v12601_v28 = vpop.f32.mrb[73].mxu1  ;;  %v12890_v17 = vpop.f32.mrb[89].mxu0 }
0x1316   :  { %v12891_v58 = vadd.f32 %v12890_v17, %v12519_v15  ;;  %v12603_v46 = vpop.f32.mrb[74].mxu1  ;;  %v12892_v20 = vpop.f32.mrb[90].mxu0 }
0x1317   :  { %v12604_v34 = vpop.f32.mrb[75].mxu1  ;;  %v12893_v36 = vpop.f32.mrb[91].mxu0  ;;  %v13009_v41 = vadd.f32 %v12982_v51, %v12889_v49 }
0x1318   :  { %v21604_v10 = vadd.f32 %v12986_v54, %v12891_v58 }
0x1334   :  { %v12929_v8 = vpop.f32.mrb[76].mxu1  ;;  %v12970_v59 = vpop.f32.mrb[92].mxu0 }
0x1335   :  { %v12930_v33 = vadd.f32 %v12929_v8, %v12558_v19  ;;  %v12971_v22 = vadd.f32 %v12970_v59, %v12599_v57  ;;  %v12931_v55 = vpop.f32.mrb[77].mxu1  ;;  %v12972_v30 = vpop.f32.mrb[93].mxu0 }
0x1336   :  { %v12932_v9 = vadd.f32 %v12931_v55, %v12560_v0  ;;  %v12973_v26 = vadd.f32 %v12972_v30, %v12601_v28  ;;  %v12933_v45 = vpop.f32.mrb[78].mxu1  ;;  %v12974_v61 = vpop.f32.mrb[94].mxu0 }
0x1337   :  { %v21610_v3 = vadd.f32 %v12990_v18, %v12930_v33  ;;  %v21612_v1 = vadd.f32 %v12998_v62, %v12971_v22  ;;  %v12934_v25 = vpop.f32.mrb[79].mxu1  ;;  %v12975_v6 = vpop.f32.mrb[95].mxu0 }
0x1338   :  { %v21614_v44 = vadd.f32 %v12994_v37, %v12932_v9  ;;  %v21616_v4 = vadd.f32 %v13002_v50, %v12973_v26 }
0x133c   :  { %v13075_v63 = vpop.f32.mrb[80].mxu1 }
0x133d   :  { %v13076_v39 = vadd.f32 %v21618_v42, %v13075_v63  ;;  %v15939_v24 = vpop.f32.mrb[81].mxu1 }
0x133e   :  { %v13078_v35 = vpop.f32.mrb[82].mxu1 }
0x133f   :  { %13089 = vrot.lane.b32.xlu0 %v13076_v39, %s17451_s4  ;;  %v15940_v60 = vpop.f32.mrb[83].mxu1  ;;  %v13081_v52 = vadd.f32 %v13076_v39, %v13009_v41 }
0x1341   :  { %v14544_v11 = vmul.f32 -1.442695, %v13081_v52 }
0x1343   :  { %17090 = vpow2.f32 %v14544_v11 }
0x134d   :  { %v17091_v31 = vpop.eup %17090 }
0x134e   :  { %v13085_v2 = vadd.f32 1.0, %v17091_v31 }
0x1350   :  { %17092 = vrcp.f32 %v13085_v2 }
0x135a   :  { %v17093_v43 = vpop.eup %17092 }
0x135b   :  { %v13099_v13 = vsub.f32 1.0, %v17093_v43  ;;  %v13105_v23 = vmul.f32 0.0, %v17093_v43 }
0x13b1   :  { %v13090_v19 = vpop.permute.xlu0 %13089 }
0x13b2   :  { %v13092_v15 = vmul.f32 %v17093_v43, %v13090_v19 }
0x13b4   :  { %13094 = vrot.lane.b32.xlu1 %v13092_v15, %s17451_s4 }
0x1426   :  { %v13095_v0 = vpop.permute.xlu1 %13094 }
0x1427   :  { %v13097_v47 = vadd.f32 %v13095_v0, %v13009_v41 }
0x1429   :  { %17094 = vtanh.f32 %v13097_v47 }
0x1433   :  { %v17095_v56 = vpop.eup %17094 }
0x1434   :  { %13101 = vrot.lane.b32.xlu0 %v17095_v56, %s17475_s14 }
0x14a6   :  { %v13102_v27 = vpop.permute.xlu0 %13101 }
0x14a7   :  { %v13104_v32 = vmul.f32 %v13102_v27, %v13099_v13 }
0x14a9   :  { %v13106_v57 = vadd.f32 %v13105_v23, %v13104_v32 }
0x14ab   :  { %v13107_v12 = vpack.c.bf16 %v13106_v57, %v13106_v57 }
0x14ad   :  { %13109 = vrot.lane.b32.xlu1 %v13107_v12, %s17475_s14 }
0x151f   :  { %v13110_v54 = vpop.permute.xlu1 %13109 }
0x1520   :  { %15946 = vmatmul.mubr.msk.bf16.vlgmr.msra.gmra.mrb[84].mxu1 %vm1695_vm2, %v13110_v54 }
0x1521   :  { %15950 = vmatpush3.bf16.msra.mxu1 %v21576_v21  ;;  %15953 = vmatprep.mubr.msk.bf16.mxu1 %vm17473_vm10, %v21946_v53 }
0x1522   :  { %15951 = vmatprep.subr.bf16.mxu1 %v21946_v53 }
0x1525   :  { %15952 = vmatpush3.bf16.msra.mxu1 %v21583_v16 }
0x1526   :  { %15965 = vmatprep.subr.bf16.mxu1 %v21946_v53 }
0x15f3   :  { %v13148_v49 = vpop.f32.mrb[84].mxu1 }
0x15f4   :  { %v13149_v28 = vadd.f32 %v21618_v42, %v13148_v49  ;;  %v15947_v17 = vpop.f32.mrb[85].mxu1 }
0x15f5   :  { %v13151_v58 = vpop.f32.mrb[86].mxu1 }
0x15f6   :  { %13172 = vrot.lane.b32.xlu1 %v13149_v28, %s17476_s2  ;;  %13155 = vrot.lane.b32.xlu0 %v13149_v28, %s17475_s14  ;;  %v15948_v46 = vpop.f32.mrb[87].mxu1 }
0x1668   :  { %v13156_v20 = vpop.permute.xlu0 %13155  ;;  %v13173_v5 = vpop.permute.xlu1 %13172 }
0x1669   :  { %v13158_v34 = vadd.f32 %v13156_v20, %v13009_v41  ;;  %v13165_v37 = vadd.f32 %v13156_v20, %v21604_v10 }
0x166b   :  { %v14546_v36 = vmul.f32 -1.442695, %v13158_v34  ;;  %v14547_v50 = vmul.f32 -1.442695, %v13165_v37 }
0x166d   :  { %17096 = vpow2.f32 %v14546_v36 }
0x1677   :  { %v17097_v40 = vpop.eup %17096 }
0x1678   :  { %v13162_v7 = vadd.f32 1.0, %v17097_v40 }
0x167a   :  { %17098 = vrcp.f32 %v13162_v7 }
0x1684   :  { %v17099_v29 = vpop.eup %17098 }
0x1685   :  { %v13175_v18 = vmul.f32 %v17099_v29, %v13173_v5 }
0x1687   :  { %13177 = vrot.lane.b32.xlu0 %v13175_v18, %s17451_s4 }
0x168b   :  { %13189 = vrot.lane.b32.xlu0 %v13106_v57, %s17475_s14 }
0x16f9   :  { %v13178_v62 = vpop.permute.xlu0 %13177 }
0x16fa   :  { %v13180_v8 = vadd.f32 %v13178_v62, %v21604_v10 }
0x16fc   :  { %17100 = vtanh.f32 %v13180_v8 }
0x16fd   :  { %17102 = vpow2.f32 %v14547_v50  ;;  %v13190_v30 = vpop.permute.xlu0 %13189 }
0x1706   :  { %v17101_v59 = vpop.eup %17100 }
0x1707   :  { %13184 = vrot.lane.b32.xlu1 %v17101_v59, %s17475_s14  ;;  %v17103_v33 = vpop.eup %17102 }
0x1708   :  { %v13169_v22 = vadd.f32 1.0, %v17103_v33 }
0x170a   :  { %17104 = vrcp.f32 %v13169_v22 }
0x1714   :  { %v17105_v55 = vpop.eup %17104 }
0x1715   :  { %v13182_v9 = vsub.f32 1.0, %v17105_v55  ;;  %v13192_v45 = vmul.f32 %v17105_v55, %v13190_v30 }
0x1779   :  { %v13185_v26 = vpop.permute.xlu1 %13184 }
0x177a   :  { %v13187_v61 = vmul.f32 %v13185_v26, %v13182_v9 }
0x177c   :  { %v13193_v25 = vadd.f32 %v13192_v45, %v13187_v61 }
0x177e   :  { %v13194_v6 = vpack.c.bf16 %v13193_v25, %v13193_v25 }
0x1780   :  { %15954 = vmatmul.mubr.msk.bf16.vlgmr.msra.gmra.mrb[88].mxu1 %vm1695_vm2, %v13194_v6 }
0x1781   :  { %15966 = vmatpush3.bf16.msra.mxu1 %v21576_v21  ;;  %15969 = vmatprep.mubr.msk.bf16.mxu1 %vm17473_vm10, %v21946_v53 }
0x1782   :  { %15967 = vmatprep.subr.bf16.mxu1 %v21946_v53 }
0x1785   :  { %15968 = vmatpush3.bf16.msra.mxu1 %v21583_v16 }
0x1786   :  { %15981 = vmatprep.subr.bf16.mxu1 %v21946_v53 }
0x1853   :  { %v13232_v63 = vpop.f32.mrb[88].mxu1 }
0x1854   :  { %v13233_v39 = vadd.f32 %v21618_v42, %v13232_v63  ;;  %v15955_v24 = vpop.f32.mrb[89].mxu1 }
0x1855   :  { %v13235_v35 = vpop.f32.mrb[90].mxu1 }
0x1856   :  { %13239 = vrot.lane.b32.xlu1 %v13233_v39, %s17451_s4  ;;  %v15956_v60 = vpop.f32.mrb[91].mxu1 }
0x18c8   :  { %v13240_v51 = vpop.permute.xlu1 %13239 }
0x18c9   :  { %v13242_v41 = vadd.f32 %v13240_v51, %v21604_v10 }
0x18cb   :  { %v14549_v52 = vmul.f32 -1.442695, %v13242_v41 }
0x18cd   :  { %17106 = vpow2.f32 %v14549_v52 }
0x18d7   :  { %v17107_v11 = vpop.eup %17106 }
0x18d8   :  { %v13246_v31 = vadd.f32 1.0, %v17107_v11 }
0x18da   :  { %17108 = vrcp.f32 %v13246_v31 }
0x18e4   :  { %v17109_v2 = vpop.eup %17108 }
0x18e5   :  { %v13249_v43 = vmul.f32 %v17109_v2, %v13233_v39  ;;  %v13256_v10 = vsub.f32 1.0, %v17109_v2 }
0x18e7   :  { %13251 = vrot.lane.b32.xlu0 %v13249_v43, %s17451_s4 }
0x18eb   :  { %13263 = vrot.lane.b32.xlu0 %v13193_v25, %s17475_s14 }
0x1959   :  { %v13252_v19 = vpop.permute.xlu0 %13251 }
0x195a   :  { %v13254_v15 = vadd.f32 %v13252_v19, %v21610_v3 }
0x195c   :  { %17110 = vtanh.f32 %v13254_v15 }
0x195d   :  { %v13264_v47 = vpop.permute.xlu0 %13263 }
0x195e   :  { %v13266_v13 = vmul.f32 %v17109_v2, %v13264_v47 }
0x1966   :  { %v17111_v0 = vpop.eup %17110 }
0x1967   :  { %13258 = vrot.lane.b32.xlu1 %v17111_v0, %s17475_s14 }
0x19d9   :  { %v13259_v56 = vpop.permute.xlu1 %13258 }
0x19da   :  { %v13261_v27 = vmul.f32 %v13259_v56, %v13256_v10 }
0x19dc   :  { %v13267_v23 = vadd.f32 %v13266_v13, %v13261_v27 }
0x19de   :  { %v13268_v32 = vpack.c.bf16 %v13267_v23, %v13267_v23 }
0x19e0   :  { %13270 = vrot.lane.b32.xlu1 %v13268_v32, %s17476_s2 }
0x1a52   :  { %v13271_v57 = vpop.permute.xlu1 %13270 }
0x1a53   :  { %15962 = vmatmul.mubr.msk.bf16.vlgmr.msra.gmra.mrb[96].mxu0 %vm1695_vm2, %v13271_v57 }
0x1a54   :  { %15974 = vmatpush3.bf16.msra.mxu0 %v21576_v21  ;;  %15977 = vmatprep.mubr.msk.bf16.mxu0 %vm17473_vm10, %v21946_v53 }
0x1a55   :  { %15975 = vmatprep.subr.bf16.mxu0 %v21946_v53 }
0x1a58   :  { %15976 = vmatpush3.bf16.msra.mxu0 %v21583_v16 }
0x1a59   :  { %15989 = vmatprep.subr.bf16.mxu0 %v21946_v53 }
0x1b26   :  { %v13309_v12 = vpop.f32.mrb[96].mxu0 }
0x1b27   :  { %v13310_v54 = vadd.f32 %v21618_v42, %v13309_v12  ;;  %v15963_v49 = vpop.f32.mrb[97].mxu0 }
0x1b28   :  { %v13312_v28 = vpop.f32.mrb[98].mxu0 }
0x1b29   :  { %13326 = vrot.lane.b32.xlu1 %v13310_v54, %s17475_s14  ;;  %13316 = vrot.lane.b32.xlu0 %v13310_v54, %s17476_s2  ;;  %v15964_v17 = vpop.f32.mrb[99].mxu0 }
0x1b9b   :  { %v13317_v58 = vpop.permute.xlu0 %13316  ;;  %v13327_v7 = vpop.permute.xlu1 %13326 }
0x1b9c   :  { %v13319_v46 = vadd.f32 %v13317_v58, %v21610_v3 }
0x1b9e   :  { %v14551_v20 = vmul.f32 -1.442695, %v13319_v46 }
0x1ba0   :  { %17112 = vpow2.f32 %v14551_v20 }
0x1baa   :  { %v17113_v34 = vpop.eup %17112 }
0x1bab   :  { %v13323_v36 = vadd.f32 1.0, %v17113_v34 }
0x1bad   :  { %17114 = vrcp.f32 %v13323_v36 }
0x1bb7   :  { %v17115_v40 = vpop.eup %17114 }
0x1bb8   :  { %v13329_v29 = vmul.f32 %v17115_v40, %v13327_v7  ;;  %v13336_v59 = vsub.f32 1.0, %v17115_v40 }
0x1bba   :  { %13331 = vrot.lane.b32.xlu0 %v13329_v29, %s17451_s4 }
0x1bbe   :  { %13343 = vrot.lane.b32.xlu0 %v13267_v23, %s17475_s14 }
0x1c2c   :  { %v13332_v5 = vpop.permute.xlu0 %13331 }
0x1c2d   :  { %v13334_v18 = vadd.f32 %v13332_v5, %v21610_v3 }
0x1c2f   :  { %17116 = vtanh.f32 %v13334_v18 }
0x1c30   :  { %v13344_v8 = vpop.permute.xlu0 %13343 }
0x1c31   :  { %v13346_v50 = vmul.f32 %v17115_v40, %v13344_v8 }
0x1c39   :  { %v17117_v62 = vpop.eup %17116 }
0x1c3a   :  { %13338 = vrot.lane.b32.xlu1 %v17117_v62, %s17475_s14 }
0x1cac   :  { %v13339_v37 = vpop.permute.xlu1 %13338 }
0x1cad   :  { %v13341_v33 = vmul.f32 %v13339_v37, %v13336_v59 }
0x1caf   :  { %v13347_v22 = vadd.f32 %v13346_v50, %v13341_v33 }
0x1cb1   :  { %v13348_v55 = vpack.c.bf16 %v13347_v22, %v13347_v22 }
0x1cb3   :  { %13350 = vrot.lane.b32.xlu1 %v13348_v55, %s17451_s4 }
0x1d25   :  { %v13351_v30 = vpop.permute.xlu1 %13350 }
0x1d26   :  { %15970 = vmatmul.mubr.msk.bf16.vlgmr.msra.gmra.mrb[92].mxu1 %vm1695_vm2, %v13351_v30 }
0x1d27   :  { %15982 = vmatpush3.bf16.msra.mxu1 %v21576_v21  ;;  %15985 = vmatprep.mubr.msk.bf16.mxu1 %vm17473_vm10, %v21946_v53 }
0x1d28   :  { %15983 = vmatprep.subr.bf16.mxu1 %v21946_v53 }
0x1d2b   :  { %15984 = vmatpush3.bf16.msra.mxu1 %v21583_v16 }
0x1d2c   :  { %15997 = vmatprep.subr.bf16.mxu1 %v21946_v53 }
0x1df9   :  { %v13389_v3 = vpop.f32.mrb[92].mxu1 }
0x1dfa   :  { %v13390_v9 = vadd.f32 %v21618_v42, %v13389_v3  ;;  %v15971_v26 = vpop.f32.mrb[93].mxu1 }
0x1dfb   :  { %v13392_v45 = vpop.f32.mrb[94].mxu1 }
0x1dfc   :  { %13403 = vrot.lane.b32.xlu0 %v13390_v9, %s17451_s4  ;;  %v15972_v61 = vpop.f32.mrb[95].mxu1  ;;  %v13395_v25 = vadd.f32 %v13390_v9, %v21614_v44 }
0x1dfe   :  { %v14553_v6 = vmul.f32 -1.442695, %v13395_v25 }
0x1e00   :  { %17118 = vpow2.f32 %v14553_v6 }
0x1e0a   :  { %v17119_v63 = vpop.eup %17118 }
0x1e0b   :  { %v13399_v39 = vadd.f32 1.0, %v17119_v63 }
0x1e0d   :  { %17120 = vrcp.f32 %v13399_v39 }
0x1e17   :  { %v17121_v24 = vpop.eup %17120 }
0x1e18   :  { %v13413_v31 = vsub.f32 1.0, %v17121_v24 }
0x1e6e   :  { %v13404_v35 = vpop.permute.xlu0 %13403 }
0x1e6f   :  { %v13406_v60 = vmul.f32 %v17121_v24, %v13404_v35 }
0x1e71   :  { %13408 = vrot.lane.b32.xlu1 %v13406_v60, %s17451_s4 }
0x1e75   :  { %13420 = vrot.lane.b32.xlu1 %v13347_v22, %s17475_s14 }
0x1ee3   :  { %v13409_v51 = vpop.permute.xlu1 %13408 }
0x1ee4   :  { %v13411_v41 = vadd.f32 %v13409_v51, %v21614_v44 }
0x1ee6   :  { %17122 = vtanh.f32 %v13411_v41 }
0x1ee7   :  { %v13421_v11 = vpop.permute.xlu1 %13420 }
0x1ee8   :  { %v13423_v43 = vmul.f32 %v17121_v24, %v13421_v11 }
0x1ef0   :  { %v17123_v52 = vpop.eup %17122 }
0x1ef1   :  { %13415 = vrot.lane.b32.xlu0 %v17123_v52, %s17475_s14 }
0x1f63   :  { %v13416_v2 = vpop.permute.xlu0 %13415 }
0x1f64   :  { %v13418_v19 = vmul.f32 %v13416_v2, %v13413_v31 }
0x1f66   :  { %v13424_v15 = vadd.f32 %v13423_v43, %v13418_v19 }
0x1f68   :  { %v13425_v0 = vpack.c.bf16 %v13424_v15, %v13424_v15 }
0x1f6a   :  { %13427 = vrot.lane.b32.xlu0 %v13425_v0, %s17475_s14 }
0x1fdc   :  { %v13428_v47 = vpop.permute.xlu0 %13427 }
0x1fdd   :  { %15978 = vmatmul.mubr.msk.bf16.vlgmr.msra.gmra.mrb[100].mxu0 %vm1695_vm2, %v13428_v47 }
0x1fde   :  { %15990 = vmatpush3.bf16.msra.mxu0 %v21576_v21  ;;  %15993 = vmatprep.mubr.msk.bf16.mxu0 %vm17473_vm10, %v21946_v53 }
0x1fdf   :  { %15991 = vmatprep.subr.bf16.mxu0 %v21946_v53 }
0x1fe2   :  { %15992 = vmatpush3.bf16.msra.mxu0 %v21583_v16 }
0x20b0   :  { %v13466_v10 = vpop.f32.mrb[100].mxu0 }
0x20b1   :  { %v13467_v56 = vadd.f32 %v21618_v42, %v13466_v10  ;;  %v15979_v13 = vpop.f32.mrb[101].mxu0 }
0x20b2   :  { %v13469_v27 = vpop.f32.mrb[102].mxu0 }
0x20b3   :  { %13490 = vrot.lane.b32.xlu0 %v13467_v56, %s17476_s2  ;;  %13473 = vrot.lane.b32.xlu1 %v13467_v56, %s17475_s14  ;;  %v15980_v23 = vpop.f32.mrb[103].mxu0 }
0x2125   :  { %v13474_v32 = vpop.permute.xlu1 %13473  ;;  %v13491_v16 = vpop.permute.xlu0 %13490 }
0x2126   :  { %v13476_v21 = vadd.f32 %v13474_v32, %v21614_v44  ;;  %v13483_v44 = vadd.f32 %v13474_v32, %v21612_v1 }
0x2128   :  { %v14555_v57 = vmul.f32 -1.442695, %v13476_v21  ;;  %v14556_v20 = vmul.f32 -1.442695, %v13483_v44 }
0x212a   :  { %17124 = vpow2.f32 %v14555_v57  ;;  %v16896_v57 = vld [vmem:[%s21765_s19] sm:$0xff]  }
0x2134   :  { %v17125_v12 = vpop.eup %17124 }
0x2135   :  { %v13480_v54 = vadd.f32 1.0, %v17125_v12  ;;  %v16897_v12 = vld [vmem:[%s21765_s19 + $0x8] sm:$0xff]  }
0x2137   :  { %17126 = vrcp.f32 %v13480_v54 }
0x2141   :  { %v17127_v49 = vpop.eup %17126 }
0x2142   :  { %v13493_v28 = vmul.f32 %v17127_v49, %v13491_v16 }
0x2144   :  { %13495 = vrot.lane.b32.xlu1 %v13493_v28, %s17451_s4 }
0x2148   :  { %13507 = vrot.lane.b32.xlu1 %v13424_v15, %s17475_s14 }
0x21b6   :  { %v13496_v17 = vpop.permute.xlu1 %13495 }
0x21b7   :  { %v13498_v58 = vadd.f32 %v13496_v17, %v21612_v1 }
0x21b9   :  { %17128 = vtanh.f32 %v13498_v58 }
0x21ba   :  { %17130 = vpow2.f32 %v14556_v20  ;;  %v13508_v7 = vpop.permute.xlu1 %13507  ;;  %v14561_v20 = vld [vmem:[#allocation22] ss:$0 sm:$0xff] }
0x21c3   :  { %v17129_v46 = vpop.eup %17128 }
0x21c4   :  { %13502 = vrot.lane.b32.xlu0 %v17129_v46, %s17475_s14  ;;  %v17131_v34 = vpop.eup %17130 }
0x21c5   :  { %v13487_v36 = vadd.f32 1.0, %v17131_v34 }
0x21c7   :  { %17132 = vrcp.f32 %v13487_v36 }
0x21d1   :  { %v17133_v40 = vpop.eup %17132 }
0x21d2   :  { %v13500_v29 = vsub.f32 1.0, %v17133_v40  ;;  %v13510_v18 = vmul.f32 %v17133_v40, %v13508_v7  ;;  %v17477_v7 = vmov 1966171168  }
0x2236   :  { %v13503_v5 = vpop.permute.xlu0 %13502 }
0x2237   :  { %v13505_v62 = vmul.f32 %v13503_v5, %v13500_v29  ;;  %v13741_v29 = vunpack.c.l.s4 %v17477_v7 }
0x2239   :  { %v13511_v8 = vadd.f32 %v13510_v18, %v13505_v62  ;;  %v13742_v18 = vunpack.c.0.s8 %v13741_v29 }
0x223b   :  { %v13512_v59 = vpack.c.bf16 %v13511_v8, %v13511_v8  ;;  %v13745_v62 = vsub.s32 %v13742_v18, %v20686_v38 }
0x223d   :  { %15986 = vmatmul.mubr.msk.bf16.vlgmr.msra.gmra.mrb[96].mxu1 %vm1695_vm2, %v13512_v59 }
0x223e   :  { %16001 = vmatprep.mubr.msk.bf16.mxu1 %vm17473_vm10, %v21946_v53  ;;  %15998 = vmatpush3.bf16.msra.mxu1 %v16896_v57 }
0x223f   :  { %15999 = vmatprep.subr.bf16.mxu1 %v21946_v53 }
0x2242   :  { %16000 = vmatpush3.bf16.msra.mxu1 %v16897_v12 }
0x2310   :  { %v13550_v37 = vpop.f32.mrb[96].mxu1 }
0x2311   :  { %v13551_v50 = vadd.f32 %v21618_v42, %v13550_v37  ;;  %v15987_v33 = vpop.f32.mrb[97].mxu1 }
0x2312   :  { %v13553_v22 = vpop.f32.mrb[98].mxu1  ;;  %v13737_v33 = vld [vmem:[%s21767_s21] sm:$0x3f] }
0x2313   :  { %13557 = vrot.lane.b32.xlu0 %v13551_v50, %s17451_s4  ;;  %v15988_v55 = vpop.f32.mrb[99].mxu1 }
0x2385   :  { %v13558_v30 = vpop.permute.xlu0 %13557 }
0x2386   :  { %v13560_v3 = vadd.f32 %v13558_v30, %v21612_v1  ;;  %v13738_v30 = vld [vmem:[%s21767_s21 + $0x8] sm:$0x3f] }
0x2388   :  { %v14558_v9 = vmul.f32 -1.442695, %v13560_v3 }
0x238a   :  { %17134 = vpow2.f32 %v14558_v9 }
0x2394   :  { %v17135_v26 = vpop.eup %17134 }
0x2395   :  { %v13564_v45 = vadd.f32 1.0, %v17135_v26 }
0x2397   :  { %17136 = vrcp.f32 %v13564_v45 }
0x23a1   :  { %v17137_v61 = vpop.eup %17136 }
0x23a2   :  { %v13567_v25 = vmul.f32 %v17137_v61, %v13551_v50  ;;  %v13574_v1 = vsub.f32 1.0, %v17137_v61 }
0x23a4   :  { %13569 = vrot.lane.b32.xlu1 %v13567_v25, %s17451_s4 }
0x23a8   :  { %13581 = vrot.lane.b32.xlu1 %v13511_v8, %s17475_s14 }
0x2416   :  { %v13570_v6 = vpop.permute.xlu1 %13569 }
0x2417   :  { %v13572_v63 = vadd.f32 %v13570_v6, %v21616_v4 }
0x2419   :  { %17138 = vtanh.f32 %v13572_v63  ;;  %v13788_v63 = vand.u32 127, %v7027_v14 }
0x241a   :  { %v13582_v24 = vpop.permute.xlu1 %13581 }
0x241b   :  { %v13584_v60 = vmul.f32 %v17137_v61, %v13582_v24 }
0x2423   :  { %v17139_v39 = vpop.eup %17138 }
0x2424   :  { %13576 = vrot.lane.b32.xlu0 %v17139_v39, %s17475_s14  ;;  %v13789_v39 = vadd.s32 4294967288, %v13788_v63 }
0x2496   :  { %v13577_v35 = vpop.permute.xlu0 %13576 }
0x2497   :  { %v13579_v51 = vmul.f32 %v13577_v35, %v13574_v1  ;;  %v13792_v1 = vsub.s32 %v13789_v39, %v20686_v38 }
0x2499   :  { %v13585_v41 = vadd.f32 %v13584_v60, %v13579_v51 }
0x249b   :  { %v13586_v52 = vpack.c.bf16 %v13585_v41, %v13585_v41 }
0x249d   :  { %13588 = vrot.lane.b32.xlu0 %v13586_v52, %s17476_s2 }
0x250f   :  { %v13589_v11 = vpop.permute.xlu0 %13588 }
0x2510   :  { %15994 = vmatmul.mubr.msk.bf16.vlgmr.msra.gmra.mrb[104].mxu0 %vm1695_vm2, %v13589_v11 }
0x25e3   :  { %v13627_v31 = vpop.f32.mrb[104].mxu0 }
0x25e4   :  { %v13628_v2 = vadd.f32 %v21618_v42, %v13627_v31  ;;  %v15995_v43 = vpop.f32.mrb[105].mxu0 }
0x25e5   :  { %v13630_v19 = vpop.f32.mrb[106].mxu0 }
0x25e6   :  { %13644 = vrot.lane.b32.xlu0 %v13628_v2, %s17475_s14  ;;  %13634 = vrot.lane.b32.xlu1 %v13628_v2, %s17476_s2  ;;  %v15996_v15 = vpop.f32.mrb[107].mxu0 }
0x2658   :  { %v13635_v0 = vpop.permute.xlu1 %13634  ;;  %v13645_v23 = vpop.permute.xlu0 %13644 }
0x2659   :  { %v13637_v47 = vadd.f32 %v13635_v0, %v21616_v4 }
0x265b   :  { %v14560_v10 = vmul.f32 -1.442695, %v13637_v47 }
0x265d   :  { %17140 = vpow2.f32 %v14560_v10 }
0x2667   :  { %v17141_v56 = vpop.eup %17140 }
0x2668   :  { %v13641_v13 = vadd.f32 1.0, %v17141_v56 }
0x266a   :  { %17142 = vrcp.f32 %v13641_v13 }
0x2674   :  { %v17143_v27 = vpop.eup %17142 }
0x2675   :  { %v13647_v32 = vmul.f32 %v17143_v27, %v13645_v23  ;;  %v13654_v16 = vsub.f32 1.0, %v17143_v27 }
0x2677   :  { %13649 = vrot.lane.b32.xlu1 %v13647_v32, %s17451_s4 }
0x267b   :  { %13661 = vrot.lane.b32.xlu1 %v13585_v41, %s17475_s14 }
0x26e9   :  { %v13650_v42 = vpop.permute.xlu1 %13649 }
0x26ea   :  { %v13652_v21 = vadd.f32 %v13650_v42, %v21616_v4 }
0x26ec   :  { %17144 = vtanh.f32 %v13652_v21 }
0x26ed   :  { %v13662_v49 = vpop.permute.xlu1 %13661 }
0x26ee   :  { %v13664_v4 = vmul.f32 %v17143_v27, %v13662_v49 }
0x26f6   :  { %v17145_v54 = vpop.eup %17144 }
0x26f7   :  { %13656 = vrot.lane.b32.xlu0 %v17145_v54, %s17475_s14 }
0x2769   :  { %v13657_v28 = vpop.permute.xlu0 %13656 }
0x276a   :  { %v13659_v17 = vmul.f32 %v13657_v28, %v13654_v16 }
0x276c   :  { %v13665_v58 = vadd.f32 %v13664_v4, %v13659_v17 }
0x276e   :  { %v13666_v46 = vpack.c.bf16 %v13665_v58, %v13665_v58 }
0x2770   :  { %13679 = vrot.lane.b32.xlu0 %v13666_v46, %s17451_s4 }
0x27e2   :  { %v13680_v44 = vpop.permute.xlu0 %13679 }
0x27e3   :  { %16002 = vmatmul.mubr.msk.bf16.vlgmr.msra.gmra.mrb[100].mxu1 %vm1695_vm2, %v13680_v44  ;;  %vm13776_vm2 = vcmask 62464  }
0x28b6   :  { %v13730_v34 = vpop.f32.mrb[100].mxu1 }
0x28b7   :  { %v13731_v36 = vadd.f32 %v14561_v20, %v13730_v34  ;;  %v16003_v53 = vpop.f32.mrb[101].mxu1 }
0x28b8   :  { %v13733_v40 = vpop.f32.mrb[102].mxu1 }
0x28b9   :  { %17146 = vtanh.f32 %v13731_v36  ;;  %v16004_v5 = vpop.f32.mrb[103].mxu1 }
0x28c3   :  { %v17147_v8 = vpop.eup %17146 }
0x28c4   :  { %v13746_v59 = vrot.slane %v17147_v8, %v13745_v62 }
0x28c6   :  { %v13754_v37 = vrot.slane %v13746_v59, %v13745_v62  ;;  %v13747_v50 = vcombine.high %v13746_v59, %v13746_v59 }
0x28c8   :  { %v13765_v22 = vrot.slane %v13754_v37, %v20697_v48  ;;  %v13761_v55 = vrot.slane %v13747_v50, %v13745_v62 }
0x28ca   :  { %v13772_v3 = vsub.f32 %v13737_v33, %v13765_v22  ;;  %v13769_v9 = vrot.slane %v13761_v55, %v20697_v48 }
0x28cc   :  { %v13774_v26 = vmul.f32 %v13772_v3, %v13772_v3  ;;  %v13773_v45 = vsub.f32 %v13738_v30, %v13769_v9 }
0x28ce   :  { %v13777_v61 = vsel %vm13776_vm2, %v13774_v26, 0.0  ;;  %v13775_v25 = vmul.f32 %v13773_v45, %v13773_v45 }
0x28cf   :  { %13778 = vadd.xlane.f32.xlu1 %v13777_v61 }
0x28d0   :  { %v13780_v6 = vsel %vm13776_vm2, %v13775_v25, 0.0 }
0x28d1   :  { %13781 = vadd.xlane.f32.xlu0 %v13780_v6 }
0x295c   :  { %v13779_v24 = vpop.xlane.xlu1 %13778 }
0x295d   :  { %v13783_v35 = vsub.f32 0.0, %v13779_v24 }
0x295e   :  { %v13782_v60 = vpop.xlane.xlu0 %13781 }
0x295f   :  { %v13784_v51 = vsub.f32 0.0, %v13782_v60  ;;  %v13793_v41 = vrot.slane %v13783_v35, %v13792_v1 }
0x2961   :  { %v13797_v48 = vrot.slane %v13784_v51, %v13792_v1 }
0x2963   :  { %v13798_v52 = vsel %vm7990_vm4, %v13797_v48, %v13793_v41 }
0x2964   :  { %v13801_v11 = vsel %vm13800_vm1, %v17147_v8, %v13798_v52 }
0x2965   :  { %v13803_v31 = vsel %vm13802_vm7, %v13801_v11, 0.0 }
0x2966   :  { %13805 = vst.msk [vmem:[%s21947_s1] sm:$0x3] %vm13804_vm5, %v13803_v31 }
0x2967   :  { %13810 = vsyncpa [#allocation4], 1 }
0x2968   :  { %13811 = vsyncpa [#allocation6], 1 }
0x2969   :  { %13812 = vsyncpa [#allocation9], 1 }
0x296a   :  { %13813 = vsyncpa [#allocation12], 1 }
0x296b   :  { %13814 = vsyncpa [#allocation15], 1 }
0x296c   :  { %13815 = vsyncpa [#allocation18], 1 }
0x296d   :  { %13816 = vsyncpa [#allocation21], 1 }

</bundles_post_ra>
